<compile_context>
chip_gen: v7x
topology: tpu7x:2x2x1
jax: 0.10.0
libtpu: 0.0.40
codegen_flags: <defaults>
</compile_context>

<pallas_src>
import functools
import math

import jax
import jax.numpy as jnp
from jax import lax
from jax.experimental import pallas as pl
from jax.experimental.pallas import tpu as pltpu  # noqa: F401  (kept for completeness)

F32 = jnp.float32


# ---------------------------------------------------------------------------
# small helpers used inside the kernel
# ---------------------------------------------------------------------------
def _nt(a, b):
    """a [m,k] x b [n,k] -> a @ b^T (MXU 'NT' form; with an identity lhs this is
    a guaranteed-supported tiny transpose)."""
    return lax.dot_general(a, b, (((1,), (1,)), ((), ())), preferred_element_type=F32)


def _stock_branch(xrows, mull_bd, refs, *, has_back):
    """One StockBlockLayer on batch-row-stacked activations xrows: [B*S, S]."""
    if has_back:
        (w0, b0, w1, b1, w2, b2, winv, fw, fb, frw, frb, bw, bscnw, bbk) = refs
    else:
        (w0, b0, w1, b1, w2, b2, winv, fw, fb, frw, frb) = refs
    C = w1.shape[0] // 2            # GLU hidden width (= 4 * time_step * multi = 128)
    KW = 4 * C                      # per-Chebyshev-order block width in Y

    # GLU-0 (forward DFT folded into w0):  Y = X @ W0 ; acc = b0 + sum_k BD(L_k) @ Y_k
    y = jnp.dot(xrows, w0[...], preferred_element_type=F32)                   # [B*S, 3*KW]
    acc = b0[...]                                                             # [1, KW] -> broadcast
    for k in range(len(mull_bd)):
        acc = acc + jnp.dot(mull_bd[k], y[:, k * KW:(k + 1) * KW],
                            preferred_element_type=F32)

    def glu_pair(v):                # [R, 4C] = [re_l | re_r | im_l | im_r] -> [R, 2C]
        return jnp.concatenate(
            [v[:, :C] * jax.nn.sigmoid(v[:, C:2 * C]),
             v[:, 2 * C:3 * C] * jax.nn.sigmoid(v[:, 3 * C:])], axis=1)

    g = glu_pair(acc)
    g = glu_pair(jnp.dot(g, w1[...], preferred_element_type=F32) + b1[...])    # block-diag re/im
    g = glu_pair(jnp.dot(g, w2[...], preferred_element_type=F32) + b2[...])

    # inverse DFT + per-order graph-conv weight + 1/mT (and the imag sign) folded into winv
    ig = jnp.dot(g, winv[...], preferred_element_type=F32)                     # [B*S, mT]

    fsrc = jax.nn.sigmoid(jnp.dot(ig, fw[...], preferred_element_type=F32) + fb[...])
    fcast = jnp.dot(fsrc, frw[...], preferred_element_type=F32) + frb[...]      # [B*S, T]
    if has_back:
        back = jax.nn.sigmoid(jnp.dot(ig, bw[...], preferred_element_type=F32)
                              + jnp.dot(xrows, bscnw[...], preferred_element_type=F32)
                              + bbk[...])                                       # bscnw = -bsc_w
        return fcast, back
    return fcast, None


# ---------------------------------------------------------------------------
# the single fused kernel
# ---------------------------------------------------------------------------
def _model_kernel(*refs, B, T, N, H, alpha, n_s0, n_s1):
    x_ref, wih_ref, whh_ref, bih_ref, bhh_ref, wkq_ref = refs[:6]
    p = 6
    s0 = refs[p:p + n_s0]; p += n_s0
    s1 = refs[p:p + n_s1]; p += n_s1
    fcw1T_ref, fcb1c_ref, fcw2T_ref, fcb2c_ref = refs[p:p + 4]; p += 4
    out_ref, att_ref = refs[p], refs[p + 1]

    # identity (used for the Laplacian and as the lhs of matmul-based tiny transposes)
    rows = lax.broadcasted_iota(jnp.int32, (N, N), 0)
    cols = lax.broadcasted_iota(jnp.int32, (N, N), 1)
    eye = (rows == cols).astype(F32)

    # ---- layout: x [B, N, T] -> batch-row-stacked [B*T, N], shared by GRU & blocks
    xrows = jnp.concatenate([_nt(eye, x_ref[b]) for b in range(B)], axis=0)   # [B*T, N]

    # ---- GRU (input projection hoisted out of the recurrence)
    whh = whh_ref[...]
    bhh = bhh_ref[...]
    gi_rows = jnp.dot(xrows, wih_ref[...], preferred_element_type=F32) + bih_ref[...]
    h = jnp.zeros((B, H), F32)
    hs = []
    for t in range(T):
        gi = jnp.concatenate(
            [gi_rows[b * T + t:b * T + t + 1, :] for b in range(B)], axis=0)  # [B, 3H]
        gh = jnp.dot(h, whh, preferred_element_type=F32) + bhh
        r = jax.nn.sigmoid(gi[:, :H] + gh[:, :H])
        z = jax.nn.sigmoid(gi[:, H:2 * H] + gh[:, H:2 * H])
        n = jnp.tanh(gi[:, 2 * H:] + r * gh[:, 2 * H:])
        h = (1.0 - z) * n + z * h
        hs.append(h)

    # key/query = time-weighted sums of GRU states (one matmul, kron-expanded weight)
    hcat = jnp.concatenate(hs, axis=1)                                        # [B, T*H]
    kq = jnp.dot(hcat, wkq_ref[...], preferred_element_type=F32)              # [B, 2H]
    key = kq[:, :H]
    query = kq[:, H:]
    keyT = _nt(eye, key)                                                      # [H, B]

    # ---- graph attention -> batch mean -> Laplacian -> Chebyshev (orders 1..3)
    att_sum = jnp.zeros((N, N), F32)
    for b in range(B):
        d = keyT[:, b:b + 1] + query[b:b + 1, :]                              # [N, N]
        d = jnp.where(d >= 0.0, d, alpha * d)                                 # LeakyReLU(alpha)
        e = jnp.exp(d - jnp.max(d, axis=1, keepdims=True))                    # softmax over lanes
        att_sum = att_sum + e / jnp.sum(e, axis=1, keepdims=True)
    # TODO(synk): attention dropout (p=0.5) omitted (eval-mode identity).
    att_m = att_sum * (1.0 / B)
    att_mT = _nt(eye, att_m)
    att_sym = 0.5 * (att_m + att_mT)
    deg_col = jnp.sum(att_m, axis=1, keepdims=True)                           # [N, 1]
    deg_row = jnp.sum(att_mT, axis=0, keepdims=True)                          # [1, N]
    dh_col = 1.0 / (jnp.sqrt(deg_col) + 1e-7)
    dh_row = 1.0 / (jnp.sqrt(deg_row) + 1e-7)
    lap = dh_col * (deg_col * eye - att_sym) * dh_row                         # D^-1/2 (D - A) D^-1/2
    third = 2.0 * jnp.dot(lap, lap, preferred_element_type=F32)               # 2 L L - 0
    forth = 2.0 * jnp.dot(lap, third, preferred_element_type=F32) - lap
    att_ref[...] = att_sym

    # Chebyshev order 0 is the zero matrix -> skipped.  Block-diagonalize over the
    # batch so each order's graph contraction is a single matmul for all batches.
    def bdiag(m):
        z = jnp.zeros_like(m)
        return jnp.concatenate(
            [jnp.concatenate([m if c == r else z for c in range(B)], axis=1)
             for r in range(B)], axis=0)

    mull_bd = [bdiag(lap), bdiag(third), bdiag(forth)]                        # [B*N, B*N] each

    # ---- both StockBlock stacks (batch stacked along sublanes) + final fc head
    f0, back = _stock_branch(xrows, mull_bd, s0, has_back=True)
    f1, _ = _stock_branch(back, mull_bd, s1, has_back=False)
    f = f0 + f1                                                               # [B*N, T]
    fT = _nt(eye, f)                                                          # [T, B*N]
    hh = jnp.dot(fcw1T_ref[...], fT, preferred_element_type=F32) + fcb1c_ref[...]
    hh = jnp.where(hh >= 0.0, hh, 0.01 * hh)                                  # nn.LeakyReLU()
    om = jnp.dot(fcw2T_ref[...], hh, preferred_element_type=F32) + fcb2c_ref[...]  # [horizon, B*N]
    for b in range(B):
        out_ref[b] = om[:, b * N:(b + 1) * N]                                 # lane-dense store


# ---------------------------------------------------------------------------
# Model forward (single pallas_call, no wrapper-side array ops)
# ---------------------------------------------------------------------------
def model_forward(fp, x, *, alpha, time_step, multi, horizon):
    B, N, T = x.shape
    assert N == T, "StemGNN reference model requires units == time_step"
    args = ([x, fp["gru"]["wih"], fp["gru"]["whh"], fp["gru"]["bih"], fp["gru"]["bhh"],
             fp["wkq"]] + list(fp["stack0"]) + list(fp["stack1"]) + list(fp["head"]))
    kern = functools.partial(_model_kernel, B=B, T=T, N=N, H=N, alpha=alpha,
                             n_s0=len(fp["stack0"]), n_s1=len(fp["stack1"]))
    forecast, attention = pl.pallas_call(
        kern,
        out_shape=(jax.ShapeDtypeStruct((B, horizon, N), F32),
                   jax.ShapeDtypeStruct((N, N), F32)),
    )(*args)
    # horizon == 1 -> [B, 1, N]; horizon > 1 -> [B, horizon, N] (already reference layout)
    return forecast, attention


# ---------------------------------------------------------------------------
# Parameter init (PyTorch-like layout) and one-time fusion into kernel layout
# ---------------------------------------------------------------------------
def dft_mats(L):
    n = jnp.arange(L, dtype=F32)
    ang = (2.0 * math.pi / L) * jnp.outer(n, n)
    return jnp.cos(ang), jnp.sin(ang)


def init_params(key, T, N, multi, stack_cnt, horizon):
    mT = T * multi
    kit = iter(jax.random.split(key, 256))

    def nxt():
        return next(kit)

    def lin(in_f, out_f):
        lim = 1.0 / math.sqrt(in_f)
        w = jax.random.uniform(nxt(), (in_f, out_f), F32, -lim, lim)
        b = jax.random.uniform(nxt(), (1, out_f), F32, -lim, lim)
        return w, b

    def glu_p(in_f, out_f):
        wl, bl = lin(in_f, out_f)
        wr, br = lin(in_f, out_f)
        return {"wl": wl, "bl": bl, "wr": wr, "br": br}

    # GRU(input_size=T, hidden_size=N); packed gate order r|z|n, separate b_ih/b_hh.
    lim = 1.0 / math.sqrt(N)

    def gw(shape):
        return jax.random.uniform(nxt(), shape, F32, -lim, lim)

    gru_p = {"wih": gw((T, 3 * N)), "whh": gw((N, 3 * N)),
             "bih": gw((1, 3 * N)), "bhh": gw((1, 3 * N))}

    xav = 1.414 * math.sqrt(2.0 / (N + 1))
    wkey = jax.random.normal(nxt(), (N, 1), F32) * xav
    wquery = jax.random.normal(nxt(), (N, 1), F32) * xav

    blocks = []
    for i in range(stack_cnt):
        oc = 4 * multi
        glus = []
        for j in range(3):
            in_f = T * 4 if j == 0 else T * oc
            out_f = T * oc
            glus.append(glu_p(in_f, out_f))     # real branch
            glus.append(glu_p(in_f, out_f))     # imaginary branch
        w5d = jax.random.normal(nxt(), (4, mT, mT), F32) * math.sqrt(1.0 / mT)
        fore_w, fore_b = lin(mT, mT)
        fres_w, fres_b = lin(mT, T)
        bsc_w, bsc_b = lin(T, T)
        bp = {"glus": glus, "weight": w5d,
              "fore_w": fore_w, "fore_b": fore_b,
              "fres_w": fres_w, "fres_b": fres_b,
              "bsc_w": bsc_w, "bsc_b": bsc_b}
        if i == 0:
            bp["back_w"], bp["back_b"] = lin(mT, T)
        blocks.append(bp)

    fc_w1, fc_b1 = lin(T, T)
    fc_w2, fc_b2 = lin(T, horizon)
    return {"gru": gru_p, "wkey": wkey, "wquery": wquery, "blocks": blocks,
            "fc_w1": fc_w1, "fc_b1": fc_b1, "fc_w2": fc_w2, "fc_b2": fc_b2}


def fuse_params(p, *, time_step, multi):
    """One-time (outside jit) repacking of parameters into the fused-kernel layout."""
    T = time_step
    mT = T * multi
    N = p["wkey"].shape[0]
    cfwd, sfwd = dft_mats(T)     # forward DFT (length T == N)
    cinv, sinv = dft_mats(mT)    # inverse DFT (length T * multi)

    def bdiag2(a, b):
        za = jnp.zeros((a.shape[0], b.shape[1]), F32)
        zb = jnp.zeros((b.shape[0], a.shape[1]), F32)
        return jnp.concatenate([jnp.concatenate([a, za], axis=1),
                                jnp.concatenate([zb, b], axis=1)], axis=0)

    def fuse_block(bp, has_back):
        def cat(g):
            return (jnp.concatenate([g["wl"], g["wr"]], axis=1),
                    jnp.concatenate([g["bl"], g["br"]], axis=1))

        w0re, b0re = cat(bp["glus"][0])
        w0im, b0im = cat(bp["glus"][1])
        w1re, b1re = cat(bp["glus"][2])
        w1im, b1im = cat(bp["glus"][3])
        w2re, b2re = cat(bp["glus"][4])
        w2im, b2im = cat(bp["glus"][5])
        two_c = w0re.shape[1]
        # Fold the forward DFT into GLU-0 weights (Chebyshev orders 1..3; order-0 input
        # is the zero matrix).  The imaginary branch's minus sign is folded in too.
        w0re_k = w0re.reshape(4, T, two_c)[1:]
        w0im_k = w0im.reshape(4, T, two_c)[1:]
        cw = jnp.einsum("st,ktc->ksc", cfwd, w0re_k)            # [3, T, 2C]
        sw = -jnp.einsum("st,ktc->ksc", sfwd, w0im_k)           # [3, T, 2C]  (negated)
        W0 = jnp.concatenate(
            [jnp.concatenate([cw[k], sw[k]], axis=1) for k in range(3)], axis=1)  # [T, 3*4C]
        b0 = jnp.concatenate([b0re, b0im], axis=1)
        # Block-diagonal GLU-1/2 weights so real & imaginary branches run in one matmul.
        W1 = bdiag2(w1re, w1im)
        b1 = jnp.concatenate([b1re, b1im], axis=1)
        W2 = bdiag2(w2re, w2im)
        b2 = jnp.concatenate([b2re, b2im], axis=1)
        # Fold inverse DFT + per-order graph-conv weight + 1/mT + imag sign into Winv.
        cfold = jnp.matmul(cinv[None], bp["weight"]).reshape(4 * mT, mT) * (1.0 / mT)
        sfold = jnp.matmul(sinv[None], bp["weight"]).reshape(4 * mT, mT) * (-1.0 / mT)
        Winv = jnp.concatenate([cfold, sfold], axis=0)           # [8*mT? -> 2*(4*mT), mT]
        refs = [W0, b0, W1, b1, W2, b2, Winv,
                bp["fore_w"], bp["fore_b"], bp["fres_w"], bp["fres_b"]]
        if has_back:
            refs += [bp["back_w"], -bp["bsc_w"], bp["back_b"] - bp["bsc_b"]]
        return refs

    # key/query weights kron-expanded so key = (concat_t h_t) @ wkq in one matmul.
    eye_h = jnp.eye(N, dtype=F32)
    wkq = jnp.concatenate([jnp.kron(p["wkey"], eye_h),
                           jnp.kron(p["wquery"], eye_h)], axis=1)   # [T*H, 2H]

    return {
        "gru": p["gru"],
        "wkq": wkq,
        "stack0": fuse_block(p["blocks"][0], True),
        "stack1": fuse_block(p["blocks"][1], False),
        "head": [jnp.transpose(p["fc_w1"]), jnp.transpose(p["fc_b1"]),
                 jnp.transpose(p["fc_w2"]), jnp.transpose(p["fc_b2"])],
    }


# ---------------------------------------------------------------------------
if __name__ == "__main__":
    B = 2
    N = 16          # units (== time_step, required by the reference model)
    T = 16          # time_step
    multi = 2
    stack_cnt = 2
    horizon = 1
    alpha = 0.2     # leaky_rate

    key = jax.random.PRNGKey(0)
    pkey, xkey = jax.random.split(key)
    raw_params = init_params(pkey, T, N, multi, stack_cnt, horizon)
    fused_params = fuse_params(raw_params, time_step=T, multi=multi)
    x = jax.random.normal(xkey, (B, N, T), F32)

    fwd = jax.jit(functools.partial(model_forward, alpha=alpha, time_step=T,
                                    multi=multi, horizon=horizon))
    forecast, attention = fwd(fused_params, x)
    jax.block_until_ready((forecast, attention))

    assert forecast.shape == (B, 1, N), forecast.shape
    assert attention.shape == (N, N), attention.shape
    assert bool(jnp.all(jnp.isfinite(forecast)))
    assert bool(jnp.all(jnp.isfinite(attention)))
    print("KERNEL_OK")
</pallas_src>

<mosaic_0001>
module attributes {stable_mosaic.version = 11 : i64} {
  func.func @_model_kernel(%arg0: memref<2x16x16xf32, #tpu.memory_space<vmem>>, %arg1: memref<16x48xf32, #tpu.memory_space<vmem>>, %arg2: memref<16x48xf32, #tpu.memory_space<vmem>>, %arg3: memref<1x48xf32, #tpu.memory_space<vmem>>, %arg4: memref<1x48xf32, #tpu.memory_space<vmem>>, %arg5: memref<256x32xf32, #tpu.memory_space<vmem>>, %arg6: memref<16x1536xf32, #tpu.memory_space<vmem>>, %arg7: memref<1x512xf32, #tpu.memory_space<vmem>>, %arg8: memref<256x512xf32, #tpu.memory_space<vmem>>, %arg9: memref<1x512xf32, #tpu.memory_space<vmem>>, %arg10: memref<256x512xf32, #tpu.memory_space<vmem>>, %arg11: memref<1x512xf32, #tpu.memory_space<vmem>>, %arg12: memref<256x32xf32, #tpu.memory_space<vmem>>, %arg13: memref<32x32xf32, #tpu.memory_space<vmem>>, %arg14: memref<1x32xf32, #tpu.memory_space<vmem>>, %arg15: memref<32x16xf32, #tpu.memory_space<vmem>>, %arg16: memref<1x16xf32, #tpu.memory_space<vmem>>, %arg17: memref<32x16xf32, #tpu.memory_space<vmem>>, %arg18: memref<16x16xf32, #tpu.memory_space<vmem>>, %arg19: memref<1x16xf32, #tpu.memory_space<vmem>>, %arg20: memref<16x1536xf32, #tpu.memory_space<vmem>>, %arg21: memref<1x512xf32, #tpu.memory_space<vmem>>, %arg22: memref<256x512xf32, #tpu.memory_space<vmem>>, %arg23: memref<1x512xf32, #tpu.memory_space<vmem>>, %arg24: memref<256x512xf32, #tpu.memory_space<vmem>>, %arg25: memref<1x512xf32, #tpu.memory_space<vmem>>, %arg26: memref<256x32xf32, #tpu.memory_space<vmem>>, %arg27: memref<32x32xf32, #tpu.memory_space<vmem>>, %arg28: memref<1x32xf32, #tpu.memory_space<vmem>>, %arg29: memref<32x16xf32, #tpu.memory_space<vmem>>, %arg30: memref<1x16xf32, #tpu.memory_space<vmem>>, %arg31: memref<16x16xf32, #tpu.memory_space<vmem>>, %arg32: memref<16x1xf32, #tpu.memory_space<vmem>>, %arg33: memref<1x16xf32, #tpu.memory_space<vmem>>, %arg34: memref<1x1xf32, #tpu.memory_space<vmem>>, %arg35: memref<2x1x16xf32, #tpu.memory_space<vmem>>, %arg36: memref<16x16xf32, #tpu.memory_space<vmem>>) attributes {dimension_semantics = [], scalar_prefetch = 0 : i64, scratch_operands = 0 : i64, tpu.core_type = #tpu.core_type<tc>} {
    %0 = tpu.iota {dimensions = array<i32: 0>} : vector<16x16xi32>
    %1 = tpu.iota {dimensions = array<i32: 1>} : vector<16x16xi32>
    %2 = arith.cmpi eq, %0, %1 : vector<16x16xi32>
    %3 = arith.extui %2 : vector<16x16xi1> to vector<16x16xi32>
    %4 = arith.sitofp %3 : vector<16x16xi32> to vector<16x16xf32>
    %c0 = arith.constant 0 : index
    %c0_0 = arith.constant 0 : index
    %c0_1 = arith.constant 0 : index
    %5 = vector.load %arg0[%c0, %c0_0, %c0_1] : memref<2x16x16xf32, #tpu.memory_space<vmem>>, vector<1x16x16xf32>
    %6 = vector.shape_cast %5 : vector<1x16x16xf32> to vector<16x16xf32>
    %cst = arith.constant dense<0.000000e+00> : vector<16x16xf32>
    %7 = tpu.matmul %4, %6, %cst {dimension_numbers = #tpu.dot_dimension_numbers<[1], [1], [0], [0], [0, 0, 1, 0], [], []>} : vector<16x16xf32>, vector<16x16xf32>, vector<16x16xf32> -> vector<16x16xf32>
    %c1 = arith.constant 1 : index
    %c0_2 = arith.constant 0 : index
    %c0_3 = arith.constant 0 : index
    %8 = vector.load %arg0[%c1, %c0_2, %c0_3] : memref<2x16x16xf32, #tpu.memory_space<vmem>>, vector<1x16x16xf32>
    %9 = vector.shape_cast %8 : vector<1x16x16xf32> to vector<16x16xf32>
    %cst_4 = arith.constant dense<0.000000e+00> : vector<16x16xf32>
    %10 = tpu.matmul %4, %9, %cst_4 {dimension_numbers = #tpu.dot_dimension_numbers<[1], [1], [0], [0], [0, 0, 1, 0], [], []>} : vector<16x16xf32>, vector<16x16xf32>, vector<16x16xf32> -> vector<16x16xf32>
    %11 = tpu.concatenate %7, %10 in 0 : vector<16x16xf32>, vector<16x16xf32> -> vector<32x16xf32>
    %c0_5 = arith.constant 0 : index
    %c0_6 = arith.constant 0 : index
    %12 = vector.load %arg2[%c0_5, %c0_6] : memref<16x48xf32, #tpu.memory_space<vmem>>, vector<16x48xf32>
    %c0_7 = arith.constant 0 : index
    %c0_8 = arith.constant 0 : index
    %13 = vector.load %arg4[%c0_7, %c0_8] : memref<1x48xf32, #tpu.memory_space<vmem>>, vector<1x48xf32>
    %c0_9 = arith.constant 0 : index
    %c0_10 = arith.constant 0 : index
    %14 = vector.load %arg1[%c0_9, %c0_10] : memref<16x48xf32, #tpu.memory_space<vmem>>, vector<16x48xf32>
    %cst_11 = arith.constant dense<0.000000e+00> : vector<32x48xf32>
    %15 = tpu.matmul %11, %14, %cst_11 {dimension_numbers = #tpu.dot_dimension_numbers<[1], [0], [0], [1], [0, 0, 1, 1], [], []>} : vector<32x16xf32>, vector<16x48xf32>, vector<32x48xf32> -> vector<32x48xf32>
    %c0_12 = arith.constant 0 : index
    %c0_13 = arith.constant 0 : index
    %16 = vector.load %arg3[%c0_12, %c0_13] : memref<1x48xf32, #tpu.memory_space<vmem>>, vector<1x48xf32>
    %17 = vector.broadcast %16 : vector<1x48xf32> to vector<32x48xf32>
    %18 = arith.addf %15, %17 : vector<32x48xf32>
    %cst_14 = arith.constant 0.000000e+00 : f32
    %19 = vector.broadcast %cst_14 : f32 to vector<2x16xf32>
    %20 = vector.extract_strided_slice %18 {offsets = [0, 0], sizes = [1, 48], strides = [1, 1]} : vector<32x48xf32> to vector<1x48xf32>
    %21 = vector.extract_strided_slice %18 {offsets = [16, 0], sizes = [1, 48], strides = [1, 1]} : vector<32x48xf32> to vector<1x48xf32>
    %22 = tpu.concatenate %20, %21 in 0 : vector<1x48xf32>, vector<1x48xf32> -> vector<2x48xf32>
    %cst_15 = arith.constant dense<0.000000e+00> : vector<2x48xf32>
    %23 = tpu.matmul %19, %12, %cst_15 {dimension_numbers = #tpu.dot_dimension_numbers<[1], [0], [0], [1], [0, 0, 1, 1], [], []>} : vector<2x16xf32>, vector<16x48xf32>, vector<2x48xf32> -> vector<2x48xf32>
    %24 = vector.broadcast %13 : vector<1x48xf32> to vector<2x48xf32>
    %25 = arith.addf %23, %24 : vector<2x48xf32>
    %26 = vector.extract_strided_slice %22 {offsets = [0, 0], sizes = [2, 16], strides = [1, 1]} : vector<2x48xf32> to vector<2x16xf32>
    %27 = vector.extract_strided_slice %25 {offsets = [0, 0], sizes = [2, 16], strides = [1, 1]} : vector<2x48xf32> to vector<2x16xf32>
    %28 = arith.addf %26, %27 : vector<2x16xf32>
    %29 = arith.negf %28 : vector<2x16xf32>
    %30 = math.exp %29 : vector<2x16xf32>
    %cst_16 = arith.constant 1.000000e+00 : f32
    %31 = vector.broadcast %cst_16 : f32 to vector<2x16xf32>
    %32 = arith.addf %31, %30 : vector<2x16xf32>
    %33 = arith.divf %31, %32 : vector<2x16xf32>
    %34 = vector.extract_strided_slice %22 {offsets = [0, 16], sizes = [2, 16], strides = [1, 1]} : vector<2x48xf32> to vector<2x16xf32>
    %35 = vector.extract_strided_slice %25 {offsets = [0, 16], sizes = [2, 16], strides = [1, 1]} : vector<2x48xf32> to vector<2x16xf32>
    %36 = arith.addf %34, %35 : vector<2x16xf32>
    %37 = arith.negf %36 : vector<2x16xf32>
    %38 = math.exp %37 : vector<2x16xf32>
    %cst_17 = arith.constant 1.000000e+00 : f32
    %39 = vector.broadcast %cst_17 : f32 to vector<2x16xf32>
    %40 = arith.addf %39, %38 : vector<2x16xf32>
    %41 = arith.divf %39, %40 : vector<2x16xf32>
    %42 = vector.extract_strided_slice %22 {offsets = [0, 32], sizes = [2, 16], strides = [1, 1]} : vector<2x48xf32> to vector<2x16xf32>
    %43 = vector.extract_strided_slice %25 {offsets = [0, 32], sizes = [2, 16], strides = [1, 1]} : vector<2x48xf32> to vector<2x16xf32>
    %44 = arith.mulf %33, %43 : vector<2x16xf32>
    %45 = arith.addf %42, %44 : vector<2x16xf32>
    %46 = math.tanh %45 : vector<2x16xf32>
    %cst_18 = arith.constant 1.000000e+00 : f32
    %47 = vector.broadcast %cst_18 : f32 to vector<2x16xf32>
    %48 = arith.subf %47, %41 : vector<2x16xf32>
    %49 = arith.mulf %48, %46 : vector<2x16xf32>
    %50 = arith.mulf %41, %19 : vector<2x16xf32>
    %51 = arith.addf %49, %50 : vector<2x16xf32>
    %52 = vector.extract_strided_slice %18 {offsets = [1, 0], sizes = [1, 48], strides = [1, 1]} : vector<32x48xf32> to vector<1x48xf32>
    %53 = vector.extract_strided_slice %18 {offsets = [17, 0], sizes = [1, 48], strides = [1, 1]} : vector<32x48xf32> to vector<1x48xf32>
    %54 = tpu.concatenate %52, %53 in 0 : vector<1x48xf32>, vector<1x48xf32> -> vector<2x48xf32>
    %cst_19 = arith.constant dense<0.000000e+00> : vector<2x48xf32>
    %55 = tpu.matmul %51, %12, %cst_19 {dimension_numbers = #tpu.dot_dimension_numbers<[1], [0], [0], [1], [0, 0, 1, 1], [], []>} : vector<2x16xf32>, vector<16x48xf32>, vector<2x48xf32> -> vector<2x48xf32>
    %56 = vector.broadcast %13 : vector<1x48xf32> to vector<2x48xf32>
    %57 = arith.addf %55, %56 : vector<2x48xf32>
    %58 = vector.extract_strided_slice %54 {offsets = [0, 0], sizes = [2, 16], strides = [1, 1]} : vector<2x48xf32> to vector<2x16xf32>
    %59 = vector.extract_strided_slice %57 {offsets = [0, 0], sizes = [2, 16], strides = [1, 1]} : vector<2x48xf32> to vector<2x16xf32>
    %60 = arith.addf %58, %59 : vector<2x16xf32>
    %61 = arith.negf %60 : vector<2x16xf32>
    %62 = math.exp %61 : vector<2x16xf32>
    %cst_20 = arith.constant 1.000000e+00 : f32
    %63 = vector.broadcast %cst_20 : f32 to vector<2x16xf32>
    %64 = arith.addf %63, %62 : vector<2x16xf32>
    %65 = arith.divf %63, %64 : vector<2x16xf32>
    %66 = vector.extract_strided_slice %54 {offsets = [0, 16], sizes = [2, 16], strides = [1, 1]} : vector<2x48xf32> to vector<2x16xf32>
    %67 = vector.extract_strided_slice %57 {offsets = [0, 16], sizes = [2, 16], strides = [1, 1]} : vector<2x48xf32> to vector<2x16xf32>
    %68 = arith.addf %66, %67 : vector<2x16xf32>
    %69 = arith.negf %68 : vector<2x16xf32>
    %70 = math.exp %69 : vector<2x16xf32>
    %cst_21 = arith.constant 1.000000e+00 : f32
    %71 = vector.broadcast %cst_21 : f32 to vector<2x16xf32>
    %72 = arith.addf %71, %70 : vector<2x16xf32>
    %73 = arith.divf %71, %72 : vector<2x16xf32>
    %74 = vector.extract_strided_slice %54 {offsets = [0, 32], sizes = [2, 16], strides = [1, 1]} : vector<2x48xf32> to vector<2x16xf32>
    %75 = vector.extract_strided_slice %57 {offsets = [0, 32], sizes = [2, 16], strides = [1, 1]} : vector<2x48xf32> to vector<2x16xf32>
    %76 = arith.mulf %65, %75 : vector<2x16xf32>
    %77 = arith.addf %74, %76 : vector<2x16xf32>
    %78 = math.tanh %77 : vector<2x16xf32>
    %cst_22 = arith.constant 1.000000e+00 : f32
    %79 = vector.broadcast %cst_22 : f32 to vector<2x16xf32>
    %80 = arith.subf %79, %73 : vector<2x16xf32>
    %81 = arith.mulf %80, %78 : vector<2x16xf32>
    %82 = arith.mulf %73, %51 : vector<2x16xf32>
    %83 = arith.addf %81, %82 : vector<2x16xf32>
    %84 = vector.extract_strided_slice %18 {offsets = [2, 0], sizes = [1, 48], strides = [1, 1]} : vector<32x48xf32> to vector<1x48xf32>
    %85 = vector.extract_strided_slice %18 {offsets = [18, 0], sizes = [1, 48], strides = [1, 1]} : vector<32x48xf32> to vector<1x48xf32>
    %86 = tpu.concatenate %84, %85 in 0 : vector<1x48xf32>, vector<1x48xf32> -> vector<2x48xf32>
    %cst_23 = arith.constant dense<0.000000e+00> : vector<2x48xf32>
    %87 = tpu.matmul %83, %12, %cst_23 {dimension_numbers = #tpu.dot_dimension_numbers<[1], [0], [0], [1], [0, 0, 1, 1], [], []>} : vector<2x16xf32>, vector<16x48xf32>, vector<2x48xf32> -> vector<2x48xf32>
    %88 = vector.broadcast %13 : vector<1x48xf32> to vector<2x48xf32>
    %89 = arith.addf %87, %88 : vector<2x48xf32>
    %90 = vector.extract_strided_slice %86 {offsets = [0, 0], sizes = [2, 16], strides = [1, 1]} : vector<2x48xf32> to vector<2x16xf32>
    %91 = vector.extract_strided_slice %89 {offsets = [0, 0], sizes = [2, 16], strides = [1, 1]} : vector<2x48xf32> to vector<2x16xf32>
    %92 = arith.addf %90, %91 : vector<2x16xf32>
    %93 = arith.negf %92 : vector<2x16xf32>
    %94 = math.exp %93 : vector<2x16xf32>
    %cst_24 = arith.constant 1.000000e+00 : f32
    %95 = vector.broadcast %cst_24 : f32 to vector<2x16xf32>
    %96 = arith.addf %95, %94 : vector<2x16xf32>
    %97 = arith.divf %95, %96 : vector<2x16xf32>
    %98 = vector.extract_strided_slice %86 {offsets = [0, 16], sizes = [2, 16], strides = [1, 1]} : vector<2x48xf32> to vector<2x16xf32>
    %99 = vector.extract_strided_slice %89 {offsets = [0, 16], sizes = [2, 16], strides = [1, 1]} : vector<2x48xf32> to vector<2x16xf32>
    %100 = arith.addf %98, %99 : vector<2x16xf32>
    %101 = arith.negf %100 : vector<2x16xf32>
    %102 = math.exp %101 : vector<2x16xf32>
    %cst_25 = arith.constant 1.000000e+00 : f32
    %103 = vector.broadcast %cst_25 : f32 to vector<2x16xf32>
    %104 = arith.addf %103, %102 : vector<2x16xf32>
    %105 = arith.divf %103, %104 : vector<2x16xf32>
    %106 = vector.extract_strided_slice %86 {offsets = [0, 32], sizes = [2, 16], strides = [1, 1]} : vector<2x48xf32> to vector<2x16xf32>
    %107 = vector.extract_strided_slice %89 {offsets = [0, 32], sizes = [2, 16], strides = [1, 1]} : vector<2x48xf32> to vector<2x16xf32>
    %108 = arith.mulf %97, %107 : vector<2x16xf32>
    %109 = arith.addf %106, %108 : vector<2x16xf32>
    %110 = math.tanh %109 : vector<2x16xf32>
    %cst_26 = arith.constant 1.000000e+00 : f32
    %111 = vector.broadcast %cst_26 : f32 to vector<2x16xf32>
    %112 = arith.subf %111, %105 : vector<2x16xf32>
    %113 = arith.mulf %112, %110 : vector<2x16xf32>
    %114 = arith.mulf %105, %83 : vector<2x16xf32>
    %115 = arith.addf %113, %114 : vector<2x16xf32>
    %116 = vector.extract_strided_slice %18 {offsets = [3, 0], sizes = [1, 48], strides = [1, 1]} : vector<32x48xf32> to vector<1x48xf32>
    %117 = vector.extract_strided_slice %18 {offsets = [19, 0], sizes = [1, 48], strides = [1, 1]} : vector<32x48xf32> to vector<1x48xf32>
    %118 = tpu.concatenate %116, %117 in 0 : vector<1x48xf32>, vector<1x48xf32> -> vector<2x48xf32>
    %cst_27 = arith.constant dense<0.000000e+00> : vector<2x48xf32>
    %119 = tpu.matmul %115, %12, %cst_27 {dimension_numbers = #tpu.dot_dimension_numbers<[1], [0], [0], [1], [0, 0, 1, 1], [], []>} : vector<2x16xf32>, vector<16x48xf32>, vector<2x48xf32> -> vector<2x48xf32>
    %120 = vector.broadcast %13 : vector<1x48xf32> to vector<2x48xf32>
    %121 = arith.addf %119, %120 : vector<2x48xf32>
    %122 = vector.extract_strided_slice %118 {offsets = [0, 0], sizes = [2, 16], strides = [1, 1]} : vector<2x48xf32> to vector<2x16xf32>
    %123 = vector.extract_strided_slice %121 {offsets = [0, 0], sizes = [2, 16], strides = [1, 1]} : vector<2x48xf32> to vector<2x16xf32>
    %124 = arith.addf %122, %123 : vector<2x16xf32>
    %125 = arith.negf %124 : vector<2x16xf32>
    %126 = math.exp %125 : vector<2x16xf32>
    %cst_28 = arith.constant 1.000000e+00 : f32
    %127 = vector.broadcast %cst_28 : f32 to vector<2x16xf32>
    %128 = arith.addf %127, %126 : vector<2x16xf32>
    %129 = arith.divf %127, %128 : vector<2x16xf32>
    %130 = vector.extract_strided_slice %118 {offsets = [0, 16], sizes = [2, 16], strides = [1, 1]} : vector<2x48xf32> to vector<2x16xf32>
    %131 = vector.extract_strided_slice %121 {offsets = [0, 16], sizes = [2, 16], strides = [1, 1]} : vector<2x48xf32> to vector<2x16xf32>
    %132 = arith.addf %130, %131 : vector<2x16xf32>
    %133 = arith.negf %132 : vector<2x16xf32>
    %134 = math.exp %133 : vector<2x16xf32>
    %cst_29 = arith.constant 1.000000e+00 : f32
    %135 = vector.broadcast %cst_29 : f32 to vector<2x16xf32>
    %136 = arith.addf %135, %134 : vector<2x16xf32>
    %137 = arith.divf %135, %136 : vector<2x16xf32>
    %138 = vector.extract_strided_slice %118 {offsets = [0, 32], sizes = [2, 16], strides = [1, 1]} : vector<2x48xf32> to vector<2x16xf32>
    %139 = vector.extract_strided_slice %121 {offsets = [0, 32], sizes = [2, 16], strides = [1, 1]} : vector<2x48xf32> to vector<2x16xf32>
    %140 = arith.mulf %129, %139 : vector<2x16xf32>
    %141 = arith.addf %138, %140 : vector<2x16xf32>
    %142 = math.tanh %141 : vector<2x16xf32>
    %cst_30 = arith.constant 1.000000e+00 : f32
    %143 = vector.broadcast %cst_30 : f32 to vector<2x16xf32>
    %144 = arith.subf %143, %137 : vector<2x16xf32>
    %145 = arith.mulf %144, %142 : vector<2x16xf32>
    %146 = arith.mulf %137, %115 : vector<2x16xf32>
    %147 = arith.addf %145, %146 : vector<2x16xf32>
    %148 = vector.extract_strided_slice %18 {offsets = [4, 0], sizes = [1, 48], strides = [1, 1]} : vector<32x48xf32> to vector<1x48xf32>
    %149 = vector.extract_strided_slice %18 {offsets = [20, 0], sizes = [1, 48], strides = [1, 1]} : vector<32x48xf32> to vector<1x48xf32>
    %150 = tpu.concatenate %148, %149 in 0 : vector<1x48xf32>, vector<1x48xf32> -> vector<2x48xf32>
    %cst_31 = arith.constant dense<0.000000e+00> : vector<2x48xf32>
    %151 = tpu.matmul %147, %12, %cst_31 {dimension_numbers = #tpu.dot_dimension_numbers<[1], [0], [0], [1], [0, 0, 1, 1], [], []>} : vector<2x16xf32>, vector<16x48xf32>, vector<2x48xf32> -> vector<2x48xf32>
    %152 = vector.broadcast %13 : vector<1x48xf32> to vector<2x48xf32>
    %153 = arith.addf %151, %152 : vector<2x48xf32>
    %154 = vector.extract_strided_slice %150 {offsets = [0, 0], sizes = [2, 16], strides = [1, 1]} : vector<2x48xf32> to vector<2x16xf32>
    %155 = vector.extract_strided_slice %153 {offsets = [0, 0], sizes = [2, 16], strides = [1, 1]} : vector<2x48xf32> to vector<2x16xf32>
    %156 = arith.addf %154, %155 : vector<2x16xf32>
    %157 = arith.negf %156 : vector<2x16xf32>
    %158 = math.exp %157 : vector<2x16xf32>
    %cst_32 = arith.constant 1.000000e+00 : f32
    %159 = vector.broadcast %cst_32 : f32 to vector<2x16xf32>
    %160 = arith.addf %159, %158 : vector<2x16xf32>
    %161 = arith.divf %159, %160 : vector<2x16xf32>
    %162 = vector.extract_strided_slice %150 {offsets = [0, 16], sizes = [2, 16], strides = [1, 1]} : vector<2x48xf32> to vector<2x16xf32>
    %163 = vector.extract_strided_slice %153 {offsets = [0, 16], sizes = [2, 16], strides = [1, 1]} : vector<2x48xf32> to vector<2x16xf32>
    %164 = arith.addf %162, %163 : vector<2x16xf32>
    %165 = arith.negf %164 : vector<2x16xf32>
    %166 = math.exp %165 : vector<2x16xf32>
    %cst_33 = arith.constant 1.000000e+00 : f32
    %167 = vector.broadcast %cst_33 : f32 to vector<2x16xf32>
    %168 = arith.addf %167, %166 : vector<2x16xf32>
    %169 = arith.divf %167, %168 : vector<2x16xf32>
    %170 = vector.extract_strided_slice %150 {offsets = [0, 32], sizes = [2, 16], strides = [1, 1]} : vector<2x48xf32> to vector<2x16xf32>
    %171 = vector.extract_strided_slice %153 {offsets = [0, 32], sizes = [2, 16], strides = [1, 1]} : vector<2x48xf32> to vector<2x16xf32>
    %172 = arith.mulf %161, %171 : vector<2x16xf32>
    %173 = arith.addf %170, %172 : vector<2x16xf32>
    %174 = math.tanh %173 : vector<2x16xf32>
    %cst_34 = arith.constant 1.000000e+00 : f32
    %175 = vector.broadcast %cst_34 : f32 to vector<2x16xf32>
    %176 = arith.subf %175, %169 : vector<2x16xf32>
    %177 = arith.mulf %176, %174 : vector<2x16xf32>
    %178 = arith.mulf %169, %147 : vector<2x16xf32>
    %179 = arith.addf %177, %178 : vector<2x16xf32>
    %180 = vector.extract_strided_slice %18 {offsets = [5, 0], sizes = [1, 48], strides = [1, 1]} : vector<32x48xf32> to vector<1x48xf32>
    %181 = vector.extract_strided_slice %18 {offsets = [21, 0], sizes = [1, 48], strides = [1, 1]} : vector<32x48xf32> to vector<1x48xf32>
    %182 = tpu.concatenate %180, %181 in 0 : vector<1x48xf32>, vector<1x48xf32> -> vector<2x48xf32>
    %cst_35 = arith.constant dense<0.000000e+00> : vector<2x48xf32>
    %183 = tpu.matmul %179, %12, %cst_35 {dimension_numbers = #tpu.dot_dimension_numbers<[1], [0], [0], [1], [0, 0, 1, 1], [], []>} : vector<2x16xf32>, vector<16x48xf32>, vector<2x48xf32> -> vector<2x48xf32>
    %184 = vector.broadcast %13 : vector<1x48xf32> to vector<2x48xf32>
    %185 = arith.addf %183, %184 : vector<2x48xf32>
    %186 = vector.extract_strided_slice %182 {offsets = [0, 0], sizes = [2, 16], strides = [1, 1]} : vector<2x48xf32> to vector<2x16xf32>
    %187 = vector.extract_strided_slice %185 {offsets = [0, 0], sizes = [2, 16], strides = [1, 1]} : vector<2x48xf32> to vector<2x16xf32>
    %188 = arith.addf %186, %187 : vector<2x16xf32>
    %189 = arith.negf %188 : vector<2x16xf32>
    %190 = math.exp %189 : vector<2x16xf32>
    %cst_36 = arith.constant 1.000000e+00 : f32
    %191 = vector.broadcast %cst_36 : f32 to vector<2x16xf32>
    %192 = arith.addf %191, %190 : vector<2x16xf32>
    %193 = arith.divf %191, %192 : vector<2x16xf32>
    %194 = vector.extract_strided_slice %182 {offsets = [0, 16], sizes = [2, 16], strides = [1, 1]} : vector<2x48xf32> to vector<2x16xf32>
    %195 = vector.extract_strided_slice %185 {offsets = [0, 16], sizes = [2, 16], strides = [1, 1]} : vector<2x48xf32> to vector<2x16xf32>
    %196 = arith.addf %194, %195 : vector<2x16xf32>
    %197 = arith.negf %196 : vector<2x16xf32>
    %198 = math.exp %197 : vector<2x16xf32>
    %cst_37 = arith.constant 1.000000e+00 : f32
    %199 = vector.broadcast %cst_37 : f32 to vector<2x16xf32>
    %200 = arith.addf %199, %198 : vector<2x16xf32>
    %201 = arith.divf %199, %200 : vector<2x16xf32>
    %202 = vector.extract_strided_slice %182 {offsets = [0, 32], sizes = [2, 16], strides = [1, 1]} : vector<2x48xf32> to vector<2x16xf32>
    %203 = vector.extract_strided_slice %185 {offsets = [0, 32], sizes = [2, 16], strides = [1, 1]} : vector<2x48xf32> to vector<2x16xf32>
    %204 = arith.mulf %193, %203 : vector<2x16xf32>
    %205 = arith.addf %202, %204 : vector<2x16xf32>
    %206 = math.tanh %205 : vector<2x16xf32>
    %cst_38 = arith.constant 1.000000e+00 : f32
    %207 = vector.broadcast %cst_38 : f32 to vector<2x16xf32>
    %208 = arith.subf %207, %201 : vector<2x16xf32>
    %209 = arith.mulf %208, %206 : vector<2x16xf32>
    %210 = arith.mulf %201, %179 : vector<2x16xf32>
    %211 = arith.addf %209, %210 : vector<2x16xf32>
    %212 = vector.extract_strided_slice %18 {offsets = [6, 0], sizes = [1, 48], strides = [1, 1]} : vector<32x48xf32> to vector<1x48xf32>
    %213 = vector.extract_strided_slice %18 {offsets = [22, 0], sizes = [1, 48], strides = [1, 1]} : vector<32x48xf32> to vector<1x48xf32>
    %214 = tpu.concatenate %212, %213 in 0 : vector<1x48xf32>, vector<1x48xf32> -> vector<2x48xf32>
    %cst_39 = arith.constant dense<0.000000e+00> : vector<2x48xf32>
    %215 = tpu.matmul %211, %12, %cst_39 {dimension_numbers = #tpu.dot_dimension_numbers<[1], [0], [0], [1], [0, 0, 1, 1], [], []>} : vector<2x16xf32>, vector<16x48xf32>, vector<2x48xf32> -> vector<2x48xf32>
    %216 = vector.broadcast %13 : vector<1x48xf32> to vector<2x48xf32>
    %217 = arith.addf %215, %216 : vector<2x48xf32>
    %218 = vector.extract_strided_slice %214 {offsets = [0, 0], sizes = [2, 16], strides = [1, 1]} : vector<2x48xf32> to vector<2x16xf32>
    %219 = vector.extract_strided_slice %217 {offsets = [0, 0], sizes = [2, 16], strides = [1, 1]} : vector<2x48xf32> to vector<2x16xf32>
    %220 = arith.addf %218, %219 : vector<2x16xf32>
    %221 = arith.negf %220 : vector<2x16xf32>
    %222 = math.exp %221 : vector<2x16xf32>
    %cst_40 = arith.constant 1.000000e+00 : f32
    %223 = vector.broadcast %cst_40 : f32 to vector<2x16xf32>
    %224 = arith.addf %223, %222 : vector<2x16xf32>
    %225 = arith.divf %223, %224 : vector<2x16xf32>
    %226 = vector.extract_strided_slice %214 {offsets = [0, 16], sizes = [2, 16], strides = [1, 1]} : vector<2x48xf32> to vector<2x16xf32>
    %227 = vector.extract_strided_slice %217 {offsets = [0, 16], sizes = [2, 16], strides = [1, 1]} : vector<2x48xf32> to vector<2x16xf32>
    %228 = arith.addf %226, %227 : vector<2x16xf32>
    %229 = arith.negf %228 : vector<2x16xf32>
    %230 = math.exp %229 : vector<2x16xf32>
    %cst_41 = arith.constant 1.000000e+00 : f32
    %231 = vector.broadcast %cst_41 : f32 to vector<2x16xf32>
    %232 = arith.addf %231, %230 : vector<2x16xf32>
    %233 = arith.divf %231, %232 : vector<2x16xf32>
    %234 = vector.extract_strided_slice %214 {offsets = [0, 32], sizes = [2, 16], strides = [1, 1]} : vector<2x48xf32> to vector<2x16xf32>
    %235 = vector.extract_strided_slice %217 {offsets = [0, 32], sizes = [2, 16], strides = [1, 1]} : vector<2x48xf32> to vector<2x16xf32>
    %236 = arith.mulf %225, %235 : vector<2x16xf32>
    %237 = arith.addf %234, %236 : vector<2x16xf32>
    %238 = math.tanh %237 : vector<2x16xf32>
    %cst_42 = arith.constant 1.000000e+00 : f32
    %239 = vector.broadcast %cst_42 : f32 to vector<2x16xf32>
    %240 = arith.subf %239, %233 : vector<2x16xf32>
    %241 = arith.mulf %240, %238 : vector<2x16xf32>
    %242 = arith.mulf %233, %211 : vector<2x16xf32>
    %243 = arith.addf %241, %242 : vector<2x16xf32>
    %244 = vector.extract_strided_slice %18 {offsets = [7, 0], sizes = [1, 48], strides = [1, 1]} : vector<32x48xf32> to vector<1x48xf32>
    %245 = vector.extract_strided_slice %18 {offsets = [23, 0], sizes = [1, 48], strides = [1, 1]} : vector<32x48xf32> to vector<1x48xf32>
    %246 = tpu.concatenate %244, %245 in 0 : vector<1x48xf32>, vector<1x48xf32> -> vector<2x48xf32>
    %cst_43 = arith.constant dense<0.000000e+00> : vector<2x48xf32>
    %247 = tpu.matmul %243, %12, %cst_43 {dimension_numbers = #tpu.dot_dimension_numbers<[1], [0], [0], [1], [0, 0, 1, 1], [], []>} : vector<2x16xf32>, vector<16x48xf32>, vector<2x48xf32> -> vector<2x48xf32>
    %248 = vector.broadcast %13 : vector<1x48xf32> to vector<2x48xf32>
    %249 = arith.addf %247, %248 : vector<2x48xf32>
    %250 = vector.extract_strided_slice %246 {offsets = [0, 0], sizes = [2, 16], strides = [1, 1]} : vector<2x48xf32> to vector<2x16xf32>
    %251 = vector.extract_strided_slice %249 {offsets = [0, 0], sizes = [2, 16], strides = [1, 1]} : vector<2x48xf32> to vector<2x16xf32>
    %252 = arith.addf %250, %251 : vector<2x16xf32>
    %253 = arith.negf %252 : vector<2x16xf32>
    %254 = math.exp %253 : vector<2x16xf32>
    %cst_44 = arith.constant 1.000000e+00 : f32
    %255 = vector.broadcast %cst_44 : f32 to vector<2x16xf32>
    %256 = arith.addf %255, %254 : vector<2x16xf32>
    %257 = arith.divf %255, %256 : vector<2x16xf32>
    %258 = vector.extract_strided_slice %246 {offsets = [0, 16], sizes = [2, 16], strides = [1, 1]} : vector<2x48xf32> to vector<2x16xf32>
    %259 = vector.extract_strided_slice %249 {offsets = [0, 16], sizes = [2, 16], strides = [1, 1]} : vector<2x48xf32> to vector<2x16xf32>
    %260 = arith.addf %258, %259 : vector<2x16xf32>
    %261 = arith.negf %260 : vector<2x16xf32>
    %262 = math.exp %261 : vector<2x16xf32>
    %cst_45 = arith.constant 1.000000e+00 : f32
    %263 = vector.broadcast %cst_45 : f32 to vector<2x16xf32>
    %264 = arith.addf %263, %262 : vector<2x16xf32>
    %265 = arith.divf %263, %264 : vector<2x16xf32>
    %266 = vector.extract_strided_slice %246 {offsets = [0, 32], sizes = [2, 16], strides = [1, 1]} : vector<2x48xf32> to vector<2x16xf32>
    %267 = vector.extract_strided_slice %249 {offsets = [0, 32], sizes = [2, 16], strides = [1, 1]} : vector<2x48xf32> to vector<2x16xf32>
    %268 = arith.mulf %257, %267 : vector<2x16xf32>
    %269 = arith.addf %266, %268 : vector<2x16xf32>
    %270 = math.tanh %269 : vector<2x16xf32>
    %cst_46 = arith.constant 1.000000e+00 : f32
    %271 = vector.broadcast %cst_46 : f32 to vector<2x16xf32>
    %272 = arith.subf %271, %265 : vector<2x16xf32>
    %273 = arith.mulf %272, %270 : vector<2x16xf32>
    %274 = arith.mulf %265, %243 : vector<2x16xf32>
    %275 = arith.addf %273, %274 : vector<2x16xf32>
    %276 = vector.extract_strided_slice %18 {offsets = [8, 0], sizes = [1, 48], strides = [1, 1]} : vector<32x48xf32> to vector<1x48xf32>
    %277 = vector.extract_strided_slice %18 {offsets = [24, 0], sizes = [1, 48], strides = [1, 1]} : vector<32x48xf32> to vector<1x48xf32>
    %278 = tpu.concatenate %276, %277 in 0 : vector<1x48xf32>, vector<1x48xf32> -> vector<2x48xf32>
    %cst_47 = arith.constant dense<0.000000e+00> : vector<2x48xf32>
    %279 = tpu.matmul %275, %12, %cst_47 {dimension_numbers = #tpu.dot_dimension_numbers<[1], [0], [0], [1], [0, 0, 1, 1], [], []>} : vector<2x16xf32>, vector<16x48xf32>, vector<2x48xf32> -> vector<2x48xf32>
    %280 = vector.broadcast %13 : vector<1x48xf32> to vector<2x48xf32>
    %281 = arith.addf %279, %280 : vector<2x48xf32>
    %282 = vector.extract_strided_slice %278 {offsets = [0, 0], sizes = [2, 16], strides = [1, 1]} : vector<2x48xf32> to vector<2x16xf32>
    %283 = vector.extract_strided_slice %281 {offsets = [0, 0], sizes = [2, 16], strides = [1, 1]} : vector<2x48xf32> to vector<2x16xf32>
    %284 = arith.addf %282, %283 : vector<2x16xf32>
    %285 = arith.negf %284 : vector<2x16xf32>
    %286 = math.exp %285 : vector<2x16xf32>
    %cst_48 = arith.constant 1.000000e+00 : f32
    %287 = vector.broadcast %cst_48 : f32 to vector<2x16xf32>
    %288 = arith.addf %287, %286 : vector<2x16xf32>
    %289 = arith.divf %287, %288 : vector<2x16xf32>
    %290 = vector.extract_strided_slice %278 {offsets = [0, 16], sizes = [2, 16], strides = [1, 1]} : vector<2x48xf32> to vector<2x16xf32>
    %291 = vector.extract_strided_slice %281 {offsets = [0, 16], sizes = [2, 16], strides = [1, 1]} : vector<2x48xf32> to vector<2x16xf32>
    %292 = arith.addf %290, %291 : vector<2x16xf32>
    %293 = arith.negf %292 : vector<2x16xf32>
    %294 = math.exp %293 : vector<2x16xf32>
    %cst_49 = arith.constant 1.000000e+00 : f32
    %295 = vector.broadcast %cst_49 : f32 to vector<2x16xf32>
    %296 = arith.addf %295, %294 : vector<2x16xf32>
    %297 = arith.divf %295, %296 : vector<2x16xf32>
    %298 = vector.extract_strided_slice %278 {offsets = [0, 32], sizes = [2, 16], strides = [1, 1]} : vector<2x48xf32> to vector<2x16xf32>
    %299 = vector.extract_strided_slice %281 {offsets = [0, 32], sizes = [2, 16], strides = [1, 1]} : vector<2x48xf32> to vector<2x16xf32>
    %300 = arith.mulf %289, %299 : vector<2x16xf32>
    %301 = arith.addf %298, %300 : vector<2x16xf32>
    %302 = math.tanh %301 : vector<2x16xf32>
    %cst_50 = arith.constant 1.000000e+00 : f32
    %303 = vector.broadcast %cst_50 : f32 to vector<2x16xf32>
    %304 = arith.subf %303, %297 : vector<2x16xf32>
    %305 = arith.mulf %304, %302 : vector<2x16xf32>
    %306 = arith.mulf %297, %275 : vector<2x16xf32>
    %307 = arith.addf %305, %306 : vector<2x16xf32>
    %308 = vector.extract_strided_slice %18 {offsets = [9, 0], sizes = [1, 48], strides = [1, 1]} : vector<32x48xf32> to vector<1x48xf32>
    %309 = vector.extract_strided_slice %18 {offsets = [25, 0], sizes = [1, 48], strides = [1, 1]} : vector<32x48xf32> to vector<1x48xf32>
    %310 = tpu.concatenate %308, %309 in 0 : vector<1x48xf32>, vector<1x48xf32> -> vector<2x48xf32>
    %cst_51 = arith.constant dense<0.000000e+00> : vector<2x48xf32>
    %311 = tpu.matmul %307, %12, %cst_51 {dimension_numbers = #tpu.dot_dimension_numbers<[1], [0], [0], [1], [0, 0, 1, 1], [], []>} : vector<2x16xf32>, vector<16x48xf32>, vector<2x48xf32> -> vector<2x48xf32>
    %312 = vector.broadcast %13 : vector<1x48xf32> to vector<2x48xf32>
    %313 = arith.addf %311, %312 : vector<2x48xf32>
    %314 = vector.extract_strided_slice %310 {offsets = [0, 0], sizes = [2, 16], strides = [1, 1]} : vector<2x48xf32> to vector<2x16xf32>
    %315 = vector.extract_strided_slice %313 {offsets = [0, 0], sizes = [2, 16], strides = [1, 1]} : vector<2x48xf32> to vector<2x16xf32>
    %316 = arith.addf %314, %315 : vector<2x16xf32>
    %317 = arith.negf %316 : vector<2x16xf32>
    %318 = math.exp %317 : vector<2x16xf32>
    %cst_52 = arith.constant 1.000000e+00 : f32
    %319 = vector.broadcast %cst_52 : f32 to vector<2x16xf32>
    %320 = arith.addf %319, %318 : vector<2x16xf32>
    %321 = arith.divf %319, %320 : vector<2x16xf32>
    %322 = vector.extract_strided_slice %310 {offsets = [0, 16], sizes = [2, 16], strides = [1, 1]} : vector<2x48xf32> to vector<2x16xf32>
    %323 = vector.extract_strided_slice %313 {offsets = [0, 16], sizes = [2, 16], strides = [1, 1]} : vector<2x48xf32> to vector<2x16xf32>
    %324 = arith.addf %322, %323 : vector<2x16xf32>
    %325 = arith.negf %324 : vector<2x16xf32>
    %326 = math.exp %325 : vector<2x16xf32>
    %cst_53 = arith.constant 1.000000e+00 : f32
    %327 = vector.broadcast %cst_53 : f32 to vector<2x16xf32>
    %328 = arith.addf %327, %326 : vector<2x16xf32>
    %329 = arith.divf %327, %328 : vector<2x16xf32>
    %330 = vector.extract_strided_slice %310 {offsets = [0, 32], sizes = [2, 16], strides = [1, 1]} : vector<2x48xf32> to vector<2x16xf32>
    %331 = vector.extract_strided_slice %313 {offsets = [0, 32], sizes = [2, 16], strides = [1, 1]} : vector<2x48xf32> to vector<2x16xf32>
    %332 = arith.mulf %321, %331 : vector<2x16xf32>
    %333 = arith.addf %330, %332 : vector<2x16xf32>
    %334 = math.tanh %333 : vector<2x16xf32>
    %cst_54 = arith.constant 1.000000e+00 : f32
    %335 = vector.broadcast %cst_54 : f32 to vector<2x16xf32>
    %336 = arith.subf %335, %329 : vector<2x16xf32>
    %337 = arith.mulf %336, %334 : vector<2x16xf32>
    %338 = arith.mulf %329, %307 : vector<2x16xf32>
    %339 = arith.addf %337, %338 : vector<2x16xf32>
    %340 = vector.extract_strided_slice %18 {offsets = [10, 0], sizes = [1, 48], strides = [1, 1]} : vector<32x48xf32> to vector<1x48xf32>
    %341 = vector.extract_strided_slice %18 {offsets = [26, 0], sizes = [1, 48], strides = [1, 1]} : vector<32x48xf32> to vector<1x48xf32>
    %342 = tpu.concatenate %340, %341 in 0 : vector<1x48xf32>, vector<1x48xf32> -> vector<2x48xf32>
    %cst_55 = arith.constant dense<0.000000e+00> : vector<2x48xf32>
    %343 = tpu.matmul %339, %12, %cst_55 {dimension_numbers = #tpu.dot_dimension_numbers<[1], [0], [0], [1], [0, 0, 1, 1], [], []>} : vector<2x16xf32>, vector<16x48xf32>, vector<2x48xf32> -> vector<2x48xf32>
    %344 = vector.broadcast %13 : vector<1x48xf32> to vector<2x48xf32>
    %345 = arith.addf %343, %344 : vector<2x48xf32>
    %346 = vector.extract_strided_slice %342 {offsets = [0, 0], sizes = [2, 16], strides = [1, 1]} : vector<2x48xf32> to vector<2x16xf32>
    %347 = vector.extract_strided_slice %345 {offsets = [0, 0], sizes = [2, 16], strides = [1, 1]} : vector<2x48xf32> to vector<2x16xf32>
    %348 = arith.addf %346, %347 : vector<2x16xf32>
    %349 = arith.negf %348 : vector<2x16xf32>
    %350 = math.exp %349 : vector<2x16xf32>
    %cst_56 = arith.constant 1.000000e+00 : f32
    %351 = vector.broadcast %cst_56 : f32 to vector<2x16xf32>
    %352 = arith.addf %351, %350 : vector<2x16xf32>
    %353 = arith.divf %351, %352 : vector<2x16xf32>
    %354 = vector.extract_strided_slice %342 {offsets = [0, 16], sizes = [2, 16], strides = [1, 1]} : vector<2x48xf32> to vector<2x16xf32>
    %355 = vector.extract_strided_slice %345 {offsets = [0, 16], sizes = [2, 16], strides = [1, 1]} : vector<2x48xf32> to vector<2x16xf32>
    %356 = arith.addf %354, %355 : vector<2x16xf32>
    %357 = arith.negf %356 : vector<2x16xf32>
    %358 = math.exp %357 : vector<2x16xf32>
    %cst_57 = arith.constant 1.000000e+00 : f32
    %359 = vector.broadcast %cst_57 : f32 to vector<2x16xf32>
    %360 = arith.addf %359, %358 : vector<2x16xf32>
    %361 = arith.divf %359, %360 : vector<2x16xf32>
    %362 = vector.extract_strided_slice %342 {offsets = [0, 32], sizes = [2, 16], strides = [1, 1]} : vector<2x48xf32> to vector<2x16xf32>
    %363 = vector.extract_strided_slice %345 {offsets = [0, 32], sizes = [2, 16], strides = [1, 1]} : vector<2x48xf32> to vector<2x16xf32>
    %364 = arith.mulf %353, %363 : vector<2x16xf32>
    %365 = arith.addf %362, %364 : vector<2x16xf32>
    %366 = math.tanh %365 : vector<2x16xf32>
    %cst_58 = arith.constant 1.000000e+00 : f32
    %367 = vector.broadcast %cst_58 : f32 to vector<2x16xf32>
    %368 = arith.subf %367, %361 : vector<2x16xf32>
    %369 = arith.mulf %368, %366 : vector<2x16xf32>
    %370 = arith.mulf %361, %339 : vector<2x16xf32>
    %371 = arith.addf %369, %370 : vector<2x16xf32>
    %372 = vector.extract_strided_slice %18 {offsets = [11, 0], sizes = [1, 48], strides = [1, 1]} : vector<32x48xf32> to vector<1x48xf32>
    %373 = vector.extract_strided_slice %18 {offsets = [27, 0], sizes = [1, 48], strides = [1, 1]} : vector<32x48xf32> to vector<1x48xf32>
    %374 = tpu.concatenate %372, %373 in 0 : vector<1x48xf32>, vector<1x48xf32> -> vector<2x48xf32>
    %cst_59 = arith.constant dense<0.000000e+00> : vector<2x48xf32>
    %375 = tpu.matmul %371, %12, %cst_59 {dimension_numbers = #tpu.dot_dimension_numbers<[1], [0], [0], [1], [0, 0, 1, 1], [], []>} : vector<2x16xf32>, vector<16x48xf32>, vector<2x48xf32> -> vector<2x48xf32>
    %376 = vector.broadcast %13 : vector<1x48xf32> to vector<2x48xf32>
    %377 = arith.addf %375, %376 : vector<2x48xf32>
    %378 = vector.extract_strided_slice %374 {offsets = [0, 0], sizes = [2, 16], strides = [1, 1]} : vector<2x48xf32> to vector<2x16xf32>
    %379 = vector.extract_strided_slice %377 {offsets = [0, 0], sizes = [2, 16], strides = [1, 1]} : vector<2x48xf32> to vector<2x16xf32>
    %380 = arith.addf %378, %379 : vector<2x16xf32>
    %381 = arith.negf %380 : vector<2x16xf32>
    %382 = math.exp %381 : vector<2x16xf32>
    %cst_60 = arith.constant 1.000000e+00 : f32
    %383 = vector.broadcast %cst_60 : f32 to vector<2x16xf32>
    %384 = arith.addf %383, %382 : vector<2x16xf32>
    %385 = arith.divf %383, %384 : vector<2x16xf32>
    %386 = vector.extract_strided_slice %374 {offsets = [0, 16], sizes = [2, 16], strides = [1, 1]} : vector<2x48xf32> to vector<2x16xf32>
    %387 = vector.extract_strided_slice %377 {offsets = [0, 16], sizes = [2, 16], strides = [1, 1]} : vector<2x48xf32> to vector<2x16xf32>
    %388 = arith.addf %386, %387 : vector<2x16xf32>
    %389 = arith.negf %388 : vector<2x16xf32>
    %390 = math.exp %389 : vector<2x16xf32>
    %cst_61 = arith.constant 1.000000e+00 : f32
    %391 = vector.broadcast %cst_61 : f32 to vector<2x16xf32>
    %392 = arith.addf %391, %390 : vector<2x16xf32>
    %393 = arith.divf %391, %392 : vector<2x16xf32>
    %394 = vector.extract_strided_slice %374 {offsets = [0, 32], sizes = [2, 16], strides = [1, 1]} : vector<2x48xf32> to vector<2x16xf32>
    %395 = vector.extract_strided_slice %377 {offsets = [0, 32], sizes = [2, 16], strides = [1, 1]} : vector<2x48xf32> to vector<2x16xf32>
    %396 = arith.mulf %385, %395 : vector<2x16xf32>
    %397 = arith.addf %394, %396 : vector<2x16xf32>
    %398 = math.tanh %397 : vector<2x16xf32>
    %cst_62 = arith.constant 1.000000e+00 : f32
    %399 = vector.broadcast %cst_62 : f32 to vector<2x16xf32>
    %400 = arith.subf %399, %393 : vector<2x16xf32>
    %401 = arith.mulf %400, %398 : vector<2x16xf32>
    %402 = arith.mulf %393, %371 : vector<2x16xf32>
    %403 = arith.addf %401, %402 : vector<2x16xf32>
    %404 = vector.extract_strided_slice %18 {offsets = [12, 0], sizes = [1, 48], strides = [1, 1]} : vector<32x48xf32> to vector<1x48xf32>
    %405 = vector.extract_strided_slice %18 {offsets = [28, 0], sizes = [1, 48], strides = [1, 1]} : vector<32x48xf32> to vector<1x48xf32>
    %406 = tpu.concatenate %404, %405 in 0 : vector<1x48xf32>, vector<1x48xf32> -> vector<2x48xf32>
    %cst_63 = arith.constant dense<0.000000e+00> : vector<2x48xf32>
    %407 = tpu.matmul %403, %12, %cst_63 {dimension_numbers = #tpu.dot_dimension_numbers<[1], [0], [0], [1], [0, 0, 1, 1], [], []>} : vector<2x16xf32>, vector<16x48xf32>, vector<2x48xf32> -> vector<2x48xf32>
    %408 = vector.broadcast %13 : vector<1x48xf32> to vector<2x48xf32>
    %409 = arith.addf %407, %408 : vector<2x48xf32>
    %410 = vector.extract_strided_slice %406 {offsets = [0, 0], sizes = [2, 16], strides = [1, 1]} : vector<2x48xf32> to vector<2x16xf32>
    %411 = vector.extract_strided_slice %409 {offsets = [0, 0], sizes = [2, 16], strides = [1, 1]} : vector<2x48xf32> to vector<2x16xf32>
    %412 = arith.addf %410, %411 : vector<2x16xf32>
    %413 = arith.negf %412 : vector<2x16xf32>
    %414 = math.exp %413 : vector<2x16xf32>
    %cst_64 = arith.constant 1.000000e+00 : f32
    %415 = vector.broadcast %cst_64 : f32 to vector<2x16xf32>
    %416 = arith.addf %415, %414 : vector<2x16xf32>
    %417 = arith.divf %415, %416 : vector<2x16xf32>
    %418 = vector.extract_strided_slice %406 {offsets = [0, 16], sizes = [2, 16], strides = [1, 1]} : vector<2x48xf32> to vector<2x16xf32>
    %419 = vector.extract_strided_slice %409 {offsets = [0, 16], sizes = [2, 16], strides = [1, 1]} : vector<2x48xf32> to vector<2x16xf32>
    %420 = arith.addf %418, %419 : vector<2x16xf32>
    %421 = arith.negf %420 : vector<2x16xf32>
    %422 = math.exp %421 : vector<2x16xf32>
    %cst_65 = arith.constant 1.000000e+00 : f32
    %423 = vector.broadcast %cst_65 : f32 to vector<2x16xf32>
    %424 = arith.addf %423, %422 : vector<2x16xf32>
    %425 = arith.divf %423, %424 : vector<2x16xf32>
    %426 = vector.extract_strided_slice %406 {offsets = [0, 32], sizes = [2, 16], strides = [1, 1]} : vector<2x48xf32> to vector<2x16xf32>
    %427 = vector.extract_strided_slice %409 {offsets = [0, 32], sizes = [2, 16], strides = [1, 1]} : vector<2x48xf32> to vector<2x16xf32>
    %428 = arith.mulf %417, %427 : vector<2x16xf32>
    %429 = arith.addf %426, %428 : vector<2x16xf32>
    %430 = math.tanh %429 : vector<2x16xf32>
    %cst_66 = arith.constant 1.000000e+00 : f32
    %431 = vector.broadcast %cst_66 : f32 to vector<2x16xf32>
    %432 = arith.subf %431, %425 : vector<2x16xf32>
    %433 = arith.mulf %432, %430 : vector<2x16xf32>
    %434 = arith.mulf %425, %403 : vector<2x16xf32>
    %435 = arith.addf %433, %434 : vector<2x16xf32>
    %436 = vector.extract_strided_slice %18 {offsets = [13, 0], sizes = [1, 48], strides = [1, 1]} : vector<32x48xf32> to vector<1x48xf32>
    %437 = vector.extract_strided_slice %18 {offsets = [29, 0], sizes = [1, 48], strides = [1, 1]} : vector<32x48xf32> to vector<1x48xf32>
    %438 = tpu.concatenate %436, %437 in 0 : vector<1x48xf32>, vector<1x48xf32> -> vector<2x48xf32>
    %cst_67 = arith.constant dense<0.000000e+00> : vector<2x48xf32>
    %439 = tpu.matmul %435, %12, %cst_67 {dimension_numbers = #tpu.dot_dimension_numbers<[1], [0], [0], [1], [0, 0, 1, 1], [], []>} : vector<2x16xf32>, vector<16x48xf32>, vector<2x48xf32> -> vector<2x48xf32>
    %440 = vector.broadcast %13 : vector<1x48xf32> to vector<2x48xf32>
    %441 = arith.addf %439, %440 : vector<2x48xf32>
    %442 = vector.extract_strided_slice %438 {offsets = [0, 0], sizes = [2, 16], strides = [1, 1]} : vector<2x48xf32> to vector<2x16xf32>
    %443 = vector.extract_strided_slice %441 {offsets = [0, 0], sizes = [2, 16], strides = [1, 1]} : vector<2x48xf32> to vector<2x16xf32>
    %444 = arith.addf %442, %443 : vector<2x16xf32>
    %445 = arith.negf %444 : vector<2x16xf32>
    %446 = math.exp %445 : vector<2x16xf32>
    %cst_68 = arith.constant 1.000000e+00 : f32
    %447 = vector.broadcast %cst_68 : f32 to vector<2x16xf32>
    %448 = arith.addf %447, %446 : vector<2x16xf32>
    %449 = arith.divf %447, %448 : vector<2x16xf32>
    %450 = vector.extract_strided_slice %438 {offsets = [0, 16], sizes = [2, 16], strides = [1, 1]} : vector<2x48xf32> to vector<2x16xf32>
    %451 = vector.extract_strided_slice %441 {offsets = [0, 16], sizes = [2, 16], strides = [1, 1]} : vector<2x48xf32> to vector<2x16xf32>
    %452 = arith.addf %450, %451 : vector<2x16xf32>
    %453 = arith.negf %452 : vector<2x16xf32>
    %454 = math.exp %453 : vector<2x16xf32>
    %cst_69 = arith.constant 1.000000e+00 : f32
    %455 = vector.broadcast %cst_69 : f32 to vector<2x16xf32>
    %456 = arith.addf %455, %454 : vector<2x16xf32>
    %457 = arith.divf %455, %456 : vector<2x16xf32>
    %458 = vector.extract_strided_slice %438 {offsets = [0, 32], sizes = [2, 16], strides = [1, 1]} : vector<2x48xf32> to vector<2x16xf32>
    %459 = vector.extract_strided_slice %441 {offsets = [0, 32], sizes = [2, 16], strides = [1, 1]} : vector<2x48xf32> to vector<2x16xf32>
    %460 = arith.mulf %449, %459 : vector<2x16xf32>
    %461 = arith.addf %458, %460 : vector<2x16xf32>
    %462 = math.tanh %461 : vector<2x16xf32>
    %cst_70 = arith.constant 1.000000e+00 : f32
    %463 = vector.broadcast %cst_70 : f32 to vector<2x16xf32>
    %464 = arith.subf %463, %457 : vector<2x16xf32>
    %465 = arith.mulf %464, %462 : vector<2x16xf32>
    %466 = arith.mulf %457, %435 : vector<2x16xf32>
    %467 = arith.addf %465, %466 : vector<2x16xf32>
    %468 = vector.extract_strided_slice %18 {offsets = [14, 0], sizes = [1, 48], strides = [1, 1]} : vector<32x48xf32> to vector<1x48xf32>
    %469 = vector.extract_strided_slice %18 {offsets = [30, 0], sizes = [1, 48], strides = [1, 1]} : vector<32x48xf32> to vector<1x48xf32>
    %470 = tpu.concatenate %468, %469 in 0 : vector<1x48xf32>, vector<1x48xf32> -> vector<2x48xf32>
    %cst_71 = arith.constant dense<0.000000e+00> : vector<2x48xf32>
    %471 = tpu.matmul %467, %12, %cst_71 {dimension_numbers = #tpu.dot_dimension_numbers<[1], [0], [0], [1], [0, 0, 1, 1], [], []>} : vector<2x16xf32>, vector<16x48xf32>, vector<2x48xf32> -> vector<2x48xf32>
    %472 = vector.broadcast %13 : vector<1x48xf32> to vector<2x48xf32>
    %473 = arith.addf %471, %472 : vector<2x48xf32>
    %474 = vector.extract_strided_slice %470 {offsets = [0, 0], sizes = [2, 16], strides = [1, 1]} : vector<2x48xf32> to vector<2x16xf32>
    %475 = vector.extract_strided_slice %473 {offsets = [0, 0], sizes = [2, 16], strides = [1, 1]} : vector<2x48xf32> to vector<2x16xf32>
    %476 = arith.addf %474, %475 : vector<2x16xf32>
    %477 = arith.negf %476 : vector<2x16xf32>
    %478 = math.exp %477 : vector<2x16xf32>
    %cst_72 = arith.constant 1.000000e+00 : f32
    %479 = vector.broadcast %cst_72 : f32 to vector<2x16xf32>
    %480 = arith.addf %479, %478 : vector<2x16xf32>
    %481 = arith.divf %479, %480 : vector<2x16xf32>
    %482 = vector.extract_strided_slice %470 {offsets = [0, 16], sizes = [2, 16], strides = [1, 1]} : vector<2x48xf32> to vector<2x16xf32>
    %483 = vector.extract_strided_slice %473 {offsets = [0, 16], sizes = [2, 16], strides = [1, 1]} : vector<2x48xf32> to vector<2x16xf32>
    %484 = arith.addf %482, %483 : vector<2x16xf32>
    %485 = arith.negf %484 : vector<2x16xf32>
    %486 = math.exp %485 : vector<2x16xf32>
    %cst_73 = arith.constant 1.000000e+00 : f32
    %487 = vector.broadcast %cst_73 : f32 to vector<2x16xf32>
    %488 = arith.addf %487, %486 : vector<2x16xf32>
    %489 = arith.divf %487, %488 : vector<2x16xf32>
    %490 = vector.extract_strided_slice %470 {offsets = [0, 32], sizes = [2, 16], strides = [1, 1]} : vector<2x48xf32> to vector<2x16xf32>
    %491 = vector.extract_strided_slice %473 {offsets = [0, 32], sizes = [2, 16], strides = [1, 1]} : vector<2x48xf32> to vector<2x16xf32>
    %492 = arith.mulf %481, %491 : vector<2x16xf32>
    %493 = arith.addf %490, %492 : vector<2x16xf32>
    %494 = math.tanh %493 : vector<2x16xf32>
    %cst_74 = arith.constant 1.000000e+00 : f32
    %495 = vector.broadcast %cst_74 : f32 to vector<2x16xf32>
    %496 = arith.subf %495, %489 : vector<2x16xf32>
    %497 = arith.mulf %496, %494 : vector<2x16xf32>
    %498 = arith.mulf %489, %467 : vector<2x16xf32>
    %499 = arith.addf %497, %498 : vector<2x16xf32>
    %500 = vector.extract_strided_slice %18 {offsets = [15, 0], sizes = [1, 48], strides = [1, 1]} : vector<32x48xf32> to vector<1x48xf32>
    %501 = vector.extract_strided_slice %18 {offsets = [31, 0], sizes = [1, 48], strides = [1, 1]} : vector<32x48xf32> to vector<1x48xf32>
    %502 = tpu.concatenate %500, %501 in 0 : vector<1x48xf32>, vector<1x48xf32> -> vector<2x48xf32>
    %cst_75 = arith.constant dense<0.000000e+00> : vector<2x48xf32>
    %503 = tpu.matmul %499, %12, %cst_75 {dimension_numbers = #tpu.dot_dimension_numbers<[1], [0], [0], [1], [0, 0, 1, 1], [], []>} : vector<2x16xf32>, vector<16x48xf32>, vector<2x48xf32> -> vector<2x48xf32>
    %504 = vector.broadcast %13 : vector<1x48xf32> to vector<2x48xf32>
    %505 = arith.addf %503, %504 : vector<2x48xf32>
    %506 = vector.extract_strided_slice %502 {offsets = [0, 0], sizes = [2, 16], strides = [1, 1]} : vector<2x48xf32> to vector<2x16xf32>
    %507 = vector.extract_strided_slice %505 {offsets = [0, 0], sizes = [2, 16], strides = [1, 1]} : vector<2x48xf32> to vector<2x16xf32>
    %508 = arith.addf %506, %507 : vector<2x16xf32>
    %509 = arith.negf %508 : vector<2x16xf32>
    %510 = math.exp %509 : vector<2x16xf32>
    %cst_76 = arith.constant 1.000000e+00 : f32
    %511 = vector.broadcast %cst_76 : f32 to vector<2x16xf32>
    %512 = arith.addf %511, %510 : vector<2x16xf32>
    %513 = arith.divf %511, %512 : vector<2x16xf32>
    %514 = vector.extract_strided_slice %502 {offsets = [0, 16], sizes = [2, 16], strides = [1, 1]} : vector<2x48xf32> to vector<2x16xf32>
    %515 = vector.extract_strided_slice %505 {offsets = [0, 16], sizes = [2, 16], strides = [1, 1]} : vector<2x48xf32> to vector<2x16xf32>
    %516 = arith.addf %514, %515 : vector<2x16xf32>
    %517 = arith.negf %516 : vector<2x16xf32>
    %518 = math.exp %517 : vector<2x16xf32>
    %cst_77 = arith.constant 1.000000e+00 : f32
    %519 = vector.broadcast %cst_77 : f32 to vector<2x16xf32>
    %520 = arith.addf %519, %518 : vector<2x16xf32>
    %521 = arith.divf %519, %520 : vector<2x16xf32>
    %522 = vector.extract_strided_slice %502 {offsets = [0, 32], sizes = [2, 16], strides = [1, 1]} : vector<2x48xf32> to vector<2x16xf32>
    %523 = vector.extract_strided_slice %505 {offsets = [0, 32], sizes = [2, 16], strides = [1, 1]} : vector<2x48xf32> to vector<2x16xf32>
    %524 = arith.mulf %513, %523 : vector<2x16xf32>
    %525 = arith.addf %522, %524 : vector<2x16xf32>
    %526 = math.tanh %525 : vector<2x16xf32>
    %cst_78 = arith.constant 1.000000e+00 : f32
    %527 = vector.broadcast %cst_78 : f32 to vector<2x16xf32>
    %528 = arith.subf %527, %521 : vector<2x16xf32>
    %529 = arith.mulf %528, %526 : vector<2x16xf32>
    %530 = arith.mulf %521, %499 : vector<2x16xf32>
    %531 = arith.addf %529, %530 : vector<2x16xf32>
    %532 = tpu.concatenate %51, %83, %115, %147, %179, %211, %243, %275, %307, %339, %371, %403, %435, %467, %499, %531 in 1 : vector<2x16xf32>, vector<2x16xf32>, vector<2x16xf32>, vector<2x16xf32>, vector<2x16xf32>, vector<2x16xf32>, vector<2x16xf32>, vector<2x16xf32>, vector<2x16xf32>, vector<2x16xf32>, vector<2x16xf32>, vector<2x16xf32>, vector<2x16xf32>, vector<2x16xf32>, vector<2x16xf32>, vector<2x16xf32> -> vector<2x256xf32>
    %c0_79 = arith.constant 0 : index
    %c0_80 = arith.constant 0 : index
    %533 = vector.load %arg5[%c0_79, %c0_80] : memref<256x32xf32, #tpu.memory_space<vmem>>, vector<256x32xf32>
    %cst_81 = arith.constant dense<0.000000e+00> : vector<2x32xf32>
    %534 = tpu.matmul %532, %533, %cst_81 {dimension_numbers = #tpu.dot_dimension_numbers<[1], [0], [0], [1], [0, 0, 1, 1], [], []>} : vector<2x256xf32>, vector<256x32xf32>, vector<2x32xf32> -> vector<2x32xf32>
    %535 = vector.extract_strided_slice %534 {offsets = [0, 0], sizes = [2, 16], strides = [1, 1]} : vector<2x32xf32> to vector<2x16xf32>
    %536 = vector.extract_strided_slice %534 {offsets = [0, 16], sizes = [2, 16], strides = [1, 1]} : vector<2x32xf32> to vector<2x16xf32>
    %cst_82 = arith.constant dense<0.000000e+00> : vector<16x2xf32>
    %537 = tpu.matmul %4, %535, %cst_82 {dimension_numbers = #tpu.dot_dimension_numbers<[1], [1], [0], [0], [0, 0, 1, 0], [], []>} : vector<16x16xf32>, vector<2x16xf32>, vector<16x2xf32> -> vector<16x2xf32>
    %cst_83 = arith.constant 0.000000e+00 : f32
    %538 = vector.broadcast %cst_83 : f32 to vector<16x16xf32>
    %539 = vector.extract_strided_slice %537 {offsets = [0, 0], sizes = [16, 1], strides = [1, 1]} : vector<16x2xf32> to vector<16x1xf32>
    %540 = vector.extract_strided_slice %536 {offsets = [0, 0], sizes = [1, 16], strides = [1, 1]} : vector<2x16xf32> to vector<1x16xf32>
    %541 = vector.broadcast %539 : vector<16x1xf32> to vector<16x16xf32>
    %542 = vector.broadcast %540 : vector<1x16xf32> to vector<16x16xf32>
    %543 = arith.addf %541, %542 : vector<16x16xf32>
    %cst_84 = arith.constant 0.000000e+00 : f32
    %544 = vector.broadcast %cst_84 : f32 to vector<16x16xf32>
    %545 = arith.cmpf oge, %543, %544 : vector<16x16xf32>
    %cst_85 = arith.constant 2.000000e-01 : f32
    %546 = vector.broadcast %cst_85 : f32 to vector<16x16xf32>
    %547 = arith.mulf %546, %543 : vector<16x16xf32>
    %548 = arith.select %545, %543, %547 : vector<16x16xi1>, vector<16x16xf32>
    %cst_86 = arith.constant dense<0xFF800000> : vector<16xf32>
    %549 = vector.multi_reduction <maximumf>, %548, %cst_86 [1] : vector<16x16xf32> to vector<16xf32>
    %550 = vector.shape_cast %549 : vector<16xf32> to vector<16x1xf32>
    %551 = vector.broadcast %550 : vector<16x1xf32> to vector<16x16xf32>
    %552 = arith.subf %548, %551 : vector<16x16xf32>
    %553 = math.exp %552 : vector<16x16xf32>
    %cst_87 = arith.constant dense<0.000000e+00> : vector<16xf32>
    %554 = vector.multi_reduction <add>, %553, %cst_87 [1] : vector<16x16xf32> to vector<16xf32>
    %555 = vector.shape_cast %554 : vector<16xf32> to vector<16x1xf32>
    %556 = vector.broadcast %555 : vector<16x1xf32> to vector<16x16xf32>
    %557 = arith.divf %553, %556 : vector<16x16xf32>
    %558 = arith.addf %538, %557 : vector<16x16xf32>
    %559 = vector.extract_strided_slice %537 {offsets = [0, 1], sizes = [16, 1], strides = [1, 1]} : vector<16x2xf32> to vector<16x1xf32>
    %560 = vector.extract_strided_slice %536 {offsets = [1, 0], sizes = [1, 16], strides = [1, 1]} : vector<2x16xf32> to vector<1x16xf32>
    %561 = vector.broadcast %559 : vector<16x1xf32> to vector<16x16xf32>
    %562 = vector.broadcast %560 : vector<1x16xf32> to vector<16x16xf32>
    %563 = arith.addf %561, %562 : vector<16x16xf32>
    %cst_88 = arith.constant 0.000000e+00 : f32
    %564 = vector.broadcast %cst_88 : f32 to vector<16x16xf32>
    %565 = arith.cmpf oge, %563, %564 : vector<16x16xf32>
    %cst_89 = arith.constant 2.000000e-01 : f32
    %566 = vector.broadcast %cst_89 : f32 to vector<16x16xf32>
    %567 = arith.mulf %566, %563 : vector<16x16xf32>
    %568 = arith.select %565, %563, %567 : vector<16x16xi1>, vector<16x16xf32>
    %cst_90 = arith.constant dense<0xFF800000> : vector<16xf32>
    %569 = vector.multi_reduction <maximumf>, %568, %cst_90 [1] : vector<16x16xf32> to vector<16xf32>
    %570 = vector.shape_cast %569 : vector<16xf32> to vector<16x1xf32>
    %571 = vector.broadcast %570 : vector<16x1xf32> to vector<16x16xf32>
    %572 = arith.subf %568, %571 : vector<16x16xf32>
    %573 = math.exp %572 : vector<16x16xf32>
    %cst_91 = arith.constant dense<0.000000e+00> : vector<16xf32>
    %574 = vector.multi_reduction <add>, %573, %cst_91 [1] : vector<16x16xf32> to vector<16xf32>
    %575 = vector.shape_cast %574 : vector<16xf32> to vector<16x1xf32>
    %576 = vector.broadcast %575 : vector<16x1xf32> to vector<16x16xf32>
    %577 = arith.divf %573, %576 : vector<16x16xf32>
    %578 = arith.addf %558, %577 : vector<16x16xf32>
    %cst_92 = arith.constant 5.000000e-01 : f32
    %579 = vector.broadcast %cst_92 : f32 to vector<16x16xf32>
    %580 = arith.mulf %578, %579 : vector<16x16xf32>
    %cst_93 = arith.constant dense<0.000000e+00> : vector<16x16xf32>
    %581 = tpu.matmul %4, %580, %cst_93 {dimension_numbers = #tpu.dot_dimension_numbers<[1], [1], [0], [0], [0, 0, 1, 0], [], []>} : vector<16x16xf32>, vector<16x16xf32>, vector<16x16xf32> -> vector<16x16xf32>
    %582 = arith.addf %580, %581 : vector<16x16xf32>
    %cst_94 = arith.constant 5.000000e-01 : f32
    %583 = vector.broadcast %cst_94 : f32 to vector<16x16xf32>
    %584 = arith.mulf %583, %582 : vector<16x16xf32>
    %cst_95 = arith.constant dense<0.000000e+00> : vector<16xf32>
    %585 = vector.multi_reduction <add>, %580, %cst_95 [1] : vector<16x16xf32> to vector<16xf32>
    %586 = vector.shape_cast %585 : vector<16xf32> to vector<16x1xf32>
    %cst_96 = arith.constant dense<0.000000e+00> : vector<16xf32>
    %587 = vector.multi_reduction <add>, %581, %cst_96 [0] : vector<16x16xf32> to vector<16xf32>
    %588 = vector.shape_cast %587 : vector<16xf32> to vector<1x16xf32>
    %589 = math.sqrt %586 : vector<16x1xf32>
    %cst_97 = arith.constant 1.000000e-07 : f32
    %590 = vector.broadcast %cst_97 : f32 to vector<16x1xf32>
    %591 = arith.addf %589, %590 : vector<16x1xf32>
    %cst_98 = arith.constant 1.000000e+00 : f32
    %592 = vector.broadcast %cst_98 : f32 to vector<16x1xf32>
    %593 = arith.divf %592, %591 : vector<16x1xf32>
    %594 = math.sqrt %588 : vector<1x16xf32>
    %cst_99 = arith.constant 1.000000e-07 : f32
    %595 = vector.broadcast %cst_99 : f32 to vector<1x16xf32>
    %596 = arith.addf %594, %595 : vector<1x16xf32>
    %cst_100 = arith.constant 1.000000e+00 : f32
    %597 = vector.broadcast %cst_100 : f32 to vector<1x16xf32>
    %598 = arith.divf %597, %596 : vector<1x16xf32>
    %599 = vector.broadcast %586 : vector<16x1xf32> to vector<16x16xf32>
    %600 = arith.mulf %599, %4 : vector<16x16xf32>
    %601 = arith.subf %600, %584 : vector<16x16xf32>
    %602 = vector.broadcast %593 : vector<16x1xf32> to vector<16x16xf32>
    %603 = arith.mulf %602, %601 : vector<16x16xf32>
    %604 = vector.broadcast %598 : vector<1x16xf32> to vector<16x16xf32>
    %605 = arith.mulf %603, %604 : vector<16x16xf32>
    %cst_101 = arith.constant dense<0.000000e+00> : vector<16x16xf32>
    %606 = tpu.matmul %605, %605, %cst_101 {dimension_numbers = #tpu.dot_dimension_numbers<[1], [0], [0], [1], [0, 0, 1, 1], [], []>} : vector<16x16xf32>, vector<16x16xf32>, vector<16x16xf32> -> vector<16x16xf32>
    %cst_102 = arith.constant 2.000000e+00 : f32
    %607 = vector.broadcast %cst_102 : f32 to vector<16x16xf32>
    %608 = arith.mulf %607, %606 : vector<16x16xf32>
    %cst_103 = arith.constant dense<0.000000e+00> : vector<16x16xf32>
    %609 = tpu.matmul %605, %608, %cst_103 {dimension_numbers = #tpu.dot_dimension_numbers<[1], [0], [0], [1], [0, 0, 1, 1], [], []>} : vector<16x16xf32>, vector<16x16xf32>, vector<16x16xf32> -> vector<16x16xf32>
    %cst_104 = arith.constant 2.000000e+00 : f32
    %610 = vector.broadcast %cst_104 : f32 to vector<16x16xf32>
    %611 = arith.mulf %610, %609 : vector<16x16xf32>
    %612 = arith.subf %611, %605 : vector<16x16xf32>
    %c0_105 = arith.constant 0 : index
    %c0_106 = arith.constant 0 : index
    %613 = vector.load %arg36[%c0_105, %c0_106] : memref<16x16xf32, #tpu.memory_space<vmem>>, vector<16x16xf32>
    tpu.vector_store %arg36[%c0_105, %c0_106], %584 {strides = array<i32>} : memref<16x16xf32, #tpu.memory_space<vmem>>, vector<16x16xf32>,
    %cst_107 = arith.constant 0.000000e+00 : f32
    %614 = vector.broadcast %cst_107 : f32 to vector<16x16xf32>
    %615 = tpu.concatenate %605, %614 in 1 : vector<16x16xf32>, vector<16x16xf32> -> vector<16x32xf32>
    %616 = tpu.concatenate %614, %605 in 1 : vector<16x16xf32>, vector<16x16xf32> -> vector<16x32xf32>
    %617 = tpu.concatenate %615, %616 in 0 : vector<16x32xf32>, vector<16x32xf32> -> vector<32x32xf32>
    %cst_108 = arith.constant 0.000000e+00 : f32
    %618 = vector.broadcast %cst_108 : f32 to vector<16x16xf32>
    %619 = tpu.concatenate %608, %618 in 1 : vector<16x16xf32>, vector<16x16xf32> -> vector<16x32xf32>
    %620 = tpu.concatenate %618, %608 in 1 : vector<16x16xf32>, vector<16x16xf32> -> vector<16x32xf32>
    %621 = tpu.concatenate %619, %620 in 0 : vector<16x32xf32>, vector<16x32xf32> -> vector<32x32xf32>
    %cst_109 = arith.constant 0.000000e+00 : f32
    %622 = vector.broadcast %cst_109 : f32 to vector<16x16xf32>
    %623 = tpu.concatenate %612, %622 in 1 : vector<16x16xf32>, vector<16x16xf32> -> vector<16x32xf32>
    %624 = tpu.concatenate %622, %612 in 1 : vector<16x16xf32>, vector<16x16xf32> -> vector<16x32xf32>
    %625 = tpu.concatenate %623, %624 in 0 : vector<16x32xf32>, vector<16x32xf32> -> vector<32x32xf32>
    %c0_110 = arith.constant 0 : index
    %c0_111 = arith.constant 0 : index
    %626 = vector.load %arg6[%c0_110, %c0_111] : memref<16x1536xf32, #tpu.memory_space<vmem>>, vector<16x1536xf32>
    %cst_112 = arith.constant dense<0.000000e+00> : vector<32x1536xf32>
    %627 = tpu.matmul %11, %626, %cst_112 {dimension_numbers = #tpu.dot_dimension_numbers<[1], [0], [0], [1], [0, 0, 1, 1], [], []>} : vector<32x16xf32>, vector<16x1536xf32>, vector<32x1536xf32> -> vector<32x1536xf32>
    %c0_113 = arith.constant 0 : index
    %c0_114 = arith.constant 0 : index
    %628 = vector.load %arg7[%c0_113, %c0_114] : memref<1x512xf32, #tpu.memory_space<vmem>>, vector<1x512xf32>
    %629 = vector.extract_strided_slice %627 {offsets = [0, 0], sizes = [32, 512], strides = [1, 1]} : vector<32x1536xf32> to vector<32x512xf32>
    %cst_115 = arith.constant dense<0.000000e+00> : vector<32x512xf32>
    %630 = tpu.matmul %617, %629, %cst_115 {dimension_numbers = #tpu.dot_dimension_numbers<[1], [0], [0], [1], [0, 0, 1, 1], [], []>} : vector<32x32xf32>, vector<32x512xf32>, vector<32x512xf32> -> vector<32x512xf32>
    %631 = vector.broadcast %628 : vector<1x512xf32> to vector<32x512xf32>
    %632 = arith.addf %631, %630 : vector<32x512xf32>
    %633 = vector.extract_strided_slice %627 {offsets = [0, 512], sizes = [32, 512], strides = [1, 1]} : vector<32x1536xf32> to vector<32x512xf32>
    %cst_116 = arith.constant dense<0.000000e+00> : vector<32x512xf32>
    %634 = tpu.matmul %621, %633, %cst_116 {dimension_numbers = #tpu.dot_dimension_numbers<[1], [0], [0], [1], [0, 0, 1, 1], [], []>} : vector<32x32xf32>, vector<32x512xf32>, vector<32x512xf32> -> vector<32x512xf32>
    %635 = arith.addf %632, %634 : vector<32x512xf32>
    %636 = vector.extract_strided_slice %627 {offsets = [0, 1024], sizes = [32, 512], strides = [1, 1]} : vector<32x1536xf32> to vector<32x512xf32>
    %cst_117 = arith.constant dense<0.000000e+00> : vector<32x512xf32>
    %637 = tpu.matmul %625, %636, %cst_117 {dimension_numbers = #tpu.dot_dimension_numbers<[1], [0], [0], [1], [0, 0, 1, 1], [], []>} : vector<32x32xf32>, vector<32x512xf32>, vector<32x512xf32> -> vector<32x512xf32>
    %638 = arith.addf %635, %637 : vector<32x512xf32>
    %639 = vector.extract_strided_slice %638 {offsets = [0, 0], sizes = [32, 128], strides = [1, 1]} : vector<32x512xf32> to vector<32x128xf32>
    %640 = vector.extract_strided_slice %638 {offsets = [0, 128], sizes = [32, 128], strides = [1, 1]} : vector<32x512xf32> to vector<32x128xf32>
    %641 = arith.negf %640 : vector<32x128xf32>
    %642 = math.exp %641 : vector<32x128xf32>
    %cst_118 = arith.constant 1.000000e+00 : f32
    %643 = vector.broadcast %cst_118 : f32 to vector<32x128xf32>
    %644 = arith.addf %643, %642 : vector<32x128xf32>
    %645 = arith.divf %643, %644 : vector<32x128xf32>
    %646 = arith.mulf %639, %645 : vector<32x128xf32>
    %647 = vector.extract_strided_slice %638 {offsets = [0, 256], sizes = [32, 128], strides = [1, 1]} : vector<32x512xf32> to vector<32x128xf32>
    %648 = vector.extract_strided_slice %638 {offsets = [0, 384], sizes = [32, 128], strides = [1, 1]} : vector<32x512xf32> to vector<32x128xf32>
    %649 = arith.negf %648 : vector<32x128xf32>
    %650 = math.exp %649 : vector<32x128xf32>
    %cst_119 = arith.constant 1.000000e+00 : f32
    %651 = vector.broadcast %cst_119 : f32 to vector<32x128xf32>
    %652 = arith.addf %651, %650 : vector<32x128xf32>
    %653 = arith.divf %651, %652 : vector<32x128xf32>
    %654 = arith.mulf %647, %653 : vector<32x128xf32>
    %655 = tpu.concatenate %646, %654 in 1 : vector<32x128xf32>, vector<32x128xf32> -> vector<32x256xf32>
    %c0_120 = arith.constant 0 : index
    %c0_121 = arith.constant 0 : index
    %656 = vector.load %arg8[%c0_120, %c0_121] : memref<256x512xf32, #tpu.memory_space<vmem>>, vector<256x512xf32>
    %cst_122 = arith.constant dense<0.000000e+00> : vector<32x512xf32>
    %657 = tpu.matmul %655, %656, %cst_122 {dimension_numbers = #tpu.dot_dimension_numbers<[1], [0], [0], [1], [0, 0, 1, 1], [], []>} : vector<32x256xf32>, vector<256x512xf32>, vector<32x512xf32> -> vector<32x512xf32>
    %c0_123 = arith.constant 0 : index
    %c0_124 = arith.constant 0 : index
    %658 = vector.load %arg9[%c0_123, %c0_124] : memref<1x512xf32, #tpu.memory_space<vmem>>, vector<1x512xf32>
    %659 = vector.broadcast %658 : vector<1x512xf32> to vector<32x512xf32>
    %660 = arith.addf %657, %659 : vector<32x512xf32>
    %661 = vector.extract_strided_slice %660 {offsets = [0, 0], sizes = [32, 128], strides = [1, 1]} : vector<32x512xf32> to vector<32x128xf32>
    %662 = vector.extract_strided_slice %660 {offsets = [0, 128], sizes = [32, 128], strides = [1, 1]} : vector<32x512xf32> to vector<32x128xf32>
    %663 = arith.negf %662 : vector<32x128xf32>
    %664 = math.exp %663 : vector<32x128xf32>
    %cst_125 = arith.constant 1.000000e+00 : f32
    %665 = vector.broadcast %cst_125 : f32 to vector<32x128xf32>
    %666 = arith.addf %665, %664 : vector<32x128xf32>
    %667 = arith.divf %665, %666 : vector<32x128xf32>
    %668 = arith.mulf %661, %667 : vector<32x128xf32>
    %669 = vector.extract_strided_slice %660 {offsets = [0, 256], sizes = [32, 128], strides = [1, 1]} : vector<32x512xf32> to vector<32x128xf32>
    %670 = vector.extract_strided_slice %660 {offsets = [0, 384], sizes = [32, 128], strides = [1, 1]} : vector<32x512xf32> to vector<32x128xf32>
    %671 = arith.negf %670 : vector<32x128xf32>
    %672 = math.exp %671 : vector<32x128xf32>
    %cst_126 = arith.constant 1.000000e+00 : f32
    %673 = vector.broadcast %cst_126 : f32 to vector<32x128xf32>
    %674 = arith.addf %673, %672 : vector<32x128xf32>
    %675 = arith.divf %673, %674 : vector<32x128xf32>
    %676 = arith.mulf %669, %675 : vector<32x128xf32>
    %677 = tpu.concatenate %668, %676 in 1 : vector<32x128xf32>, vector<32x128xf32> -> vector<32x256xf32>
    %c0_127 = arith.constant 0 : index
    %c0_128 = arith.constant 0 : index
    %678 = vector.load %arg10[%c0_127, %c0_128] : memref<256x512xf32, #tpu.memory_space<vmem>>, vector<256x512xf32>
    %cst_129 = arith.constant dense<0.000000e+00> : vector<32x512xf32>
    %679 = tpu.matmul %677, %678, %cst_129 {dimension_numbers = #tpu.dot_dimension_numbers<[1], [0], [0], [1], [0, 0, 1, 1], [], []>} : vector<32x256xf32>, vector<256x512xf32>, vector<32x512xf32> -> vector<32x512xf32>
    %c0_130 = arith.constant 0 : index
    %c0_131 = arith.constant 0 : index
    %680 = vector.load %arg11[%c0_130, %c0_131] : memref<1x512xf32, #tpu.memory_space<vmem>>, vector<1x512xf32>
    %681 = vector.broadcast %680 : vector<1x512xf32> to vector<32x512xf32>
    %682 = arith.addf %679, %681 : vector<32x512xf32>
    %683 = vector.extract_strided_slice %682 {offsets = [0, 0], sizes = [32, 128], strides = [1, 1]} : vector<32x512xf32> to vector<32x128xf32>
    %684 = vector.extract_strided_slice %682 {offsets = [0, 128], sizes = [32, 128], strides = [1, 1]} : vector<32x512xf32> to vector<32x128xf32>
    %685 = arith.negf %684 : vector<32x128xf32>
    %686 = math.exp %685 : vector<32x128xf32>
    %cst_132 = arith.constant 1.000000e+00 : f32
    %687 = vector.broadcast %cst_132 : f32 to vector<32x128xf32>
    %688 = arith.addf %687, %686 : vector<32x128xf32>
    %689 = arith.divf %687, %688 : vector<32x128xf32>
    %690 = arith.mulf %683, %689 : vector<32x128xf32>
    %691 = vector.extract_strided_slice %682 {offsets = [0, 256], sizes = [32, 128], strides = [1, 1]} : vector<32x512xf32> to vector<32x128xf32>
    %692 = vector.extract_strided_slice %682 {offsets = [0, 384], sizes = [32, 128], strides = [1, 1]} : vector<32x512xf32> to vector<32x128xf32>
    %693 = arith.negf %692 : vector<32x128xf32>
    %694 = math.exp %693 : vector<32x128xf32>
    %cst_133 = arith.constant 1.000000e+00 : f32
    %695 = vector.broadcast %cst_133 : f32 to vector<32x128xf32>
    %696 = arith.addf %695, %694 : vector<32x128xf32>
    %697 = arith.divf %695, %696 : vector<32x128xf32>
    %698 = arith.mulf %691, %697 : vector<32x128xf32>
    %699 = tpu.concatenate %690, %698 in 1 : vector<32x128xf32>, vector<32x128xf32> -> vector<32x256xf32>
    %c0_134 = arith.constant 0 : index
    %c0_135 = arith.constant 0 : index
    %700 = vector.load %arg12[%c0_134, %c0_135] : memref<256x32xf32, #tpu.memory_space<vmem>>, vector<256x32xf32>
    %cst_136 = arith.constant dense<0.000000e+00> : vector<32x32xf32>
    %701 = tpu.matmul %699, %700, %cst_136 {dimension_numbers = #tpu.dot_dimension_numbers<[1], [0], [0], [1], [0, 0, 1, 1], [], []>} : vector<32x256xf32>, vector<256x32xf32>, vector<32x32xf32> -> vector<32x32xf32>
    %c0_137 = arith.constant 0 : index
    %c0_138 = arith.constant 0 : index
    %702 = vector.load %arg13[%c0_137, %c0_138] : memref<32x32xf32, #tpu.memory_space<vmem>>, vector<32x32xf32>
    %cst_139 = arith.constant dense<0.000000e+00> : vector<32x32xf32>
    %703 = tpu.matmul %701, %702, %cst_139 {dimension_numbers = #tpu.dot_dimension_numbers<[1], [0], [0], [1], [0, 0, 1, 1], [], []>} : vector<32x32xf32>, vector<32x32xf32>, vector<32x32xf32> -> vector<32x32xf32>
    %c0_140 = arith.constant 0 : index
    %c0_141 = arith.constant 0 : index
    %704 = vector.load %arg14[%c0_140, %c0_141] : memref<1x32xf32, #tpu.memory_space<vmem>>, vector<1x32xf32>
    %705 = vector.broadcast %704 : vector<1x32xf32> to vector<32x32xf32>
    %706 = arith.addf %703, %705 : vector<32x32xf32>
    %707 = arith.negf %706 : vector<32x32xf32>
    %708 = math.exp %707 : vector<32x32xf32>
    %cst_142 = arith.constant 1.000000e+00 : f32
    %709 = vector.broadcast %cst_142 : f32 to vector<32x32xf32>
    %710 = arith.addf %709, %708 : vector<32x32xf32>
    %711 = arith.divf %709, %710 : vector<32x32xf32>
    %c0_143 = arith.constant 0 : index
    %c0_144 = arith.constant 0 : index
    %712 = vector.load %arg15[%c0_143, %c0_144] : memref<32x16xf32, #tpu.memory_space<vmem>>, vector<32x16xf32>
    %cst_145 = arith.constant dense<0.000000e+00> : vector<32x16xf32>
    %713 = tpu.matmul %711, %712, %cst_145 {dimension_numbers = #tpu.dot_dimension_numbers<[1], [0], [0], [1], [0, 0, 1, 1], [], []>} : vector<32x32xf32>, vector<32x16xf32>, vector<32x16xf32> -> vector<32x16xf32>
    %c0_146 = arith.constant 0 : index
    %c0_147 = arith.constant 0 : index
    %714 = vector.load %arg16[%c0_146, %c0_147] : memref<1x16xf32, #tpu.memory_space<vmem>>, vector<1x16xf32>
    %715 = vector.broadcast %714 : vector<1x16xf32> to vector<32x16xf32>
    %716 = arith.addf %713, %715 : vector<32x16xf32>
    %c0_148 = arith.constant 0 : index
    %c0_149 = arith.constant 0 : index
    %717 = vector.load %arg17[%c0_148, %c0_149] : memref<32x16xf32, #tpu.memory_space<vmem>>, vector<32x16xf32>
    %cst_150 = arith.constant dense<0.000000e+00> : vector<32x16xf32>
    %718 = tpu.matmul %701, %717, %cst_150 {dimension_numbers = #tpu.dot_dimension_numbers<[1], [0], [0], [1], [0, 0, 1, 1], [], []>} : vector<32x32xf32>, vector<32x16xf32>, vector<32x16xf32> -> vector<32x16xf32>
    %c0_151 = arith.constant 0 : index
    %c0_152 = arith.constant 0 : index
    %719 = vector.load %arg18[%c0_151, %c0_152] : memref<16x16xf32, #tpu.memory_space<vmem>>, vector<16x16xf32>
    %cst_153 = arith.constant dense<0.000000e+00> : vector<32x16xf32>
    %720 = tpu.matmul %11, %719, %cst_153 {dimension_numbers = #tpu.dot_dimension_numbers<[1], [0], [0], [1], [0, 0, 1, 1], [], []>} : vector<32x16xf32>, vector<16x16xf32>, vector<32x16xf32> -> vector<32x16xf32>
    %721 = arith.addf %718, %720 : vector<32x16xf32>
    %c0_154 = arith.constant 0 : index
    %c0_155 = arith.constant 0 : index
    %722 = vector.load %arg19[%c0_154, %c0_155] : memref<1x16xf32, #tpu.memory_space<vmem>>, vector<1x16xf32>
    %723 = vector.broadcast %722 : vector<1x16xf32> to vector<32x16xf32>
    %724 = arith.addf %721, %723 : vector<32x16xf32>
    %725 = arith.negf %724 : vector<32x16xf32>
    %726 = math.exp %725 : vector<32x16xf32>
    %cst_156 = arith.constant 1.000000e+00 : f32
    %727 = vector.broadcast %cst_156 : f32 to vector<32x16xf32>
    %728 = arith.addf %727, %726 : vector<32x16xf32>
    %729 = arith.divf %727, %728 : vector<32x16xf32>
    %c0_157 = arith.constant 0 : index
    %c0_158 = arith.constant 0 : index
    %730 = vector.load %arg20[%c0_157, %c0_158] : memref<16x1536xf32, #tpu.memory_space<vmem>>, vector<16x1536xf32>
    %cst_159 = arith.constant dense<0.000000e+00> : vector<32x1536xf32>
    %731 = tpu.matmul %729, %730, %cst_159 {dimension_numbers = #tpu.dot_dimension_numbers<[1], [0], [0], [1], [0, 0, 1, 1], [], []>} : vector<32x16xf32>, vector<16x1536xf32>, vector<32x1536xf32> -> vector<32x1536xf32>
    %c0_160 = arith.constant 0 : index
    %c0_161 = arith.constant 0 : index
    %732 = vector.load %arg21[%c0_160, %c0_161] : memref<1x512xf32, #tpu.memory_space<vmem>>, vector<1x512xf32>
    %733 = vector.extract_strided_slice %731 {offsets = [0, 0], sizes = [32, 512], strides = [1, 1]} : vector<32x1536xf32> to vector<32x512xf32>
    %cst_162 = arith.constant dense<0.000000e+00> : vector<32x512xf32>
    %734 = tpu.matmul %617, %733, %cst_162 {dimension_numbers = #tpu.dot_dimension_numbers<[1], [0], [0], [1], [0, 0, 1, 1], [], []>} : vector<32x32xf32>, vector<32x512xf32>, vector<32x512xf32> -> vector<32x512xf32>
    %735 = vector.broadcast %732 : vector<1x512xf32> to vector<32x512xf32>
    %736 = arith.addf %735, %734 : vector<32x512xf32>
    %737 = vector.extract_strided_slice %731 {offsets = [0, 512], sizes = [32, 512], strides = [1, 1]} : vector<32x1536xf32> to vector<32x512xf32>
    %cst_163 = arith.constant dense<0.000000e+00> : vector<32x512xf32>
    %738 = tpu.matmul %621, %737, %cst_163 {dimension_numbers = #tpu.dot_dimension_numbers<[1], [0], [0], [1], [0, 0, 1, 1], [], []>} : vector<32x32xf32>, vector<32x512xf32>, vector<32x512xf32> -> vector<32x512xf32>
    %739 = arith.addf %736, %738 : vector<32x512xf32>
    %740 = vector.extract_strided_slice %731 {offsets = [0, 1024], sizes = [32, 512], strides = [1, 1]} : vector<32x1536xf32> to vector<32x512xf32>
    %cst_164 = arith.constant dense<0.000000e+00> : vector<32x512xf32>
    %741 = tpu.matmul %625, %740, %cst_164 {dimension_numbers = #tpu.dot_dimension_numbers<[1], [0], [0], [1], [0, 0, 1, 1], [], []>} : vector<32x32xf32>, vector<32x512xf32>, vector<32x512xf32> -> vector<32x512xf32>
    %742 = arith.addf %739, %741 : vector<32x512xf32>
    %743 = vector.extract_strided_slice %742 {offsets = [0, 0], sizes = [32, 128], strides = [1, 1]} : vector<32x512xf32> to vector<32x128xf32>
    %744 = vector.extract_strided_slice %742 {offsets = [0, 128], sizes = [32, 128], strides = [1, 1]} : vector<32x512xf32> to vector<32x128xf32>
    %745 = arith.negf %744 : vector<32x128xf32>
    %746 = math.exp %745 : vector<32x128xf32>
    %cst_165 = arith.constant 1.000000e+00 : f32
    %747 = vector.broadcast %cst_165 : f32 to vector<32x128xf32>
    %748 = arith.addf %747, %746 : vector<32x128xf32>
    %749 = arith.divf %747, %748 : vector<32x128xf32>
    %750 = arith.mulf %743, %749 : vector<32x128xf32>
    %751 = vector.extract_strided_slice %742 {offsets = [0, 256], sizes = [32, 128], strides = [1, 1]} : vector<32x512xf32> to vector<32x128xf32>
    %752 = vector.extract_strided_slice %742 {offsets = [0, 384], sizes = [32, 128], strides = [1, 1]} : vector<32x512xf32> to vector<32x128xf32>
    %753 = arith.negf %752 : vector<32x128xf32>
    %754 = math.exp %753 : vector<32x128xf32>
    %cst_166 = arith.constant 1.000000e+00 : f32
    %755 = vector.broadcast %cst_166 : f32 to vector<32x128xf32>
    %756 = arith.addf %755, %754 : vector<32x128xf32>
    %757 = arith.divf %755, %756 : vector<32x128xf32>
    %758 = arith.mulf %751, %757 : vector<32x128xf32>
    %759 = tpu.concatenate %750, %758 in 1 : vector<32x128xf32>, vector<32x128xf32> -> vector<32x256xf32>
    %c0_167 = arith.constant 0 : index
    %c0_168 = arith.constant 0 : index
    %760 = vector.load %arg22[%c0_167, %c0_168] : memref<256x512xf32, #tpu.memory_space<vmem>>, vector<256x512xf32>
    %cst_169 = arith.constant dense<0.000000e+00> : vector<32x512xf32>
    %761 = tpu.matmul %759, %760, %cst_169 {dimension_numbers = #tpu.dot_dimension_numbers<[1], [0], [0], [1], [0, 0, 1, 1], [], []>} : vector<32x256xf32>, vector<256x512xf32>, vector<32x512xf32> -> vector<32x512xf32>
    %c0_170 = arith.constant 0 : index
    %c0_171 = arith.constant 0 : index
    %762 = vector.load %arg23[%c0_170, %c0_171] : memref<1x512xf32, #tpu.memory_space<vmem>>, vector<1x512xf32>
    %763 = vector.broadcast %762 : vector<1x512xf32> to vector<32x512xf32>
    %764 = arith.addf %761, %763 : vector<32x512xf32>
    %765 = vector.extract_strided_slice %764 {offsets = [0, 0], sizes = [32, 128], strides = [1, 1]} : vector<32x512xf32> to vector<32x128xf32>
    %766 = vector.extract_strided_slice %764 {offsets = [0, 128], sizes = [32, 128], strides = [1, 1]} : vector<32x512xf32> to vector<32x128xf32>
    %767 = arith.negf %766 : vector<32x128xf32>
    %768 = math.exp %767 : vector<32x128xf32>
    %cst_172 = arith.constant 1.000000e+00 : f32
    %769 = vector.broadcast %cst_172 : f32 to vector<32x128xf32>
    %770 = arith.addf %769, %768 : vector<32x128xf32>
    %771 = arith.divf %769, %770 : vector<32x128xf32>
    %772 = arith.mulf %765, %771 : vector<32x128xf32>
    %773 = vector.extract_strided_slice %764 {offsets = [0, 256], sizes = [32, 128], strides = [1, 1]} : vector<32x512xf32> to vector<32x128xf32>
    %774 = vector.extract_strided_slice %764 {offsets = [0, 384], sizes = [32, 128], strides = [1, 1]} : vector<32x512xf32> to vector<32x128xf32>
    %775 = arith.negf %774 : vector<32x128xf32>
    %776 = math.exp %775 : vector<32x128xf32>
    %cst_173 = arith.constant 1.000000e+00 : f32
    %777 = vector.broadcast %cst_173 : f32 to vector<32x128xf32>
    %778 = arith.addf %777, %776 : vector<32x128xf32>
    %779 = arith.divf %777, %778 : vector<32x128xf32>
    %780 = arith.mulf %773, %779 : vector<32x128xf32>
    %781 = tpu.concatenate %772, %780 in 1 : vector<32x128xf32>, vector<32x128xf32> -> vector<32x256xf32>
    %c0_174 = arith.constant 0 : index
    %c0_175 = arith.constant 0 : index
    %782 = vector.load %arg24[%c0_174, %c0_175] : memref<256x512xf32, #tpu.memory_space<vmem>>, vector<256x512xf32>
    %cst_176 = arith.constant dense<0.000000e+00> : vector<32x512xf32>
    %783 = tpu.matmul %781, %782, %cst_176 {dimension_numbers = #tpu.dot_dimension_numbers<[1], [0], [0], [1], [0, 0, 1, 1], [], []>} : vector<32x256xf32>, vector<256x512xf32>, vector<32x512xf32> -> vector<32x512xf32>
    %c0_177 = arith.constant 0 : index
    %c0_178 = arith.constant 0 : index
    %784 = vector.load %arg25[%c0_177, %c0_178] : memref<1x512xf32, #tpu.memory_space<vmem>>, vector<1x512xf32>
    %785 = vector.broadcast %784 : vector<1x512xf32> to vector<32x512xf32>
    %786 = arith.addf %783, %785 : vector<32x512xf32>
    %787 = vector.extract_strided_slice %786 {offsets = [0, 0], sizes = [32, 128], strides = [1, 1]} : vector<32x512xf32> to vector<32x128xf32>
    %788 = vector.extract_strided_slice %786 {offsets = [0, 128], sizes = [32, 128], strides = [1, 1]} : vector<32x512xf32> to vector<32x128xf32>
    %789 = arith.negf %788 : vector<32x128xf32>
    %790 = math.exp %789 : vector<32x128xf32>
    %cst_179 = arith.constant 1.000000e+00 : f32
    %791 = vector.broadcast %cst_179 : f32 to vector<32x128xf32>
    %792 = arith.addf %791, %790 : vector<32x128xf32>
    %793 = arith.divf %791, %792 : vector<32x128xf32>
    %794 = arith.mulf %787, %793 : vector<32x128xf32>
    %795 = vector.extract_strided_slice %786 {offsets = [0, 256], sizes = [32, 128], strides = [1, 1]} : vector<32x512xf32> to vector<32x128xf32>
    %796 = vector.extract_strided_slice %786 {offsets = [0, 384], sizes = [32, 128], strides = [1, 1]} : vector<32x512xf32> to vector<32x128xf32>
    %797 = arith.negf %796 : vector<32x128xf32>
    %798 = math.exp %797 : vector<32x128xf32>
    %cst_180 = arith.constant 1.000000e+00 : f32
    %799 = vector.broadcast %cst_180 : f32 to vector<32x128xf32>
    %800 = arith.addf %799, %798 : vector<32x128xf32>
    %801 = arith.divf %799, %800 : vector<32x128xf32>
    %802 = arith.mulf %795, %801 : vector<32x128xf32>
    %803 = tpu.concatenate %794, %802 in 1 : vector<32x128xf32>, vector<32x128xf32> -> vector<32x256xf32>
    %c0_181 = arith.constant 0 : index
    %c0_182 = arith.constant 0 : index
    %804 = vector.load %arg26[%c0_181, %c0_182] : memref<256x32xf32, #tpu.memory_space<vmem>>, vector<256x32xf32>
    %cst_183 = arith.constant dense<0.000000e+00> : vector<32x32xf32>
    %805 = tpu.matmul %803, %804, %cst_183 {dimension_numbers = #tpu.dot_dimension_numbers<[1], [0], [0], [1], [0, 0, 1, 1], [], []>} : vector<32x256xf32>, vector<256x32xf32>, vector<32x32xf32> -> vector<32x32xf32>
    %c0_184 = arith.constant 0 : index
    %c0_185 = arith.constant 0 : index
    %806 = vector.load %arg27[%c0_184, %c0_185] : memref<32x32xf32, #tpu.memory_space<vmem>>, vector<32x32xf32>
    %cst_186 = arith.constant dense<0.000000e+00> : vector<32x32xf32>
    %807 = tpu.matmul %805, %806, %cst_186 {dimension_numbers = #tpu.dot_dimension_numbers<[1], [0], [0], [1], [0, 0, 1, 1], [], []>} : vector<32x32xf32>, vector<32x32xf32>, vector<32x32xf32> -> vector<32x32xf32>
    %c0_187 = arith.constant 0 : index
    %c0_188 = arith.constant 0 : index
    %808 = vector.load %arg28[%c0_187, %c0_188] : memref<1x32xf32, #tpu.memory_space<vmem>>, vector<1x32xf32>
    %809 = vector.broadcast %808 : vector<1x32xf32> to vector<32x32xf32>
    %810 = arith.addf %807, %809 : vector<32x32xf32>
    %811 = arith.negf %810 : vector<32x32xf32>
    %812 = math.exp %811 : vector<32x32xf32>
    %cst_189 = arith.constant 1.000000e+00 : f32
    %813 = vector.broadcast %cst_189 : f32 to vector<32x32xf32>
    %814 = arith.addf %813, %812 : vector<32x32xf32>
    %815 = arith.divf %813, %814 : vector<32x32xf32>
    %c0_190 = arith.constant 0 : index
    %c0_191 = arith.constant 0 : index
    %816 = vector.load %arg29[%c0_190, %c0_191] : memref<32x16xf32, #tpu.memory_space<vmem>>, vector<32x16xf32>
    %cst_192 = arith.constant dense<0.000000e+00> : vector<32x16xf32>
    %817 = tpu.matmul %815, %816, %cst_192 {dimension_numbers = #tpu.dot_dimension_numbers<[1], [0], [0], [1], [0, 0, 1, 1], [], []>} : vector<32x32xf32>, vector<32x16xf32>, vector<32x16xf32> -> vector<32x16xf32>
    %c0_193 = arith.constant 0 : index
    %c0_194 = arith.constant 0 : index
    %818 = vector.load %arg30[%c0_193, %c0_194] : memref<1x16xf32, #tpu.memory_space<vmem>>, vector<1x16xf32>
    %819 = vector.broadcast %818 : vector<1x16xf32> to vector<32x16xf32>
    %820 = arith.addf %817, %819 : vector<32x16xf32>
    %821 = arith.addf %716, %820 : vector<32x16xf32>
    %cst_195 = arith.constant dense<0.000000e+00> : vector<16x32xf32>
    %822 = tpu.matmul %4, %821, %cst_195 {dimension_numbers = #tpu.dot_dimension_numbers<[1], [1], [0], [0], [0, 0, 1, 0], [], []>} : vector<16x16xf32>, vector<32x16xf32>, vector<16x32xf32> -> vector<16x32xf32>
    %c0_196 = arith.constant 0 : index
    %c0_197 = arith.constant 0 : index
    %823 = vector.load %arg31[%c0_196, %c0_197] : memref<16x16xf32, #tpu.memory_space<vmem>>, vector<16x16xf32>
    %cst_198 = arith.constant dense<0.000000e+00> : vector<16x32xf32>
    %824 = tpu.matmul %823, %822, %cst_198 {dimension_numbers = #tpu.dot_dimension_numbers<[1], [0], [0], [1], [0, 0, 1, 1], [], []>} : vector<16x16xf32>, vector<16x32xf32>, vector<16x32xf32> -> vector<16x32xf32>
    %c0_199 = arith.constant 0 : index
    %c0_200 = arith.constant 0 : index
    %825 = vector.load %arg32[%c0_199, %c0_200] : memref<16x1xf32, #tpu.memory_space<vmem>>, vector<16x1xf32>
    %826 = vector.broadcast %825 : vector<16x1xf32> to vector<16x32xf32>
    %827 = arith.addf %824, %826 : vector<16x32xf32>
    %cst_201 = arith.constant 0.000000e+00 : f32
    %828 = vector.broadcast %cst_201 : f32 to vector<16x32xf32>
    %829 = arith.cmpf oge, %827, %828 : vector<16x32xf32>
    %cst_202 = arith.constant 0.00999999977 : f32
    %830 = vector.broadcast %cst_202 : f32 to vector<16x32xf32>
    %831 = arith.mulf %830, %827 : vector<16x32xf32>
    %832 = arith.select %829, %827, %831 : vector<16x32xi1>, vector<16x32xf32>
    %c0_203 = arith.constant 0 : index
    %c0_204 = arith.constant 0 : index
    %833 = vector.load %arg33[%c0_203, %c0_204] : memref<1x16xf32, #tpu.memory_space<vmem>>, vector<1x16xf32>
    %cst_205 = arith.constant dense<0.000000e+00> : vector<1x32xf32>
    %834 = tpu.matmul %833, %832, %cst_205 {dimension_numbers = #tpu.dot_dimension_numbers<[1], [0], [0], [1], [0, 0, 1, 1], [], []>} : vector<1x16xf32>, vector<16x32xf32>, vector<1x32xf32> -> vector<1x32xf32>
    %c0_206 = arith.constant 0 : index
    %c0_207 = arith.constant 0 : index
    %835 = vector.load %arg34[%c0_206, %c0_207] : memref<1x1xf32, #tpu.memory_space<vmem>>, vector<1x1xf32>
    %836 = vector.broadcast %835 : vector<1x1xf32> to vector<1x32xf32>
    %837 = arith.addf %834, %836 : vector<1x32xf32>
    %838 = vector.extract_strided_slice %837 {offsets = [0, 0], sizes = [1, 16], strides = [1, 1]} : vector<1x32xf32> to vector<1x16xf32>
    %c0_208 = arith.constant 0 : index
    %c0_209 = arith.constant 0 : index
    %c0_210 = arith.constant 0 : index
    %839 = vector.load %arg35[%c0_208, %c0_209, %c0_210] : memref<2x1x16xf32, #tpu.memory_space<vmem>>, vector<1x1x16xf32>
    %840 = vector.shape_cast %839 : vector<1x1x16xf32> to vector<1x16xf32>
    %841 = vector.shape_cast %838 : vector<1x16xf32> to vector<1x1x16xf32>
    tpu.vector_store %arg35[%c0_208, %c0_209, %c0_210], %841 {strides = array<i32>} : memref<2x1x16xf32, #tpu.memory_space<vmem>>, vector<1x1x16xf32>,
    %842 = vector.extract_strided_slice %837 {offsets = [0, 16], sizes = [1, 16], strides = [1, 1]} : vector<1x32xf32> to vector<1x16xf32>
    %c1_211 = arith.constant 1 : index
    %c0_212 = arith.constant 0 : index
    %c0_213 = arith.constant 0 : index
    %843 = vector.load %arg35[%c1_211, %c0_212, %c0_213] : memref<2x1x16xf32, #tpu.memory_space<vmem>>, vector<1x1x16xf32>
    %844 = vector.shape_cast %843 : vector<1x1x16xf32> to vector<1x16xf32>
    %845 = vector.shape_cast %842 : vector<1x16xf32> to vector<1x1x16xf32>
    tpu.vector_store %arg35[%c1_211, %c0_212, %c0_213], %845 {strides = array<i32>} : memref<2x1x16xf32, #tpu.memory_space<vmem>>, vector<1x1x16xf32>,
    return
  }
}

</mosaic_0001>

<bundles_post_ra>
// kernel: model_forward.1
= control target key start
LH: loop header
LB: loop body
LE: loop exit
PB: predicated region body
PF: predicated region fallthrough
CT: control target
= control target key end

     0   :  { %s11285_s6 = smov 1   ;;  %s11286_s10 = smov 2   ;;  %s12952_s0 = inlined_call_operand.smem [shape: u32[37], index: -1, kind: input, shape index: {}] }
   0x1   :  { %s11371_s5 = sld [smem:[%s12952_s0]]   ;;  %s11287_s14 = smov 3  }
   0x2   :  { %s11376_s9 = sld [smem:[%s12952_s0 + %s11285_s6]]   ;;  %s11288_s18 = smov 4  }
   0x3   :  { %s11381_s13 = sld [smem:[%s12952_s0 + %s11286_s10]]   ;;  %s11289_s22 = smov 5  }
   0x4   :  { %s11386_s17 = sld [smem:[%s12952_s0 + %s11287_s14]]   ;;  %s11290_s26 = smov 6  }
   0x5   :  { %s11391_s21 = sld [smem:[%s12952_s0 + %s11288_s18]]   ;;  %s11291_s30 = smov 7  }
   0x6   :  { %s11396_s25 = sld [smem:[%s12952_s0 + %s11289_s22]]   ;;  %s11292_s4 = smov 8  }
   0x7   :  { %s11401_s29 = sld [smem:[%s12952_s0 + %s11290_s26]]   ;;  %s11293_s10 = smov 9  }
   0x8   :  { %s11406_s3 = sld [smem:[%s12952_s0 + %s11291_s30]]   ;;  %s11294_s15 = smov 10  }
   0x9   :  { %s11411_s8 = sld [smem:[%s12952_s0 + %s11292_s4]]   ;;  %s11295_s20 = smov 11  }
   0xa   :  { %12969 = sst [smem:[#allocation56_spill]] %s11386_s17  ;;  %s11296_s26 = smov 12  }
   0xb   :  { %12970 = sst [smem:[#allocation57_spill]] %s11391_s21  ;;  %s11297_s1 = smov 13  }
   0xc   :  { %12971 = sst [smem:[#allocation58_spill]] %s11396_s25  ;;  %s11298_s7 = smov 14  }
   0xd   :  { %s11416_s14 = sld [smem:[%s12952_s0 + %s11293_s10]]   ;;  %s11300_s22 = smov 16  }
   0xe   :  { %s11421_s19 = sld [smem:[%s12952_s0 + %s11294_s15]]   ;;  %s11299_s15 = smov 15  }
   0xf   :  { %12972 = sst [smem:[#allocation59_spill]] %s11411_s8  ;;  %s11301_s28 = smov 17  }
  0x10   :  { %s11426_s24 = sld [smem:[%s12952_s0 + %s11295_s20]]   ;;  %s11319_s16 = smov 35  }
  0x11   :  { %s11431_s30 = sld [smem:[%s12952_s0 + %s11296_s26]]   ;;  %s11320_s23 = smov 36  }
  0x12   :  { %s11436_s6 = sld [smem:[%s12952_s0 + %s11297_s1]]  }
  0x13   :  { %s11441_s12 = sld [smem:[%s12952_s0 + %s11298_s7]]   ;;  %s11302_s7 = smov 18  }
  0x14   :  { %12973 = sst [smem:[#allocation60_spill]] %s11421_s19 }
  0x15   :  { %s11446_s20 = sld [smem:[%s12952_s0 + %s11299_s15]]   ;;  %s11303_s15 = smov 19  }
  0x16   :  { %s11451_s27 = sld [smem:[%s12952_s0 + %s11300_s22]]   ;;  %s11304_s22 = smov 20  }
  0x17   :  { %12974 = sst [smem:[#allocation61_spill]] %s11431_s30 }
  0x18   :  { %12975 = sst [smem:[#allocation62_spill]] %s11436_s6 }
  0x19   :  { %s11456_s4 = sld [smem:[%s12952_s0 + %s11301_s28]]   ;;  %s11305_s28 = smov 21  }
  0x1a   :  { %s11461_s30 = sld [smem:[%s12952_s0 + %s11302_s7]]   ;;  %s11306_s7 = smov 22  }
  0x1b   :  { %12976 = sst [smem:[#allocation63_spill]] %s11446_s20 }
  0x1c   :  { %12977 = sst [smem:[#allocation64_spill]] %s11451_s27 }
  0x1d   :  { %s11466_s20 = sld [smem:[%s12952_s0 + %s11303_s15]]   ;;  %s11307_s15 = smov 23  }
  0x1e   :  { %s11471_s8 = sld [smem:[%s12952_s0 + %s11304_s22]]   ;;  %s11308_s22 = smov 24  }
  0x1f   :  { %12978 = sst [smem:[#allocation65_spill]] %s11456_s4 }
  0x20   :  { %s11476_s4 = sld [smem:[%s12952_s0 + %s11305_s28]]   ;;  %s11309_s28 = smov 25  }
  0x21   :  { %s11481_s25 = sld [smem:[%s12952_s0 + %s11306_s7]]   ;;  %s11310_s7 = smov 26  }
  0x22   :  { %s11486_s17 = sld [smem:[%s12952_s0 + %s11307_s15]]   ;;  %s11311_s15 = smov 27  }
  0x23   :  { %12979 = sst [smem:[#allocation66_spill]] %s11466_s20 }
  0x24   :  { %s11491_s21 = sld [smem:[%s12952_s0 + %s11308_s22]]   ;;  %s11312_s22 = smov 28  }
  0x25   :  { %s11501_s20 = sld [smem:[%s12952_s0 + %s11310_s7]]   ;;  %s11314_s7 = smov 30  }
  0x26   :  { %12980 = sst [smem:[#allocation67_spill]] %s11476_s4 }
  0x27   :  { %s11496_s4 = sld [smem:[%s12952_s0 + %s11309_s28]]   ;;  %s11313_s28 = smov 29  }
  0x28   :  { %12981 = sst [smem:[#allocation68_spill]] %s11486_s17 }
  0x29   :  { %s11506_s17 = sld [smem:[%s12952_s0 + %s11311_s15]]   ;;  %s11315_s15 = smov 31  }
  0x2a   :  { %s11511_s27 = sld [smem:[%s12952_s0 + %s11312_s22]]   ;;  %s11316_s22 = smov 32  }
  0x2b   :  { %12983 = sst [smem:[#allocation70_spill]] %s11501_s20 }
  0x2c   :  { %s11521_s20 = sld [smem:[%s12952_s0 + %s11314_s7]]   ;;  %s11318_s7 = smov 34  }
  0x2d   :  { %12982 = sst [smem:[#allocation69_spill]] %s11496_s4 }
  0x2e   :  { %s11516_s4 = sld [smem:[%s12952_s0 + %s11313_s28]]   ;;  %s11317_s28 = smov 33  }
  0x2f   :  { %s11526_s6 = sld [smem:[%s12952_s0 + %s11315_s15]]  }
  0x30   :  { %12984 = sst [smem:[#allocation71_spill]] %s11511_s27 }
  0x31   :  { %s11531_s27 = sld [smem:[%s12952_s0 + %s11316_s22]]  }
  0x32   :  { %12986 = sst [smem:[#allocation73_spill]] %s11521_s20 }
  0x33   :  { %s8445_s20 = sld [smem:[%s12952_s0 + %s11318_s7]]  }
  0x34   :  { %12985 = sst [smem:[#allocation72_spill]] %s11516_s4 }
  0x35   :  { %s11536_s4 = sld [smem:[%s12952_s0 + %s11317_s28]]  }
  0x36   :  { %s11544_s19 = sld [smem:[%s12952_s0 + %s11319_s16]]  }
  0x37   :  { %12987 = sst [smem:[#allocation74_spill]] %s11531_s27 }
  0x38   :  { %s11549_s27 = sld [smem:[%s12952_s0 + %s11320_s23]]  }
  0x39   :  { %v79_v0 = vstv %s8445_s20 }
  0x3a   :  { %80 = vst [vmem:[#allocation2] sm:$0x1] %v79_v0 }
  0x3b   :  { %81 = vsyncpa [#allocation4], 0 }
  0x3c   :  { %82 = vsyncpa [#allocation7], 0 }
  0x3d   :  { %83 = vsyncpa [#allocation10], 0 }
  0x3e   :  { %84 = vsyncpa [#allocation13], 0 }
  0x3f   :  { %85 = vsyncpa [#allocation16], 0 }
  0x40   :  { %86 = vsyncpa [#allocation19], 0 }
  0x41   :  { %87 = vsyncpa [#allocation22], 0 }
  0x42   :  { %88 = vsyncpa [#allocation25], 0 }
  0x43   :  { %89 = vsyncpa [#allocation28], 0 }
  0x44   :  { %90 = vsyncpa [#allocation31], 0 }
  0x45   :  { %91 = vsyncpa [#allocation34], 0 }
  0x46   :  { %92 = vsyncpa [#allocation37], 0 }
  0x47   :  { %93 = vsyncpa [#allocation5], 0 }
  0x48   :  { %94 = vsyncpa [#allocation41], 0  ;;  %s11321_s0 = smov [#allocation6]   ;;  %s11322_s28 = smov [#allocation9]  }
  0x49   :  { %s112_s20 = sshll.u32 %s11321_s0, 4  ;;  %s142_s1 = sshll.u32 %s11322_s28, 4  ;;  %s113_s20 = int_to_ptr.vmem [resolvable:$true] %s112_s20  ;;  %s11551_s1 = int_to_ptr.vmem [resolvable:$true] %s142_s1 }
  0x4a   :  { %s10707_s2 = scalar_lea.hbm %s11376_s9, 256 }
  0x4b   :  { %p10708_p0 = scmp.ne.s32.totalorder %s11376_s9, %s10707_s2  ;;  %p10711_p1 = scmp.lt.u32.totalorder %s10707_s2, %s11376_s9 }
  0x4d   :  { %p10713_p2 = pnand %p10711_p1, %p10708_p0 }
  0x4f   :  { %10716 = shalt.err (!%p10713_p2)
}
  0x50   :  { %s10717_s7 = scalar_lea.vmem %s113_s20, 256  ;;  %p10722_p4 = scmp.lt.s32.totalorder %s113_s20, %s113_s20 }
  0x51   :  { %p10718_p3 = scmp.ne.s32.totalorder %s113_s20, %s10717_s7  ;;  %p10723_p5 = scmp.lt.s32.totalorder %s10717_s7, %s10717_s7 }
  0x53   :  { %p10724_p6 = por %p10723_p5, %p10722_p4 }
  0x55   :  { %p10725_p7 = pnand %p10724_p6, %p10718_p3 }
  0x57   :  { %10728 = shalt.err (!%p10725_p7)
}
  0x58   :  { %s11323_s10 = smov 128   ;;  %s11324_s11 = smov 8  }
  0x59   :  { %118 = dma.hbm_to_vmem [thread:$0]  %s11376_s9, 256, %s113_s20, [#allocation7], %s11323_s10, %s11323_s10, %s11324_s11  }
  0x5a   :  { %s10729_s16 = scalar_lea.hbm %s11401_s29, 3072 }
  0x5b   :  { %p10730_p8 = scmp.ne.s32.totalorder %s11401_s29, %s10729_s16  ;;  %p10733_p9 = scmp.lt.u32.totalorder %s10729_s16, %s11401_s29 }
  0x5d   :  { %p10735_p10 = pnand %p10733_p9, %p10730_p8 }
  0x5f   :  { %10738 = shalt.err (!%p10735_p10)
}
  0x60   :  { %s10739_s15 = scalar_lea.vmem %s11551_s1, 3072  ;;  %p10744_p12 = scmp.lt.s32.totalorder %s11551_s1, %s11551_s1 }
  0x61   :  { %p10740_p11 = scmp.ne.s32.totalorder %s11551_s1, %s10739_s15  ;;  %p10745_p13 = scmp.lt.s32.totalorder %s10739_s15, %s10739_s15 }
  0x63   :  { %p10746_p0 = por %p10745_p13, %p10744_p12 }
  0x65   :  { %p10747_p1 = pnand %p10746_p0, %p10740_p11 }
  0x67   :  { %10750 = shalt.err (!%p10747_p1)
}
  0x68   :  { %s11325_s18 = smov 1536   ;;  %s11326_s9 = smov 96  }
  0x69   :  { %148 = dma.hbm_to_vmem [thread:$0]  %s11401_s29, 3072, %s11551_s1, [#allocation10], %s11325_s18, %s11325_s18, %s11326_s9  }
  0x6a   :  { %s11327_s23 = smov [#allocation12]   ;;  %s11328_s26 = smov [#allocation15]  }
  0x6b   :  { %s167_s22 = sshll.u32 %s11327_s23, 4  ;;  %s189_s0 = sshll.u32 %s11328_s26, 4  ;;  %s168_s22 = int_to_ptr.vmem [resolvable:$true] %s167_s22  ;;  %s190_s0 = int_to_ptr.vmem [resolvable:$true] %s189_s0 }
  0x6c   :  { %s10751_s20 = scalar_lea.hbm %s11416_s14, 64 }
  0x6d   :  { %p10752_p2 = scmp.ne.s32.totalorder %s11416_s14, %s10751_s20  ;;  %p10755_p3 = scmp.lt.u32.totalorder %s10751_s20, %s11416_s14 }
  0x6f   :  { %p10757_p4 = pnand %p10755_p3, %p10752_p2 }
  0x71   :  { %10760 = shalt.err (!%p10757_p4)
}
  0x72   :  { %s10761_s28 = scalar_lea.vmem %s168_s22, 64  ;;  %p10766_p6 = scmp.lt.s32.totalorder %s168_s22, %s168_s22 }
  0x73   :  { %p10762_p5 = scmp.ne.s32.totalorder %s168_s22, %s10761_s28  ;;  %p10767_p7 = scmp.lt.s32.totalorder %s10761_s28, %s10761_s28 }
  0x75   :  { %p10768_p8 = por %p10767_p7, %p10766_p6 }
  0x77   :  { %p10769_p9 = pnand %p10768_p8, %p10762_p5 }
  0x79   :  { %10772 = shalt.err (!%p10769_p9)
}
  0x7a   :  { %170 = dma.hbm_to_vmem [thread:$0]  %s11416_s14, 64, %s168_s22, [#allocation13]  }
  0x7b   :  { %s10773_s29 = scalar_lea.hbm %s11426_s24, 64 }
  0x7c   :  { %p10774_p10 = scmp.ne.s32.totalorder %s11426_s24, %s10773_s29  ;;  %p10777_p11 = scmp.lt.u32.totalorder %s10773_s29, %s11426_s24 }
  0x7e   :  { %p10779_p12 = pnand %p10777_p11, %p10774_p10 }
  0x80   :  { %10782 = shalt.err (!%p10779_p12)
}
  0x81   :  { %s10783_s1 = scalar_lea.vmem %s190_s0, 64  ;;  %p10788_p0 = scmp.lt.s32.totalorder %s190_s0, %s190_s0 }
  0x82   :  { %p10784_p13 = scmp.ne.s32.totalorder %s190_s0, %s10783_s1  ;;  %p10789_p1 = scmp.lt.s32.totalorder %s10783_s1, %s10783_s1 }
  0x84   :  { %p10790_p2 = por %p10789_p1, %p10788_p0 }
  0x86   :  { %p10791_p3 = pnand %p10790_p2, %p10784_p13 }
  0x88   :  { %10794 = shalt.err (!%p10791_p3)
}
  0x89   :  { %192 = dma.hbm_to_vmem [thread:$0]  %s11426_s24, 64, %s190_s0, [#allocation16]  }
  0x8a   :  { %s11329_s2 = smov [#allocation18]   ;;  %s11330_s14 = smov [#allocation21]  }
  0x8b   :  { %s213_s7 = sshll.u32 %s11329_s2, 4  ;;  %s236_s16 = sshll.u32 %s11330_s14, 4  ;;  %s214_s7 = int_to_ptr.vmem [resolvable:$true] %s213_s7  ;;  %s11580_s16 = int_to_ptr.vmem [resolvable:$true] %s236_s16 }
  0x8c   :  { %s10795_s15 = scalar_lea.hbm %s11441_s12, 16 }
  0x8d   :  { %p10796_p4 = scmp.ne.s32.totalorder %s11441_s12, %s10795_s15  ;;  %p10799_p5 = scmp.lt.u32.totalorder %s10795_s15, %s11441_s12 }
  0x8f   :  { %p10801_p6 = pnand %p10799_p5, %p10796_p4 }
  0x91   :  { %10804 = shalt.err (!%p10801_p6)
}
  0x92   :  { %s10805_s23 = scalar_lea.vmem %s214_s7, 16  ;;  %s10809_s22 = scalar_lea.vmem %s214_s7, 32 }
  0x93   :  { %p10806_p7 = scmp.ne.s32.totalorder %s214_s7, %s10805_s23  ;;  %p10810_p8 = scmp.lt.s32.totalorder %s214_s7, %s214_s7 }
  0x94   :  { %p10811_p9 = scmp.lt.s32.totalorder %s10809_s22, %s10805_s23 }
  0x96   :  { %p10812_p10 = por %p10811_p9, %p10810_p8 }
  0x98   :  { %p10813_p11 = pnand %p10812_p10, %p10806_p7 }
  0x9a   :  { %10816 = shalt.err (!%p10813_p11)
}
  0x9b   :  { %216 = dma.hbm_to_vmem [thread:$0]  %s11441_s12, 16, %s214_s7, [#allocation19]  }
  0x9c   :  { %s10817_s24 = scalar_lea.hbm %s11461_s30, 256 }
  0x9d   :  { %p10818_p12 = scmp.ne.s32.totalorder %s11461_s30, %s10817_s24  ;;  %p10821_p13 = scmp.lt.u32.totalorder %s10817_s24, %s11461_s30 }
  0x9f   :  { %p10823_p0 = pnand %p10821_p13, %p10818_p12 }
  0xa1   :  { %10826 = shalt.err (!%p10823_p0)
}
  0xa2   :  { %s10827_s26 = scalar_lea.vmem %s11580_s16, 256  ;;  %p10832_p2 = scmp.lt.s32.totalorder %s11580_s16, %s11580_s16 }
  0xa3   :  { %p10828_p1 = scmp.ne.s32.totalorder %s11580_s16, %s10827_s26  ;;  %p10833_p3 = scmp.lt.s32.totalorder %s10827_s26, %s10827_s26 }
  0xa5   :  { %p10834_p4 = por %p10833_p3, %p10832_p2 }
  0xa7   :  { %p10835_p5 = pnand %p10834_p4, %p10828_p1 }
  0xa9   :  { %10838 = shalt.err (!%p10835_p5)
}
  0xaa   :  { %242 = dma.hbm_to_vmem [thread:$0]  %s11461_s30, 256, %s11580_s16, [#allocation22], %s11323_s10, %s11323_s10, %s11324_s11  }
  0xab   :  { %s11331_s12 = smov [#allocation24]   ;;  %s10839_s20 = scalar_lea.hbm %s11471_s8, 3072 }
  0xac   :  { %s258_s0 = sshll.u32 %s11331_s12, 4  ;;  %p10840_p6 = scmp.ne.s32.totalorder %s11471_s8, %s10839_s20  ;;  %s259_s0 = int_to_ptr.vmem [resolvable:$true] %s258_s0 }
  0xad   :  { %p10843_p7 = scmp.lt.u32.totalorder %s10839_s20, %s11471_s8 }
  0xaf   :  { %p10845_p8 = pnand %p10843_p7, %p10840_p6 }
  0xb1   :  { %10848 = shalt.err (!%p10845_p8)
}
  0xb2   :  { %s10849_s28 = scalar_lea.vmem %s259_s0, 3072  ;;  %p10854_p10 = scmp.lt.s32.totalorder %s259_s0, %s259_s0 }
  0xb3   :  { %p10850_p9 = scmp.ne.s32.totalorder %s259_s0, %s10849_s28  ;;  %p10855_p11 = scmp.lt.s32.totalorder %s10849_s28, %s10849_s28 }
  0xb5   :  { %p10856_p12 = por %p10855_p11, %p10854_p10 }
  0xb7   :  { %p10857_p13 = pnand %p10856_p12, %p10850_p9 }
  0xb9   :  { %10860 = shalt.err (!%p10857_p13)
}
  0xba   :  { %264 = dma.hbm_to_vmem [thread:$0]  %s11471_s8, 3072, %s259_s0, [#allocation25], %s11325_s18, %s11325_s18, %s11326_s9  }
  0xbb   :  { %s11332_s30 = smov [#allocation27]   ;;  %s11333_s1 = smov [#allocation30]  }
  0xbc   :  { %s280_s29 = sshll.u32 %s11332_s30, 4  ;;  %s302_s2 = sshll.u32 %s11333_s1, 4  ;;  %s281_s29 = int_to_ptr.vmem [resolvable:$true] %s280_s29  ;;  %s303_s2 = int_to_ptr.vmem [resolvable:$true] %s302_s2 }
  0xbd   :  { %s10861_s7 = scalar_lea.hbm %s11481_s25, 16384 }
  0xbe   :  { %p10862_p0 = scmp.ne.s32.totalorder %s11481_s25, %s10861_s7  ;;  %p10865_p1 = scmp.lt.u32.totalorder %s10861_s7, %s11481_s25 }
  0xc0   :  { %p10867_p2 = pnand %p10865_p1, %p10862_p0 }
  0xc2   :  { %10870 = shalt.err (!%p10867_p2)
}
  0xc3   :  { %s10871_s14 = scalar_lea.vmem %s281_s29, 16384  ;;  %p10876_p4 = scmp.lt.s32.totalorder %s281_s29, %s281_s29 }
  0xc4   :  { %p10872_p3 = scmp.ne.s32.totalorder %s281_s29, %s10871_s14  ;;  %p10877_p5 = scmp.lt.s32.totalorder %s10871_s14, %s10871_s14 }
  0xc6   :  { %p10878_p6 = por %p10877_p5, %p10876_p4 }
  0xc8   :  { %p10879_p7 = pnand %p10878_p6, %p10872_p3 }
  0xca   :  { %10882 = shalt.err (!%p10879_p7)
}
  0xcb   :  { %s11334_s16 = smov 512   ;;  %s11335_s8 = smov 32  }
  0xcc   :  { %286 = dma.hbm_to_vmem [thread:$0]  %s11481_s25, 16384, %s281_s29, [#allocation28], %s11334_s16, %s11334_s16, %s11335_s8  }
  0xcd   :  { %s10883_s18 = scalar_lea.hbm %s11491_s21, 16384 }
  0xce   :  { %p10884_p8 = scmp.ne.s32.totalorder %s11491_s21, %s10883_s18  ;;  %p10887_p9 = scmp.lt.u32.totalorder %s10883_s18, %s11491_s21 }
  0xd0   :  { %p10889_p10 = pnand %p10887_p9, %p10884_p8 }
  0xd2   :  { %10892 = shalt.err (!%p10889_p10)
}
  0xd3   :  { %s10893_s15 = scalar_lea.vmem %s303_s2, 16384  ;;  %p10898_p12 = scmp.lt.s32.totalorder %s303_s2, %s303_s2 }
  0xd4   :  { %p10894_p11 = scmp.ne.s32.totalorder %s303_s2, %s10893_s15  ;;  %p10899_p13 = scmp.lt.s32.totalorder %s10893_s15, %s10893_s15 }
  0xd6   :  { %p10900_p0 = por %p10899_p13, %p10898_p12 }
  0xd8   :  { %p10901_p1 = pnand %p10900_p0, %p10894_p11 }
  0xda   :  { %10904 = shalt.err (!%p10901_p1)
}
  0xdb   :  { %308 = dma.hbm_to_vmem [thread:$0]  %s11491_s21, 16384, %s303_s2, [#allocation31], %s11334_s16, %s11334_s16, %s11335_s8  }
  0xdc   :  { %s11336_s25 = smov [#allocation33]   ;;  %s11337_s22 = smov [#allocation36]  }
  0xdd   :  { %s326_s23 = sshll.u32 %s11336_s25, 4  ;;  %s352_s24 = sshll.u32 %s11337_s22, 4  ;;  %s327_s23 = int_to_ptr.vmem [resolvable:$true] %s326_s23  ;;  %s353_s24 = int_to_ptr.vmem [resolvable:$true] %s352_s24 }
  0xde   :  { %s10905_s26 = scalar_lea.hbm %s11506_s17, 512 }
  0xdf   :  { %p10906_p2 = scmp.ne.s32.totalorder %s11506_s17, %s10905_s26  ;;  %p10909_p3 = scmp.lt.u32.totalorder %s10905_s26, %s11506_s17 }
  0xe1   :  { %p10911_p4 = pnand %p10909_p3, %p10906_p2 }
  0xe3   :  { %10914 = shalt.err (!%p10911_p4)
}
  0xe4   :  { %s10915_s12 = scalar_lea.vmem %s327_s23, 512  ;;  %p10920_p6 = scmp.lt.s32.totalorder %s327_s23, %s327_s23 }
  0xe5   :  { %p10916_p5 = scmp.ne.s32.totalorder %s327_s23, %s10915_s12  ;;  %p10921_p7 = scmp.lt.s32.totalorder %s10915_s12, %s10915_s12 }
  0xe7   :  { %p10922_p8 = por %p10921_p7, %p10920_p6 }
  0xe9   :  { %p10923_p9 = pnand %p10922_p8, %p10916_p5 }
  0xeb   :  { %10926 = shalt.err (!%p10923_p9)
}
  0xec   :  { %332 = dma.hbm_to_vmem [thread:$0]  %s11506_s17, 512, %s327_s23, [#allocation34], %s11323_s10, %s11323_s10, %s11324_s11  }
  0xed   :  { %s10927_s21 = scalar_lea.hbm %s11526_s6, 256 }
  0xee   :  { %p10928_p10 = scmp.ne.s32.totalorder %s11526_s6, %s10927_s21  ;;  %p10931_p11 = scmp.lt.u32.totalorder %s10927_s21, %s11526_s6 }
  0xf0   :  { %p10933_p12 = pnand %p10931_p11, %p10928_p10 }
  0xf2   :  { %10936 = shalt.err (!%p10933_p12)
}
  0xf3   :  { %s10937_s0 = scalar_lea.vmem %s353_s24, 256  ;;  %p10942_p0 = scmp.lt.s32.totalorder %s353_s24, %s353_s24 }
  0xf4   :  { %p10938_p13 = scmp.ne.s32.totalorder %s353_s24, %s10937_s0  ;;  %p10943_p1 = scmp.lt.s32.totalorder %s10937_s0, %s10937_s0 }
  0xf6   :  { %p10944_p2 = por %p10943_p1, %p10942_p0 }
  0xf8   :  { %p10945_p3 = pnand %p10944_p2, %p10938_p13 }
  0xfa   :  { %10948 = shalt.err (!%p10945_p3)
}
  0xfb   :  { %358 = dma.hbm_to_vmem [thread:$0]  %s11526_s6, 256, %s353_s24, [#allocation37], %s11323_s10, %s11323_s10, %s11324_s11  }
  0xfc   :  { %s11338_s17 = smov [#allocation3]   ;;  %s11339_s28 = smov [#allocation8]  }
  0xfd   :  { %s100_s20 = sshll.u32 %s11338_s17, 4  ;;  %s124_s30 = sshll.u32 %s11339_s28, 4  ;;  %s101_s20 = int_to_ptr.vmem [resolvable:$true] %s100_s20  ;;  %s125_s30 = int_to_ptr.vmem [resolvable:$true] %s124_s30 }
  0xfe   :  { %s10949_s29 = scalar_lea.hbm %s11371_s5, 512 }
  0xff   :  { %p10950_p4 = scmp.ne.s32.totalorder %s11371_s5, %s10949_s29  ;;  %p10953_p5 = scmp.lt.u32.totalorder %s10949_s29, %s11371_s5 }
 0x101   :  { %p10955_p6 = pnand %p10953_p5, %p10950_p4 }
 0x103   :  { %10958 = shalt.err (!%p10955_p6)
}
 0x104   :  { %s10959_s1 = scalar_lea.vmem %s101_s20, 512  ;;  %p10964_p8 = scmp.lt.s32.totalorder %s101_s20, %s101_s20 }
 0x105   :  { %p10960_p7 = scmp.ne.s32.totalorder %s101_s20, %s10959_s1  ;;  %p10965_p9 = scmp.lt.s32.totalorder %s10959_s1, %s10959_s1 }
 0x107   :  { %p10966_p10 = por %p10965_p9, %p10964_p8 }
 0x109   :  { %p10967_p11 = pnand %p10966_p10, %p10960_p7 }
 0x10b   :  { %10970 = shalt.err (!%p10967_p11)
}
 0x10c   :  { %106 = dma.hbm_to_vmem [thread:$0]  %s11371_s5, 512, %s101_s20, [#allocation4], %s11323_s10, %s11323_s10, %s11324_s11  }
 0x10d   :  { %s10971_s6 = scalar_lea.hbm %s11381_s13, 256 }
 0x10e   :  { %p10972_p12 = scmp.ne.s32.totalorder %s11381_s13, %s10971_s6  ;;  %p10975_p13 = scmp.lt.u32.totalorder %s10971_s6, %s11381_s13 }
 0x110   :  { %p10977_p0 = pnand %p10975_p13, %p10972_p12 }
 0x112   :  { %10980 = shalt.err (!%p10977_p0)
}
 0x113   :  { %s10981_s2 = scalar_lea.vmem %s125_s30, 256  ;;  %p10986_p2 = scmp.lt.s32.totalorder %s125_s30, %s125_s30 }
 0x114   :  { %p10982_p1 = scmp.ne.s32.totalorder %s125_s30, %s10981_s2  ;;  %p10987_p3 = scmp.lt.s32.totalorder %s10981_s2, %s10981_s2 }
 0x116   :  { %p10988_p4 = por %p10987_p3, %p10986_p2 }
 0x118   :  { %p10989_p5 = pnand %p10988_p4, %p10982_p1 }
 0x11a   :  { %10992 = shalt.err (!%p10989_p5)
}
 0x11b   :  { %130 = dma.hbm_to_vmem [thread:$0]  %s11381_s13, 256, %s125_s30, [#allocation7], %s11323_s10, %s11323_s10, %s11324_s11  }
 0x11c   :  { %s11340_s5 = smov [#allocation11]   ;;  %s11341_s14 = smov [#allocation14]  }
 0x11d   :  { %s155_s7 = sshll.u32 %s11340_s5, 4  ;;  %s176_s18 = sshll.u32 %s11341_s14, 4  ;;  %s156_s7 = int_to_ptr.vmem [resolvable:$true] %s155_s7  ;;  %s177_s18 = int_to_ptr.vmem [resolvable:$true] %s176_s18 }
 0x11e   :  { %s10993_s15 = scalar_lea.hbm %s11406_s3, 64 }
 0x11f   :  { %p10994_p6 = scmp.ne.s32.totalorder %s11406_s3, %s10993_s15  ;;  %p10997_p7 = scmp.lt.u32.totalorder %s10993_s15, %s11406_s3 }
 0x121   :  { %p10999_p8 = pnand %p10997_p7, %p10994_p6 }
 0x123   :  { %11002 = shalt.err (!%p10999_p8)
}
 0x124   :  { %s11003_s25 = scalar_lea.vmem %s156_s7, 64  ;;  %p11008_p10 = scmp.lt.s32.totalorder %s156_s7, %s156_s7 }
 0x125   :  { %p11004_p9 = scmp.ne.s32.totalorder %s156_s7, %s11003_s25  ;;  %p11009_p11 = scmp.lt.s32.totalorder %s11003_s25, %s11003_s25 }
 0x127   :  { %p11010_p12 = por %p11009_p11, %p11008_p10 }
 0x129   :  { %p11011_p13 = pnand %p11010_p12, %p11004_p9 }
 0x12b   :  { %11014 = shalt.err (!%p11011_p13)
}
 0x12c   :  { %s12988_s23 = sld [smem:[#allocation60_spill]] }
 0x12d   :  { %158 = dma.hbm_to_vmem [thread:$0]  %s11406_s3, 64, %s156_s7, [#allocation10]  }
 0x132   :  { %s11015_s13 = scalar_lea.hbm %s12988_s23, 16384 }
 0x133   :  { %p11016_p0 = scmp.ne.s32.totalorder %s12988_s23, %s11015_s13  ;;  %p11019_p1 = scmp.lt.u32.totalorder %s11015_s13, %s12988_s23 }
 0x135   :  { %p11021_p2 = pnand %p11019_p1, %p11016_p0 }
 0x137   :  { %11024 = shalt.err (!%p11021_p2)
}
 0x138   :  { %s11025_s22 = scalar_lea.vmem %s177_s18, 16384  ;;  %p11030_p4 = scmp.lt.s32.totalorder %s177_s18, %s177_s18 }
 0x139   :  { %p11026_p3 = scmp.ne.s32.totalorder %s177_s18, %s11025_s22  ;;  %p11031_p5 = scmp.lt.s32.totalorder %s11025_s22, %s11025_s22 }
 0x13b   :  { %p11032_p6 = por %p11031_p5, %p11030_p4 }
 0x13d   :  { %p11033_p7 = pnand %p11032_p6, %p11026_p3 }
 0x13f   :  { %11036 = shalt.err (!%p11033_p7)
}
 0x140   :  { %s12989_s24 = sld [smem:[#allocation62_spill]]  ;;  %s11342_s3 = smov [#allocation17]  }
 0x141   :  { %182 = dma.hbm_to_vmem [thread:$0]  %s12988_s23, 16384, %s177_s18, [#allocation13], %s11334_s16, %s11334_s16, %s11335_s8  }
 0x142   :  { %s200_s26 = sshll.u32 %s11342_s3, 4  ;;  %s11343_s12 = smov [#allocation20]   ;;  %s201_s26 = int_to_ptr.vmem [resolvable:$true] %s200_s26 }
 0x143   :  { %s225_s21 = sshll.u32 %s11343_s12, 4  ;;  %s226_s21 = int_to_ptr.vmem [resolvable:$true] %s225_s21 }
 0x146   :  { %s11037_s0 = scalar_lea.hbm %s12989_s24, 512 }
 0x147   :  { %p11038_p8 = scmp.ne.s32.totalorder %s12989_s24, %s11037_s0  ;;  %p11041_p9 = scmp.lt.u32.totalorder %s11037_s0, %s12989_s24 }
 0x149   :  { %p11043_p10 = pnand %p11041_p9, %p11038_p8 }
 0x14b   :  { %11046 = shalt.err (!%p11043_p10)
}
 0x14c   :  { %s11047_s17 = scalar_lea.vmem %s201_s26, 512  ;;  %p11052_p12 = scmp.lt.s32.totalorder %s201_s26, %s201_s26 }
 0x14d   :  { %p11048_p11 = scmp.ne.s32.totalorder %s201_s26, %s11047_s17  ;;  %p11053_p13 = scmp.lt.s32.totalorder %s11047_s17, %s11047_s17 }
 0x14f   :  { %p11054_p0 = por %p11053_p13, %p11052_p12 }
 0x151   :  { %p11055_p1 = pnand %p11054_p0, %p11048_p11 }
 0x153   :  { %11058 = shalt.err (!%p11055_p1)
}
 0x154   :  { %s12990_s16 = sld [smem:[#allocation64_spill]] }
 0x155   :  { %206 = dma.hbm_to_vmem [thread:$0]  %s12989_s24, 512, %s201_s26, [#allocation16], %s11323_s10, %s11323_s10, %s11324_s11  }
 0x15a   :  { %s11059_s20 = scalar_lea.hbm %s12990_s16, 16 }
 0x15b   :  { %p11060_p2 = scmp.ne.s32.totalorder %s12990_s16, %s11059_s20  ;;  %p11063_p3 = scmp.lt.u32.totalorder %s11059_s20, %s12990_s16 }
 0x15d   :  { %p11065_p4 = pnand %p11063_p3, %p11060_p2 }
 0x15f   :  { %11068 = shalt.err (!%p11065_p4)
}
 0x160   :  { %s11069_s28 = scalar_lea.vmem %s226_s21, 16  ;;  %s11073_s30 = scalar_lea.vmem %s226_s21, 32 }
 0x161   :  { %p11070_p5 = scmp.ne.s32.totalorder %s226_s21, %s11069_s28  ;;  %p11074_p6 = scmp.lt.s32.totalorder %s226_s21, %s226_s21 }
 0x162   :  { %p11075_p7 = scmp.lt.s32.totalorder %s11073_s30, %s11069_s28 }
 0x164   :  { %p11076_p8 = por %p11075_p7, %p11074_p6 }
 0x166   :  { %p11077_p9 = pnand %p11076_p8, %p11070_p5 }
 0x168   :  { %11080 = shalt.err (!%p11077_p9)
}
 0x169   :  { %s12991_s29 = sld [smem:[#allocation66_spill]]  ;;  %s11344_s1 = smov [#allocation23]  }
 0x16a   :  { %228 = dma.hbm_to_vmem [thread:$0]  %s12990_s16, 16, %s226_s21, [#allocation19]  }
 0x16b   :  { %s249_s6 = sshll.u32 %s11344_s1, 4  ;;  %s11345_s2 = smov [#allocation26]   ;;  %s250_s6 = int_to_ptr.vmem [resolvable:$true] %s249_s6 }
 0x16c   :  { %s271_s5 = sshll.u32 %s11345_s2, 4  ;;  %s272_s5 = int_to_ptr.vmem [resolvable:$true] %s271_s5 }
 0x16f   :  { %s11081_s7 = scalar_lea.hbm %s12991_s29, 16 }
 0x170   :  { %p11082_p10 = scmp.ne.s32.totalorder %s12991_s29, %s11081_s7  ;;  %p11085_p11 = scmp.lt.u32.totalorder %s11081_s7, %s12991_s29 }
 0x172   :  { %p11087_p12 = pnand %p11085_p11, %p11082_p10 }
 0x174   :  { %11090 = shalt.err (!%p11087_p12)
}
 0x175   :  { %s11091_s14 = scalar_lea.vmem %s250_s6, 16  ;;  %s11095_s18 = scalar_lea.vmem %s250_s6, 32 }
 0x176   :  { %p11092_p13 = scmp.ne.s32.totalorder %s250_s6, %s11091_s14  ;;  %p11096_p0 = scmp.lt.s32.totalorder %s250_s6, %s250_s6 }
 0x177   :  { %p11097_p1 = scmp.lt.s32.totalorder %s11095_s18, %s11091_s14 }
 0x179   :  { %p11098_p2 = por %p11097_p1, %p11096_p0 }
 0x17b   :  { %p11099_p3 = pnand %p11098_p2, %p11092_p13 }
 0x17d   :  { %11102 = shalt.err (!%p11099_p3)
}
 0x17e   :  { %s12992_s15 = sld [smem:[#allocation67_spill]] }
 0x17f   :  { %252 = dma.hbm_to_vmem [thread:$0]  %s12991_s29, 16, %s250_s6, [#allocation22]  }
 0x184   :  { %s11103_s25 = scalar_lea.hbm %s12992_s15, 64 }
 0x185   :  { %p11104_p4 = scmp.ne.s32.totalorder %s12992_s15, %s11103_s25  ;;  %p11107_p5 = scmp.lt.u32.totalorder %s11103_s25, %s12992_s15 }
 0x187   :  { %p11109_p6 = pnand %p11107_p5, %p11104_p4 }
 0x189   :  { %11112 = shalt.err (!%p11109_p6)
}
 0x18a   :  { %s11113_s23 = scalar_lea.vmem %s272_s5, 64  ;;  %p11118_p8 = scmp.lt.s32.totalorder %s272_s5, %s272_s5 }
 0x18b   :  { %p11114_p7 = scmp.ne.s32.totalorder %s272_s5, %s11113_s23  ;;  %p11119_p9 = scmp.lt.s32.totalorder %s11113_s23, %s11113_s23 }
 0x18d   :  { %p11120_p10 = por %p11119_p9, %p11118_p8 }
 0x18f   :  { %p11121_p11 = pnand %p11120_p10, %p11114_p7 }
 0x191   :  { %11124 = shalt.err (!%p11121_p11)
}
 0x192   :  { %s12993_s13 = sld [smem:[#allocation68_spill]]  ;;  %s11346_s22 = smov [#allocation29]  }
 0x193   :  { %274 = dma.hbm_to_vmem [thread:$0]  %s12992_s15, 64, %s272_s5, [#allocation25]  }
 0x194   :  { %s293_s24 = sshll.u32 %s11346_s22, 4  ;;  %s11347_s3 = smov [#allocation32]   ;;  %s294_s24 = int_to_ptr.vmem [resolvable:$true] %s293_s24 }
 0x195   :  { %s315_s26 = sshll.u32 %s11347_s3, 4  ;;  %s316_s26 = int_to_ptr.vmem [resolvable:$true] %s315_s26 }
 0x198   :  { %s11125_s12 = scalar_lea.hbm %s12993_s13, 64 }
 0x199   :  { %p11126_p12 = scmp.ne.s32.totalorder %s12993_s13, %s11125_s12  ;;  %p11129_p13 = scmp.lt.u32.totalorder %s11125_s12, %s12993_s13 }
 0x19b   :  { %p11131_p0 = pnand %p11129_p13, %p11126_p12 }
 0x19d   :  { %11134 = shalt.err (!%p11131_p0)
}
 0x19e   :  { %s11135_s21 = scalar_lea.vmem %s294_s24, 64  ;;  %p11140_p2 = scmp.lt.s32.totalorder %s294_s24, %s294_s24 }
 0x19f   :  { %p11136_p1 = scmp.ne.s32.totalorder %s294_s24, %s11135_s21  ;;  %p11141_p3 = scmp.lt.s32.totalorder %s11135_s21, %s11135_s21 }
 0x1a1   :  { %p11142_p4 = por %p11141_p3, %p11140_p2 }
 0x1a3   :  { %p11143_p5 = pnand %p11142_p4, %p11136_p1 }
 0x1a5   :  { %11146 = shalt.err (!%p11143_p5)
}
 0x1a6   :  { %s12994_s0 = sld [smem:[#allocation69_spill]] }
 0x1a7   :  { %296 = dma.hbm_to_vmem [thread:$0]  %s12993_s13, 64, %s294_s24, [#allocation28]  }
 0x1ac   :  { %s11147_s17 = scalar_lea.hbm %s12994_s0, 64 }
 0x1ad   :  { %p11148_p6 = scmp.ne.s32.totalorder %s12994_s0, %s11147_s17  ;;  %p11151_p7 = scmp.lt.u32.totalorder %s11147_s17, %s12994_s0 }
 0x1af   :  { %p11153_p8 = pnand %p11151_p7, %p11148_p6 }
 0x1b1   :  { %11156 = shalt.err (!%p11153_p8)
}
 0x1b2   :  { %s11157_s16 = scalar_lea.vmem %s316_s26, 64  ;;  %p11162_p10 = scmp.lt.s32.totalorder %s316_s26, %s316_s26 }
 0x1b3   :  { %p11158_p9 = scmp.ne.s32.totalorder %s316_s26, %s11157_s16  ;;  %p11163_p11 = scmp.lt.s32.totalorder %s11157_s16, %s11157_s16 }
 0x1b5   :  { %p11164_p12 = por %p11163_p11, %p11162_p10 }
 0x1b7   :  { %p11165_p13 = pnand %p11164_p12, %p11158_p9 }
 0x1b9   :  { %11168 = shalt.err (!%p11165_p13)
}
 0x1ba   :  { %s12995_s20 = sld [smem:[#allocation71_spill]]  ;;  %s11348_s28 = smov [#allocation35]  }
 0x1bb   :  { %318 = dma.hbm_to_vmem [thread:$0]  %s12994_s0, 64, %s316_s26, [#allocation31]  }
 0x1bc   :  { %s339_s30 = sshll.u32 %s11348_s28, 4  ;;  %s11349_s29 = smov [#allocation38]   ;;  %s340_s30 = int_to_ptr.vmem [resolvable:$true] %s339_s30 }
 0x1bd   :  { %s367_s1 = sshll.u32 %s11349_s29, 4  ;;  %s368_s1 = int_to_ptr.vmem [resolvable:$true] %s367_s1 }
 0x1c0   :  { %s11169_s6 = scalar_lea.hbm %s12995_s20, 16 }
 0x1c1   :  { %p11170_p0 = scmp.ne.s32.totalorder %s12995_s20, %s11169_s6  ;;  %p11173_p1 = scmp.lt.u32.totalorder %s11169_s6, %s12995_s20 }
 0x1c3   :  { %p11175_p2 = pnand %p11173_p1, %p11170_p0 }
 0x1c5   :  { %11178 = shalt.err (!%p11175_p2)
}
 0x1c6   :  { %s11179_s2 = scalar_lea.vmem %s340_s30, 16  ;;  %s11183_s5 = scalar_lea.vmem %s340_s30, 32 }
 0x1c7   :  { %p11180_p3 = scmp.ne.s32.totalorder %s340_s30, %s11179_s2  ;;  %p11184_p4 = scmp.lt.s32.totalorder %s340_s30, %s340_s30 }
 0x1c8   :  { %p11185_p5 = scmp.lt.s32.totalorder %s11183_s5, %s11179_s2 }
 0x1ca   :  { %p11186_p6 = por %p11185_p5, %p11184_p4 }
 0x1cc   :  { %p11187_p7 = pnand %p11186_p6, %p11180_p3 }
 0x1ce   :  { %11190 = shalt.err (!%p11187_p7)
}
 0x1cf   :  { %342 = dma.hbm_to_vmem [thread:$0]  %s12995_s20, 16, %s340_s30, [#allocation34]  }
 0x1d0   :  { %s11191_s7 = scalar_lea.hbm %s11536_s4, 16 }
 0x1d1   :  { %p11192_p8 = scmp.ne.s32.totalorder %s11536_s4, %s11191_s7  ;;  %p11195_p9 = scmp.lt.u32.totalorder %s11191_s7, %s11536_s4 }
 0x1d3   :  { %p11197_p10 = pnand %p11195_p9, %p11192_p8 }
 0x1d5   :  { %11200 = shalt.err (!%p11197_p10)
}
 0x1d6   :  { %s11201_s14 = scalar_lea.vmem %s368_s1, 16  ;;  %s11205_s18 = scalar_lea.vmem %s368_s1, 32 }
 0x1d7   :  { %p11202_p11 = scmp.ne.s32.totalorder %s368_s1, %s11201_s14  ;;  %p11206_p12 = scmp.lt.s32.totalorder %s368_s1, %s368_s1 }
 0x1d8   :  { %p11207_p13 = scmp.lt.s32.totalorder %s11205_s18, %s11201_s14 }
 0x1da   :  { %p11208_p0 = por %p11207_p13, %p11206_p12 }
 0x1dc   :  { %p11209_p1 = pnand %p11208_p0, %p11202_p11 }
 0x1de   :  { %11212 = shalt.err (!%p11209_p1)
}
 0x1df   :  { %370 = dma.hbm_to_vmem [thread:$0]  %s11536_s4, 16, %s368_s1, [#allocation37]  }
 0x1e0   :  { %11257 = dma.done.wait [#allocation4], 512  }
 0x1e1   :  { %11258 = vsyncadd [#allocation4], 4294966784 }
 0x1e2   :  { %11259 = dma.done.wait [#allocation7], 512  }
 0x1e3   :  { %11260 = vsyncadd [#allocation7], 4294966784 }
 0x1e4   :  { %11261 = dma.done.wait [#allocation10], 3136  }
 0x1e5   :  { %11262 = vsyncadd [#allocation10], 4294964160 }
 0x1e6   :  { %11263 = dma.done.wait [#allocation13], 16448  }
 0x1e7   :  { %11264 = vsyncadd [#allocation13], 4294950848 }
 0x1e8   :  { %11265 = dma.done.wait [#allocation16], 576  }
 0x1e9   :  { %11266 = vsyncadd [#allocation16], 4294966720 }
 0x1ea   :  { %11267 = dma.done.wait [#allocation19], 32  }
 0x1eb   :  { %11268 = vsyncadd [#allocation19], 4294967264 }
 0x1ec   :  { %11269 = dma.done.wait [#allocation22], 272  }
 0x1ed   :  { %11270 = vsyncadd [#allocation22], 4294967024 }
 0x1ee   :  { %11271 = dma.done.wait [#allocation25], 3136  }
 0x1ef   :  { %11272 = vsyncadd [#allocation25], 4294964160 }
 0x1f0   :  { %11273 = dma.done.wait [#allocation28], 16448  }
 0x1f1   :  { %11274 = vsyncadd [#allocation28], 4294950848 }
 0x1f2   :  { %11275 = dma.done.wait [#allocation31], 16448  }
 0x1f3   :  { %11276 = vsyncadd [#allocation31], 4294950848 }
 0x1f4   :  { %11277 = dma.done.wait [#allocation34], 528  }
 0x1f5   :  { %11278 = vsyncadd [#allocation34], 4294966768 }
 0x1f6   :  { %11279 = dma.done.wait [#allocation37], 272  }
 0x1f7   :  { %11280 = vsyncadd [#allocation37], 4294967024  ;;  %v442_v1 = vlaneseq  ;;  %vm455_vm0 = vcmask 130048   ;;  %v11350_v4 = vmov 0.0   ;;  %v453_v7 = vld [vmem:[#allocation3] sm:$0xff]  ;;  %v454_v8 = vld [vmem:[#allocation3 + $0x8] sm:$0xff] }
 0x1f8   :  { %vm11701_vm2 = vmpackc.low %vm455_vm0, %vm455_vm0  ;;  %v544_v9 = vld [vmem:[#allocation3 + $0x10] sm:$0xff]  ;;  %v9226_v10 = vpack.c.bf16 %v454_v8, %v453_v7  ;;  %v545_v11 = vld [vmem:[#allocation3 + $0x18] sm:$0xff]  ;;  %v11351_v17 = vmov 0.0|0.0   ;;  %s12998_s4 = sld [smem:[#allocation57_spill]]  ;;  %vm11352_vm4 = vmmov 0   ;;  %s12999_s15 = sld [smem:[#allocation56_spill]] }
 0x1f9   :  { %v11693_v2 = vshrl.u32 %v442_v1, 7  ;;  %v446_v3 = vand.u32 127, %v442_v1  ;;  %v9232_v13 = vpack.c.bf16 %v545_v11, %v544_v9  ;;  %v630_v14 = vld [vmem:[#allocation6] sm:$0xff]  ;;  %v631_v15 = vld [vmem:[#allocation6 + $0x8] sm:$0xff]  ;;  %v627_v18 = vld [vmem:[#allocation8] sm:$0xff]  ;;  %vm739_vm5 = vcmask 1040384  }
 0x1fa   :  { %9228 = vmatprep.subr.msk.bf16.mxu0 %vm11701_vm2, %v9226_v10  ;;  %v9238_v16 = vpack.c.bf16 %v631_v15, %v630_v14  ;;  %v628_v19 = vld [vmem:[#allocation8 + $0x8] sm:$0xff]  ;;  %s11353_s25 = smov 112   ;;  %s13000_s23 = sld [smem:[#allocation58_spill]]  ;;  %vm2473_vm6 = vcmask 261120   ;;  %vm2475_vm7 = vcmask 392192   ;;  %vm2477_vm8 = vcmask 523264  }
 0x1fb   :  { %vm447_vm1 = vcmp.eq.s32.totalorder %v11693_v2, %v446_v3  ;;  %v444_v12 = vadd.s32 8, %v11693_v2  ;;  %9231 = vmatpush3.bf16.xpose.msk.msra.mxu0 %vm11701_vm2, %v9226_v10  ;;  %9234 = vmatprep.subr.msk.bf16.mxu1 %vm11701_vm2, %v9232_v13  ;;  %v11722_v21 = vpack.c.bf16 %v628_v19, %v627_v18  ;;  %s11354_s13 = smov 16   ;;  %s11355_s22 = smov 48   ;;  %vm2479_vm9 = vcmask 654336  }
 0x1fc   :  { %v11697_v5 = vsel %vm447_vm1, 1.0, %v11350_v4  ;;  %9237 = vmatpush3.bf16.xpose.msk.msra.mxu1 %vm11701_vm2, %v9232_v13  ;;  %9239 = vmatprep.subr.bf16.mxu0 %v9238_v16  ;;  %s11356_s24 = smov 80   ;;  %s11357_s3 = smov 64   ;;  %vm2481_vm10 = vcmask 785408   ;;  %vm2483_vm11 = vcmask 916480   ;;  %vm2694_vm13 = vcmask 261248  }
 0x1fd   :  { %8963 = vmatprep.mubr.msk.f32.mxu0 %vm455_vm0, %v11697_v5  ;;  %8970 = vmatprep.mubr.msk.f32.mxu1 %vm455_vm0, %v11697_v5  ;;  %vm448_vm3 = vcmp.eq.s32.totalorder %v444_v12, %v446_v3  ;;  %s13003_s26 = sld [smem:[#allocation61_spill]]  ;;  %s13004_s12 = sld [smem:[#allocation63_spill]] }
 0x1fe   :  { %9242 = vmatprep.subr.bf16.mxu1 %v11351_v17  ;;  %v11720_v20 = vsel %vm448_vm3, 1.0, %v11350_v4  ;;  %v11751_v26 = vld [vmem:[%s12998_s4] ss:$0 sm:$0xff]  ;;  %s13005_s21 = sld [smem:[#allocation65_spill]]  ;;  %s13006_s0 = sld [smem:[#allocation70_spill]] }
 0x1ff   :  { %v8458_v30 = vld [vmem:[%s12999_s15] ss:$0 sm:$0xff]  ;;  %s13007_s17 = sld [smem:[#allocation72_spill]]  ;;  %s13008_s16 = sld [smem:[#allocation73_spill]] }
 0x200   :  { %s11360_s20 = smov [#allocation40]  }
 0x201   :  { %s8385_s28 = sshll.u32 %s11360_s20, 4  ;;  %s8386_s28 = int_to_ptr.vmem [resolvable:$true] %s8385_s28 }
 0x202   :  { %8964 = vmatmul.mubr.msk.f32.vlgmr.msra.gmra.mrb[0].mxu0 %vm455_vm0, %v11720_v20  ;;  %s11213_s30 = scalar_lea.vmem %s8386_s28, 256  ;;  %p11218_p3 = scmp.lt.s32.totalorder %s8386_s28, %s8386_s28 }
 0x203   :  { %8971 = vmatmul.mubr.msk.f32.vlgmr.msra.gmra.mrb[0].mxu1 %vm455_vm0, %v11720_v20  ;;  %9241 = vmatpush3.bf16.msra.mxu0 %v9238_v16  ;;  %p11214_p2 = scmp.ne.s32.totalorder %s8386_s28, %s11213_s30  ;;  %p11219_p4 = scmp.lt.s32.totalorder %s11213_s30, %s11213_s30 }
 0x204   :  { %9244 = vmatpush3.bf16.msra.mxu1 %v11722_v21  ;;  %8987 = vmatprep.mubr.msk.f32.mxu1 %vm11352_vm4, %v11350_v4 }
 0x205   :  { %9245 = vmatprep.subr.bf16.mxu1 %v11351_v17  ;;  %9248 = vmatprep.subr.bf16.mxu0 %v11351_v17  ;;  %p11220_p5 = por %p11219_p4, %p11218_p3 }
 0x207   :  { %8988 = vmatmul.mubr.f32.vlgmr.msra.gmra.mrb[2].mxu1 %v11350_v4  ;;  %p11221_p6 = pnand %p11220_p5, %p11214_p2 }
 0x208   :  { %9247 = vmatpush3.bf16.msra.mxu1 %v11722_v21  ;;  %8994 = vmatprep.mubr.msk.f32.mxu1 %vm11352_vm4, %v11350_v4 }
 0x209   :  { %9251 = vmatprep.subr.bf16.mxu1 %v11351_v17 }
 0x2d5   :  { %v11738_v22 = vpop.f32.mrb[0].mxu0 }
 0x2d6   :  { %v11740_v23 = vpop.f32.mrb[1].mxu0  ;;  %v11742_v24 = vpop.f32.mrb[0].mxu1 }
 0x2d7   :  { %8977 = vmatprep.mubr.msk.f32.mxu0 %vm455_vm0, %v11740_v23  ;;  %v11746_v25 = vpop.f32.mrb[1].mxu1 }
 0x2d8   :  { %8978 = vmatmul.mubr.msk.f32.vlgmr.msra.gmra.mrb[2].mxu0 %vm455_vm0, %v11738_v22 }
 0x2d9   :  { %8980 = vmatprep.mubr.msk.f32.mxu0 %vm455_vm0, %v11746_v25  ;;  %9250 = vmatpush3.bf16.msra.mxu0 %v11722_v21 }
 0x2da   :  { %v816_v27 = vpop.f32.mrb[2].mxu1  ;;  %9254 = vmatprep.subr.bf16.mxu0 %v11351_v17 }
 0x2db   :  { %v817_v28 = vadd.f32 %v11751_v26, %v816_v27  ;;  %v8989_v29 = vpop.f32.mrb[3].mxu1 }
 0x2dc   :  { %8981 = vmatmul.mubr.msk.f32.gmra.mrb[4].mxu0 %vm455_vm0, %v11742_v24 }
 0x2dd   :  { %828 = vrot.lane.b32.xlu0 %v817_v28, %s11326_s9  ;;  %9001 = vmatprep.mubr.msk.f32.mxu0 %vm11352_vm4, %v11350_v4 }
 0x3ab   :  { %v8979_v31 = vpop.f32.mrb[2].mxu0 }
 0x3ac   :  { %v723_v32 = vadd.f32 %v8979_v31, %v8458_v30  ;;  %v717_v33 = vpop.f32.mrb[3].mxu0 }
 0x3ad   :  { %v718_v34 = vadd.f32 %v8458_v30, %v717_v33 }
 0x3ae   :  { %v1693_v35 = vrot.slane %v723_v32, 1  ;;  %v1797_v36 = vrot.slane %v723_v32, 2  ;;  %v1903_v37 = vrot.slane %v723_v32, 3  ;;  %v2009_v38 = vrot.slane %v723_v32, 4 }
 0x3af   :  { %v8982_v39 = vpop.f32.mrb[4].mxu0  ;;  %v847_v40 = vrot.slane %v718_v34, 1  ;;  %v951_v41 = vrot.slane %v718_v34, 2  ;;  %v1057_v42 = vrot.slane %v718_v34, 3  ;;  %v1163_v43 = vrot.slane %v718_v34, 4 }
 0x3b0   :  { %v733_v44 = vadd.f32 %v8982_v39, %v8458_v30  ;;  %v727_v45 = vpop.f32.mrb[5].mxu0  ;;  %v1269_v46 = vrot.slane %v718_v34, 5  ;;  %v1375_v47 = vrot.slane %v718_v34, 6  ;;  %v1481_v48 = vrot.slane %v718_v34, 7 }
 0x3b1   :  { %v728_v49 = vadd.f32 %v8458_v30, %v727_v45  ;;  %v2115_v50 = vrot.slane %v723_v32, 5  ;;  %v2221_v51 = vrot.slane %v723_v32, 6  ;;  %v2327_v52 = vrot.slane %v723_v32, 7 }
 0x3b2   :  { %v1588_v53 = vrot.slane %v733_v44, 7  ;;  %v11765_v54 = vsel %vm739_vm5, %v1693_v35, %v733_v44  ;;  %v1799_v55 = vrot.slane %v733_v44, 1  ;;  %v1905_v56 = vrot.slane %v733_v44, 2  ;;  %v829_v35 = vpop.permute.xlu0 %828 }
 0x3b3   :  { %v737_v57 = vrot.slane %v728_v49, 7  ;;  %v11768_v58 = vsel %vm739_vm5, %v847_v40, %v728_v49  ;;  %v953_v59 = vrot.slane %v728_v49, 1  ;;  %v1059_v60 = vrot.slane %v728_v49, 2 }
 0x3b4   :  { %v1165_v61 = vrot.slane %v728_v49, 3  ;;  %v1271_v62 = vrot.slane %v728_v49, 4  ;;  %v1377_v63 = vrot.slane %v728_v49, 5  ;;  %v1483_v0 = vrot.slane %v728_v49, 6 }
 0x3b5   :  { %v740_v1 = vsel %vm739_vm5, %v718_v34, %v737_v57  ;;  %v11772_v3 = vsel %vm739_vm5, %v951_v41, %v953_v59  ;;  %v11775_v7 = vsel %vm739_vm5, %v1057_v42, %v1059_v60  ;;  %v11778_v8 = vsel %vm739_vm5, %v723_v32, %v1588_v53 }
 0x3b6   :  { %v820_v9 = vadd.f32 %v817_v28, %v740_v1  ;;  %v11781_v10 = vsel %vm739_vm5, %v1163_v43, %v1165_v61  ;;  %v11784_v11 = vsel %vm739_vm5, %v1269_v46, %v1271_v62  ;;  %v11787_v12 = vsel %vm739_vm5, %v1375_v47, %v1377_v63 }
 0x3b7   :  { %v11790_v13 = vsel %vm739_vm5, %v1481_v48, %v1483_v0  ;;  %v11793_v14 = vsel %vm739_vm5, %v1797_v36, %v1799_v55  ;;  %v11796_v15 = vsel %vm739_vm5, %v1903_v37, %v1905_v56  ;;  %v2011_v16 = vrot.slane %v733_v44, 3 }
 0x3b8   :  { %v8464_v18 = vmul.f32 -1.442695, %v820_v9  ;;  %v2117_v19 = vrot.slane %v733_v44, 4  ;;  %v2223_v27 = vrot.slane %v733_v44, 5  ;;  %v2329_v28 = vrot.slane %v733_v44, 6 }
 0x3b9   :  { %v11799_v29 = vsel %vm739_vm5, %v2009_v38, %v2011_v16 }
 0x3ba   :  { %10343 = vpow2.f32 %v8464_v18  ;;  %v11802_v30 = vsel %vm739_vm5, %v2115_v50, %v2117_v19  ;;  %v11805_v31 = vsel %vm739_vm5, %v2221_v51, %v2223_v27  ;;  %v11808_v32 = vsel %vm739_vm5, %v2327_v52, %v2329_v28 }
 0x3c4   :  { %v10344_v33 = vpop.eup %10343 }
 0x3c5   :  { %v824_v34 = vadd.f32 1.0, %v10344_v33 }
 0x3c7   :  { %10345 = vrcp.f32 %v824_v34 }
 0x3d1   :  { %v10346_v36 = vpop.eup %10345 }
 0x3d2   :  { %v831_v37 = vmul.f32 %v10346_v36, %v829_v35  ;;  %v838_v41 = vsub.f32 1.0, %v10346_v36  ;;  %v844_v43 = vmul.f32 0.0, %v10346_v36 }
 0x3d4   :  { %833 = vrot.lane.b32.xlu0 %v831_v37, %s11335_s8 }
 0x446   :  { %v834_v38 = vpop.permute.xlu0 %833 }
 0x447   :  { %v836_v39 = vadd.f32 %v834_v38, %v740_v1 }
 0x449   :  { %10347 = vtanh.f32 %v836_v39 }
 0x453   :  { %v10348_v40 = vpop.eup %10347 }
 0x454   :  { %840 = vrot.lane.b32.xlu1 %v10348_v40, %s11353_s25 }
 0x4c6   :  { %v841_v42 = vpop.permute.xlu1 %840 }
 0x4c7   :  { %v843_v44 = vmul.f32 %v841_v42, %v838_v41 }
 0x4c9   :  { %v845_v45 = vadd.f32 %v844_v43, %v843_v44 }
 0x4cb   :  { %851 = vrot.lane.b32.xlu1 %v845_v45, %s11353_s25 }
 0x53d   :  { %v11813_v46 = vpop.permute.xlu1 %851 }
 0x53e   :  { %8995 = vmatmul.mubr.msk.f32.vlgmr.msra.gmra.mrb[4].mxu1 %vm455_vm0, %v11813_v46 }
 0x53f   :  { %9253 = vmatpush3.bf16.msra.mxu1 %v11722_v21  ;;  %9008 = vmatprep.mubr.msk.f32.mxu1 %vm11352_vm4, %v11350_v4 }
 0x540   :  { %9257 = vmatprep.subr.bf16.mxu1 %v11351_v17 }
 0x611   :  { %v921_v47 = vpop.f32.mrb[4].mxu1 }
 0x612   :  { %v922_v48 = vadd.f32 %v11751_v26, %v921_v47  ;;  %v8996_v49 = vpop.f32.mrb[5].mxu1 }
 0x614   :  { %933 = vrot.lane.b32.xlu0 %v922_v48, %s11326_s9  ;;  %v925_v50 = vadd.f32 %v922_v48, %v11768_v58 }
 0x616   :  { %v8466_v51 = vmul.f32 -1.442695, %v925_v50 }
 0x618   :  { %10349 = vpow2.f32 %v8466_v51 }
 0x622   :  { %v10350_v52 = vpop.eup %10349 }
 0x623   :  { %v929_v53 = vadd.f32 1.0, %v10350_v52 }
 0x625   :  { %10351 = vrcp.f32 %v929_v53 }
 0x62f   :  { %v10352_v55 = vpop.eup %10351 }
 0x630   :  { %v943_v62 = vsub.f32 1.0, %v10352_v55  ;;  %v949_v0 = vmul.f32 %v10352_v55, %v845_v45 }
 0x686   :  { %v934_v56 = vpop.permute.xlu0 %933 }
 0x687   :  { %v936_v57 = vmul.f32 %v10352_v55, %v934_v56 }
 0x689   :  { %938 = vrot.lane.b32.xlu1 %v936_v57, %s11335_s8 }
 0x6fb   :  { %v939_v59 = vpop.permute.xlu1 %938 }
 0x6fc   :  { %v941_v60 = vadd.f32 %v939_v59, %v11768_v58 }
 0x6fe   :  { %10353 = vtanh.f32 %v941_v60 }
 0x708   :  { %v10354_v61 = vpop.eup %10353 }
 0x709   :  { %945 = vrot.lane.b32.xlu0 %v10354_v61, %s11353_s25 }
 0x77b   :  { %v946_v63 = vpop.permute.xlu0 %945 }
 0x77c   :  { %v948_v1 = vmul.f32 %v946_v63, %v943_v62 }
 0x77e   :  { %v11827_v9 = vadd.f32 %v949_v0, %v948_v1 }
 0x780   :  { %957 = vrot.lane.b32.xlu1 %v11827_v9, %s11353_s25 }
 0x7f2   :  { %v958_v16 = vpop.permute.xlu1 %957 }
 0x7f3   :  { %9002 = vmatmul.mubr.msk.f32.vlgmr.msra.gmra.mrb[6].mxu0 %vm455_vm0, %v958_v16 }
 0x7f4   :  { %9256 = vmatpush3.bf16.msra.mxu0 %v11722_v21  ;;  %9015 = vmatprep.mubr.msk.f32.mxu0 %vm11352_vm4, %v11350_v4 }
 0x7f5   :  { %9260 = vmatprep.subr.bf16.mxu0 %v11351_v17 }
 0x8c6   :  { %v1027_v58 = vpop.f32.mrb[6].mxu0 }
 0x8c7   :  { %v1028_v18 = vadd.f32 %v11751_v26, %v1027_v58  ;;  %v9003_v19 = vpop.f32.mrb[7].mxu0 }
 0x8c9   :  { %1039 = vrot.lane.b32.xlu0 %v1028_v18, %s11326_s9  ;;  %v1031_v27 = vadd.f32 %v1028_v18, %v11772_v3 }
 0x8cb   :  { %v8468_v28 = vmul.f32 -1.442695, %v1031_v27 }
 0x8cd   :  { %10355 = vpow2.f32 %v8468_v28 }
 0x8d7   :  { %v10356_v33 = vpop.eup %10355 }
 0x8d8   :  { %v1035_v34 = vadd.f32 1.0, %v10356_v33 }
 0x8da   :  { %10357 = vrcp.f32 %v1035_v34 }
 0x8e4   :  { %v10358_v35 = vpop.eup %10357 }
 0x8e5   :  { %v1049_v41 = vsub.f32 1.0, %v10358_v35  ;;  %v1055_v43 = vmul.f32 %v10358_v35, %v11827_v9 }
 0x93b   :  { %v1040_v36 = vpop.permute.xlu0 %1039 }
 0x93c   :  { %v1042_v37 = vmul.f32 %v10358_v35, %v1040_v36 }
 0x93e   :  { %1044 = vrot.lane.b32.xlu1 %v1042_v37, %s11335_s8 }
 0x9b0   :  { %v1045_v38 = vpop.permute.xlu1 %1044 }
 0x9b1   :  { %v1047_v39 = vadd.f32 %v1045_v38, %v11772_v3 }
 0x9b3   :  { %10359 = vtanh.f32 %v1047_v39 }
 0x9bd   :  { %v10360_v40 = vpop.eup %10359 }
 0x9be   :  { %1051 = vrot.lane.b32.xlu0 %v10360_v40, %s11353_s25 }
 0xa30   :  { %v1052_v42 = vpop.permute.xlu0 %1051 }
 0xa31   :  { %v1054_v44 = vmul.f32 %v1052_v42, %v1049_v41 }
 0xa33   :  { %v11843_v45 = vadd.f32 %v1055_v43, %v1054_v44 }
 0xa35   :  { %1063 = vrot.lane.b32.xlu1 %v11843_v45, %s11353_s25 }
 0xaa7   :  { %v1064_v47 = vpop.permute.xlu1 %1063 }
 0xaa8   :  { %9009 = vmatmul.mubr.msk.f32.vlgmr.msra.gmra.mrb[6].mxu1 %vm455_vm0, %v1064_v47 }
 0xaa9   :  { %9259 = vmatpush3.bf16.msra.mxu1 %v11722_v21  ;;  %9022 = vmatprep.mubr.msk.f32.mxu1 %vm11352_vm4, %v11350_v4 }
 0xaaa   :  { %9263 = vmatprep.subr.bf16.mxu1 %v11351_v17 }
 0xb7b   :  { %v1133_v3 = vpop.f32.mrb[6].mxu1 }
 0xb7c   :  { %v1134_v48 = vadd.f32 %v11751_v26, %v1133_v3  ;;  %v9010_v49 = vpop.f32.mrb[7].mxu1 }
 0xb7e   :  { %1145 = vrot.lane.b32.xlu0 %v1134_v48, %s11326_s9  ;;  %v1137_v50 = vadd.f32 %v1134_v48, %v11775_v7 }
 0xb80   :  { %v8470_v51 = vmul.f32 -1.442695, %v1137_v50 }
 0xb82   :  { %10361 = vpow2.f32 %v8470_v51 }
 0xb8c   :  { %v10362_v52 = vpop.eup %10361 }
 0xb8d   :  { %v1141_v53 = vadd.f32 1.0, %v10362_v52 }
 0xb8f   :  { %10363 = vrcp.f32 %v1141_v53 }
 0xb99   :  { %v10364_v55 = vpop.eup %10363 }
 0xb9a   :  { %v1155_v62 = vsub.f32 1.0, %v10364_v55  ;;  %v1161_v0 = vmul.f32 %v10364_v55, %v11843_v45 }
 0xbf0   :  { %v1146_v56 = vpop.permute.xlu0 %1145 }
 0xbf1   :  { %v1148_v57 = vmul.f32 %v10364_v55, %v1146_v56 }
 0xbf3   :  { %1150 = vrot.lane.b32.xlu1 %v1148_v57, %s11335_s8 }
 0xc65   :  { %v1151_v59 = vpop.permute.xlu1 %1150 }
 0xc66   :  { %v1153_v60 = vadd.f32 %v1151_v59, %v11775_v7 }
 0xc68   :  { %10365 = vtanh.f32 %v1153_v60 }
 0xc72   :  { %v10366_v61 = vpop.eup %10365 }
 0xc73   :  { %1157 = vrot.lane.b32.xlu0 %v10366_v61, %s11353_s25 }
 0xce5   :  { %v1158_v63 = vpop.permute.xlu0 %1157 }
 0xce6   :  { %v1160_v1 = vmul.f32 %v1158_v63, %v1155_v62 }
 0xce8   :  { %v11859_v16 = vadd.f32 %v1161_v0, %v1160_v1 }
 0xcea   :  { %1169 = vrot.lane.b32.xlu1 %v11859_v16, %s11353_s25 }
 0xd5c   :  { %v1170_v58 = vpop.permute.xlu1 %1169 }
 0xd5d   :  { %9016 = vmatmul.mubr.msk.f32.vlgmr.msra.gmra.mrb[8].mxu0 %vm455_vm0, %v1170_v58 }
 0xd5e   :  { %9262 = vmatpush3.bf16.msra.mxu0 %v11722_v21  ;;  %9029 = vmatprep.mubr.msk.f32.mxu0 %vm11352_vm4, %v11350_v4 }
 0xd5f   :  { %9266 = vmatprep.subr.bf16.mxu0 %v11351_v17 }
 0xe30   :  { %v1239_v7 = vpop.f32.mrb[8].mxu0 }
 0xe31   :  { %v1240_v18 = vadd.f32 %v11751_v26, %v1239_v7  ;;  %v9017_v19 = vpop.f32.mrb[9].mxu0 }
 0xe33   :  { %1251 = vrot.lane.b32.xlu0 %v1240_v18, %s11326_s9  ;;  %v1243_v27 = vadd.f32 %v1240_v18, %v11781_v10 }
 0xe35   :  { %v8472_v28 = vmul.f32 -1.442695, %v1243_v27 }
 0xe37   :  { %10367 = vpow2.f32 %v8472_v28 }
 0xe41   :  { %v10368_v33 = vpop.eup %10367 }
 0xe42   :  { %v1247_v34 = vadd.f32 1.0, %v10368_v33 }
 0xe44   :  { %10369 = vrcp.f32 %v1247_v34 }
 0xe4e   :  { %v10370_v35 = vpop.eup %10369 }
 0xe4f   :  { %v1261_v41 = vsub.f32 1.0, %v10370_v35  ;;  %v1267_v43 = vmul.f32 %v10370_v35, %v11859_v16 }
 0xea5   :  { %v1252_v36 = vpop.permute.xlu0 %1251 }
 0xea6   :  { %v1254_v37 = vmul.f32 %v10370_v35, %v1252_v36 }
 0xea8   :  { %1256 = vrot.lane.b32.xlu1 %v1254_v37, %s11335_s8 }
 0xf1a   :  { %v1257_v38 = vpop.permute.xlu1 %1256 }
 0xf1b   :  { %v1259_v39 = vadd.f32 %v1257_v38, %v11781_v10 }
 0xf1d   :  { %10371 = vtanh.f32 %v1259_v39 }
 0xf27   :  { %v10372_v40 = vpop.eup %10371 }
 0xf28   :  { %1263 = vrot.lane.b32.xlu0 %v10372_v40, %s11353_s25 }
 0xf9a   :  { %v1264_v42 = vpop.permute.xlu0 %1263 }
 0xf9b   :  { %v1266_v44 = vmul.f32 %v1264_v42, %v1261_v41 }
 0xf9d   :  { %v11875_v47 = vadd.f32 %v1267_v43, %v1266_v44 }
 0xf9f   :  { %1275 = vrot.lane.b32.xlu1 %v11875_v47, %s11353_s25 }
0x1011   :  { %v1276_v3 = vpop.permute.xlu1 %1275 }
0x1012   :  { %9023 = vmatmul.mubr.msk.f32.vlgmr.msra.gmra.mrb[8].mxu1 %vm455_vm0, %v1276_v3 }
0x1013   :  { %9265 = vmatpush3.bf16.msra.mxu1 %v11722_v21  ;;  %9036 = vmatprep.mubr.msk.f32.mxu1 %vm11352_vm4, %v11350_v4 }
0x1014   :  { %9269 = vmatprep.subr.bf16.mxu1 %v11351_v17 }
0x10e5   :  { %v1345_v10 = vpop.f32.mrb[8].mxu1 }
0x10e6   :  { %v1346_v48 = vadd.f32 %v11751_v26, %v1345_v10  ;;  %v9024_v49 = vpop.f32.mrb[9].mxu1 }
0x10e8   :  { %1357 = vrot.lane.b32.xlu0 %v1346_v48, %s11326_s9  ;;  %v1349_v50 = vadd.f32 %v1346_v48, %v11784_v11 }
0x10ea   :  { %v8474_v51 = vmul.f32 -1.442695, %v1349_v50 }
0x10ec   :  { %10373 = vpow2.f32 %v8474_v51 }
0x10f6   :  { %v10374_v52 = vpop.eup %10373 }
0x10f7   :  { %v1353_v53 = vadd.f32 1.0, %v10374_v52 }
0x10f9   :  { %10375 = vrcp.f32 %v1353_v53 }
0x1103   :  { %v10376_v55 = vpop.eup %10375 }
0x1104   :  { %v1367_v62 = vsub.f32 1.0, %v10376_v55  ;;  %v1373_v0 = vmul.f32 %v10376_v55, %v11875_v47 }
0x115a   :  { %v1358_v56 = vpop.permute.xlu0 %1357 }
0x115b   :  { %v1360_v57 = vmul.f32 %v10376_v55, %v1358_v56 }
0x115d   :  { %1362 = vrot.lane.b32.xlu1 %v1360_v57, %s11335_s8 }
0x11cf   :  { %v1363_v59 = vpop.permute.xlu1 %1362 }
0x11d0   :  { %v1365_v60 = vadd.f32 %v1363_v59, %v11784_v11 }
0x11d2   :  { %10377 = vtanh.f32 %v1365_v60 }
0x11dc   :  { %v10378_v61 = vpop.eup %10377 }
0x11dd   :  { %1369 = vrot.lane.b32.xlu0 %v10378_v61, %s11353_s25 }
0x124f   :  { %v1370_v63 = vpop.permute.xlu0 %1369 }
0x1250   :  { %v1372_v1 = vmul.f32 %v1370_v63, %v1367_v62 }
0x1252   :  { %v11891_v58 = vadd.f32 %v1373_v0, %v1372_v1 }
0x1254   :  { %1381 = vrot.lane.b32.xlu1 %v11891_v58, %s11353_s25 }
0x12c6   :  { %v1382_v7 = vpop.permute.xlu1 %1381 }
0x12c7   :  { %9030 = vmatmul.mubr.msk.f32.vlgmr.msra.gmra.mrb[10].mxu0 %vm455_vm0, %v1382_v7 }
0x12c8   :  { %9268 = vmatpush3.bf16.msra.mxu0 %v11722_v21  ;;  %9043 = vmatprep.mubr.msk.f32.mxu0 %vm11352_vm4, %v11350_v4 }
0x12c9   :  { %9272 = vmatprep.subr.bf16.mxu0 %v11351_v17 }
0x139a   :  { %v1451_v11 = vpop.f32.mrb[10].mxu0 }
0x139b   :  { %v1452_v18 = vadd.f32 %v11751_v26, %v1451_v11  ;;  %v9031_v19 = vpop.f32.mrb[11].mxu0 }
0x139d   :  { %1463 = vrot.lane.b32.xlu0 %v1452_v18, %s11326_s9  ;;  %v1455_v27 = vadd.f32 %v1452_v18, %v11787_v12 }
0x139f   :  { %v8476_v28 = vmul.f32 -1.442695, %v1455_v27 }
0x13a1   :  { %10379 = vpow2.f32 %v8476_v28 }
0x13ab   :  { %v10380_v33 = vpop.eup %10379 }
0x13ac   :  { %v1459_v34 = vadd.f32 1.0, %v10380_v33 }
0x13ae   :  { %10381 = vrcp.f32 %v1459_v34 }
0x13b8   :  { %v10382_v35 = vpop.eup %10381 }
0x13b9   :  { %v1473_v41 = vsub.f32 1.0, %v10382_v35  ;;  %v1479_v43 = vmul.f32 %v10382_v35, %v11891_v58 }
0x140f   :  { %v1464_v36 = vpop.permute.xlu0 %1463 }
0x1410   :  { %v1466_v37 = vmul.f32 %v10382_v35, %v1464_v36 }
0x1412   :  { %1468 = vrot.lane.b32.xlu1 %v1466_v37, %s11335_s8 }
0x1484   :  { %v1469_v38 = vpop.permute.xlu1 %1468 }
0x1485   :  { %v1471_v39 = vadd.f32 %v1469_v38, %v11787_v12 }
0x1487   :  { %10383 = vtanh.f32 %v1471_v39 }
0x1491   :  { %v10384_v40 = vpop.eup %10383 }
0x1492   :  { %1475 = vrot.lane.b32.xlu0 %v10384_v40, %s11353_s25 }
0x1504   :  { %v1476_v42 = vpop.permute.xlu0 %1475 }
0x1505   :  { %v1478_v44 = vmul.f32 %v1476_v42, %v1473_v41 }
0x1507   :  { %v11907_v3 = vadd.f32 %v1479_v43, %v1478_v44 }
0x1509   :  { %1487 = vrot.lane.b32.xlu1 %v11907_v3, %s11353_s25 }
0x157b   :  { %v1488_v10 = vpop.permute.xlu1 %1487 }
0x157c   :  { %9037 = vmatmul.mubr.msk.f32.vlgmr.msra.gmra.mrb[10].mxu1 %vm455_vm0, %v1488_v10 }
0x157d   :  { %9271 = vmatpush3.bf16.msra.mxu1 %v11722_v21  ;;  %9050 = vmatprep.mubr.msk.f32.mxu1 %vm11352_vm4, %v11350_v4 }
0x157e   :  { %9275 = vmatprep.subr.bf16.mxu1 %v11351_v17 }
0x164f   :  { %v1557_v12 = vpop.f32.mrb[10].mxu1 }
0x1650   :  { %v1558_v48 = vadd.f32 %v11751_v26, %v1557_v12  ;;  %v9038_v49 = vpop.f32.mrb[11].mxu1 }
0x1652   :  { %1569 = vrot.lane.b32.xlu0 %v1558_v48, %s11326_s9  ;;  %v1561_v50 = vadd.f32 %v1558_v48, %v11790_v13 }
0x1654   :  { %v8478_v51 = vmul.f32 -1.442695, %v1561_v50 }
0x1656   :  { %10385 = vpow2.f32 %v8478_v51 }
0x1660   :  { %v10386_v52 = vpop.eup %10385 }
0x1661   :  { %v1565_v53 = vadd.f32 1.0, %v10386_v52 }
0x1663   :  { %10387 = vrcp.f32 %v1565_v53 }
0x166d   :  { %v10388_v55 = vpop.eup %10387 }
0x166e   :  { %v1579_v62 = vsub.f32 1.0, %v10388_v55  ;;  %v1585_v0 = vmul.f32 %v10388_v55, %v11907_v3 }
0x16c4   :  { %v1570_v56 = vpop.permute.xlu0 %1569 }
0x16c5   :  { %v1572_v57 = vmul.f32 %v10388_v55, %v1570_v56 }
0x16c7   :  { %1574 = vrot.lane.b32.xlu1 %v1572_v57, %s11335_s8 }
0x1739   :  { %v1575_v59 = vpop.permute.xlu1 %1574 }
0x173a   :  { %v1577_v60 = vadd.f32 %v1575_v59, %v11790_v13 }
0x173c   :  { %10389 = vtanh.f32 %v1577_v60 }
0x1746   :  { %v10390_v61 = vpop.eup %10389 }
0x1747   :  { %1581 = vrot.lane.b32.xlu0 %v10390_v61, %s11353_s25 }
0x17b9   :  { %v1582_v63 = vpop.permute.xlu0 %1581 }
0x17ba   :  { %v1584_v1 = vmul.f32 %v1582_v63, %v1579_v62 }
0x17bc   :  { %v11923_v7 = vadd.f32 %v1585_v0, %v1584_v1 }
0x17be   :  { %1592 = vrot.lane.b32.xlu1 %v11923_v7, %s11353_s25 }
0x1830   :  { %v1593_v11 = vpop.permute.xlu1 %1592 }
0x1831   :  { %9044 = vmatmul.mubr.msk.f32.vlgmr.msra.gmra.mrb[12].mxu0 %vm455_vm0, %v1593_v11 }
0x1832   :  { %9274 = vmatpush3.bf16.msra.mxu0 %v11722_v21  ;;  %9057 = vmatprep.mubr.msk.f32.mxu0 %vm11352_vm4, %v11350_v4 }
0x1833   :  { %9278 = vmatprep.subr.bf16.mxu0 %v11351_v17 }
0x1904   :  { %v1662_v13 = vpop.f32.mrb[12].mxu0 }
0x1905   :  { %v1663_v18 = vadd.f32 %v11751_v26, %v1662_v13  ;;  %v9045_v19 = vpop.f32.mrb[13].mxu0 }
0x1907   :  { %1674 = vrot.lane.b32.xlu0 %v1663_v18, %s11326_s9  ;;  %v1666_v27 = vadd.f32 %v1663_v18, %v11778_v8 }
0x1909   :  { %v8480_v28 = vmul.f32 -1.442695, %v1666_v27 }
0x190b   :  { %10391 = vpow2.f32 %v8480_v28 }
0x1915   :  { %v10392_v33 = vpop.eup %10391 }
0x1916   :  { %v1670_v34 = vadd.f32 1.0, %v10392_v33 }
0x1918   :  { %10393 = vrcp.f32 %v1670_v34 }
0x1922   :  { %v10394_v35 = vpop.eup %10393 }
0x1923   :  { %v1684_v41 = vsub.f32 1.0, %v10394_v35  ;;  %v1690_v43 = vmul.f32 %v10394_v35, %v11923_v7 }
0x1979   :  { %v1675_v36 = vpop.permute.xlu0 %1674 }
0x197a   :  { %v1677_v37 = vmul.f32 %v10394_v35, %v1675_v36 }
0x197c   :  { %1679 = vrot.lane.b32.xlu1 %v1677_v37, %s11335_s8 }
0x19ee   :  { %v1680_v38 = vpop.permute.xlu1 %1679 }
0x19ef   :  { %v1682_v39 = vadd.f32 %v1680_v38, %v11778_v8 }
0x19f1   :  { %10395 = vtanh.f32 %v1682_v39 }
0x19fb   :  { %v10396_v40 = vpop.eup %10395 }
0x19fc   :  { %1686 = vrot.lane.b32.xlu0 %v10396_v40, %s11353_s25 }
0x1a6e   :  { %v1687_v42 = vpop.permute.xlu0 %1686 }
0x1a6f   :  { %v1689_v44 = vmul.f32 %v1687_v42, %v1684_v41 }
0x1a71   :  { %v1691_v10 = vadd.f32 %v1690_v43, %v1689_v44 }
0x1a73   :  { %1697 = vrot.lane.b32.xlu1 %v1691_v10, %s11353_s25 }
0x1ae5   :  { %v11940_v12 = vpop.permute.xlu1 %1697 }
0x1ae6   :  { %9051 = vmatmul.mubr.msk.f32.vlgmr.msra.gmra.mrb[12].mxu1 %vm455_vm0, %v11940_v12 }
0x1ae7   :  { %9277 = vmatpush3.bf16.msra.mxu1 %v11722_v21  ;;  %9064 = vmatprep.mubr.msk.f32.mxu1 %vm11352_vm4, %v11350_v4 }
0x1ae8   :  { %9281 = vmatprep.subr.bf16.mxu1 %v11351_v17 }
0x1bb9   :  { %v1767_v8 = vpop.f32.mrb[12].mxu1 }
0x1bba   :  { %v1768_v48 = vadd.f32 %v11751_v26, %v1767_v8  ;;  %v9052_v49 = vpop.f32.mrb[13].mxu1 }
0x1bbc   :  { %1779 = vrot.lane.b32.xlu0 %v1768_v48, %s11326_s9  ;;  %v1771_v50 = vadd.f32 %v1768_v48, %v11765_v54 }
0x1bbe   :  { %v8482_v51 = vmul.f32 -1.442695, %v1771_v50 }
0x1bc0   :  { %10397 = vpow2.f32 %v8482_v51 }
0x1bca   :  { %v10398_v52 = vpop.eup %10397 }
0x1bcb   :  { %v1775_v53 = vadd.f32 1.0, %v10398_v52 }
0x1bcd   :  { %10399 = vrcp.f32 %v1775_v53 }
0x1bd7   :  { %v10400_v55 = vpop.eup %10399 }
0x1bd8   :  { %v1789_v62 = vsub.f32 1.0, %v10400_v55  ;;  %v1795_v0 = vmul.f32 %v10400_v55, %v1691_v10 }
0x1c2e   :  { %v1780_v56 = vpop.permute.xlu0 %1779 }
0x1c2f   :  { %v1782_v57 = vmul.f32 %v10400_v55, %v1780_v56 }
0x1c31   :  { %1784 = vrot.lane.b32.xlu1 %v1782_v57, %s11335_s8 }
0x1ca3   :  { %v1785_v59 = vpop.permute.xlu1 %1784 }
0x1ca4   :  { %v1787_v60 = vadd.f32 %v1785_v59, %v11765_v54 }
0x1ca6   :  { %10401 = vtanh.f32 %v1787_v60 }
0x1cb0   :  { %v10402_v61 = vpop.eup %10401 }
0x1cb1   :  { %1791 = vrot.lane.b32.xlu0 %v10402_v61, %s11353_s25 }
0x1d23   :  { %v1792_v63 = vpop.permute.xlu0 %1791 }
0x1d24   :  { %v1794_v1 = vmul.f32 %v1792_v63, %v1789_v62 }
0x1d26   :  { %v11954_v11 = vadd.f32 %v1795_v0, %v1794_v1 }
0x1d28   :  { %1803 = vrot.lane.b32.xlu1 %v11954_v11, %s11353_s25 }
0x1d9a   :  { %v1804_v13 = vpop.permute.xlu1 %1803 }
0x1d9b   :  { %9058 = vmatmul.mubr.msk.f32.vlgmr.msra.gmra.mrb[14].mxu0 %vm455_vm0, %v1804_v13 }
0x1d9c   :  { %9280 = vmatpush3.bf16.msra.mxu0 %v11722_v21  ;;  %9071 = vmatprep.mubr.msk.f32.mxu0 %vm11352_vm4, %v11350_v4 }
0x1d9d   :  { %9284 = vmatprep.subr.bf16.mxu0 %v11351_v17 }
0x1e6e   :  { %v1873_v54 = vpop.f32.mrb[14].mxu0 }
0x1e6f   :  { %v1874_v18 = vadd.f32 %v11751_v26, %v1873_v54  ;;  %v9059_v19 = vpop.f32.mrb[15].mxu0 }
0x1e71   :  { %1885 = vrot.lane.b32.xlu0 %v1874_v18, %s11326_s9  ;;  %v1877_v27 = vadd.f32 %v1874_v18, %v11793_v14 }
0x1e73   :  { %v8484_v28 = vmul.f32 -1.442695, %v1877_v27 }
0x1e75   :  { %10403 = vpow2.f32 %v8484_v28 }
0x1e7f   :  { %v10404_v33 = vpop.eup %10403 }
0x1e80   :  { %v1881_v34 = vadd.f32 1.0, %v10404_v33 }
0x1e82   :  { %10405 = vrcp.f32 %v1881_v34 }
0x1e8c   :  { %v10406_v35 = vpop.eup %10405 }
0x1e8d   :  { %v1895_v41 = vsub.f32 1.0, %v10406_v35  ;;  %v1901_v43 = vmul.f32 %v10406_v35, %v11954_v11 }
0x1ee3   :  { %v1886_v36 = vpop.permute.xlu0 %1885 }
0x1ee4   :  { %v1888_v37 = vmul.f32 %v10406_v35, %v1886_v36 }
0x1ee6   :  { %1890 = vrot.lane.b32.xlu1 %v1888_v37, %s11335_s8 }
0x1f58   :  { %v1891_v38 = vpop.permute.xlu1 %1890 }
0x1f59   :  { %v1893_v39 = vadd.f32 %v1891_v38, %v11793_v14 }
0x1f5b   :  { %10407 = vtanh.f32 %v1893_v39 }
0x1f65   :  { %v10408_v40 = vpop.eup %10407 }
0x1f66   :  { %1897 = vrot.lane.b32.xlu0 %v10408_v40, %s11353_s25 }
0x1fd8   :  { %v1898_v42 = vpop.permute.xlu0 %1897 }
0x1fd9   :  { %v1900_v44 = vmul.f32 %v1898_v42, %v1895_v41 }
0x1fdb   :  { %v11970_v10 = vadd.f32 %v1901_v43, %v1900_v44 }
0x1fdd   :  { %1909 = vrot.lane.b32.xlu1 %v11970_v10, %s11353_s25 }
0x204f   :  { %v1910_v8 = vpop.permute.xlu1 %1909 }
0x2050   :  { %9065 = vmatmul.mubr.msk.f32.vlgmr.msra.gmra.mrb[14].mxu1 %vm455_vm0, %v1910_v8 }
0x2051   :  { %9283 = vmatpush3.bf16.msra.mxu1 %v11722_v21  ;;  %9078 = vmatprep.mubr.msk.f32.mxu1 %vm11352_vm4, %v11350_v4 }
0x2052   :  { %9287 = vmatprep.subr.bf16.mxu1 %v11351_v17 }
0x2123   :  { %v1979_v14 = vpop.f32.mrb[14].mxu1 }
0x2124   :  { %v1980_v48 = vadd.f32 %v11751_v26, %v1979_v14  ;;  %v9066_v49 = vpop.f32.mrb[15].mxu1 }
0x2126   :  { %1991 = vrot.lane.b32.xlu0 %v1980_v48, %s11326_s9  ;;  %v1983_v50 = vadd.f32 %v1980_v48, %v11796_v15 }
0x2128   :  { %v8486_v51 = vmul.f32 -1.442695, %v1983_v50 }
0x212a   :  { %10409 = vpow2.f32 %v8486_v51 }
0x2134   :  { %v10410_v52 = vpop.eup %10409 }
0x2135   :  { %v1987_v53 = vadd.f32 1.0, %v10410_v52 }
0x2137   :  { %10411 = vrcp.f32 %v1987_v53 }
0x2141   :  { %v10412_v55 = vpop.eup %10411 }
0x2142   :  { %v2001_v62 = vsub.f32 1.0, %v10412_v55  ;;  %v2007_v0 = vmul.f32 %v10412_v55, %v11970_v10 }
0x2198   :  { %v1992_v56 = vpop.permute.xlu0 %1991 }
0x2199   :  { %v1994_v57 = vmul.f32 %v10412_v55, %v1992_v56 }
0x219b   :  { %1996 = vrot.lane.b32.xlu1 %v1994_v57, %s11335_s8 }
0x220d   :  { %v1997_v59 = vpop.permute.xlu1 %1996 }
0x220e   :  { %v1999_v60 = vadd.f32 %v1997_v59, %v11796_v15 }
0x2210   :  { %10413 = vtanh.f32 %v1999_v60 }
0x221a   :  { %v10414_v61 = vpop.eup %10413 }
0x221b   :  { %2003 = vrot.lane.b32.xlu0 %v10414_v61, %s11353_s25 }
0x228d   :  { %v2004_v63 = vpop.permute.xlu0 %2003 }
0x228e   :  { %v2006_v1 = vmul.f32 %v2004_v63, %v2001_v62 }
0x2290   :  { %v11986_v13 = vadd.f32 %v2007_v0, %v2006_v1 }
0x2292   :  { %2015 = vrot.lane.b32.xlu1 %v11986_v13, %s11353_s25 }
0x2304   :  { %v2016_v54 = vpop.permute.xlu1 %2015 }
0x2305   :  { %9072 = vmatmul.mubr.msk.f32.vlgmr.msra.gmra.mrb[16].mxu0 %vm455_vm0, %v2016_v54 }
0x2306   :  { %9286 = vmatpush3.bf16.msra.mxu0 %v11722_v21  ;;  %9085 = vmatprep.mubr.msk.f32.mxu0 %vm11352_vm4, %v11350_v4 }
0x23d8   :  { %v2085_v15 = vpop.f32.mrb[16].mxu0 }
0x23d9   :  { %v2086_v18 = vadd.f32 %v11751_v26, %v2085_v15  ;;  %v9073_v19 = vpop.f32.mrb[17].mxu0 }
0x23db   :  { %2097 = vrot.lane.b32.xlu0 %v2086_v18, %s11326_s9  ;;  %v2089_v27 = vadd.f32 %v2086_v18, %v11799_v29 }
0x23dd   :  { %v8488_v28 = vmul.f32 -1.442695, %v2089_v27 }
0x23df   :  { %10415 = vpow2.f32 %v8488_v28 }
0x23e9   :  { %v10416_v33 = vpop.eup %10415 }
0x23ea   :  { %v2093_v34 = vadd.f32 1.0, %v10416_v33 }
0x23ec   :  { %10417 = vrcp.f32 %v2093_v34 }
0x23f6   :  { %v10418_v35 = vpop.eup %10417 }
0x23f7   :  { %v2107_v41 = vsub.f32 1.0, %v10418_v35  ;;  %v2113_v43 = vmul.f32 %v10418_v35, %v11986_v13 }
0x244d   :  { %v2098_v36 = vpop.permute.xlu0 %2097 }
0x244e   :  { %v2100_v37 = vmul.f32 %v10418_v35, %v2098_v36 }
0x2450   :  { %2102 = vrot.lane.b32.xlu1 %v2100_v37, %s11335_s8 }
0x24c2   :  { %v2103_v38 = vpop.permute.xlu1 %2102 }
0x24c3   :  { %v2105_v39 = vadd.f32 %v2103_v38, %v11799_v29 }
0x24c5   :  { %10419 = vtanh.f32 %v2105_v39 }
0x24cf   :  { %v10420_v40 = vpop.eup %10419 }
0x24d0   :  { %2109 = vrot.lane.b32.xlu0 %v10420_v40, %s11353_s25 }
0x2542   :  { %v2110_v42 = vpop.permute.xlu0 %2109 }
0x2543   :  { %v2112_v44 = vmul.f32 %v2110_v42, %v2107_v41 }
0x2545   :  { %v12001_v8 = vadd.f32 %v2113_v43, %v2112_v44 }
0x2547   :  { %2121 = vrot.lane.b32.xlu1 %v12001_v8, %s11353_s25 }
0x25b9   :  { %v2122_v14 = vpop.permute.xlu1 %2121 }
0x25ba   :  { %9079 = vmatmul.mubr.msk.f32.vlgmr.msra.gmra.mrb[16].mxu1 %vm455_vm0, %v2122_v14 }
0x25bb   :  { %9289 = vmatpush3.bf16.msra.mxu1 %v11722_v21  ;;  %9092 = vmatprep.mubr.msk.f32.mxu1 %vm11352_vm4, %v11350_v4 }
0x268d   :  { %v2191_v29 = vpop.f32.mrb[16].mxu1 }
0x268e   :  { %v2192_v48 = vadd.f32 %v11751_v26, %v2191_v29  ;;  %v9080_v49 = vpop.f32.mrb[17].mxu1 }
0x2690   :  { %2203 = vrot.lane.b32.xlu0 %v2192_v48, %s11326_s9  ;;  %v2195_v50 = vadd.f32 %v2192_v48, %v11802_v30 }
0x2692   :  { %v8490_v51 = vmul.f32 -1.442695, %v2195_v50 }
0x2694   :  { %10421 = vpow2.f32 %v8490_v51 }
0x269e   :  { %v10422_v52 = vpop.eup %10421 }
0x269f   :  { %v2199_v53 = vadd.f32 1.0, %v10422_v52 }
0x26a1   :  { %10423 = vrcp.f32 %v2199_v53 }
0x26ab   :  { %v10424_v55 = vpop.eup %10423 }
0x26ac   :  { %v2213_v61 = vsub.f32 1.0, %v10424_v55  ;;  %v2219_v63 = vmul.f32 %v10424_v55, %v12001_v8 }
0x2702   :  { %v2204_v56 = vpop.permute.xlu0 %2203 }
0x2703   :  { %v2206_v57 = vmul.f32 %v10424_v55, %v2204_v56 }
0x2705   :  { %2208 = vrot.lane.b32.xlu1 %v2206_v57, %s11335_s8  ;;  %v10319_v57 = vpack.i.bf16 %v11875_v47, %v12001_v8  ;;  %v2493_v47 = vld [vmem:[%s13000_s23 + $0x8] sm:$0xff]  ;;  %v2510_v8 = vld [vmem:[%s13000_s23 + $0x90] sm:$0xff] }
0x2777   :  { %v2209_v21 = vpop.permute.xlu1 %2208 }
0x2778   :  { %v2211_v59 = vadd.f32 %v2209_v21, %v11802_v30 }
0x277a   :  { %10425 = vtanh.f32 %v2211_v59  ;;  %v2508_v59 = vld [vmem:[%s13000_s23 + $0x80] sm:$0xff] }
0x2784   :  { %v10426_v60 = vpop.eup %10425 }
0x2785   :  { %2215 = vrot.lane.b32.xlu0 %v10426_v60, %s11353_s25  ;;  %v2509_v60 = vld [vmem:[%s13000_s23 + $0x88] sm:$0xff] }
0x27f7   :  { %v2216_v62 = vpop.permute.xlu0 %2215 }
0x27f8   :  { %v2218_v0 = vmul.f32 %v2216_v62, %v2213_v61  ;;  %v2492_v61 = vld [vmem:[%s13000_s23] sm:$0xff]  ;;  %v9290_v62 = vpack.c.bf16 %v2509_v60, %v2508_v59  ;;  %v2506_v59 = vld [vmem:[%s13000_s23 + $0x70] sm:$0xff] }
0x27fa   :  { %v12016_v1 = vadd.f32 %v2219_v63, %v2218_v0  ;;  %v2511_v63 = vld [vmem:[%s13000_s23 + $0x98] sm:$0xff]  ;;  %v9292_v0 = vpack.c.bf16 %v2493_v47, %v2492_v61  ;;  %9291 = vmatprep.subr.bf16.mxu0 %v9290_v62 }
0x27fb   :  { %v2507_v61 = vld [vmem:[%s13000_s23 + $0x78] sm:$0xff] }
0x27fc   :  { %2227 = vrot.lane.b32.xlu1 %v12016_v1, %s11353_s25  ;;  %v9320_v62 = vpack.c.bf16 %v2507_v61, %v2506_v59  ;;  %v3142_v47 = vld [vmem:[#allocation9 + $0x18] sm:$0xff] }
0x27fd   :  { %v3162_v59 = vld [vmem:[#allocation9 + $0xb8] sm:$0xff] }
0x286e   :  { %v2228_v54 = vpop.permute.xlu1 %2227 }
0x286f   :  { %9086 = vmatmul.mubr.msk.f32.vlgmr.msra.gmra.mrb[18].mxu0 %vm455_vm0, %v2228_v54  ;;  %v9294_v54 = vpack.c.bf16 %v2511_v63, %v2510_v8  ;;  %v3154_v8 = vld [vmem:[#allocation9 + $0x78] sm:$0xff] }
0x2870   :  { %9293 = vmatpush3.bf16.msra.mxu0 %v9292_v0 }
0x2871   :  { %9295 = vmatprep.subr.bf16.mxu0 %v9294_v54 }
0x2942   :  { %v2297_v15 = vpop.f32.mrb[18].mxu0 }
0x2943   :  { %v2298_v30 = vadd.f32 %v11751_v26, %v2297_v15  ;;  %v9087_v18 = vpop.f32.mrb[19].mxu0  ;;  %v2494_v15 = vld [vmem:[%s13000_s23 + $0x10] sm:$0xff] }
0x2944   :  { %v2512_v18 = vld [vmem:[%s13000_s23 + $0xa0] sm:$0xff] }
0x2945   :  { %2309 = vrot.lane.b32.xlu0 %v2298_v30, %s11326_s9  ;;  %v2301_v19 = vadd.f32 %v2298_v30, %v11805_v31  ;;  %v2495_v30 = vld [vmem:[%s13000_s23 + $0x18] sm:$0xff] }
0x2947   :  { %v8492_v27 = vmul.f32 -1.442695, %v2301_v19  ;;  %v9296_v19 = vpack.c.bf16 %v2495_v30, %v2494_v15 }
0x2949   :  { %10427 = vpow2.f32 %v8492_v27  ;;  %v10314_v27 = vpack.i.bf16 %v11859_v16, %v11986_v13  ;;  %9297 = vmatpush3.bf16.msra.mxu0 %v9296_v19  ;;  %v2498_v13 = vld [vmem:[%s13000_s23 + $0x30] sm:$0xff] }
0x2953   :  { %v10428_v28 = vpop.eup %10427 }
0x2954   :  { %v2305_v33 = vadd.f32 1.0, %v10428_v28 }
0x2956   :  { %10429 = vrcp.f32 %v2305_v33  ;;  %v2496_v33 = vld [vmem:[%s13000_s23 + $0x20] sm:$0xff] }
0x2960   :  { %v10430_v34 = vpop.eup %10429 }
0x2961   :  { %v2319_v40 = vsub.f32 1.0, %v10430_v34  ;;  %v2325_v42 = vmul.f32 %v10430_v34, %v12016_v1 }
0x29b7   :  { %v2310_v35 = vpop.permute.xlu0 %2309 }
0x29b8   :  { %v2312_v36 = vmul.f32 %v10430_v34, %v2310_v35  ;;  %v2497_v34 = vld [vmem:[%s13000_s23 + $0x28] sm:$0xff]  ;;  %v2514_v35 = vld [vmem:[%s13000_s23 + $0xb0] sm:$0xff] }
0x29ba   :  { %2314 = vrot.lane.b32.xlu1 %v2312_v36, %s11335_s8  ;;  %v2515_v36 = vld [vmem:[%s13000_s23 + $0xb8] sm:$0xff] }
0x29bb   :  { %v9302_v16 = vpack.c.bf16 %v2515_v36, %v2514_v35 }
0x2a2c   :  { %v2315_v37 = vpop.permute.xlu1 %2314 }
0x2a2d   :  { %v2317_v38 = vadd.f32 %v2315_v37, %v11805_v31  ;;  %v9300_v37 = vpack.c.bf16 %v2497_v34, %v2496_v33 }
0x2a2f   :  { %10431 = vtanh.f32 %v2317_v38  ;;  %v10324_v38 = vpack.i.bf16 %v11891_v58, %v12016_v1  ;;  %v2501_v58 = vld [vmem:[%s13000_s23 + $0x48] sm:$0xff]  ;;  %v2518_v1 = vld [vmem:[%s13000_s23 + $0xd0] sm:$0xff] }
0x2a39   :  { %v10432_v39 = vpop.eup %10431 }
0x2a3a   :  { %2321 = vrot.lane.b32.xlu0 %v10432_v39, %s11353_s25  ;;  %v2499_v39 = vld [vmem:[%s13000_s23 + $0x38] sm:$0xff] }
0x2aac   :  { %v2322_v41 = vpop.permute.xlu0 %2321 }
0x2aad   :  { %v2324_v43 = vmul.f32 %v2322_v41, %v2319_v40  ;;  %v2516_v40 = vld [vmem:[%s13000_s23 + $0xc0] sm:$0xff]  ;;  %v2517_v41 = vld [vmem:[%s13000_s23 + $0xc8] sm:$0xff] }
0x2aaf   :  { %v12028_v44 = vadd.f32 %v2325_v42, %v2324_v43  ;;  %v9304_v42 = vpack.c.bf16 %v2499_v39, %v2498_v13  ;;  %v9306_v43 = vpack.c.bf16 %v2517_v41, %v2516_v40 }
0x2ab1   :  { %2333 = vrot.lane.b32.xlu1 %v12028_v44, %s11353_s25  ;;  %v10329_v21 = vpack.i.bf16 %v11907_v3, %v12028_v44 }
0x2b23   :  { %v2334_v14 = vpop.permute.xlu1 %2333 }
0x2b24   :  { %9093 = vmatmul.mubr.msk.f32.vlgmr.msra.gmra.mrb[18].mxu1 %vm455_vm0, %v2334_v14  ;;  %v2500_v14 = vld [vmem:[%s13000_s23 + $0x40] sm:$0xff] }
0x2b25   :  { %9097 = vmatprep.mubr.msk.f32.mxu1 %vm455_vm0, %v11697_v5 }
0x2bf7   :  { %v2403_v31 = vpop.f32.mrb[18].mxu1 }
0x2bf8   :  { %v2404_v29 = vadd.f32 %v11751_v26, %v2403_v31  ;;  %v9094_v48 = vpop.f32.mrb[19].mxu1  ;;  %v10309_v26 = vpack.i.bf16 %v11843_v45, %v11970_v10  ;;  %v2519_v31 = vld [vmem:[%s13000_s23 + $0xd8] sm:$0xff] }
0x2bf9   :  { %v9310_v48 = vpack.c.bf16 %v2519_v31, %v2518_v1 }
0x2bfa   :  { %2415 = vrot.lane.b32.xlu0 %v2404_v29, %s11326_s9  ;;  %v2407_v49 = vadd.f32 %v2404_v29, %v11808_v32  ;;  %v9308_v29 = vpack.c.bf16 %v2501_v58, %v2500_v14  ;;  %v3141_v58 = vld [vmem:[#allocation9 + $0x10] sm:$0xff] }
0x2bfc   :  { %v8494_v50 = vmul.f32 -1.442695, %v2407_v49  ;;  %v2502_v49 = vld [vmem:[%s13000_s23 + $0x50] sm:$0xff] }
0x2bfe   :  { %10433 = vpow2.f32 %v8494_v50  ;;  %v2503_v50 = vld [vmem:[%s13000_s23 + $0x58] sm:$0xff] }
0x2c08   :  { %v10434_v51 = vpop.eup %10433 }
0x2c09   :  { %v2411_v52 = vadd.f32 1.0, %v10434_v51  ;;  %v2520_v51 = vld [vmem:[%s13000_s23 + $0xe0] sm:$0xff] }
0x2c0b   :  { %10435 = vrcp.f32 %v2411_v52  ;;  %v2521_v52 = vld [vmem:[%s13000_s23 + $0xe8] sm:$0xff] }
0x2c15   :  { %v12038_v53 = vpop.eup %10435 }
0x2c16   :  { %v2425_v63 = vsub.f32 1.0, %v12038_v53  ;;  %v2431_v54 = vmul.f32 %v12038_v53, %v12028_v44  ;;  %v2472_v44 = vsel %vm455_vm0, %v11813_v46, %v11827_v9 }
0x2c6c   :  { %v2416_v55 = vpop.permute.xlu0 %2415 }
0x2c6d   :  { %v2418_v56 = vmul.f32 %v12038_v53, %v2416_v55  ;;  %v9312_v55 = vpack.c.bf16 %v2503_v50, %v2502_v49 }
0x2c6f   :  { %2420 = vrot.lane.b32.xlu1 %v2418_v56, %s11335_s8  ;;  %v9314_v56 = vpack.c.bf16 %v2521_v52, %v2520_v51 }
0x2c73   :  { %10310 = vrot.lane.b32.xlu1 %v10309_v26, %s11354_s13  ;;  %v2504_v26 = vld [vmem:[%s13000_s23 + $0x60] sm:$0xff] }
0x2c77   :  { %10320 = vrot.lane.b32.xlu1 %v10319_v57, %s11355_s22  ;;  %v2505_v57 = vld [vmem:[%s13000_s23 + $0x68] sm:$0xff] }
0x2c7b   :  { %10330 = vrot.lane.b32.xlu1 %v10329_v21, %s11356_s24  ;;  %v9316_v21 = vpack.c.bf16 %v2505_v57, %v2504_v26 }
0x2ce1   :  { %v2421_v45 = vpop.permute.xlu1 %2420 }
0x2ce2   :  { %v2423_v10 = vadd.f32 %v2421_v45, %v11808_v32  ;;  %v2513_v32 = vld [vmem:[%s13000_s23 + $0xa8] sm:$0xff]  ;;  %v2522_v45 = vld [vmem:[%s13000_s23 + $0xf0] sm:$0xff] }
0x2ce3   :  { %v9298_v28 = vpack.c.bf16 %v2513_v32, %v2512_v18 }
0x2ce4   :  { %10437 = vtanh.f32 %v2423_v10  ;;  %v2523_v10 = vld [vmem:[%s13000_s23 + $0xf8] sm:$0xff] }
0x2ce5   :  { %9299 = vmatprep.subr.bf16.mxu0 %v9298_v28  ;;  %v9318_v60 = vpack.c.bf16 %v2523_v10, %v2522_v45  ;;  %v10311_v32 = vpop.permute.xlu1 %10310  ;;  %v3157_v45 = vld [vmem:[#allocation9 + $0x90] sm:$0xff]  ;;  %v3150_v10 = vld [vmem:[#allocation9 + $0x58] sm:$0xff] }
0x2ce6   :  { %9301 = vmatpush3.bf16.msra.mxu0 %v9300_v37  ;;  %v10312_v28 = vunpack.i.l.bf16 %v10311_v32  ;;  %v9356_v61 = vpack.c.bf16 %v3162_v59, %v3150_v10  ;;  %v12196_v59 = vsub.s32 1, %v11693_v2 }
0x2ce7   :  { %9303 = vmatprep.subr.bf16.mxu0 %v9302_v16 }
0x2ce9   :  { %v10321_v33 = vpop.permute.xlu1 %10320 }
0x2cea   :  { %9305 = vmatpush3.bf16.msra.mxu0 %v9304_v42  ;;  %v10323_v40 = vunpack.i.h.bf16 %v10321_v33  ;;  %v10322_v41 = vunpack.i.l.bf16 %v10321_v33 }
0x2ceb   :  { %9307 = vmatprep.subr.bf16.mxu0 %v9306_v43 }
0x2ced   :  { %v10331_v42 = vpop.permute.xlu1 %10330 }
0x2cee   :  { %v10438_v3 = vpop.eup %10437  ;;  %9309 = vmatpush3.bf16.msra.mxu0 %v9308_v29  ;;  %v10332_v1 = vunpack.i.l.bf16 %v10331_v42  ;;  %v3146_v29 = vld [vmem:[#allocation9 + $0x38] sm:$0xff] }
0x2cef   :  { %2427 = vrot.lane.b32.xlu0 %v10438_v3, %s11353_s25  ;;  %9311 = vmatprep.subr.bf16.mxu0 %v9310_v48  ;;  %v9340_v3 = vpack.c.bf16 %v3154_v8, %v3142_v47  ;;  %v3158_v48 = vld [vmem:[#allocation9 + $0x98] sm:$0xff]  ;;  %v3161_v47 = vld [vmem:[#allocation9 + $0xb0] sm:$0xff] }
0x2cf0   :  { %v9348_v57 = vpack.c.bf16 %v3158_v48, %v3146_v29 }
0x2cf2   :  { %9313 = vmatpush3.bf16.msra.mxu0 %v9312_v55 }
0x2cf3   :  { %10315 = vrot.lane.b32.xlu0 %v10314_v27, %s11335_s8  ;;  %9315 = vmatprep.subr.bf16.mxu0 %v9314_v56  ;;  %v10313_v27 = vunpack.i.h.bf16 %v10311_v32  ;;  %s13002_s8 = sld [smem:[#allocation59_spill]] }
0x2cf5   :  { %v2474_v53 = vsel %vm2473_vm6, %v2472_v44, %v10313_v27 }
0x2cf6   :  { %9317 = vmatpush3.bf16.msra.mxu0 %v9316_v21  ;;  %v3145_v21 = vld [vmem:[#allocation9 + $0x30] sm:$0xff] }
0x2cf7   :  { %10325 = vrot.lane.b32.xlu0 %v10324_v38, %s11357_s3  ;;  %9319 = vmatprep.subr.bf16.mxu0 %v9318_v60  ;;  %v9350_v60 = vpack.c.bf16 %v3157_v45, %v3145_v21 }
0x2cfa   :  { %9321 = vmatpush3.bf16.msra.mxu0 %v9320_v62  ;;  %v3149_v62 = vld [vmem:[#allocation9 + $0x50] sm:$0xff] }
0x2cfb   :  { %9341 = vmatprep.subr.bf16.mxu0 %v9340_v3  ;;  %v9358_v8 = vpack.c.bf16 %v3161_v47, %v3149_v62 }
0x2d61   :  { %v2428_v0 = vpop.permute.xlu0 %2427 }
0x2d62   :  { %v2430_v15 = vmul.f32 %v2428_v0, %v2425_v63  ;;  %v11358_v63 = vmov 0  }
0x2d63   :  { %10339 = vset.pattern.permute.xlu0 %v11358_v63  ;;  %10340 = vset.pattern.permute.xlu1 %v11358_v63 }
0x2d64   :  { %v2432_v30 = vadd.f32 %v2431_v54, %v2430_v15 }
0x2d65   :  { %v10316_v19 = vpop.permute.xlu0 %10315 }
0x2d66   :  { %v10334_v18 = vpack.i.bf16 %v11923_v7, %v2432_v30  ;;  %v10318_v34 = vunpack.i.h.bf16 %v10316_v19  ;;  %v10317_v35 = vunpack.i.l.bf16 %v10316_v19  ;;  %v2485_v7 = vsel %vm455_vm0, %v11940_v12, %v11954_v11  ;;  %v3153_v12 = vld [vmem:[#allocation9 + $0x70] sm:$0xff] }
0x2d67   :  { %v2486_v37 = vsel %vm2473_vm6, %v2485_v7, %v10312_v28  ;;  %v10333_v11 = vunpack.i.h.bf16 %v10331_v42  ;;  %v9342_v55 = vpack.c.bf16 %v3153_v12, %v3141_v58 }
0x2d68   :  { %10335 = vrot.lane.b32.xlu0 %v10334_v18, %s11326_s9  ;;  %v2476_v38 = vsel %vm2475_vm7, %v2474_v53, %v10318_v34  ;;  %v2487_v16 = vsel %vm2475_vm7, %v2486_v37, %v10317_v35  ;;  %s13001_s9 = sld [smem:[#allocation74_spill]] }
0x2d69   :  { %v10326_v36 = vpop.permute.xlu0 %10325  ;;  %v2478_v43 = vsel %vm2477_vm8, %v2476_v38, %v10323_v40  ;;  %v2488_v14 = vsel %vm2477_vm8, %v2487_v16, %v10322_v41 }
0x2d6a   :  { %v10328_v13 = vunpack.i.h.bf16 %v10326_v36  ;;  %v10327_v39 = vunpack.i.l.bf16 %v10326_v36 }
0x2d6c   :  { %v2480_v46 = vsel %vm2479_vm9, %v2478_v43, %v10328_v13  ;;  %v2489_v9 = vsel %vm2479_vm9, %v2488_v14, %v10327_v39 }
0x2d6d   :  { %v2490_v51 = vsel %vm2481_vm10, %v2489_v9, %v10332_v1  ;;  %v2482_v52 = vsel %vm2481_vm10, %v2480_v46, %v10333_v11 }
0x2dda   :  { %v10336_v31 = vpop.permute.xlu0 %10335 }
0x2ddb   :  { %v10338_v49 = vunpack.i.h.bf16 %v10336_v31  ;;  %v10337_v50 = vunpack.i.l.bf16 %v10336_v31 }
0x2ddd   :  { %v2491_v56 = vsel %vm2483_vm11, %v2490_v51, %v10337_v50  ;;  %v2484_v26 = vsel %vm2483_vm11, %v2482_v52, %v10338_v49 }
0x2dde   :  { %2588 = vmatprep.mubr.f32.mxu0 %v2491_v56  ;;  %v11359_v56 = vmov 1  }
0x2ddf   :  { %2589 = vmatmul.mubr.f32.vlgmr.msra.gmra.mrb[20].mxu0 %v2484_v26  ;;  %v12191_v26 = vsub.s32 0, %v11693_v2 }
0x2de0   :  { %9343 = vmatpush1.bf16.msra.mxu0 %v9342_v55  ;;  %3316 = vmatprep.mubr.f32.mxu0 %v11350_v4 }
0x2de1   :  { %9349 = vmatprep.subr.bf16.mxu0 %v9348_v57 }
0x2de3   :  { %8510 = vmatmul.mubr.msk.f32.vlgmr.msra.gmra.mrb[22].mxu0 %vm455_vm0, %v11740_v23 }
0x2de4   :  { %3322 = vmatprep.mubr.f32.mxu0 %v11350_v4  ;;  %9351 = vmatpush1.bf16.msra.mxu0 %v9350_v60 }
0x2de5   :  { %9357 = vmatprep.subr.bf16.mxu0 %v9356_v61 }
0x2de7   :  { %8511 = vmatmul.mubr.msk.f32.gmra.mrb[24].mxu0 %vm455_vm0, %v11738_v22 }
0x2de8   :  { %3328 = vmatprep.mubr.f32.mxu0 %v11350_v4 }
0x2deb   :  { %8512 = vmatmul.mubr.msk.f32.gmra.mrb[26].mxu0 %vm455_vm0, %v11746_v25 }
0x2dec   :  { %3334 = vmatprep.mubr.f32.mxu0 %v11350_v4 }
0x2def   :  { %8513 = vmatmul.mubr.msk.f32.gmra.mrb[28].mxu0 %vm455_vm0, %v11742_v24 }
0x2df0   :  { %3494 = vmatprep.mubr.f32.mxu0 %v11350_v4 }
0x2df3   :  { %8518 = vmatmul.mubr.msk.f32.vlgmr.msra.gmra.mrb[30].mxu0 %vm455_vm0, %v11740_v23 }
0x2df4   :  { %3500 = vmatprep.mubr.f32.mxu0 %v11350_v4  ;;  %9359 = vmatpush1.bf16.msra.mxu0 %v9358_v8 }
0x2df7   :  { %8519 = vmatmul.mubr.msk.f32.gmra.mrb[32].mxu0 %vm455_vm0, %v11738_v22 }
0x2df8   :  { %3506 = vmatprep.mubr.f32.mxu0 %v11350_v4 }
0x2dfb   :  { %8520 = vmatmul.mubr.msk.f32.gmra.mrb[34].mxu0 %vm455_vm0, %v11746_v25 }
0x2dfc   :  { %3512 = vmatprep.mubr.f32.mxu0 %v11350_v4 }
0x2dff   :  { %8521 = vmatmul.mubr.msk.f32.gmra.mrb[36].mxu0 %vm455_vm0, %v11742_v24 }
0x2e00   :  { %3672 = vmatprep.mubr.f32.mxu0 %v11350_v4 }
0x2e03   :  { %8526 = vmatmul.mubr.msk.f32.vlgmr.msra.gmra.mrb[38].mxu0 %vm455_vm0, %v11740_v23 }
0x2e04   :  { %3678 = vmatprep.mubr.f32.mxu0 %v11350_v4 }
0x2e07   :  { %8527 = vmatmul.mubr.msk.f32.gmra.mrb[40].mxu0 %vm455_vm0, %v11738_v22 }
0x2e08   :  { %3684 = vmatprep.mubr.f32.mxu0 %v11350_v4 }
0x2e0b   :  { %8528 = vmatmul.mubr.msk.f32.gmra.mrb[42].mxu0 %vm455_vm0, %v11746_v25 }
0x2e0c   :  { %3690 = vmatprep.mubr.f32.mxu0 %v11350_v4 }
0x2e0f   :  { %8529 = vmatmul.mubr.msk.f32.gmra.mrb[44].mxu0 %vm455_vm0, %v11742_v24 }
0x2e10   :  { %3863 = vmatprep.mubr.f32.mxu0 %v11350_v4 }
0x2eb2   :  { %v8794_v3 = vpop.f32.mrb[20].mxu0 }
0x2eb3   :  { %v8795_v0 = vpop.f32.mrb[21].mxu0 }
0x2eb4   :  { %v12138_v54 = vadd.f32 %v8795_v0, %v8794_v3 }
0x2eb6   :  { %9095 = vmatprep.subr.msk.mxu1 %vm455_vm0, %v12138_v54  ;;  %v3318_v15 = vpop.f32.mrb[22].mxu0  ;;  %v2685_v57 = vrot.slane %v12138_v54, %v12191_v26  ;;  %v2738_v47 = vrot.slane %v12138_v54, %v12196_v59 }
0x2eb7   :  { %9096 = vmatpush3.xpose.msk.msra.mxu1 %vm455_vm0, %v12138_v54  ;;  %v3320_v30 = vpop.f32.mrb[23].mxu0 }
0x2eba   :  { %9098 = vmatmul.mubr.msk.f32.vlgmr.msra.gmra.mrb[20].mxu1 %vm455_vm0, %v11720_v20  ;;  %v3324_v18 = vpop.f32.mrb[24].mxu0 }
0x2ebb   :  { %v9370_v32 = vpack.c.bf16 %v3324_v18, %v3318_v15  ;;  %v3326_v19 = vpop.f32.mrb[25].mxu0  ;;  %9104 = vmatprep.mubr.msk.f32.mxu1 %vm455_vm0, %v11697_v5 }
0x2ebc   :  { %v9368_v27 = vpack.c.bf16 %v3326_v19, %v3320_v30 }
0x2ebe   :  { %v3330_v28 = vpop.f32.mrb[26].mxu0  ;;  %9369 = vmatprep.subr.bf16.mxu0 %v9368_v27 }
0x2ebf   :  { %v3332_v33 = vpop.f32.mrb[27].mxu0  ;;  %9371 = vmatpush1.bf16.msra.mxu0 %v9370_v32 }
0x2ec2   :  { %v3336_v34 = vpop.f32.mrb[28].mxu0 }
0x2ec3   :  { %v9374_v35 = vpack.c.bf16 %v3336_v34, %v3330_v28  ;;  %v3338_v36 = vpop.f32.mrb[29].mxu0 }
0x2ec4   :  { %v9372_v44 = vpack.c.bf16 %v3338_v36, %v3332_v33 }
0x2ec6   :  { %v12148_v7 = vpop.f32.mrb[30].mxu0  ;;  %9373 = vmatprep.subr.bf16.mxu0 %v9372_v44 }
0x2ec7   :  { %v3498_v53 = vpop.f32.mrb[31].mxu0  ;;  %9375 = vmatpush1.bf16.msra.mxu0 %v9374_v35 }
0x2eca   :  { %v12150_v37 = vpop.f32.mrb[32].mxu0 }
0x2ecb   :  { %v9386_v38 = vpack.c.bf16 %v12150_v37, %v12148_v7  ;;  %v3504_v16 = vpop.f32.mrb[33].mxu0 }
0x2ecc   :  { %v9384_v13 = vpack.c.bf16 %v3504_v16, %v3498_v53 }
0x2ece   :  { %v12154_v39 = vpop.f32.mrb[34].mxu0  ;;  %9385 = vmatprep.subr.bf16.mxu0 %v9384_v13 }
0x2ecf   :  { %v12156_v40 = vpop.f32.mrb[35].mxu0 }
0x2ed2   :  { %v12158_v41 = vpop.f32.mrb[36].mxu0 }
0x2ed3   :  { %v9390_v42 = vpack.c.bf16 %v12158_v41, %v12154_v39  ;;  %v12162_v43 = vpop.f32.mrb[37].mxu0 }
0x2ed4   :  { %v9388_v14 = vpack.c.bf16 %v12162_v43, %v12156_v40  ;;  %v3140_v43 = vld [vmem:[#allocation9 + $0x8] sm:$0xff] }
0x2ed6   :  { %v12166_v46 = vpop.f32.mrb[38].mxu0 }
0x2ed7   :  { %v12168_v9 = vpop.f32.mrb[39].mxu0 }
0x2eda   :  { %v12170_v58 = vpop.f32.mrb[40].mxu0 }
0x2edb   :  { %v9402_v12 = vpack.c.bf16 %v12170_v58, %v12166_v46  ;;  %v12174_v11 = vpop.f32.mrb[41].mxu0  ;;  %v3148_v46 = vld [vmem:[#allocation9 + $0x48] sm:$0xff] }
0x2edc   :  { %v9400_v1 = vpack.c.bf16 %v12174_v11, %v12168_v9  ;;  %v3160_v58 = vld [vmem:[#allocation9 + $0xa8] sm:$0xff] }
0x2ede   :  { %v12178_v31 = vpop.f32.mrb[42].mxu0 }
0x2edf   :  { %v12180_v29 = vpop.f32.mrb[43].mxu0 }
0x2ee2   :  { %v12182_v48 = vpop.f32.mrb[44].mxu0 }
0x2ee3   :  { %v9406_v49 = vpack.c.bf16 %v12182_v48, %v12178_v31  ;;  %v12186_v50 = vpop.f32.mrb[45].mxu0  ;;  %v3147_v31 = vld [vmem:[#allocation9 + $0x40] sm:$0xff] }
0x2ee4   :  { %v9404_v51 = vpack.c.bf16 %v12186_v50, %v12180_v29  ;;  %v9352_v29 = vpack.c.bf16 %v3160_v58, %v3148_v46  ;;  %v3159_v48 = vld [vmem:[#allocation9 + $0xa0] sm:$0xff] }
0x2f8d   :  { %v9099_v52 = vpop.f32.mrb[20].mxu1 }
0x2f8e   :  { %2679 = vperm.xlu0 %10339, %v9099_v52   ;;  %v2663_v55 = vpop.f32.mrb[21].mxu1 }
0x2f8f   :  { %2674 = vperm.xlu1 %10340, %v2663_v55  }
0x2f93   :  { %10341 = vset.pattern.permute.xlu1 %v11359_v56 }
0x2f94   :  { %2728 = vperm.xlu1 %10341, %v2663_v55  }
0x2f98   :  { %2732 = vperm.xlu1 %10341, %v9099_v52  }
0x2f9c   :  { %10342 = vset.pattern.permute.xlu1 %v11358_v63 }
0x300d   :  { %v2680_v21 = vpop.permute.xlu0 %2679 }
0x300e   :  { %v2687_v45 = vadd.f32 %v2685_v57, %v2680_v21  ;;  %v2675_v10 = vpop.permute.xlu1 %2674 }
0x300f   :  { %v2686_v60 = vadd.f32 %v2685_v57, %v2675_v10 }
0x3010   :  { %v2691_v61 = vmul.f32 0.2, %v2687_v45  ;;  %vm2689_vm12 = vcmp.ge.f32.partialorder %v2687_v45, 0.0 }
0x3011   :  { %v2690_v62 = vmul.f32 0.2, %v2686_v60  ;;  %vm2688_vm14 = vcmp.ge.f32.partialorder %v2686_v60, 0.0 }
0x3012   :  { %v2693_v8 = vsel %vm2689_vm12, %v2687_v45, %v2691_v61 }
0x3013   :  { %v2729_v63 = vpop.permute.xlu1 %2728  ;;  %v2698_v3 = vsel %vm2694_vm13, %v2693_v8, -inf  ;;  %v2692_v0 = vsel %vm2688_vm14, %v2686_v60, %v2690_v62 }
0x3014   :  { %v2739_v15 = vadd.f32 %v2738_v47, %v2729_v63  ;;  %2699 = vmax.xlane.f32.xlu1 %v2698_v3  ;;  %v2695_v30 = vsel %vm2694_vm13, %v2692_v0, -inf }
0x3015   :  { %2696 = vmax.xlane.f32.xlu0 %v2695_v30 }
0x3016   :  { %v2743_v18 = vmul.f32 0.2, %v2739_v15  ;;  %vm2741_vm15 = vcmp.ge.f32.partialorder %v2739_v15, 0.0 }
0x3017   :  { %v2733_v32 = vpop.permute.xlu1 %2732 }
0x3018   :  { %v2740_v19 = vadd.f32 %v2738_v47, %v2733_v32  ;;  %v2745_v27 = vsel %vm2741_vm15, %v2739_v15, %v2743_v18 }
0x3019   :  { %v2747_v28 = vsel %vm2694_vm13, %v2745_v27, -inf }
0x301a   :  { %v2744_v33 = vmul.f32 0.2, %v2740_v19  ;;  %2748 = vmax.xlane.f32.xlu0 %v2747_v28  ;;  %vm2742_vm1 = vcmp.ge.f32.partialorder %v2740_v19, 0.0 }
0x301c   :  { %v2746_v54 = vsel %vm2742_vm1, %v2740_v19, %v2744_v33 }
0x301d   :  { %v2750_v34 = vsel %vm2694_vm13, %v2746_v54, -inf }
0x301e   :  { %2751 = vmax.xlane.f32.xlu0 %v2750_v34 }
0x30a1   :  { %v2700_v35 = vpop.xlane.xlu1 %2699 }
0x30a2   :  { %v2702_v36 = vsub.f32 %v2693_v8, %v2700_v35  ;;  %v2697_v44 = vpop.xlane.xlu0 %2696 }
0x30a3   :  { %v2701_v53 = vsub.f32 %v2692_v0, %v2697_v44 }
0x30a4   :  { %v2705_v16 = vmul.f32 1.442695, %v2702_v36 }
0x30a5   :  { %v2703_v13 = vmul.f32 1.442695, %v2701_v53 }
0x30a6   :  { %10439 = vpow2.f32 %v2705_v16 }
0x30a7   :  { %10441 = vpow2.f32 %v2703_v13  ;;  %v2749_v52 = vpop.xlane.xlu0 %2748 }
0x30a8   :  { %v2753_v55 = vsub.f32 %v2745_v27, %v2749_v52 }
0x30aa   :  { %v2755_v56 = vmul.f32 1.442695, %v2753_v55 }
0x30ab   :  { %v2752_v57 = vpop.xlane.xlu0 %2751 }
0x30ac   :  { %10443 = vpow2.f32 %v2755_v56  ;;  %v2754_v21 = vsub.f32 %v2746_v54, %v2752_v57 }
0x30ae   :  { %v2757_v45 = vmul.f32 1.442695, %v2754_v21 }
0x30b0   :  { %v10440_v10 = vpop.eup %10439  ;;  %10445 = vpow2.f32 %v2757_v45 }
0x30b1   :  { %v10442_v60 = vpop.eup %10441  ;;  %2711 = vrot.lane.b32.xlu0 %v10440_v10, %s11353_s25 }
0x30b2   :  { %2709 = vrot.lane.b32.xlu1 %v10442_v60, %s11353_s25 }
0x30b6   :  { %v10444_v61 = vpop.eup %10443 }
0x30b7   :  { %2761 = vrot.lane.b32.xlu1 %v10444_v61, %s11353_s25 }
0x30ba   :  { %v10446_v62 = vpop.eup %10445 }
0x30bb   :  { %2763 = vrot.lane.b32.xlu1 %v10446_v62, %s11353_s25 }
0x3123   :  { %v2712_v47 = vpop.permute.xlu0 %2711 }
0x3124   :  { %v2710_v8 = vpop.permute.xlu1 %2709  ;;  %v2718_v63 = vsel %vm455_vm0, %v2712_v47, 0.0 }
0x3125   :  { %2719 = vadd.xlane.f32.xlu1 %v2718_v63  ;;  %v2715_v3 = vsel %vm455_vm0, %v2710_v8, 0.0 }
0x3126   :  { %2716 = vadd.xlane.f32.xlu0 %v2715_v3 }
0x3129   :  { %v2762_v0 = vpop.permute.xlu1 %2761 }
0x312a   :  { %v2767_v15 = vsel %vm455_vm0, %v2762_v0, 0.0 }
0x312b   :  { %2768 = vadd.xlane.f32.xlu0 %v2767_v15 }
0x312d   :  { %v2764_v30 = vpop.permute.xlu1 %2763 }
0x312e   :  { %v2770_v18 = vsel %vm455_vm0, %v2764_v30, 0.0 }
0x312f   :  { %2771 = vadd.xlane.f32.xlu0 %v2770_v18 }
0x31b2   :  { %v2720_v19 = vpop.xlane.xlu1 %2719 }
0x31b3   :  { %v2717_v32 = vpop.xlane.xlu0 %2716 }
0x31b4   :  { %10447 = vrcp.f32 %v2717_v32 }
0x31b8   :  { %v2769_v27 = vpop.xlane.xlu0 %2768 }
0x31b9   :  { %10449 = vrcp.f32 %v2769_v27 }
0x31ba   :  { %10451 = vrcp.f32 %v2720_v19 }
0x31bc   :  { %v2772_v28 = vpop.xlane.xlu0 %2771 }
0x31bd   :  { %10453 = vrcp.f32 %v2772_v28 }
0x31be   :  { %v10448_v33 = vpop.eup %10447 }
0x31bf   :  { %v2722_v34 = vmul.f32 %v10448_v33, %v10442_v60 }
0x31c3   :  { %v10450_v54 = vpop.eup %10449 }
0x31c4   :  { %v2774_v35 = vmul.f32 %v10450_v54, %v10444_v61  ;;  %v10452_v36 = vpop.eup %10451 }
0x31c5   :  { %v2724_v13 = vmul.f32 %v10452_v36, %v10440_v10 }
0x31c6   :  { %v2777_v44 = vadd.f32 %v2774_v35, %v2722_v34 }
0x31c7   :  { %v10454_v53 = vpop.eup %10453 }
0x31c8   :  { %v2779_v16 = vmul.f32 0.5, %v2777_v44  ;;  %v2776_v52 = vmul.f32 %v10454_v53, %v10446_v62 }
0x31ca   :  { %2783 = vrot.lane.b32.xlu1 %v2779_v16, %s11353_s25  ;;  %v2778_v55 = vadd.f32 %v2776_v52, %v2724_v13 }
0x31cc   :  { %v2780_v56 = vmul.f32 0.5, %v2778_v55 }
0x31ce   :  { %2785 = vrot.lane.b32.xlu0 %v2780_v56, %s11353_s25 }
0x323c   :  { %v2784_v57 = vpop.permute.xlu1 %2783 }
0x323d   :  { %v2880_v21 = vsel %vm455_vm0, %v2784_v57, 0.0 }
0x323e   :  { %2881 = vadd.xlane.f32.xlu0 %v2880_v21 }
0x3240   :  { %v2786_v45 = vpop.permute.xlu0 %2785 }
0x3241   :  { %v9322_v47 = vpack.c.bf16 %v2786_v45, %v2784_v57  ;;  %v2883_v63 = vsel %vm455_vm0, %v2786_v45, 0.0 }
0x3243   :  { %9324 = vmatprep.subr.msk.bf16.mxu1 %vm11701_vm2, %v9322_v47 }
0x3244   :  { %9327 = vmatpush3.bf16.xpose.msk.msra.mxu1 %vm11701_vm2, %v9322_v47 }
0x324b   :  { %9105 = vmatmul.mubr.msk.f32.vlgmr.msra.gmra.mrb[22].mxu1 %vm455_vm0, %v11720_v20 }
0x32cb   :  { %v2882_v34 = vpop.xlane.xlu0 %2881 }
0x32cc   :  { %10455 = vrsqrt.f32 %v2882_v34  ;;  %vm2897_vm3 = vcmp.eq.f32.partialorder %v2882_v34, inf  ;;  %v2900_v57 = vand.u32 2147483648, %v2882_v34  ;;  %vm2899_vm7 = vcmp.eq.f32.partialorder %v2882_v34, 0.0 }
0x32d6   :  { %v10456_v44 = vpop.eup %10455 }
0x331e   :  { %v9106_v10 = vpop.f32.mrb[22].mxu1 }
0x331f   :  { %v2887_v60 = vsel %vm455_vm0, %v9106_v10, 0.0  ;;  %v2857_v61 = vpop.f32.mrb[23].mxu1 }
0x3320   :  { %v2886_v62 = vsel %vm455_vm0, %v2857_v61, 0.0  ;;  %2868 = vrot.lane.b32.xlu1 %v2857_v61, %s11354_s13 }
0x3321   :  { %v2888_v8 = vadd.f32 %v2887_v60, %v2886_v62 }
0x3323   :  { %v2889_v19 = vrot.slane %v2888_v8, 4 }
0x3324   :  { %2870 = vrot.lane.b32.xlu1 %v9106_v10, %s11354_s13 }
0x3325   :  { %v2890_v27 = vadd.f32 %v2889_v19, %v2888_v8 }
0x3327   :  { %v2891_v28 = vrot.slane %v2890_v27, 2 }
0x3329   :  { %v2892_v33 = vadd.f32 %v2891_v28, %v2890_v27 }
0x332b   :  { %v2893_v54 = vrot.slane %v2892_v33, 1 }
0x332d   :  { %v2894_v35 = vadd.f32 %v2893_v54, %v2892_v33 }
0x332f   :  { %10457 = vrsqrt.f32 %v2894_v35  ;;  %vm2917_vm5 = vcmp.eq.f32.partialorder %v2894_v35, inf  ;;  %v2920_v47 = vand.u32 2147483648, %v2894_v35  ;;  %vm2919_vm9 = vcmp.eq.f32.partialorder %v2894_v35, 0.0 }
0x3339   :  { %v10458_v53 = vpop.eup %10457 }
0x333a   :  { %v2916_v52 = vmul.f32 %v10458_v53, %v2894_v35 }
0x333c   :  { %v2918_v21 = vsel %vm2917_vm5, %v2894_v35, %v2916_v52  ;;  %v3139_v52 = vld [vmem:[#allocation9] sm:$0xff] }
0x333d   :  { %v2921_v61 = vsel %vm2919_vm9, %v2920_v47, %v2918_v21 }
0x3348   :  { %2884 = vadd.xlane.f32.xlu1 %v2883_v63  ;;  %v2922_v63 = vadd.f32 1e-07, %v2921_v61 }
0x3392   :  { %v2869_v3 = vpop.permute.xlu1 %2868 }
0x3393   :  { %v2874_v0 = vadd.f32 %v2869_v3, %v2779_v16  ;;  %v2896_v16 = vmul.f32 %v10456_v44, %v2882_v34 }
0x3395   :  { %v2876_v15 = vmul.f32 0.5, %v2874_v0  ;;  %v2898_v55 = vsel %vm2897_vm3, %v2882_v34, %v2896_v16  ;;  %v2925_v0 = vmul.f32 %v11697_v5, %v2882_v34 }
0x3396   :  { %v2871_v30 = vpop.permute.xlu1 %2870  ;;  %v2901_v45 = vsel %vm2899_vm7, %v2900_v57, %v2898_v55  ;;  %v3151_v55 = vld [vmem:[#allocation9 + $0x60] sm:$0xff]  ;;  %v3156_v57 = vld [vmem:[#allocation9 + $0x88] sm:$0xff] }
0x3397   :  { %v2875_v18 = vadd.f32 %v2871_v30, %v2780_v56  ;;  %2929 = vrot.lane.b32.xlu0 %v2876_v15, %s11353_s25  ;;  %v2909_v62 = vadd.f32 1e-07, %v2901_v45  ;;  %v9338_v21 = vpack.c.bf16 %v3151_v55, %v3139_v52 }
0x3399   :  { %v2877_v32 = vmul.f32 0.5, %v2875_v18 }
0x339b   :  { %2931 = vrot.lane.b32.xlu1 %v2877_v32, %s11353_s25 }
0x33d5   :  { %v2885_v36 = vpop.xlane.xlu1 %2884 }
0x33d6   :  { %10459 = vrsqrt.f32 %v2885_v36  ;;  %vm2904_vm8 = vcmp.eq.f32.partialorder %v2885_v36, inf  ;;  %v2907_v60 = vand.u32 2147483648, %v2885_v36  ;;  %vm2906_vm10 = vcmp.eq.f32.partialorder %v2885_v36, 0.0 }
0x33d7   :  { %10461 = vrcp.f32 %v2909_v62  ;;  %v2926_v19 = vmul.f32 %v11720_v20, %v2885_v36 }
0x33d8   :  { %10463 = vrcp.f32 %v2922_v63 }
0x33e0   :  { %v10460_v13 = vpop.eup %10459 }
0x33e1   :  { %v2903_v56 = vmul.f32 %v10460_v13, %v2885_v36  ;;  %v10462_v18 = vpop.eup %10461 }
0x33e2   :  { %v10464_v27 = vpop.eup %10463 }
0x33e3   :  { %v2905_v10 = vsel %vm2904_vm8, %v2885_v36, %v2903_v56  ;;  %v3144_v56 = vld [vmem:[#allocation9 + $0x28] sm:$0xff] }
0x33e4   :  { %v2908_v8 = vsel %vm2906_vm10, %v2907_v60, %v2905_v10  ;;  %v9344_v47 = vpack.c.bf16 %v3156_v57, %v3144_v56  ;;  %v3143_v10 = vld [vmem:[#allocation9 + $0x20] sm:$0xff] }
0x33e5   :  { %v2910_v3 = vadd.f32 1e-07, %v2908_v8  ;;  %v3155_v60 = vld [vmem:[#allocation9 + $0x80] sm:$0xff] }
0x33e7   :  { %10465 = vrcp.f32 %v2910_v3 }
0x33f1   :  { %v10466_v35 = vpop.eup %10465 }
0x3409   :  { %v2930_v15 = vpop.permute.xlu0 %2929 }
0x340a   :  { %v2935_v30 = vsub.f32 %v2925_v0, %v2930_v15  ;;  %3103 = vst.msk [vmem:[#allocation40] sm:$0xff] %vm455_vm0, %v2930_v15 }
0x340c   :  { %v2937_v32 = vmul.f32 %v10462_v18, %v2935_v30 }
0x340d   :  { %v2932_v28 = vpop.permute.xlu1 %2931 }
0x340e   :  { %v12231_v33 = vmul.f32 %v10464_v27, %v2937_v32  ;;  %v2936_v54 = vsub.f32 %v2926_v19, %v2932_v28  ;;  %3104 = vst.msk [vmem:[#allocation40 + $0x8] sm:$0xff] %vm455_vm0, %v2932_v28 }
0x3410   :  { %v2938_v44 = vmul.f32 %v10466_v35, %v2936_v54  ;;  %3107 = vrot.lane.b32.xlu0 %v12231_v33, %s11354_s13  ;;  %9111 = vmatprep.mubr.msk.f32.mxu1 %vm455_vm0, %v12231_v33  ;;  %v12240_v34 = vsel %vm455_vm0, %v12231_v33, 0.0 }
0x3411   :  { %8534 = vmatmul.mubr.msk.f32.vlgmr.msra.gmra.mrb[46].mxu0 %vm2473_vm6, %v12240_v34 }
0x3412   :  { %v12244_v36 = vmul.f32 %v10464_v27, %v2938_v44  ;;  %9387 = vmatpush1.bf16.msra.mxu0 %v9386_v38  ;;  %3869 = vmatprep.mubr.f32.mxu0 %v11350_v4  ;;  %v8177_v27 = vld [vmem:[%s13001_s9] sm:$0xff] }
0x3413   :  { %9389 = vmatprep.subr.bf16.mxu0 %v9388_v14  ;;  %v3152_v14 = vld [vmem:[#allocation9 + $0x68] sm:$0xff] }
0x3414   :  { %3109 = vrot.lane.b32.xlu1 %v12244_v36, %s11354_s13  ;;  %v12257_v53 = vsel %vm455_vm0, %v12244_v36, 0.0  ;;  %v9328_v16 = vpack.c.bf16 %v12244_v36, %v12231_v33  ;;  %v9336_v13 = vpack.c.bf16 %v3152_v14, %v3140_v43 }
0x3415   :  { %8535 = vmatmul.mubr.msk.f32.gmra.mrb[48].mxu0 %vm2473_vm6, %v12257_v53 }
0x3416   :  { %9391 = vmatpush1.bf16.msra.mxu0 %v9390_v42  ;;  %9329 = vmatprep.subr.bf16.mxu1 %v9328_v16 }
0x3417   :  { %9401 = vmatprep.subr.bf16.mxu0 %v9400_v1  ;;  %9331 = vmatpush3.bf16.msra.mxu1 %v9328_v16 }
0x3418   :  { %3875 = vmatprep.mubr.f32.mxu0 %v11350_v4 }
0x341a   :  { %9112 = vmatmul.mubr.msk.f32.vlgmr.msra.gmra.mrb[24].mxu1 %vm455_vm0, %v12244_v36 }
0x341b   :  { %9118 = vmatprep.mubr.msk.f32.mxu1 %vm455_vm0, %v12231_v33 }
0x3482   :  { %v3108_v7 = vpop.permute.xlu0 %3107 }
0x3483   :  { %v12275_v37 = vsel %vm455_vm0, 0.0, %v3108_v7 }
0x3484   :  { %8536 = vmatmul.mubr.msk.f32.gmra.mrb[50].mxu0 %vm2473_vm6, %v12275_v37 }
0x3485   :  { %3881 = vmatprep.mubr.f32.mxu0 %v11350_v4 }
0x3486   :  { %v3110_v38 = vpop.permute.xlu1 %3109 }
0x3487   :  { %v12281_v39 = vsel %vm455_vm0, 0.0, %v3110_v38 }
0x3488   :  { %8537 = vmatmul.mubr.msk.f32.gmra.mrb[52].mxu0 %vm2473_vm6, %v12281_v39 }
0x3489   :  { %4090 = vmatprep.mubr.f32.mxu0 %v11350_v4 }
0x34ed   :  { %v9113_v40 = vpop.f32.mrb[24].mxu1 }
0x34ee   :  { %v3023_v41 = vmul.f32 2.0, %v9113_v40  ;;  %v3013_v42 = vpop.f32.mrb[25].mxu1 }
0x34ef   :  { %v3022_v9 = vmul.f32 2.0, %v3013_v42 }
0x34f0   :  { %3121 = vrot.lane.b32.xlu1 %v3023_v41, %s11354_s13  ;;  %v12301_v45 = vsel %vm455_vm0, %v3023_v41, 0.0 }
0x34f1   :  { %v12288_v11 = vsel %vm455_vm0, %v3022_v9, 0.0  ;;  %3119 = vrot.lane.b32.xlu0 %v3022_v9, %s11354_s13  ;;  %v9332_v1 = vpack.c.bf16 %v3023_v41, %v3022_v9 }
0x34f2   :  { %8542 = vmatmul.mubr.msk.f32.vlgmr.msra.gmra.mrb[46].mxu0 %vm2473_vm6, %v12288_v11 }
0x34f3   :  { %9403 = vmatpush1.bf16.msra.mxu0 %v9402_v12  ;;  %9333 = vmatprep.subr.bf16.mxu1 %v9332_v1  ;;  %v9346_v12 = vpack.c.bf16 %v3155_v60, %v3143_v10 }
0x34f4   :  { %9405 = vmatprep.subr.bf16.mxu0 %v9404_v51  ;;  %9335 = vmatpush3.bf16.msra.mxu1 %v9332_v1 }
0x34f5   :  { %4096 = vmatprep.mubr.f32.mxu0 %v11350_v4  ;;  %9337 = vmatprep.subr.bf16.mxu1 %v9336_v13 }
0x34f6   :  { %8543 = vmatmul.mubr.msk.f32.gmra.mrb[48].mxu0 %vm2473_vm6, %v12301_v45 }
0x34f7   :  { %9407 = vmatpush1.bf16.msra.mxu0 %v9406_v49  ;;  %9119 = vmatmul.mubr.msk.f32.vlgmr.msra.gmra.mrb[26].mxu1 %vm455_vm0, %v12244_v36  ;;  %v9354_v49 = vpack.c.bf16 %v3159_v48, %v3147_v31 }
0x34f8   :  { %9339 = vmatpush1.bf16.msra.mxu1 %v9338_v21  ;;  %3227 = vmatprep.mubr.f32.mxu1 %v11350_v4 }
0x34f9   :  { %9345 = vmatprep.subr.bf16.mxu1 %v9344_v47  ;;  %4102 = vmatprep.mubr.f32.mxu0 %v11350_v4 }
0x34fb   :  { %8506 = vmatmul.mubr.msk.f32.vlgmr.msra.gmra.mrb[28].mxu1 %vm455_vm0, %v11740_v23 }
0x34fc   :  { %3233 = vmatprep.mubr.f32.mxu1 %v11350_v4  ;;  %9347 = vmatpush1.bf16.msra.mxu1 %v9346_v12 }
0x34fd   :  { %9353 = vmatprep.subr.bf16.mxu1 %v9352_v29 }
0x34ff   :  { %8507 = vmatmul.mubr.msk.f32.gmra.mrb[30].mxu1 %vm455_vm0, %v11738_v22 }
0x3500   :  { %3239 = vmatprep.mubr.f32.mxu1 %v11350_v4 }
0x3503   :  { %8508 = vmatmul.mubr.msk.f32.gmra.mrb[32].mxu1 %vm455_vm0, %v11746_v25 }
0x3504   :  { %3245 = vmatprep.mubr.f32.mxu1 %v11350_v4 }
0x3507   :  { %8509 = vmatmul.mubr.msk.f32.gmra.mrb[34].mxu1 %vm455_vm0, %v11742_v24 }
0x3508   :  { %3405 = vmatprep.mubr.f32.mxu1 %v11350_v4 }
0x350b   :  { %8514 = vmatmul.mubr.msk.f32.vlgmr.msra.gmra.mrb[36].mxu1 %vm455_vm0, %v11740_v23 }
0x350c   :  { %3411 = vmatprep.mubr.f32.mxu1 %v11350_v4  ;;  %9355 = vmatpush1.bf16.msra.mxu1 %v9354_v49 }
0x350f   :  { %8515 = vmatmul.mubr.msk.f32.gmra.mrb[38].mxu1 %vm455_vm0, %v11738_v22 }
0x3510   :  { %3417 = vmatprep.mubr.f32.mxu1 %v11350_v4 }
0x3513   :  { %8516 = vmatmul.mubr.msk.f32.gmra.mrb[40].mxu1 %vm455_vm0, %v11746_v25 }
0x3514   :  { %3423 = vmatprep.mubr.f32.mxu1 %v11350_v4 }
0x3517   :  { %8517 = vmatmul.mubr.msk.f32.gmra.mrb[42].mxu1 %vm455_vm0, %v11742_v24 }
0x3518   :  { %3583 = vmatprep.mubr.f32.mxu1 %v11350_v4 }
0x351b   :  { %8522 = vmatmul.mubr.msk.f32.vlgmr.msra.gmra.mrb[44].mxu1 %vm455_vm0, %v11740_v23 }
0x351c   :  { %3589 = vmatprep.mubr.f32.mxu1 %v11350_v4 }
0x351f   :  { %8523 = vmatmul.mubr.msk.f32.gmra.mrb[46].mxu1 %vm455_vm0, %v11738_v22 }
0x3520   :  { %3595 = vmatprep.mubr.f32.mxu1 %v11350_v4 }
0x3523   :  { %8524 = vmatmul.mubr.msk.f32.gmra.mrb[48].mxu1 %vm455_vm0, %v11746_v25 }
0x3524   :  { %3601 = vmatprep.mubr.f32.mxu1 %v11350_v4 }
0x3527   :  { %8525 = vmatmul.mubr.msk.f32.gmra.mrb[50].mxu1 %vm455_vm0, %v11742_v24 }
0x3528   :  { %3774 = vmatprep.mubr.f32.mxu1 %v11350_v4 }
0x3562   :  { %v3122_v61 = vpop.permute.xlu1 %3121 }
0x3563   :  { %v3120_v50 = vpop.permute.xlu0 %3119  ;;  %v12355_v62 = vsel %vm455_vm0, 0.0, %v3122_v61 }
0x3564   :  { %v12349_v51 = vsel %vm455_vm0, 0.0, %v3120_v50 }
0x3565   :  { %8544 = vmatmul.mubr.msk.f32.gmra.mrb[50].mxu0 %vm2473_vm6, %v12349_v51 }
0x3566   :  { %4108 = vmatprep.mubr.f32.mxu0 %v11350_v4 }
0x3569   :  { %8545 = vmatmul.mubr.msk.f32.gmra.mrb[52].mxu0 %vm2473_vm6, %v12355_v62 }
0x356a   :  { %4296 = vmatprep.mubr.f32.mxu0 %v11350_v4 }
0x35ca   :  { %v9120_v8 = vpop.f32.mrb[26].mxu1 }
0x35cb   :  { %v3100_v63 = vmul.f32 2.0, %v9120_v8  ;;  %v3090_v3 = vpop.f32.mrb[27].mxu1 }
0x35cc   :  { %v3099_v0 = vmul.f32 2.0, %v3090_v3  ;;  %v4394_v3 = vld [vmem:[%s13002_s8 + $0x8] sm:$0xff] }
0x35cd   :  { %v3102_v15 = vsub.f32 %v3100_v63, %v12244_v36  ;;  %v8277_v36 = vld [vmem:[#allocation2] sm:$0x1] }
0x35ce   :  { %v3101_v30 = vsub.f32 %v3099_v0, %v12231_v33  ;;  %v3229_v18 = vpop.f32.mrb[28].mxu1  ;;  %v4398_v0 = vld [vmem:[%s13002_s8 + $0x28] sm:$0xff] }
0x35cf   :  { %3133 = vrot.lane.b32.xlu1 %v3102_v15, %s11354_s13  ;;  %v3231_v32 = vpop.f32.mrb[29].mxu1  ;;  %v12372_v33 = vsel %vm455_vm0, %v3102_v15, 0.0  ;;  %v4396_v15 = vld [vmem:[%s13002_s8 + $0x18] sm:$0xff] }
0x35d0   :  { %v12364_v19 = vsel %vm455_vm0, %v3101_v30, 0.0  ;;  %3131 = vrot.lane.b32.xlu0 %v3101_v30, %s11354_s13  ;;  %v9408_v30 = vpack.c.bf16 %v4398_v0, %v4394_v3 }
0x35d1   :  { %8550 = vmatmul.mubr.msk.f32.vlgmr.msra.gmra.mrb[46].mxu0 %vm2473_vm6, %v12364_v19 }
0x35d2   :  { %v3235_v28 = vpop.f32.mrb[30].mxu1  ;;  %4302 = vmatprep.mubr.f32.mxu0 %v11350_v4 }
0x35d3   :  { %v9362_v54 = vpack.c.bf16 %v3235_v28, %v3229_v18  ;;  %v3237_v35 = vpop.f32.mrb[31].mxu1  ;;  %v4400_v18 = vld [vmem:[%s13002_s8 + $0x38] sm:$0xff] }
0x35d4   :  { %v9360_v44 = vpack.c.bf16 %v3237_v35, %v3231_v32  ;;  %8181 = vperm.xlu0 %10339, %v8177_v27   ;;  %v4393_v32 = vld [vmem:[%s13002_s8] sm:$0xff]  ;;  %v9472_v28 = vpack.c.bf16 %v4400_v18, %v4396_v15  ;;  %v4395_v35 = vld [vmem:[%s13002_s8 + $0x10] sm:$0xff] }
0x35d5   :  { %8551 = vmatmul.mubr.msk.f32.gmra.mrb[48].mxu0 %vm2473_vm6, %v12372_v33  ;;  %v4397_v27 = vld [vmem:[%s13002_s8 + $0x20] sm:$0xff]  ;;  %v4419_v18 = vld [vmem:[%s13002_s8 + $0xd0] sm:$0xff] }
0x35d6   :  { %v3241_v16 = vpop.f32.mrb[32].mxu1  ;;  %9361 = vmatprep.subr.bf16.mxu1 %v9360_v44  ;;  %4308 = vmatprep.mubr.f32.mxu0 %v11350_v4  ;;  %v4399_v44 = vld [vmem:[%s13002_s8 + $0x30] sm:$0xff] }
0x35d7   :  { %v3243_v7 = vpop.f32.mrb[33].mxu1  ;;  %9363 = vmatpush1.bf16.msra.mxu1 %v9362_v54  ;;  %v9410_v54 = vpack.c.bf16 %v4397_v27, %v4393_v32  ;;  %9473 = vmatprep.subr.bf16.mxu0 %v9472_v28  ;;  %v4423_v32 = vld [vmem:[%s13002_s8 + $0xf0] sm:$0xff]  ;;  %v4426_v28 = vld [vmem:[%s13002_s8 + $0x108] sm:$0xff] }
0x35d8   :  { %8280 = vperm.xlu0 %10339, %v8277_v36   ;;  %v9474_v36 = vpack.c.bf16 %v4399_v44, %v4395_v35  ;;  %v4428_v35 = vld [vmem:[%s13002_s8 + $0x118] sm:$0xff] }
0x35d9   :  { %v4432_v44 = vld [vmem:[%s13002_s8 + $0x138] sm:$0xff] }
0x35da   :  { %v3247_v38 = vpop.f32.mrb[34].mxu1  ;;  %9475 = vmatpush1.bf16.msra.mxu0 %v9474_v36 }
0x35db   :  { %v9366_v40 = vpack.c.bf16 %v3247_v38, %v3241_v16  ;;  %v3249_v41 = vpop.f32.mrb[35].mxu1  ;;  %v4402_v16 = vld [vmem:[%s13002_s8 + $0x48] sm:$0xff]  ;;  %v4404_v38 = vld [vmem:[%s13002_s8 + $0x58] sm:$0xff] }
0x35dc   :  { %v9364_v42 = vpack.c.bf16 %v3249_v41, %v3243_v7  ;;  %v4406_v7 = vld [vmem:[%s13002_s8 + $0x68] sm:$0xff]  ;;  %v4408_v41 = vld [vmem:[%s13002_s8 + $0x78] sm:$0xff] }
0x35de   :  { %v3407_v43 = vpop.f32.mrb[36].mxu1  ;;  %9365 = vmatprep.subr.bf16.mxu1 %v9364_v42  ;;  %v4401_v42 = vld [vmem:[%s13002_s8 + $0x40] sm:$0xff] }
0x35df   :  { %v3409_v14 = vpop.f32.mrb[37].mxu1  ;;  %9367 = vmatpush1.bf16.msra.mxu1 %v9366_v40  ;;  %v9412_v40 = vpack.c.bf16 %v4406_v7, %v4402_v16  ;;  %v9486_v16 = vpack.c.bf16 %v4423_v32, %v4419_v18  ;;  %v4425_v7 = vld [vmem:[%s13002_s8 + $0x100] sm:$0xff]  ;;  %v4454_v18 = vld [vmem:[%s13002_s8 + $0x1e8] sm:$0xff]  ;;  %v4452_v32 = vld [vmem:[%s13002_s8 + $0x1d8] sm:$0xff] }
0x35e2   :  { %v3413_v9 = vpop.f32.mrb[38].mxu1  ;;  %8530 = vmatmul.mubr.msk.f32.vlgmr.msra.gmra.mrb[52].mxu1 %vm2473_vm6, %v12240_v34 }
0x35e3   :  { %v9378_v1 = vpack.c.bf16 %v3413_v9, %v3407_v43  ;;  %v3415_v13 = vpop.f32.mrb[39].mxu1  ;;  %3780 = vmatprep.mubr.f32.mxu1 %v11350_v4  ;;  %v4405_v43 = vld [vmem:[%s13002_s8 + $0x60] sm:$0xff] }
0x35e4   :  { %v9376_v52 = vpack.c.bf16 %v3415_v13, %v3409_v14  ;;  %v9476_v14 = vpack.c.bf16 %v4408_v41, %v4404_v38  ;;  %v9414_v9 = vpack.c.bf16 %v4405_v43, %v4401_v42  ;;  %v4407_v13 = vld [vmem:[%s13002_s8 + $0x70] sm:$0xff]  ;;  %v4429_v38 = vld [vmem:[%s13002_s8 + $0x120] sm:$0xff]  ;;  %v9488_v42 = vpack.c.bf16 %v4432_v44, %v4428_v35 }
0x35e5   :  { %v4427_v43 = vld [vmem:[%s13002_s8 + $0x110] sm:$0xff]  ;;  %v4449_v35 = vld [vmem:[%s13002_s8 + $0x1c0] sm:$0xff] }
0x35e6   :  { %v3419_v55 = vpop.f32.mrb[40].mxu1  ;;  %8531 = vmatmul.mubr.msk.f32.gmra.mrb[54].mxu1 %vm2473_vm6, %v12257_v53  ;;  %9377 = vmatprep.subr.bf16.mxu1 %v9376_v52  ;;  %v4410_v52 = vld [vmem:[%s13002_s8 + $0x88] sm:$0xff] }
0x35e7   :  { %v3421_v56 = vpop.f32.mrb[41].mxu1  ;;  %9379 = vmatpush1.bf16.msra.mxu1 %v9378_v1  ;;  %3786 = vmatprep.mubr.f32.mxu1 %v11350_v4  ;;  %v4403_v1 = vld [vmem:[%s13002_s8 + $0x50] sm:$0xff] }
0x35e8   :  { %9477 = vmatprep.subr.bf16.mxu0 %v9476_v14  ;;  %v4431_v14 = vld [vmem:[%s13002_s8 + $0x130] sm:$0xff] }
0x35ea   :  { %v3425_v57 = vpop.f32.mrb[42].mxu1  ;;  %8532 = vmatmul.mubr.msk.f32.gmra.mrb[56].mxu1 %vm2473_vm6, %v12275_v37 }
0x35eb   :  { %v9382_v21 = vpack.c.bf16 %v3425_v57, %v3419_v55  ;;  %v3427_v47 = vpop.f32.mrb[43].mxu1  ;;  %3792 = vmatprep.mubr.f32.mxu1 %v11350_v4  ;;  %v9478_v55 = vpack.c.bf16 %v4407_v13, %v4403_v1  ;;  %v4412_v57 = vld [vmem:[%s13002_s8 + $0x98] sm:$0xff]  ;;  %v4438_v1 = vld [vmem:[%s13002_s8 + $0x168] sm:$0xff] }
0x35ec   :  { %v9380_v10 = vpack.c.bf16 %v3427_v47, %v3421_v56  ;;  %v4414_v56 = vld [vmem:[%s13002_s8 + $0xa8] sm:$0xff]  ;;  %v4436_v13 = vld [vmem:[%s13002_s8 + $0x158] sm:$0xff] }
0x35ed   :  { %v9416_v47 = vpack.c.bf16 %v4414_v56, %v4410_v52  ;;  %9479 = vmatpush1.bf16.msra.mxu0 %v9478_v55  ;;  %v4440_v52 = vld [vmem:[%s13002_s8 + $0x178] sm:$0xff]  ;;  %v9426_v55 = vpack.c.bf16 %v4429_v38, %v4425_v7  ;;  %v9490_v56 = vpack.c.bf16 %v4431_v14, %v4427_v43  ;;  %v4451_v7 = vld [vmem:[%s13002_s8 + $0x1d0] sm:$0xff]  ;;  %v4458_v43 = vld [vmem:[%s13002_s8 + $0x208] sm:$0xff] }
0x35ee   :  { %v3585_v60 = vpop.f32.mrb[44].mxu1  ;;  %8533 = vmatmul.mubr.msk.f32.gmra.mrb[58].mxu1 %vm2473_vm6, %v12281_v39  ;;  %9381 = vmatprep.subr.bf16.mxu1 %v9380_v10  ;;  %v4455_v38 = vld [vmem:[%s13002_s8 + $0x1f0] sm:$0xff]  ;;  %v4462_v14 = vld [vmem:[%s13002_s8 + $0x228] sm:$0xff] }
0x35ef   :  { %v3587_v46 = vpop.f32.mrb[45].mxu1  ;;  %9383 = vmatpush1.bf16.msra.mxu1 %v9382_v21  ;;  %4001 = vmatprep.mubr.f32.mxu1 %v11350_v4  ;;  %v4416_v21 = vld [vmem:[%s13002_s8 + $0xb8] sm:$0xff] }
0x35f0   :  { %v9480_v10 = vpack.c.bf16 %v4416_v21, %v4412_v57  ;;  %v4433_v57 = vld [vmem:[%s13002_s8 + $0x140] sm:$0xff] }
0x35f1   :  { %v4437_v21 = vld [vmem:[%s13002_s8 + $0x160] sm:$0xff] }
0x35f2   :  { %v3591_v58 = vpop.f32.mrb[46].mxu1  ;;  %8538 = vmatmul.mubr.msk.f32.vlgmr.msra.gmra.mrb[52].mxu1 %vm2473_vm6, %v12288_v11  ;;  %9481 = vmatprep.subr.bf16.mxu0 %v9480_v10  ;;  %v9492_v10 = vpack.c.bf16 %v4440_v52, %v4436_v13  ;;  %v4464_v13 = vld [vmem:[%s13002_s8 + $0x238] sm:$0xff] }
0x35f3   :  { %v9394_v12 = vpack.c.bf16 %v3591_v58, %v3585_v60  ;;  %v3593_v29 = vpop.f32.mrb[47].mxu1  ;;  %4007 = vmatprep.mubr.f32.mxu1 %v11350_v4  ;;  %v4409_v60 = vld [vmem:[%s13002_s8 + $0x80] sm:$0xff]  ;;  %v4411_v58 = vld [vmem:[%s13002_s8 + $0x90] sm:$0xff] }
0x35f4   :  { %v9392_v31 = vpack.c.bf16 %v3593_v29, %v3587_v46  ;;  %v4413_v46 = vld [vmem:[%s13002_s8 + $0xa0] sm:$0xff]  ;;  %v4418_v29 = vld [vmem:[%s13002_s8 + $0xc8] sm:$0xff] }
0x35f6   :  { %v3597_v48 = vpop.f32.mrb[48].mxu1  ;;  %8539 = vmatmul.mubr.msk.f32.gmra.mrb[54].mxu1 %vm2473_vm6, %v12301_v45  ;;  %9393 = vmatprep.subr.bf16.mxu1 %v9392_v31  ;;  %v4422_v31 = vld [vmem:[%s13002_s8 + $0xe8] sm:$0xff] }
0x35f7   :  { %v3599_v49 = vpop.f32.mrb[49].mxu1  ;;  %9395 = vmatpush1.bf16.msra.mxu1 %v9394_v12  ;;  %4013 = vmatprep.mubr.f32.mxu1 %v11350_v4  ;;  %v4415_v12 = vld [vmem:[%s13002_s8 + $0xb0] sm:$0xff]  ;;  %v9420_v0 = vpack.c.bf16 %v4422_v31, %v4418_v29  ;;  %v4444_v29 = vld [vmem:[%s13002_s8 + $0x198] sm:$0xff] }
0x35f8   :  { %v4448_v31 = vld [vmem:[%s13002_s8 + $0x1b8] sm:$0xff] }
0x35fa   :  { %v3603_v50 = vpop.f32.mrb[50].mxu1  ;;  %8540 = vmatmul.mubr.msk.f32.gmra.mrb[56].mxu1 %vm2473_vm6, %v12349_v51 }
0x35fb   :  { %v9398_v61 = vpack.c.bf16 %v3603_v50, %v3597_v48  ;;  %v3605_v8 = vpop.f32.mrb[51].mxu1  ;;  %4019 = vmatprep.mubr.f32.mxu1 %v11350_v4  ;;  %v4420_v48 = vld [vmem:[%s13002_s8 + $0xd8] sm:$0xff] }
0x35fc   :  { %v9396_v63 = vpack.c.bf16 %v3605_v8, %v3599_v49  ;;  %v4424_v49 = vld [vmem:[%s13002_s8 + $0xf8] sm:$0xff]  ;;  %v9482_v8 = vpack.c.bf16 %v4415_v12, %v4411_v58  ;;  %v4442_v58 = vld [vmem:[%s13002_s8 + $0x188] sm:$0xff] }
0x35fd   :  { %v9484_v15 = vpack.c.bf16 %v4424_v49, %v4420_v48  ;;  %v4446_v12 = vld [vmem:[%s13002_s8 + $0x1a8] sm:$0xff]  ;;  %v9430_v48 = vpack.c.bf16 %v4437_v21, %v4433_v57  ;;  %v4459_v57 = vld [vmem:[%s13002_s8 + $0x210] sm:$0xff] }
0x35fe   :  { %8541 = vmatmul.mubr.msk.f32.gmra.mrb[58].mxu1 %vm2473_vm6, %v12355_v62  ;;  %9397 = vmatprep.subr.bf16.mxu1 %v9396_v63  ;;  %v4417_v63 = vld [vmem:[%s13002_s8 + $0xc0] sm:$0xff] }
0x35ff   :  { %9399 = vmatpush1.bf16.msra.mxu1 %v9398_v61  ;;  %4207 = vmatprep.mubr.f32.mxu1 %v11350_v4  ;;  %v9418_v61 = vpack.c.bf16 %v4413_v46, %v4409_v60  ;;  %v4435_v60 = vld [vmem:[%s13002_s8 + $0x150] sm:$0xff] }
0x3600   :  { %9409 = vmatprep.subr.bf16.mxu1 %v9408_v30  ;;  %v4421_v30 = vld [vmem:[%s13002_s8 + $0xe0] sm:$0xff]  ;;  %9483 = vmatpush1.bf16.msra.mxu0 %v9482_v8  ;;  %v4439_v46 = vld [vmem:[%s13002_s8 + $0x170] sm:$0xff]  ;;  %v9432_v8 = vpack.c.bf16 %v4446_v12, %v4442_v58  ;;  %v4468_v58 = vld [vmem:[%s13002_s8 + $0x258] sm:$0xff] }
0x3601   :  { %v9422_v36 = vpack.c.bf16 %v4421_v30, %v4417_v63  ;;  %9485 = vmatprep.subr.bf16.mxu0 %v9484_v15  ;;  %v9494_v49 = vpack.c.bf16 %v4439_v46, %v4435_v60  ;;  %v9496_v63 = vpack.c.bf16 %v4448_v31, %v4444_v29  ;;  %v4447_v15 = vld [vmem:[%s13002_s8 + $0x1b0] sm:$0xff]  ;;  %v4450_v30 = vld [vmem:[%s13002_s8 + $0x1c8] sm:$0xff]  ;;  %v4472_v29 = vld [vmem:[%s13002_s8 + $0x278] sm:$0xff] }
0x3602   :  { %8546 = vmatmul.mubr.msk.f32.vlgmr.msra.gmra.mrb[52].mxu1 %vm2473_vm6, %v12364_v19  ;;  %v9436_v44 = vpack.c.bf16 %v4454_v18, %v4450_v30  ;;  %v4466_v60 = vld [vmem:[%s13002_s8 + $0x248] sm:$0xff]  ;;  %v4465_v31 = vld [vmem:[%s13002_s8 + $0x240] sm:$0xff]  ;;  %v4476_v30 = vld [vmem:[%s13002_s8 + $0x298] sm:$0xff] }
0x3603   :  { %4213 = vmatprep.mubr.f32.mxu1 %v11350_v4  ;;  %9411 = vmatpush1.bf16.msra.mxu1 %v9410_v54  ;;  %v4430_v54 = vld [vmem:[%s13002_s8 + $0x128] sm:$0xff] }
0x3604   :  { %9413 = vmatprep.subr.bf16.mxu1 %v9412_v40  ;;  %v9424_v41 = vpack.c.bf16 %v4430_v54, %v4426_v28  ;;  %9487 = vmatpush1.bf16.msra.mxu0 %v9486_v16  ;;  %v4453_v16 = vld [vmem:[%s13002_s8 + $0x1e0] sm:$0xff]  ;;  %v4470_v46 = vld [vmem:[%s13002_s8 + $0x268] sm:$0xff] }
0x3605   :  { %9489 = vmatprep.subr.bf16.mxu0 %v9488_v42  ;;  %v9502_v42 = vpack.c.bf16 %v4455_v38, %v4451_v7  ;;  %v9444_v12 = vpack.c.bf16 %v4470_v46, %v4466_v60  ;;  %v4482_v7 = vld [vmem:[%s13002_s8 + $0x2c8] sm:$0xff]  ;;  %v4496_v60 = vld [vmem:[%s13002_s8 + $0x338] sm:$0xff]  ;;  %v4489_v46 = vld [vmem:[%s13002_s8 + $0x300] sm:$0xff] }
0x3606   :  { %8547 = vmatmul.mubr.msk.f32.gmra.mrb[54].mxu1 %vm2473_vm6, %v12372_v33  ;;  %v4486_v38 = vld [vmem:[%s13002_s8 + $0x2e8] sm:$0xff] }
0x3607   :  { %4219 = vmatprep.mubr.f32.mxu1 %v11350_v4  ;;  %9415 = vmatpush1.bf16.msra.mxu1 %v9414_v9  ;;  %v4434_v9 = vld [vmem:[%s13002_s8 + $0x148] sm:$0xff] }
0x3608   :  { %9417 = vmatprep.subr.bf16.mxu1 %v9416_v47  ;;  %v9428_v47 = vpack.c.bf16 %v4438_v1, %v4434_v9  ;;  %9491 = vmatpush1.bf16.msra.mxu0 %v9490_v56  ;;  %v4460_v9 = vld [vmem:[%s13002_s8 + $0x218] sm:$0xff]  ;;  %v9440_v1 = vpack.c.bf16 %v4462_v14, %v4458_v43  ;;  %v4461_v56 = vld [vmem:[%s13002_s8 + $0x220] sm:$0xff] }
0x3609   :  { %9493 = vmatprep.subr.bf16.mxu0 %v9492_v10  ;;  %v9504_v52 = vpack.c.bf16 %v4464_v13, %v4460_v9  ;;  %v4488_v43 = vld [vmem:[%s13002_s8 + $0x2f8] sm:$0xff]  ;;  %v4481_v14 = vld [vmem:[%s13002_s8 + $0x2c0] sm:$0xff] }
0x360a   :  { %v4485_v9 = vld [vmem:[%s13002_s8 + $0x2e0] sm:$0xff] }
0x360b   :  { %9419 = vmatpush1.bf16.msra.mxu1 %v9418_v61  ;;  %v4445_v61 = vld [vmem:[%s13002_s8 + $0x1a0] sm:$0xff]  ;;  %v9454_v13 = vpack.c.bf16 %v4485_v9, %v4481_v14  ;;  %v4511_v14 = vld [vmem:[%s13002_s8 + $0x3b0] sm:$0xff]  ;;  %v4514_v9 = vld [vmem:[%s13002_s8 + $0x3c8] sm:$0xff] }
0x360c   :  { %9421 = vmatprep.subr.bf16.mxu1 %v9420_v0  ;;  %v4443_v0 = vld [vmem:[%s13002_s8 + $0x190] sm:$0xff]  ;;  %9495 = vmatpush1.bf16.msra.mxu0 %v9494_v49  ;;  %v9508_v49 = vpack.c.bf16 %v4472_v29, %v4468_v58  ;;  %v4493_v58 = vld [vmem:[%s13002_s8 + $0x320] sm:$0xff] }
0x360d   :  { %v9498_v54 = vpack.c.bf16 %v4447_v15, %v4443_v0  ;;  %9497 = vmatprep.subr.bf16.mxu0 %v9496_v63  ;;  %v4474_v0 = vld [vmem:[%s13002_s8 + $0x288] sm:$0xff]  ;;  %v9458_v29 = vpack.c.bf16 %v4493_v58, %v4489_v46  ;;  %v4519_v46 = vld [vmem:[%s13002_s8 + $0x3f0] sm:$0xff] }
0x360e   :  { %v4478_v15 = vld [vmem:[%s13002_s8 + $0x2a8] sm:$0xff] }
0x360f   :  { %9423 = vmatpush1.bf16.msra.mxu1 %v9422_v36  ;;  %v9448_v18 = vpack.c.bf16 %v4478_v15, %v4474_v0  ;;  %v4504_v0 = vld [vmem:[%s13002_s8 + $0x378] sm:$0xff]  ;;  %v4497_v15 = vld [vmem:[%s13002_s8 + $0x340] sm:$0xff] }
0x3610   :  { %9425 = vmatprep.subr.bf16.mxu1 %v9424_v41  ;;  %9499 = vmatpush1.bf16.msra.mxu0 %v9498_v54  ;;  %v9438_v41 = vpack.c.bf16 %v4453_v16, %v4449_v35 }
0x3613   :  { %9427 = vmatpush1.bf16.msra.mxu1 %v9426_v55  ;;  %v4457_v55 = vld [vmem:[%s13002_s8 + $0x200] sm:$0xff] }
0x3614   :  { %9429 = vmatprep.subr.bf16.mxu1 %v9428_v47  ;;  %v9442_v21 = vpack.c.bf16 %v4461_v56, %v4457_v55  ;;  %v4463_v47 = vld [vmem:[%s13002_s8 + $0x230] sm:$0xff] }
0x3615   :  { %v9506_v10 = vpack.c.bf16 %v4463_v47, %v4459_v57  ;;  %v4487_v55 = vld [vmem:[%s13002_s8 + $0x2f0] sm:$0xff]  ;;  %v4490_v57 = vld [vmem:[%s13002_s8 + $0x308] sm:$0xff]  ;;  %v4492_v47 = vld [vmem:[%s13002_s8 + $0x318] sm:$0xff] }
0x3617   :  { %9431 = vmatpush1.bf16.msra.mxu1 %v9430_v48  ;;  %v4469_v48 = vld [vmem:[%s13002_s8 + $0x260] sm:$0xff] }
0x3618   :  { %9433 = vmatprep.subr.bf16.mxu1 %v9432_v8  ;;  %v4471_v8 = vld [vmem:[%s13002_s8 + $0x270] sm:$0xff] }
0x3641   :  { %v3134_v27 = vpop.permute.xlu1 %3133 }
0x3642   :  { %v3132_v50 = vpop.permute.xlu0 %3131  ;;  %v12455_v40 = vsel %vm455_vm0, 0.0, %v3134_v27  ;;  %v4456_v27 = vld [vmem:[%s13002_s8 + $0x1f8] sm:$0xff] }
0x3643   :  { %v12437_v3 = vsel %vm455_vm0, 0.0, %v3132_v50  ;;  %v4441_v50 = vld [vmem:[%s13002_s8 + $0x180] sm:$0xff]  ;;  %v9500_v36 = vpack.c.bf16 %v4456_v27, %v4452_v32  ;;  %v4480_v32 = vld [vmem:[%s13002_s8 + $0x2b8] sm:$0xff] }
0x3644   :  { %8548 = vmatmul.mubr.msk.f32.gmra.mrb[56].mxu1 %vm2473_vm6, %v12437_v3  ;;  %8552 = vmatmul.mubr.msk.f32.gmra.mrb[50].mxu0 %vm2473_vm6, %v12437_v3  ;;  %v9434_v28 = vpack.c.bf16 %v4445_v61, %v4441_v50  ;;  %v9446_v50 = vpack.c.bf16 %v4469_v48, %v4465_v31  ;;  %v4467_v61 = vld [vmem:[%s13002_s8 + $0x250] sm:$0xff]  ;;  %v4473_v27 = vld [vmem:[%s13002_s8 + $0x280] sm:$0xff]  ;;  %v9512_v54 = vpack.c.bf16 %v4480_v32, %v4476_v30 }
0x3645   :  { %4225 = vmatprep.mubr.f32.mxu1 %v11350_v4  ;;  %4314 = vmatprep.mubr.f32.mxu0 %v11350_v4  ;;  %v9510_v63 = vpack.c.bf16 %v4471_v8, %v4467_v61  ;;  %v4491_v31 = vld [vmem:[%s13002_s8 + $0x310] sm:$0xff]  ;;  %v4502_v61 = vld [vmem:[%s13002_s8 + $0x368] sm:$0xff]  ;;  %v4500_v8 = vld [vmem:[%s13002_s8 + $0x358] sm:$0xff] }
0x3646   :  { %9435 = vmatpush1.bf16.msra.mxu1 %v9434_v28  ;;  %9501 = vmatprep.subr.bf16.mxu0 %v9500_v36  ;;  %v4477_v28 = vld [vmem:[%s13002_s8 + $0x2a0] sm:$0xff]  ;;  %v4479_v36 = vld [vmem:[%s13002_s8 + $0x2b0] sm:$0xff] }
0x3647   :  { %9437 = vmatprep.subr.bf16.mxu1 %v9436_v44  ;;  %9503 = vmatpush1.bf16.msra.mxu0 %v9502_v42  ;;  %v9450_v35 = vpack.c.bf16 %v4477_v28, %v4473_v27  ;;  %v4475_v44 = vld [vmem:[%s13002_s8 + $0x290] sm:$0xff]  ;;  %v9452_v42 = vpack.c.bf16 %v4486_v38, %v4482_v7  ;;  %v4501_v30 = vld [vmem:[%s13002_s8 + $0x360] sm:$0xff] }
0x3648   :  { %8549 = vmatmul.mubr.msk.f32.gmra.mrb[58].mxu1 %vm2473_vm6, %v12455_v40  ;;  %8553 = vmatmul.mubr.msk.f32.gmra.mrb[52].mxu0 %vm2473_vm6, %v12455_v40  ;;  %v9514_v16 = vpack.c.bf16 %v4479_v36, %v4475_v44  ;;  %v4495_v48 = vld [vmem:[%s13002_s8 + $0x330] sm:$0xff]  ;;  %v9462_v32 = vpack.c.bf16 %v4501_v30, %v4497_v15  ;;  %v4510_v44 = vld [vmem:[%s13002_s8 + $0x3a8] sm:$0xff]  ;;  %v4508_v36 = vld [vmem:[%s13002_s8 + $0x398] sm:$0xff] }
0x3649   :  { %9505 = vmatprep.subr.bf16.mxu0 %v9504_v52  ;;  %v4483_v52 = vld [vmem:[%s13002_s8 + $0x2d0] sm:$0xff] }
0x364a   :  { %9439 = vmatpush1.bf16.msra.mxu1 %v9438_v41  ;;  %v4484_v41 = vld [vmem:[%s13002_s8 + $0x2d8] sm:$0xff]  ;;  %v9518_v56 = vpack.c.bf16 %v4487_v55, %v4483_v52  ;;  %v4499_v27 = vld [vmem:[%s13002_s8 + $0x350] sm:$0xff] }
0x364b   :  { %9441 = vmatprep.subr.bf16.mxu1 %v9440_v1  ;;  %9507 = vmatpush1.bf16.msra.mxu0 %v9506_v10  ;;  %v9516_v1 = vpack.c.bf16 %v4488_v43, %v4484_v41  ;;  %v4503_v28 = vld [vmem:[%s13002_s8 + $0x370] sm:$0xff]  ;;  %v4505_v41 = vld [vmem:[%s13002_s8 + $0x380] sm:$0xff]  ;;  %v4516_v55 = vld [vmem:[%s13002_s8 + $0x3d8] sm:$0xff] }
0x364c   :  { %9509 = vmatprep.subr.bf16.mxu0 %v9508_v49  ;;  %v9522_v49 = vpack.c.bf16 %v4495_v48, %v4491_v31  ;;  %v4507_v43 = vld [vmem:[%s13002_s8 + $0x390] sm:$0xff]  ;;  %v3697_v31 = vld [vmem:[#allocation11] sm:$0xf] }
0x364d   :  { %v9530_v52 = vpack.c.bf16 %v4511_v14, %v4507_v43 }
0x364e   :  { %9443 = vmatpush1.bf16.msra.mxu1 %v9442_v21  ;;  %v4494_v21 = vld [vmem:[%s13002_s8 + $0x328] sm:$0xff] }
0x364f   :  { %9445 = vmatprep.subr.bf16.mxu1 %v9444_v12  ;;  %9511 = vmatpush1.bf16.msra.mxu0 %v9510_v63  ;;  %v9456_v10 = vpack.c.bf16 %v4494_v21, %v4490_v57  ;;  %v9520_v12 = vpack.c.bf16 %v4496_v60, %v4492_v47  ;;  %v4513_v57 = vld [vmem:[%s13002_s8 + $0x3c0] sm:$0xff]  ;;  %v4515_v60 = vld [vmem:[%s13002_s8 + $0x3d0] sm:$0xff] }
0x3650   :  { %9513 = vmatprep.subr.bf16.mxu0 %v9512_v54  ;;  %v4506_v54 = vld [vmem:[%s13002_s8 + $0x388] sm:$0xff] }
0x3651   :  { %v9464_v7 = vpack.c.bf16 %v4510_v44, %v4506_v54  ;;  %v4778_v44 = vld [vmem:[#allocation14 + $0x8] sm:$0xff] }
0x3652   :  { %9447 = vmatpush1.bf16.msra.mxu1 %v9446_v50  ;;  %v4498_v50 = vld [vmem:[%s13002_s8 + $0x348] sm:$0xff] }
0x3653   :  { %9449 = vmatprep.subr.bf16.mxu1 %v9448_v18  ;;  %9515 = vmatpush1.bf16.msra.mxu0 %v9514_v16  ;;  %v9460_v63 = vpack.c.bf16 %v4502_v61, %v4498_v50  ;;  %v9524_v18 = vpack.c.bf16 %v4504_v0, %v4500_v8  ;;  %v4512_v16 = vld [vmem:[%s13002_s8 + $0x3b8] sm:$0xff] }
0x3654   :  { %9517 = vmatprep.subr.bf16.mxu0 %v9516_v1  ;;  %v9528_v38 = vpack.c.bf16 %v4512_v16, %v4508_v36  ;;  %v4518_v1 = vld [vmem:[%s13002_s8 + $0x3e8] sm:$0xff]  ;;  %v4782_v36 = vld [vmem:[#allocation14 + $0x28] sm:$0xff] }
0x3655   :  { %v9468_v21 = vpack.c.bf16 %v4518_v1, %v4514_v9  ;;  %v4780_v16 = vld [vmem:[#allocation14 + $0x18] sm:$0xff] }
0x3656   :  { %9451 = vmatpush1.bf16.msra.mxu1 %v9450_v35  ;;  %v9526_v35 = vpack.c.bf16 %v4503_v28, %v4499_v27  ;;  %v12560_v28 = vsub.s32 2, %v11693_v2 }
0x3657   :  { %9453 = vmatprep.subr.bf16.mxu1 %v9452_v42  ;;  %9519 = vmatpush1.bf16.msra.mxu0 %v9518_v56  ;;  %v4509_v42 = vld [vmem:[%s13002_s8 + $0x3a0] sm:$0xff]  ;;  %v4520_v56 = vld [vmem:[%s13002_s8 + $0x3f8] sm:$0xff] }
0x3658   :  { %9521 = vmatprep.subr.bf16.mxu0 %v9520_v12  ;;  %v9532_v47 = vpack.c.bf16 %v4520_v56, %v4516_v55  ;;  %v9534_v12 = vpack.c.bf16 %v4519_v46, %v4515_v60 }
0x365a   :  { %9455 = vmatpush1.bf16.msra.mxu1 %v9454_v13  ;;  %v9466_v13 = vpack.c.bf16 %v4509_v42, %v4505_v41 }
0x365b   :  { %9457 = vmatprep.subr.bf16.mxu1 %v9456_v10  ;;  %9523 = vmatpush1.bf16.msra.mxu0 %v9522_v49  ;;  %v4517_v10 = vld [vmem:[%s13002_s8 + $0x3e0] sm:$0xff] }
0x365c   :  { %9525 = vmatprep.subr.bf16.mxu0 %v9524_v18  ;;  %v9470_v58 = vpack.c.bf16 %v4517_v10, %v4513_v57 }
0x365e   :  { %9459 = vmatpush1.bf16.msra.mxu1 %v9458_v29  ;;  %v12552_v29 = vsub.s32 3, %v11693_v2 }
0x365f   :  { %9461 = vmatprep.subr.bf16.mxu1 %v9460_v63  ;;  %9527 = vmatpush1.bf16.msra.mxu0 %v9526_v35  ;;  %v12563_v35 = vrot.slane %v3697_v31, %v12560_v28 }
0x3660   :  { %9529 = vmatprep.subr.bf16.mxu0 %v9528_v38  ;;  %v12555_v48 = vrot.slane %v3697_v31, %v12552_v29  ;;  %v4784_v38 = vld [vmem:[#allocation14 + $0x38] sm:$0xff] }
0x3661   :  { %v9600_v41 = vpack.c.bf16 %v4784_v38, %v4780_v16  ;;  %v4789_v38 = vld [vmem:[#allocation14 + $0x60] sm:$0xff] }
0x3662   :  { %9463 = vmatpush1.bf16.msra.mxu1 %v9462_v32 }
0x3663   :  { %9465 = vmatprep.subr.bf16.mxu1 %v9464_v7  ;;  %9531 = vmatpush1.bf16.msra.mxu0 %v9530_v52  ;;  %v9536_v7 = vpack.c.bf16 %v4782_v36, %v4778_v44 }
0x3664   :  { %9533 = vmatprep.subr.bf16.mxu0 %v9532_v47 }
0x3666   :  { %9467 = vmatpush1.bf16.msra.mxu1 %v9466_v13  ;;  %v12568_v13 = vrot.slane %v3697_v31, %v12196_v59 }
0x3667   :  { %9469 = vmatprep.subr.bf16.mxu1 %v9468_v21  ;;  %9535 = vmatpush1.bf16.msra.mxu0 %v9534_v12 }
0x3668   :  { %9601 = vmatprep.subr.bf16.mxu0 %v9600_v41 }
0x366a   :  { %9471 = vmatpush1.bf16.msra.mxu1 %v9470_v58 }
0x366b   :  { %9537 = vmatprep.subr.bf16.mxu1 %v9536_v7  ;;  %v4785_v7 = vld [vmem:[#allocation14 + $0x40] sm:$0xff] }
0x36a4   :  { %v4298_v49 = vpop.f32.mrb[46].mxu0 }
0x36a5   :  { %v4300_v50 = vpop.f32.mrb[47].mxu0  ;;  %v10127_v42 = vadd.f32 %v4298_v49, %v12563_v35 }
0x36a6   :  { %v10128_v61 = vadd.f32 %v4300_v50, %v12555_v48  ;;  %v12573_v50 = vrot.slane %v3697_v31, %v12191_v26  ;;  %v4787_v31 = vld [vmem:[#allocation14 + $0x50] sm:$0xff] }
0x36a8   :  { %v8558_v8 = vmul.f32 -1.442695, %v10128_v61  ;;  %v4304_v63 = vpop.f32.mrb[48].mxu0  ;;  %v4777_v61 = vld [vmem:[#allocation14] sm:$0xff] }
0x36a9   :  { %v4306_v0 = vpop.f32.mrb[49].mxu0  ;;  %v10129_v2 = vadd.f32 %v4304_v63, %v12563_v35  ;;  %v4779_v63 = vld [vmem:[#allocation14 + $0x10] sm:$0xff] }
0x36aa   :  { %10467 = vpow2.f32 %v8558_v8  ;;  %v10130_v15 = vadd.f32 %v4306_v0, %v12555_v48  ;;  %v4781_v8 = vld [vmem:[#allocation14 + $0x20] sm:$0xff]  ;;  %v4783_v0 = vld [vmem:[#allocation14 + $0x30] sm:$0xff] }
0x36ab   :  { %v9538_v36 = vpack.c.bf16 %v4781_v8, %v4777_v61  ;;  %v9602_v16 = vpack.c.bf16 %v4783_v0, %v4779_v63  ;;  %v4802_v61 = vld [vmem:[#allocation14 + $0xc8] sm:$0xff]  ;;  %v4804_v63 = vld [vmem:[#allocation14 + $0xd8] sm:$0xff] }
0x36ac   :  { %v8559_v30 = vmul.f32 -1.442695, %v10130_v15  ;;  %v4786_v15 = vld [vmem:[#allocation14 + $0x48] sm:$0xff]  ;;  %v4808_v0 = vld [vmem:[#allocation14 + $0xf8] sm:$0xff] }
0x36ad   :  { %v4806_v8 = vld [vmem:[#allocation14 + $0xe8] sm:$0xff] }
0x36ae   :  { %10469 = vpow2.f32 %v8559_v30 }
0x36b4   :  { %v10468_v18 = vpop.eup %10467 }
0x36b5   :  { %v4377_v32 = vadd.f32 1.0, %v10468_v18  ;;  %v4790_v18 = vld [vmem:[#allocation14 + $0x68] sm:$0xff] }
0x36b6   :  { %v9540_v41 = vpack.c.bf16 %v4790_v18, %v4786_v15  ;;  %v4805_v18 = vld [vmem:[#allocation14 + $0xe0] sm:$0xff] }
0x36b7   :  { %10471 = vrcp.f32 %v4377_v32  ;;  %v4788_v32 = vld [vmem:[#allocation14 + $0x58] sm:$0xff] }
0x36b8   :  { %v10470_v27 = vpop.eup %10469 }
0x36b9   :  { %v4378_v54 = vadd.f32 1.0, %v10470_v27  ;;  %v4792_v27 = vld [vmem:[#allocation14 + $0x78] sm:$0xff] }
0x36bb   :  { %10473 = vrcp.f32 %v4378_v54 }
0x36c1   :  { %v10472_v43 = vpop.eup %10471 }
0x36c2   :  { %v4389_v14 = vmul.f32 %v10472_v43, %v10127_v42  ;;  %v9604_v42 = vpack.c.bf16 %v4792_v27, %v4788_v32  ;;  %v4791_v43 = vld [vmem:[#allocation14 + $0x70] sm:$0xff]  ;;  %v9548_v32 = vpack.c.bf16 %v4806_v8, %v4802_v61  ;;  %v9612_v27 = vpack.c.bf16 %v4808_v0, %v4804_v63  ;;  %v4826_v8 = vld [vmem:[#allocation14 + $0x188] sm:$0xff]  ;;  %v4828_v0 = vld [vmem:[#allocation14 + $0x198] sm:$0xff] }
0x36c3   :  { %v4823_v61 = vld [vmem:[#allocation14 + $0x170] sm:$0xff]  ;;  %v4830_v63 = vld [vmem:[#allocation14 + $0x1a8] sm:$0xff] }
0x36c4   :  { %4607 = vmatprep.mubr.f32.mxu1 %v4389_v14  ;;  %4696 = vmatprep.mubr.f32.mxu0 %v4389_v14  ;;  %v4794_v14 = vld [vmem:[#allocation14 + $0x88] sm:$0xff] }
0x36c5   :  { %v10474_v9 = vpop.eup %10473 }
0x36c6   :  { %v4390_v1 = vmul.f32 %v10474_v9, %v10129_v2  ;;  %v4798_v9 = vld [vmem:[#allocation14 + $0xa8] sm:$0xff] }
0x36d5   :  { %v4209_v52 = vpop.f32.mrb[52].mxu1 }
0x36d6   :  { %v4211_v55 = vpop.f32.mrb[53].mxu1  ;;  %v10119_v30 = vadd.f32 %v4209_v52, %v12573_v50  ;;  %v4796_v52 = vld [vmem:[#allocation14 + $0x98] sm:$0xff] }
0x36d7   :  { %v10120_v56 = vadd.f32 %v4211_v55, %v12568_v13  ;;  %v4800_v55 = vld [vmem:[#allocation14 + $0xb8] sm:$0xff] }
0x36d9   :  { %v8554_v57 = vmul.f32 -1.442695, %v10120_v56  ;;  %v4215_v21 = vpop.f32.mrb[54].mxu1 }
0x36da   :  { %v4217_v47 = vpop.f32.mrb[55].mxu1  ;;  %v10121_v2 = vadd.f32 %v4215_v21, %v12573_v50  ;;  %v4795_v21 = vld [vmem:[#allocation14 + $0x90] sm:$0xff] }
0x36db   :  { %10475 = vpow2.f32 %v8554_v57  ;;  %v10122_v10 = vadd.f32 %v4217_v47, %v12568_v13  ;;  %v9542_v47 = vpack.c.bf16 %v4789_v38, %v4785_v7  ;;  %v4812_v7 = vld [vmem:[#allocation14 + $0x118] sm:$0xff] }
0x36dc   :  { %v4816_v38 = vld [vmem:[#allocation14 + $0x138] sm:$0xff] }
0x36dd   :  { %v8555_v60 = vmul.f32 -1.442695, %v10122_v10  ;;  %v9606_v10 = vpack.c.bf16 %v4791_v43, %v4787_v31  ;;  %v4809_v31 = vld [vmem:[#allocation14 + $0x100] sm:$0xff] }
0x36de   :  { %v4813_v43 = vld [vmem:[#allocation14 + $0x120] sm:$0xff] }
0x36df   :  { %10477 = vpow2.f32 %v8555_v60  ;;  %v4793_v60 = vld [vmem:[#allocation14 + $0x80] sm:$0xff] }
0x36e5   :  { %v10476_v46 = vpop.eup %10475 }
0x36e6   :  { %v4349_v58 = vadd.f32 1.0, %v10476_v46  ;;  %v4797_v46 = vld [vmem:[#allocation14 + $0xa0] sm:$0xff] }
0x36e8   :  { %10479 = vrcp.f32 %v4349_v58  ;;  %v9544_v58 = vpack.c.bf16 %v4798_v9, %v4794_v14  ;;  %v4811_v9 = vld [vmem:[#allocation14 + $0x110] sm:$0xff] }
0x36e9   :  { %v10478_v12 = vpop.eup %10477 }
0x36ea   :  { %v4350_v49 = vadd.f32 1.0, %v10478_v12  ;;  %v9608_v12 = vpack.c.bf16 %v4800_v55, %v4796_v52  ;;  %v4815_v52 = vld [vmem:[#allocation14 + $0x130] sm:$0xff]  ;;  %v4818_v55 = vld [vmem:[#allocation14 + $0x148] sm:$0xff] }
0x36ec   :  { %10481 = vrcp.f32 %v4350_v49  ;;  %v4799_v49 = vld [vmem:[#allocation14 + $0xb0] sm:$0xff] }
0x36ed   :  { %v9610_v15 = vpack.c.bf16 %v4799_v49, %v4795_v21  ;;  %v4819_v49 = vld [vmem:[#allocation14 + $0x150] sm:$0xff] }
0x36f2   :  { %v10480_v54 = vpop.eup %10479 }
0x36f3   :  { %v4361_v44 = vmul.f32 %v10480_v54, %v10119_v30  ;;  %v4801_v30 = vld [vmem:[#allocation14 + $0xc0] sm:$0xff]  ;;  %v4803_v54 = vld [vmem:[#allocation14 + $0xd0] sm:$0xff] }
0x36f5   :  { %4608 = vmatmul.mubr.f32.vlgmr.msra.gmra.mrb[60].mxu1 %v4361_v44  ;;  %4697 = vmatmul.mubr.f32.vlgmr.msra.gmra.mrb[54].mxu0 %v4361_v44  ;;  %v4807_v44 = vld [vmem:[#allocation14 + $0xf0] sm:$0xff] }
0x36f6   :  { %v10482_v56 = vpop.eup %10481  ;;  %4613 = vmatprep.mubr.f32.mxu1 %v4390_v1  ;;  %4702 = vmatprep.mubr.f32.mxu0 %v4390_v1  ;;  %v9546_v1 = vpack.c.bf16 %v4797_v46, %v4793_v60  ;;  %v9618_v60 = vpack.c.bf16 %v4815_v52, %v4811_v9  ;;  %v4817_v46 = vld [vmem:[#allocation14 + $0x140] sm:$0xff]  ;;  %v4835_v52 = vld [vmem:[#allocation14 + $0x1d0] sm:$0xff] }
0x36f7   :  { %v4362_v57 = vmul.f32 %v10482_v56, %v10121_v2  ;;  %9539 = vmatpush1.bf16.msra.mxu1 %v9538_v36  ;;  %9603 = vmatpush1.bf16.msra.mxu0 %v9602_v16  ;;  %v4810_v36 = vld [vmem:[#allocation14 + $0x108] sm:$0xff]  ;;  %v9616_v2 = vpack.c.bf16 %v4816_v38, %v4812_v7  ;;  %v4836_v38 = vld [vmem:[#allocation14 + $0x1d8] sm:$0xff]  ;;  %v4837_v9 = vld [vmem:[#allocation14 + $0x1e0] sm:$0xff] }
0x36f8   :  { %9541 = vmatprep.subr.bf16.mxu1 %v9540_v41  ;;  %9605 = vmatprep.subr.bf16.mxu0 %v9604_v42  ;;  %v4814_v16 = vld [vmem:[#allocation14 + $0x128] sm:$0xff]  ;;  %v9550_v41 = vpack.c.bf16 %v4805_v18, %v4801_v30  ;;  %v9614_v42 = vpack.c.bf16 %v4807_v44, %v4803_v54  ;;  %v9622_v30 = vpack.c.bf16 %v4823_v61, %v4819_v49  ;;  %v4825_v18 = vld [vmem:[#allocation14 + $0x180] sm:$0xff]  ;;  %v4827_v44 = vld [vmem:[#allocation14 + $0x190] sm:$0xff] }
0x36f9   :  { %4614 = vmatmul.mubr.f32.gmra.mrb[62].mxu1 %v4362_v57  ;;  %4703 = vmatmul.mubr.f32.gmra.mrb[56].mxu0 %v4362_v57  ;;  %v9552_v14 = vpack.c.bf16 %v4814_v16, %v4810_v36  ;;  %v4822_v56 = vld [vmem:[#allocation14 + $0x168] sm:$0xff]  ;;  %v4820_v57 = vld [vmem:[#allocation14 + $0x158] sm:$0xff]  ;;  %v4831_v36 = vld [vmem:[#allocation14 + $0x1b0] sm:$0xff] }
0x36fa   :  { %v4834_v16 = vld [vmem:[#allocation14 + $0x1c8] sm:$0xff] }
0x36fb   :  { %9543 = vmatpush1.bf16.msra.mxu1 %v9542_v47  ;;  %9607 = vmatpush1.bf16.msra.mxu0 %v9606_v10  ;;  %v4824_v47 = vld [vmem:[#allocation14 + $0x178] sm:$0xff]  ;;  %v9554_v10 = vpack.c.bf16 %v4813_v43, %v4809_v31  ;;  %v4838_v7 = vld [vmem:[#allocation14 + $0x1e8] sm:$0xff]  ;;  %v9626_v31 = vpack.c.bf16 %v4831_v36, %v4827_v44  ;;  %v4833_v43 = vld [vmem:[#allocation14 + $0x1c0] sm:$0xff] }
0x36fc   :  { %9545 = vmatprep.subr.bf16.mxu1 %v9544_v58  ;;  %9609 = vmatprep.subr.bf16.mxu0 %v9608_v12  ;;  %v4821_v58 = vld [vmem:[#allocation14 + $0x160] sm:$0xff]  ;;  %v9556_v12 = vpack.c.bf16 %v4822_v56, %v4818_v55  ;;  %v9620_v21 = vpack.c.bf16 %v4824_v47, %v4820_v57  ;;  %v4839_v55 = vld [vmem:[#allocation14 + $0x1f0] sm:$0xff]  ;;  %v9566_v56 = vpack.c.bf16 %v4837_v9, %v4833_v43 }
0x36fd   :  { %v9630_v57 = vpack.c.bf16 %v4839_v55, %v4835_v52 }
0x36ff   :  { %9547 = vmatpush1.bf16.msra.mxu1 %v9546_v1  ;;  %9611 = vmatpush1.bf16.msra.mxu0 %v9610_v15  ;;  %v4832_v1 = vld [vmem:[#allocation14 + $0x1b8] sm:$0xff]  ;;  %v9558_v15 = vpack.c.bf16 %v4821_v58, %v4817_v46 }
0x3700   :  { %9549 = vmatprep.subr.bf16.mxu1 %v9548_v32  ;;  %9613 = vmatprep.subr.bf16.mxu0 %v9612_v27  ;;  %v4829_v32 = vld [vmem:[#allocation14 + $0x1a0] sm:$0xff]  ;;  %v9560_v27 = vpack.c.bf16 %v4830_v63, %v4826_v8  ;;  %v9624_v54 = vpack.c.bf16 %v4832_v1, %v4828_v0 }
0x3703   :  { %9551 = vmatpush1.bf16.msra.mxu1 %v9550_v41  ;;  %9615 = vmatpush1.bf16.msra.mxu0 %v9614_v42  ;;  %v4840_v41 = vld [vmem:[#allocation14 + $0x1f8] sm:$0xff]  ;;  %v9562_v42 = vpack.c.bf16 %v4829_v32, %v4825_v18 }
0x3704   :  { %9553 = vmatprep.subr.bf16.mxu1 %v9552_v14  ;;  %9617 = vmatprep.subr.bf16.mxu0 %v9616_v2  ;;  %v9564_v14 = vpack.c.bf16 %v4838_v7, %v4834_v16  ;;  %v9628_v2 = vpack.c.bf16 %v4840_v41, %v4836_v38 }
0x3707   :  { %9555 = vmatpush1.bf16.msra.mxu1 %v9554_v10  ;;  %9619 = vmatpush1.bf16.msra.mxu0 %v9618_v60 }
0x3708   :  { %9557 = vmatprep.subr.bf16.mxu1 %v9556_v12  ;;  %9621 = vmatprep.subr.bf16.mxu0 %v9620_v21 }
0x370b   :  { %9559 = vmatpush1.bf16.msra.mxu1 %v9558_v15  ;;  %9623 = vmatpush1.bf16.msra.mxu0 %v9622_v30 }
0x370c   :  { %9561 = vmatprep.subr.bf16.mxu1 %v9560_v27  ;;  %9625 = vmatprep.subr.bf16.mxu0 %v9624_v54 }
0x370f   :  { %9563 = vmatpush1.bf16.msra.mxu1 %v9562_v42  ;;  %9627 = vmatpush1.bf16.msra.mxu0 %v9626_v31 }
0x3710   :  { %9565 = vmatprep.subr.bf16.mxu1 %v9564_v14  ;;  %9629 = vmatprep.subr.bf16.mxu0 %v9628_v2 }
0x3713   :  { %9567 = vmatpush1.bf16.msra.mxu1 %v9566_v56  ;;  %9631 = vmatpush1.bf16.msra.mxu0 %v9630_v57  ;;  %v4842_v57 = vld [vmem:[#allocation14 + $0x208] sm:$0xff] }
0x3717   :  { %v4221_v47 = vpop.f32.mrb[56].mxu1  ;;  %v4310_v10 = vpop.f32.mrb[50].mxu0 }
0x3718   :  { %v4223_v60 = vpop.f32.mrb[57].mxu1  ;;  %v4312_v46 = vpop.f32.mrb[51].mxu0  ;;  %v10131_v41 = vadd.f32 %v4310_v10, %v12563_v35  ;;  %v4844_v10 = vld [vmem:[#allocation14 + $0x218] sm:$0xff] }
0x3719   :  { %v10124_v58 = vadd.f32 %v4223_v60, %v12568_v13  ;;  %v10132_v12 = vadd.f32 %v4312_v46, %v12555_v48  ;;  %v4848_v46 = vld [vmem:[#allocation14 + $0x238] sm:$0xff] }
0x371b   :  { %v8556_v21 = vmul.f32 -1.442695, %v10124_v58  ;;  %v8560_v49 = vmul.f32 -1.442695, %v10132_v12  ;;  %v4227_v61 = vpop.f32.mrb[58].mxu1  ;;  %v4316_v8 = vpop.f32.mrb[52].mxu0  ;;  %v9632_v12 = vpack.c.bf16 %v4848_v46, %v4844_v10 }
0x371c   :  { %v4229_v63 = vpop.f32.mrb[59].mxu1  ;;  %v4318_v0 = vpop.f32.mrb[53].mxu0  ;;  %v10125_v14 = vadd.f32 %v4227_v61, %v12573_v50  ;;  %v10133_v9 = vadd.f32 %v4316_v8, %v12563_v35  ;;  %v4845_v58 = vld [vmem:[#allocation14 + $0x220] sm:$0xff]  ;;  %v4850_v8 = vld [vmem:[#allocation14 + $0x248] sm:$0xff] }
0x371d   :  { %10483 = vpow2.f32 %v8556_v21  ;;  %v10126_v1 = vadd.f32 %v4229_v63, %v12568_v13  ;;  %v10134_v15 = vadd.f32 %v4318_v0, %v12555_v48  ;;  %v10123_v13 = vadd.f32 %v4221_v47, %v12573_v50  ;;  %v4846_v47 = vld [vmem:[#allocation14 + $0x228] sm:$0xff]  ;;  %v4841_v50 = vld [vmem:[#allocation14 + $0x200] sm:$0xff]  ;;  %v4843_v21 = vld [vmem:[#allocation14 + $0x210] sm:$0xff]  ;;  %9633 = vmatprep.subr.bf16.mxu0 %v9632_v12 }
0x371e   :  { %10485 = vpow2.f32 %v8560_v49  ;;  %v9568_v60 = vpack.c.bf16 %v4846_v47, %v4842_v57  ;;  %v9570_v35 = vpack.c.bf16 %v4845_v58, %v4841_v50  ;;  %v4847_v49 = vld [vmem:[#allocation14 + $0x230] sm:$0xff]  ;;  %v4854_v63 = vld [vmem:[#allocation14 + $0x268] sm:$0xff]  ;;  %v4852_v0 = vld [vmem:[#allocation14 + $0x258] sm:$0xff] }
0x371f   :  { %v8557_v30 = vmul.f32 -1.442695, %v10126_v1  ;;  %v8561_v18 = vmul.f32 -1.442695, %v10134_v15  ;;  %v9634_v61 = vpack.c.bf16 %v4847_v49, %v4843_v21  ;;  %v9572_v1 = vpack.c.bf16 %v4854_v63, %v4850_v8  ;;  %v4856_v15 = vld [vmem:[#allocation14 + $0x278] sm:$0xff]  ;;  %v4865_v10 = vld [vmem:[#allocation14 + $0x2c0] sm:$0xff] }
0x3720   :  { %9569 = vmatprep.subr.bf16.mxu1 %v9568_v60  ;;  %v4872_v47 = vld [vmem:[#allocation14 + $0x2f8] sm:$0xff]  ;;  %v4869_v60 = vld [vmem:[#allocation14 + $0x2e0] sm:$0xff]  ;;  %v4867_v58 = vld [vmem:[#allocation14 + $0x2d0] sm:$0xff] }
0x3721   :  { %10487 = vpow2.f32 %v8557_v30  ;;  %9571 = vmatpush1.bf16.msra.mxu1 %v9570_v35  ;;  %9635 = vmatpush1.bf16.msra.mxu0 %v9634_v61  ;;  %v4849_v30 = vld [vmem:[#allocation14 + $0x240] sm:$0xff]  ;;  %v9582_v50 = vpack.c.bf16 %v4869_v60, %v4865_v10  ;;  %v4871_v12 = vld [vmem:[#allocation14 + $0x2f0] sm:$0xff]  ;;  %v4874_v21 = vld [vmem:[#allocation14 + $0x308] sm:$0xff] }
0x3722   :  { %10489 = vpow2.f32 %v8561_v18  ;;  %v4853_v18 = vld [vmem:[#allocation14 + $0x260] sm:$0xff]  ;;  %9573 = vmatprep.subr.bf16.mxu1 %v9572_v1  ;;  %v9646_v35 = vpack.c.bf16 %v4871_v12, %v4867_v58  ;;  %v4878_v49 = vld [vmem:[#allocation14 + $0x328] sm:$0xff]  ;;  %v4876_v61 = vld [vmem:[#allocation14 + $0x318] sm:$0xff] }
0x3723   :  { %v9584_v8 = vpack.c.bf16 %v4878_v49, %v4874_v21  ;;  %v4880_v63 = vld [vmem:[#allocation14 + $0x338] sm:$0xff]  ;;  %v4877_v1 = vld [vmem:[#allocation14 + $0x320] sm:$0xff]  ;;  %v4891_v10 = vld [vmem:[#allocation14 + $0x390] sm:$0xff] }
0x3724   :  { %v4902_v58 = vld [vmem:[#allocation14 + $0x3e8] sm:$0xff]  ;;  %v4900_v21 = vld [vmem:[#allocation14 + $0x3d8] sm:$0xff] }
0x3725   :  { %v4904_v49 = vld [vmem:[#allocation14 + $0x3f8] sm:$0xff] }
0x3727   :  { %v10484_v32 = vpop.eup %10483 }
0x3728   :  { %v10486_v27 = vpop.eup %10485  ;;  %v4351_v54 = vadd.f32 1.0, %v10484_v32  ;;  %v9636_v32 = vpack.c.bf16 %v4856_v15, %v4852_v0  ;;  %v4873_v0 = vld [vmem:[#allocation14 + $0x300] sm:$0xff]  ;;  %v9648_v15 = vpack.c.bf16 %v4880_v63, %v4876_v61 }
0x3729   :  { %v4379_v44 = vadd.f32 1.0, %v10486_v27  ;;  %v9574_v27 = vpack.c.bf16 %v4853_v18, %v4849_v30  ;;  %v9586_v30 = vpack.c.bf16 %v4877_v1, %v4873_v0  ;;  %v4875_v18 = vld [vmem:[#allocation14 + $0x310] sm:$0xff]  ;;  %v4897_v61 = vld [vmem:[#allocation14 + $0x3c0] sm:$0xff] }
0x372a   :  { %10491 = vrcp.f32 %v4351_v54  ;;  %v4851_v54 = vld [vmem:[#allocation14 + $0x250] sm:$0xff]  ;;  %9637 = vmatprep.subr.bf16.mxu0 %v9636_v32  ;;  %v4901_v63 = vld [vmem:[#allocation14 + $0x3e0] sm:$0xff] }
0x372b   :  { %v10488_v36 = vpop.eup %10487  ;;  %10493 = vrcp.f32 %v4379_v44  ;;  %v4855_v44 = vld [vmem:[#allocation14 + $0x270] sm:$0xff]  ;;  %9575 = vmatpush1.bf16.msra.mxu1 %v9574_v27 }
0x372c   :  { %v10490_v16 = vpop.eup %10489  ;;  %v4352_v7 = vadd.f32 1.0, %v10488_v36  ;;  %v9638_v36 = vpack.c.bf16 %v4855_v44, %v4851_v54  ;;  %v4879_v32 = vld [vmem:[#allocation14 + $0x330] sm:$0xff]  ;;  %v4882_v54 = vld [vmem:[#allocation14 + $0x348] sm:$0xff] }
0x372d   :  { %v4380_v38 = vadd.f32 1.0, %v10490_v16  ;;  %v4858_v16 = vld [vmem:[#allocation14 + $0x288] sm:$0xff]  ;;  %v9650_v27 = vpack.c.bf16 %v4879_v32, %v4875_v18  ;;  %v4899_v0 = vld [vmem:[#allocation14 + $0x3d0] sm:$0xff]  ;;  %v4521_v18 = vld [vmem:[#allocation12] sm:$0xf] }
0x372e   :  { %10495 = vrcp.f32 %v4352_v7  ;;  %v4862_v7 = vld [vmem:[#allocation14 + $0x2a8] sm:$0xff]  ;;  %9639 = vmatpush1.bf16.msra.mxu0 %v9638_v36  ;;  %v4884_v36 = vld [vmem:[#allocation14 + $0x358] sm:$0xff]  ;;  %v4903_v1 = vld [vmem:[#allocation14 + $0x3f0] sm:$0xff]  ;;  %v12586_v32 = vrot.slane %v4521_v18, %v12196_v59 }
0x372f   :  { %10497 = vrcp.f32 %v4380_v38  ;;  %v4860_v38 = vld [vmem:[#allocation14 + $0x298] sm:$0xff]  ;;  %v4886_v44 = vld [vmem:[#allocation14 + $0x368] sm:$0xff] }
0x3734   :  { %v10492_v48 = vpop.eup %10491 }
0x3735   :  { %v10494_v42 = vpop.eup %10493  ;;  %v4363_v31 = vmul.f32 %v10492_v48, %v10123_v13  ;;  %v9576_v13 = vpack.c.bf16 %v4862_v7, %v4858_v16  ;;  %v4864_v48 = vld [vmem:[#allocation14 + $0x2b8] sm:$0xff]  ;;  %v9588_v16 = vpack.c.bf16 %v4886_v44, %v4882_v54 }
0x3736   :  { %v4391_v43 = vmul.f32 %v10494_v42, %v10131_v41  ;;  %v4857_v41 = vld [vmem:[#allocation14 + $0x280] sm:$0xff]  ;;  %v4888_v7 = vld [vmem:[#allocation14 + $0x378] sm:$0xff] }
0x3737   :  { %v4861_v42 = vld [vmem:[#allocation14 + $0x2a0] sm:$0xff]  ;;  %9577 = vmatprep.subr.bf16.mxu1 %v9576_v13 }
0x3738   :  { %v10496_v2 = vpop.eup %10495  ;;  %4619 = vmatprep.mubr.f32.mxu1 %v4391_v43  ;;  %4708 = vmatprep.mubr.f32.mxu0 %v4391_v43  ;;  %v9578_v43 = vpack.c.bf16 %v4861_v42, %v4857_v41  ;;  %v4885_v13 = vld [vmem:[#allocation14 + $0x360] sm:$0xff]  ;;  %v4883_v42 = vld [vmem:[#allocation14 + $0x350] sm:$0xff] }
0x3739   :  { %v10498_v52 = vpop.eup %10497  ;;  %4620 = vmatmul.mubr.f32.gmra.mrb[64].mxu1 %v4363_v31  ;;  %4709 = vmatmul.mubr.f32.gmra.mrb[58].mxu0 %v4363_v31  ;;  %v4364_v55 = vmul.f32 %v10496_v2, %v10125_v14  ;;  %v9640_v31 = vpack.c.bf16 %v4864_v48, %v4860_v38  ;;  %v4859_v14 = vld [vmem:[#allocation14 + $0x290] sm:$0xff]  ;;  %v4881_v38 = vld [vmem:[#allocation14 + $0x340] sm:$0xff]  ;;  %v9652_v48 = vpack.c.bf16 %v4888_v7, %v4884_v36 }
0x373a   :  { %v4392_v56 = vmul.f32 %v10498_v52, %v10133_v9  ;;  %v4863_v2 = vld [vmem:[#allocation14 + $0x2b0] sm:$0xff]  ;;  %9579 = vmatpush1.bf16.msra.mxu1 %v9578_v43  ;;  %v4866_v52 = vld [vmem:[#allocation14 + $0x2c8] sm:$0xff]  ;;  %v9590_v41 = vpack.c.bf16 %v4885_v13, %v4881_v38 }
0x373b   :  { %v9642_v9 = vpack.c.bf16 %v4863_v2, %v4859_v14  ;;  %9641 = vmatprep.subr.bf16.mxu0 %v9640_v31  ;;  %v4887_v31 = vld [vmem:[#allocation14 + $0x370] sm:$0xff]  ;;  %v4890_v43 = vld [vmem:[#allocation14 + $0x388] sm:$0xff] }
0x373c   :  { %4625 = vmatprep.mubr.f32.mxu1 %v4392_v56  ;;  %4714 = vmatprep.mubr.f32.mxu0 %v4392_v56  ;;  %v4868_v56 = vld [vmem:[#allocation14 + $0x2d8] sm:$0xff]  ;;  %v9654_v14 = vpack.c.bf16 %v4887_v31, %v4883_v42  ;;  %v4894_v2 = vld [vmem:[#allocation14 + $0x3a8] sm:$0xff] }
0x373d   :  { %4626 = vmatmul.mubr.f32.gmra.mrb[66].mxu1 %v4364_v55  ;;  %4715 = vmatmul.mubr.f32.gmra.mrb[60].mxu0 %v4364_v55  ;;  %v4870_v55 = vld [vmem:[#allocation14 + $0x2e8] sm:$0xff]  ;;  %v9644_v46 = vpack.c.bf16 %v4872_v47, %v4868_v56  ;;  %v4893_v47 = vld [vmem:[#allocation14 + $0x3a0] sm:$0xff] }
0x373e   :  { %9643 = vmatpush1.bf16.msra.mxu0 %v9642_v9  ;;  %v9580_v57 = vpack.c.bf16 %v4870_v55, %v4866_v52  ;;  %v4892_v9 = vld [vmem:[#allocation14 + $0x398] sm:$0xff]  ;;  %v9592_v55 = vpack.c.bf16 %v4894_v2, %v4890_v43 }
0x373f   :  { %9645 = vmatprep.subr.bf16.mxu0 %v9644_v46  ;;  %v4896_v52 = vld [vmem:[#allocation14 + $0x3b8] sm:$0xff]  ;;  %v4895_v46 = vld [vmem:[#allocation14 + $0x3b0] sm:$0xff] }
0x3740   :  { %9581 = vmatprep.subr.bf16.mxu1 %v9580_v57  ;;  %v9656_v56 = vpack.c.bf16 %v4896_v52, %v4892_v9  ;;  %v4889_v57 = vld [vmem:[#allocation14 + $0x380] sm:$0xff]  ;;  %v9658_v12 = vpack.c.bf16 %v4895_v46, %v4891_v10 }
0x3741   :  { %9583 = vmatpush1.bf16.msra.mxu1 %v9582_v50  ;;  %v9594_v60 = vpack.c.bf16 %v4893_v47, %v4889_v57  ;;  %v4898_v50 = vld [vmem:[#allocation14 + $0x3c8] sm:$0xff] }
0x3742   :  { %9647 = vmatpush1.bf16.msra.mxu0 %v9646_v35  ;;  %9585 = vmatprep.subr.bf16.mxu1 %v9584_v8  ;;  %v9596_v35 = vpack.c.bf16 %v4902_v58, %v4898_v50  ;;  %v9660_v8 = vpack.c.bf16 %v4904_v49, %v4900_v21  ;;  %v4526_v58 = vrot.slane %v4521_v18, %v12191_v26 }
0x3743   :  { %9649 = vmatprep.subr.bf16.mxu0 %v9648_v15  ;;  %v9598_v15 = vpack.c.bf16 %v4901_v63, %v4897_v61 }
0x3745   :  { %9587 = vmatpush1.bf16.msra.mxu1 %v9586_v30  ;;  %v9662_v30 = vpack.c.bf16 %v4903_v1, %v4899_v0 }
0x3746   :  { %9651 = vmatpush1.bf16.msra.mxu0 %v9650_v27  ;;  %9589 = vmatprep.subr.bf16.mxu1 %v9588_v16  ;;  %v12589_v27 = vrot.slane %v4521_v18, %v12552_v29 }
0x3747   :  { %9653 = vmatprep.subr.bf16.mxu0 %v9652_v48 }
0x3749   :  { %9591 = vmatpush1.bf16.msra.mxu1 %v9590_v41 }
0x374a   :  { %9655 = vmatpush1.bf16.msra.mxu0 %v9654_v14  ;;  %9593 = vmatprep.subr.bf16.mxu1 %v9592_v55 }
0x374b   :  { %9657 = vmatprep.subr.bf16.mxu0 %v9656_v56 }
0x374d   :  { %9595 = vmatpush1.bf16.msra.mxu1 %v9594_v60 }
0x374e   :  { %9659 = vmatpush1.bf16.msra.mxu0 %v9658_v12  ;;  %9597 = vmatprep.subr.bf16.mxu1 %v9596_v35  ;;  %v4534_v12 = vrot.slane %v4521_v18, %v12560_v28 }
0x374f   :  { %9661 = vmatprep.subr.bf16.mxu0 %v9660_v8 }
0x3751   :  { %9599 = vmatpush1.bf16.msra.mxu1 %v9598_v15 }
0x3752   :  { %9663 = vmatpush1.bf16.msra.mxu0 %v9662_v30 }
0x37c8   :  { %v4609_v54 = vpop.f32.mrb[60].mxu1  ;;  %v4698_v44 = vpop.f32.mrb[54].mxu0 }
0x37c9   :  { %v4611_v36 = vpop.f32.mrb[61].mxu1  ;;  %v4700_v16 = vpop.f32.mrb[55].mxu0  ;;  %v4610_v35 = vadd.f32 %v4609_v54, %v4526_v58  ;;  %v4699_v49 = vadd.f32 %v4698_v44, %v4534_v12 }
0x37ca   :  { %v4612_v7 = vadd.f32 %v4611_v36, %v12586_v32  ;;  %v4701_v38 = vadd.f32 %v4700_v16, %v12589_v27 }
0x37cc   :  { %v8562_v13 = vmul.f32 -1.442695, %v4612_v7  ;;  %v8566_v48 = vmul.f32 -1.442695, %v4701_v38  ;;  %v4615_v41 = vpop.f32.mrb[62].mxu1  ;;  %v4704_v42 = vpop.f32.mrb[56].mxu0 }
0x37cd   :  { %v4617_v31 = vpop.f32.mrb[63].mxu1  ;;  %v4706_v43 = vpop.f32.mrb[57].mxu0  ;;  %v4616_v0 = vadd.f32 %v4615_v41, %v4526_v58  ;;  %v4705_v15 = vadd.f32 %v4704_v42, %v4534_v12 }
0x37ce   :  { %10499 = vpow2.f32 %v8562_v13  ;;  %v4618_v14 = vadd.f32 %v4617_v31, %v12586_v32  ;;  %v4707_v2 = vadd.f32 %v4706_v43, %v12589_v27 }
0x37cf   :  { %10501 = vpow2.f32 %v8566_v48 }
0x37d0   :  { %v8563_v9 = vmul.f32 -1.442695, %v4618_v14  ;;  %v8567_v52 = vmul.f32 -1.442695, %v4707_v2 }
0x37d2   :  { %10503 = vpow2.f32 %v8563_v9 }
0x37d3   :  { %10505 = vpow2.f32 %v8567_v52 }
0x37d8   :  { %v10500_v55 = vpop.eup %10499 }
0x37d9   :  { %v10502_v56 = vpop.eup %10501  ;;  %v4733_v57 = vadd.f32 1.0, %v10500_v55 }
0x37da   :  { %v4761_v47 = vadd.f32 1.0, %v10502_v56 }
0x37db   :  { %10507 = vrcp.f32 %v4733_v57 }
0x37dc   :  { %v10504_v10 = vpop.eup %10503  ;;  %10509 = vrcp.f32 %v4761_v47 }
0x37dd   :  { %v10506_v60 = vpop.eup %10505  ;;  %v4734_v46 = vadd.f32 1.0, %v10504_v10 }
0x37de   :  { %v4762_v50 = vadd.f32 1.0, %v10506_v60 }
0x37df   :  { %10511 = vrcp.f32 %v4734_v46 }
0x37e0   :  { %10513 = vrcp.f32 %v4762_v50 }
0x37e5   :  { %v10508_v21 = vpop.eup %10507 }
0x37e6   :  { %v10510_v61 = vpop.eup %10509  ;;  %v4745_v8 = vmul.f32 %v10508_v21, %v4610_v35 }
0x37e7   :  { %v4773_v63 = vmul.f32 %v10510_v61, %v4699_v49 }
0x37e9   :  { %v10512_v1 = vpop.eup %10511  ;;  %4991 = vmatprep.mubr.f32.mxu1 %v4773_v63  ;;  %5080 = vmatprep.mubr.f32.mxu0 %v4773_v63 }
0x37ea   :  { %v10514_v30 = vpop.eup %10513  ;;  %4992 = vmatmul.mubr.f32.vlgmr.msra.gmra.mrb[68].mxu1 %v4745_v8  ;;  %5081 = vmatmul.mubr.f32.vlgmr.msra.gmra.mrb[62].mxu0 %v4745_v8  ;;  %v4746_v36 = vmul.f32 %v10512_v1, %v4616_v0 }
0x37eb   :  { %v4774_v16 = vmul.f32 %v10514_v30, %v4705_v15 }
0x37ed   :  { %4997 = vmatprep.mubr.f32.mxu1 %v4774_v16  ;;  %5086 = vmatprep.mubr.f32.mxu0 %v4774_v16  ;;  %v5178_v16 = vld [vmem:[%s13003_s26 + $0x88] sm:$0xff] }
0x37ee   :  { %4998 = vmatmul.mubr.f32.gmra.mrb[70].mxu1 %v4746_v36  ;;  %5087 = vmatmul.mubr.f32.gmra.mrb[64].mxu0 %v4746_v36 }
0x380c   :  { %v4621_v18 = vpop.f32.mrb[64].mxu1  ;;  %v4710_v54 = vpop.f32.mrb[58].mxu0 }
0x380d   :  { %v4623_v44 = vpop.f32.mrb[65].mxu1  ;;  %v4712_v7 = vpop.f32.mrb[59].mxu0 }
0x380e   :  { %v4624_v38 = vadd.f32 %v4623_v44, %v12586_v32  ;;  %v4713_v13 = vadd.f32 %v4712_v7, %v12589_v27  ;;  %v5179_v7 = vld [vmem:[%s13003_s26 + $0x90] sm:$0xff] }
0x3810   :  { %v8564_v48 = vmul.f32 -1.442695, %v4624_v38  ;;  %v8568_v41 = vmul.f32 -1.442695, %v4713_v13  ;;  %v4627_v42 = vpop.f32.mrb[66].mxu1  ;;  %v4716_v31 = vpop.f32.mrb[60].mxu0 }
0x3811   :  { %v4629_v43 = vpop.f32.mrb[67].mxu1  ;;  %v4718_v14 = vpop.f32.mrb[61].mxu0  ;;  %v4628_v63 = vadd.f32 %v4627_v42, %v4526_v58  ;;  %v4717_v1 = vadd.f32 %v4716_v31, %v4534_v12  ;;  %v5180_v38 = vld [vmem:[%s13003_s26 + $0x98] sm:$0xff]  ;;  %v5181_v31 = vld [vmem:[%s13003_s26 + $0xa0] sm:$0xff] }
0x3812   :  { %10515 = vpow2.f32 %v8564_v48  ;;  %v4630_v2 = vadd.f32 %v4629_v43, %v12586_v32  ;;  %v4719_v9 = vadd.f32 %v4718_v14, %v12589_v27  ;;  %v4622_v32 = vadd.f32 %v4621_v18, %v4526_v58  ;;  %v5177_v58 = vld [vmem:[%s13003_s26 + $0x80] sm:$0xff]  ;;  %v5163_v48 = vld [vmem:[%s13003_s26 + $0x10] sm:$0xff]  ;;  %v5182_v43 = vld [vmem:[%s13003_s26 + $0xa8] sm:$0xff] }
0x3813   :  { %10517 = vpow2.f32 %v8568_v41  ;;  %v4711_v27 = vadd.f32 %v4710_v54, %v4534_v12  ;;  %v9664_v12 = vpack.c.bf16 %v5178_v16, %v5177_v58  ;;  %v5161_v18 = vld [vmem:[%s13003_s26] sm:$0xff]  ;;  %v5162_v54 = vld [vmem:[%s13003_s26 + $0x8] sm:$0xff]  ;;  %v9668_v13 = vpack.c.bf16 %v5180_v38, %v5179_v7  ;;  %v5164_v41 = vld [vmem:[%s13003_s26 + $0x18] sm:$0xff] }
0x3814   :  { %v8565_v52 = vmul.f32 -1.442695, %v4630_v2  ;;  %v8569_v55 = vmul.f32 -1.442695, %v4719_v9  ;;  %v9666_v44 = vpack.c.bf16 %v5162_v54, %v5161_v18  ;;  %v9670_v42 = vpack.c.bf16 %v5164_v41, %v5163_v48  ;;  %v5165_v2 = vld [vmem:[%s13003_s26 + $0x20] sm:$0xff]  ;;  %v5166_v9 = vld [vmem:[%s13003_s26 + $0x28] sm:$0xff] }
0x3815   :  { %9665 = vmatprep.subr.bf16.mxu1 %v9664_v12  ;;  %v9672_v14 = vpack.c.bf16 %v5182_v43, %v5181_v31  ;;  %v5174_v58 = vld [vmem:[%s13003_s26 + $0x68] sm:$0xff]  ;;  %v5191_v12 = vld [vmem:[%s13003_s26 + $0xf0] sm:$0xff]  ;;  %v5192_v18 = vld [vmem:[%s13003_s26 + $0xf8] sm:$0xff] }
0x3816   :  { %10519 = vpow2.f32 %v8565_v52  ;;  %9667 = vmatpush3.bf16.msra.mxu1 %v9666_v44  ;;  %v9674_v52 = vpack.c.bf16 %v5166_v9, %v5165_v2  ;;  %v9692_v44 = vpack.c.bf16 %v5192_v18, %v5191_v12  ;;  %v5175_v7 = vld [vmem:[%s13003_s26 + $0x70] sm:$0xff]  ;;  %v5176_v38 = vld [vmem:[%s13003_s26 + $0x78] sm:$0xff]  ;;  %v4905_v48 = vld [vmem:[#allocation15] sm:$0xf] }
0x3817   :  { %10521 = vpow2.f32 %v8569_v55  ;;  %9669 = vmatprep.subr.bf16.mxu1 %v9668_v13  ;;  %v5183_v55 = vld [vmem:[%s13003_s26 + $0xb0] sm:$0xff]  ;;  %v9694_v13 = vpack.c.bf16 %v5176_v38, %v5175_v7  ;;  %v12634_v41 = vrot.slane %v4905_v48, %v12196_v59 }
0x381a   :  { %9671 = vmatpush3.bf16.msra.mxu1 %v9670_v42  ;;  %v12637_v42 = vrot.slane %v4905_v48, %v12552_v29 }
0x381b   :  { %9673 = vmatprep.subr.bf16.mxu1 %v9672_v14 }
0x381c   :  { %v10516_v56 = vpop.eup %10515 }
0x381d   :  { %v10518_v57 = vpop.eup %10517  ;;  %v4735_v47 = vadd.f32 1.0, %v10516_v56  ;;  %v5184_v56 = vld [vmem:[%s13003_s26 + $0xb8] sm:$0xff] }
0x381e   :  { %v4763_v10 = vadd.f32 1.0, %v10518_v57  ;;  %9675 = vmatpush3.bf16.msra.mxu1 %v9674_v52  ;;  %v9676_v57 = vpack.c.bf16 %v5184_v56, %v5183_v55 }
0x381f   :  { %10523 = vrcp.f32 %v4735_v47  ;;  %v5167_v47 = vld [vmem:[%s13003_s26 + $0x30] sm:$0xff] }
0x3820   :  { %v10520_v60 = vpop.eup %10519  ;;  %10525 = vrcp.f32 %v4763_v10  ;;  %v5168_v10 = vld [vmem:[%s13003_s26 + $0x38] sm:$0xff]  ;;  %9677 = vmatprep.subr.bf16.mxu1 %v9676_v57 }
0x3821   :  { %v10522_v46 = vpop.eup %10521  ;;  %v4736_v50 = vadd.f32 1.0, %v10520_v60  ;;  %v9678_v60 = vpack.c.bf16 %v5168_v10, %v5167_v47 }
0x3822   :  { %v4764_v35 = vadd.f32 1.0, %v10522_v46  ;;  %v5185_v46 = vld [vmem:[%s13003_s26 + $0xc0] sm:$0xff] }
0x3823   :  { %10527 = vrcp.f32 %v4736_v50  ;;  %9679 = vmatpush3.bf16.msra.mxu1 %v9678_v60  ;;  %v5186_v50 = vld [vmem:[%s13003_s26 + $0xc8] sm:$0xff] }
0x3824   :  { %10529 = vrcp.f32 %v4764_v35  ;;  %v9680_v35 = vpack.c.bf16 %v5186_v50, %v5185_v46 }
0x3826   :  { %9681 = vmatprep.subr.bf16.mxu1 %v9680_v35 }
0x3829   :  { %v10524_v21 = vpop.eup %10523 }
0x382a   :  { %v10526_v49 = vpop.eup %10525  ;;  %v4747_v61 = vmul.f32 %v10524_v21, %v4622_v32  ;;  %v5169_v32 = vld [vmem:[%s13003_s26 + $0x40] sm:$0xff]  ;;  %v5170_v21 = vld [vmem:[%s13003_s26 + $0x48] sm:$0xff] }
0x382b   :  { %v4775_v8 = vmul.f32 %v10526_v49, %v4711_v27  ;;  %v9682_v27 = vpack.c.bf16 %v5170_v21, %v5169_v32  ;;  %v5187_v49 = vld [vmem:[%s13003_s26 + $0xd0] sm:$0xff] }
0x382d   :  { %v10528_v0 = vpop.eup %10527  ;;  %5003 = vmatprep.mubr.f32.mxu1 %v4775_v8  ;;  %5092 = vmatprep.mubr.f32.mxu0 %v4775_v8 }
0x382e   :  { %v10530_v15 = vpop.eup %10529  ;;  %5004 = vmatmul.mubr.f32.gmra.mrb[72].mxu1 %v4747_v61  ;;  %5093 = vmatmul.mubr.f32.gmra.mrb[66].mxu0 %v4747_v61  ;;  %v4748_v30 = vmul.f32 %v10528_v0, %v4628_v63  ;;  %v5188_v61 = vld [vmem:[%s13003_s26 + $0xd8] sm:$0xff]  ;;  %v5171_v63 = vld [vmem:[%s13003_s26 + $0x50] sm:$0xff] }
0x382f   :  { %v4776_v36 = vmul.f32 %v10530_v15, %v4717_v1  ;;  %9683 = vmatpush3.bf16.msra.mxu1 %v9682_v27  ;;  %v9684_v8 = vpack.c.bf16 %v5188_v61, %v5187_v49  ;;  %v5172_v0 = vld [vmem:[%s13003_s26 + $0x58] sm:$0xff]  ;;  %v5189_v1 = vld [vmem:[%s13003_s26 + $0xe0] sm:$0xff] }
0x3830   :  { %v9686_v15 = vpack.c.bf16 %v5172_v0, %v5171_v63 }
0x3831   :  { %5009 = vmatprep.mubr.f32.mxu1 %v4776_v36  ;;  %5098 = vmatprep.mubr.f32.mxu0 %v4776_v36  ;;  %v5173_v36 = vld [vmem:[%s13003_s26 + $0x60] sm:$0xff] }
0x3832   :  { %5010 = vmatmul.mubr.f32.gmra.mrb[74].mxu1 %v4748_v30  ;;  %5099 = vmatmul.mubr.f32.gmra.mrb[68].mxu0 %v4748_v30  ;;  %v5190_v30 = vld [vmem:[%s13003_s26 + $0xe8] sm:$0xff]  ;;  %v9690_v54 = vpack.c.bf16 %v5174_v58, %v5173_v36 }
0x3833   :  { %9685 = vmatprep.subr.bf16.mxu1 %v9684_v8  ;;  %v9688_v16 = vpack.c.bf16 %v5190_v30, %v5189_v1  ;;  %v4918_v30 = vrot.slane %v4905_v48, %v12560_v28 }
0x3834   :  { %9687 = vmatpush3.bf16.msra.mxu1 %v9686_v15  ;;  %v4910_v15 = vrot.slane %v4905_v48, %v12191_v26 }
0x3835   :  { %9689 = vmatprep.subr.bf16.mxu1 %v9688_v16 }
0x3838   :  { %9691 = vmatpush3.bf16.msra.mxu1 %v9690_v54 }
0x3839   :  { %9693 = vmatprep.subr.bf16.mxu1 %v9692_v44 }
0x383c   :  { %9695 = vmatpush3.bf16.msra.mxu1 %v9694_v13 }
0x38bd   :  { %v4993_v31 = vpop.f32.mrb[68].mxu1  ;;  %v5082_v43 = vpop.f32.mrb[62].mxu0 }
0x38be   :  { %v4995_v14 = vpop.f32.mrb[69].mxu1  ;;  %v5084_v2 = vpop.f32.mrb[63].mxu0  ;;  %v4994_v36 = vadd.f32 %v4993_v31, %v4910_v15  ;;  %v5083_v16 = vadd.f32 %v5082_v43, %v4918_v30 }
0x38bf   :  { %v4996_v9 = vadd.f32 %v4995_v14, %v12634_v41  ;;  %v5085_v52 = vadd.f32 %v5084_v2, %v12637_v42 }
0x38c1   :  { %v8570_v55 = vmul.f32 -1.442695, %v4996_v9  ;;  %v8574_v56 = vmul.f32 -1.442695, %v5085_v52  ;;  %v4999_v57 = vpop.f32.mrb[70].mxu1  ;;  %v5088_v47 = vpop.f32.mrb[64].mxu0 }
0x38c2   :  { %v5001_v10 = vpop.f32.mrb[71].mxu1  ;;  %v5090_v60 = vpop.f32.mrb[65].mxu0  ;;  %v5000_v44 = vadd.f32 %v4999_v57, %v4910_v15  ;;  %v5089_v38 = vadd.f32 %v5088_v47, %v4918_v30 }
0x38c3   :  { %10531 = vpow2.f32 %v8570_v55  ;;  %v5002_v46 = vadd.f32 %v5001_v10, %v12634_v41  ;;  %v5091_v50 = vadd.f32 %v5090_v60, %v12637_v42 }
0x38c4   :  { %10533 = vpow2.f32 %v8574_v56 }
0x38c5   :  { %v8571_v35 = vmul.f32 -1.442695, %v5002_v46  ;;  %v8575_v32 = vmul.f32 -1.442695, %v5091_v50 }
0x38c7   :  { %10535 = vpow2.f32 %v8571_v35 }
0x38c8   :  { %10537 = vpow2.f32 %v8575_v32 }
0x38cd   :  { %v10532_v21 = vpop.eup %10531 }
0x38ce   :  { %v10534_v27 = vpop.eup %10533  ;;  %v5117_v49 = vadd.f32 1.0, %v10532_v21 }
0x38cf   :  { %v5145_v61 = vadd.f32 1.0, %v10534_v27 }
0x38d0   :  { %10539 = vrcp.f32 %v5117_v49 }
0x38d1   :  { %v10536_v8 = vpop.eup %10535  ;;  %10541 = vrcp.f32 %v5145_v61 }
0x38d2   :  { %v10538_v63 = vpop.eup %10537  ;;  %v5118_v0 = vadd.f32 1.0, %v10536_v8 }
0x38d3   :  { %v5146_v1 = vadd.f32 1.0, %v10538_v63 }
0x38d4   :  { %10543 = vrcp.f32 %v5118_v0 }
0x38d5   :  { %10545 = vrcp.f32 %v5146_v1 }
0x38da   :  { %v10540_v58 = vpop.eup %10539 }
0x38db   :  { %v10542_v12 = vpop.eup %10541  ;;  %v5129_v18 = vmul.f32 %v10540_v58, %v4994_v36 }
0x38dc   :  { %v5157_v54 = vmul.f32 %v10542_v12, %v5083_v16 }
0x38de   :  { %v10544_v7 = vpop.eup %10543  ;;  %5257 = vmatprep.mubr.f32.mxu1 %v5157_v54 }
0x38df   :  { %v10546_v13 = vpop.eup %10545  ;;  %5258 = vmatmul.mubr.f32.vlgmr.msra.gmra.mrb[76].mxu1 %v5129_v18  ;;  %v5130_v14 = vmul.f32 %v10544_v7, %v5000_v44 }
0x38e0   :  { %v5158_v2 = vmul.f32 %v10546_v13, %v5089_v38 }
0x38e2   :  { %5262 = vmatprep.mubr.f32.mxu1 %v5158_v2  ;;  %v5278_v2 = vld [vmem:[#allocation17] sm:$0xff] }
0x38e3   :  { %5263 = vmatmul.mubr.f32.gmra.mrb[78].mxu1 %v5130_v14 }
0x3901   :  { %v5005_v9 = vpop.f32.mrb[72].mxu1  ;;  %v5094_v52 = vpop.f32.mrb[66].mxu0 }
0x3902   :  { %v5007_v55 = vpop.f32.mrb[73].mxu1  ;;  %v5096_v48 = vpop.f32.mrb[67].mxu0 }
0x3903   :  { %v5008_v31 = vadd.f32 %v5007_v55, %v12634_v41  ;;  %v5097_v43 = vadd.f32 %v5096_v48, %v12637_v42  ;;  %v5279_v55 = vld [vmem:[#allocation17 + $0x8] sm:$0xff]  ;;  %v5281_v48 = vld [vmem:[#allocation17 + $0x18] sm:$0xff] }
0x3905   :  { %v8572_v56 = vmul.f32 -1.442695, %v5008_v31  ;;  %v8576_v10 = vmul.f32 -1.442695, %v5097_v43  ;;  %v5011_v57 = vpop.f32.mrb[74].mxu1  ;;  %v5100_v60 = vpop.f32.mrb[68].mxu0 }
0x3906   :  { %v5013_v47 = vpop.f32.mrb[75].mxu1  ;;  %v5102_v46 = vpop.f32.mrb[69].mxu0  ;;  %v5012_v54 = vadd.f32 %v5011_v57, %v4910_v15  ;;  %v5101_v7 = vadd.f32 %v5100_v60, %v4918_v30 }
0x3907   :  { %10547 = vpow2.f32 %v8572_v56  ;;  %v5014_v50 = vadd.f32 %v5013_v47, %v12634_v41  ;;  %v5103_v35 = vadd.f32 %v5102_v46, %v12637_v42  ;;  %v5006_v41 = vadd.f32 %v5005_v9, %v4910_v15 }
0x3908   :  { %10549 = vpow2.f32 %v8576_v10  ;;  %v5095_v42 = vadd.f32 %v5094_v52, %v4918_v30  ;;  %v9696_v9 = vpack.c.bf16 %v5279_v55, %v5278_v2  ;;  %v5280_v52 = vld [vmem:[#allocation17 + $0x10] sm:$0xff]  ;;  %v5519_v2 = vld [vmem:[%s13005_s21 + $0x8] sm:$0xff] }
0x3909   :  { %v8573_v32 = vmul.f32 -1.442695, %v5014_v50  ;;  %v8577_v21 = vmul.f32 -1.442695, %v5103_v35  ;;  %v9700_v31 = vpack.c.bf16 %v5281_v48, %v5280_v52 }
0x390a   :  { %9697 = vmatprep.subr.bf16.mxu0 %v9696_v9 }
0x390b   :  { %10551 = vpow2.f32 %v8573_v32  ;;  %9699 = vmatpush3.bf16.msra.mxu0 %v9696_v9 }
0x390c   :  { %10553 = vpow2.f32 %v8577_v21  ;;  %9701 = vmatprep.subr.bf16.mxu0 %v9700_v31  ;;  %v5410_v21 = vld [vmem:[%s13004_s12] sm:$0xff] }
0x390f   :  { %9703 = vmatpush3.bf16.msra.mxu0 %v9700_v31 }
0x3911   :  { %v10548_v27 = vpop.eup %10547 }
0x3912   :  { %v10550_v49 = vpop.eup %10549  ;;  %v5119_v61 = vadd.f32 1.0, %v10548_v27  ;;  %v5411_v27 = vld [vmem:[%s13004_s12 + $0x8] sm:$0xff] }
0x3913   :  { %v5147_v8 = vadd.f32 1.0, %v10550_v49  ;;  %v5412_v49 = vld [vmem:[%s13004_s12 + $0x10] sm:$0xff] }
0x3914   :  { %10555 = vrcp.f32 %v5119_v61  ;;  %v9704_v61 = vpack.c.bf16 %v5411_v27, %v5410_v21 }
0x3915   :  { %v10552_v63 = vpop.eup %10551  ;;  %10557 = vrcp.f32 %v5147_v8  ;;  %v5413_v8 = vld [vmem:[%s13004_s12 + $0x18] sm:$0xff] }
0x3916   :  { %v10554_v0 = vpop.eup %10553  ;;  %v5120_v1 = vadd.f32 1.0, %v10552_v63  ;;  %v9708_v63 = vpack.c.bf16 %v5413_v8, %v5412_v49  ;;  %9705 = vmatprep.subr.bf16.mxu0 %v9704_v61  ;;  %v5520_v49 = vld [vmem:[%s13005_s21 + $0x10] sm:$0xff] }
0x3917   :  { %v5148_v36 = vadd.f32 1.0, %v10554_v0  ;;  %v5522_v0 = vld [vmem:[#allocation21] sm:$0xff] }
0x3918   :  { %10559 = vrcp.f32 %v5120_v1  ;;  %v5523_v1 = vld [vmem:[#allocation21 + $0x8] sm:$0xff] }
0x3919   :  { %10561 = vrcp.f32 %v5148_v36  ;;  %v9712_v36 = vpack.c.bf16 %v5523_v1, %v5522_v0  ;;  %v5732_v0 = vld [vmem:[#allocation24 + $0x18] sm:$0xff] }
0x391a   :  { %v5744_v1 = vld [vmem:[#allocation24 + $0x78] sm:$0xff] }
0x391e   :  { %v10556_v58 = vpop.eup %10555 }
0x391f   :  { %v10558_v16 = vpop.eup %10557  ;;  %v5131_v12 = vmul.f32 %v10556_v58, %v5006_v41  ;;  %v8578_v41 = vld [vmem:[#allocation18] ss:$0 sm:$0xff] }
0x3920   :  { %v5159_v18 = vmul.f32 %v10558_v16, %v5095_v42 }
0x3922   :  { %v10560_v44 = vpop.eup %10559  ;;  %5267 = vmatprep.mubr.f32.mxu1 %v5159_v18 }
0x3923   :  { %v10562_v38 = vpop.eup %10561  ;;  %5268 = vmatmul.mubr.f32.gmra.mrb[80].mxu1 %v5131_v12  ;;  %v5132_v13 = vmul.f32 %v10560_v44, %v5012_v54 }
0x3924   :  { %v5160_v14 = vmul.f32 %v10562_v38, %v5101_v7 }
0x3926   :  { %5272 = vmatprep.mubr.f32.mxu1 %v5160_v14  ;;  %v5518_v14 = vld [vmem:[%s13005_s21] sm:$0xff] }
0x3927   :  { %5273 = vmatmul.mubr.f32.gmra.mrb[82].mxu1 %v5132_v13  ;;  %v9716_v9 = vpack.c.bf16 %v5519_v2, %v5518_v14 }
0x3928   :  { %5829 = vmatprep.mubr.f32.mxu1 %v11350_v4 }
0x39b2   :  { %v8844_v15 = vpop.f32.mrb[76].mxu1 }
0x39b3   :  { %v8845_v30 = vpop.f32.mrb[77].mxu1 }
0x39b4   :  { %v12650_v43 = vadd.f32 %v8845_v30, %v8844_v15 }
0x39b6   :  { %v8847_v56 = vpop.f32.mrb[78].mxu1  ;;  %9129 = vmatprep.mubr.msk.f32.mxu0 %vm2473_vm6, %v12650_v43 }
0x39b7   :  { %v8848_v10 = vpop.f32.mrb[79].mxu1 }
0x39b8   :  { %v12654_v57 = vadd.f32 %v8848_v10, %v8847_v56 }
0x39ba   :  { %9130 = vmatmul.mubr.msk.f32.vlgmr.msra.gmra.mrb[70].mxu0 %vm2473_vm6, %v12654_v57 }
0x39bb   :  { %9707 = vmatpush3.bf16.msra.mxu0 %v9704_v61  ;;  %v5521_v61 = vld [vmem:[%s13005_s21 + $0x18] sm:$0xff] }
0x39bc   :  { %9709 = vmatprep.subr.bf16.mxu0 %v9708_v63  ;;  %v9720_v8 = vpack.c.bf16 %v5521_v61, %v5520_v49  ;;  %v5733_v49 = vld [vmem:[#allocation24 + $0x20] sm:$0xff] }
0x39bd   :  { %v5745_v61 = vld [vmem:[#allocation24 + $0x80] sm:$0xff] }
0x39bf   :  { %9711 = vmatpush3.bf16.msra.mxu0 %v9708_v63 }
0x39c0   :  { %9713 = vmatprep.subr.bf16.mxu0 %v9712_v36 }
0x39f6   :  { %v8850_v60 = vpop.f32.mrb[80].mxu1 }
0x39f7   :  { %v8851_v47 = vpop.f32.mrb[81].mxu1 }
0x39f8   :  { %v12658_v46 = vadd.f32 %v8851_v47, %v8850_v60 }
0x39fa   :  { %v8853_v50 = vpop.f32.mrb[82].mxu1  ;;  %9132 = vmatprep.mubr.msk.f32.mxu0 %vm2473_vm6, %v12658_v46 }
0x39fb   :  { %v8854_v35 = vpop.f32.mrb[83].mxu1 }
0x39fc   :  { %v12662_v32 = vadd.f32 %v8854_v35, %v8853_v50 }
0x39fe   :  { %9133 = vmatmul.mubr.msk.f32.gmra.mrb[72].mxu0 %vm2473_vm6, %v12662_v32 }
0x3a8d   :  { %v9131_v58 = vpop.f32.mrb[70].mxu0 }
0x3a8e   :  { %v5373_v42 = vadd.f32 %v9131_v58, %v8578_v41  ;;  %v5367_v16 = vpop.f32.mrb[71].mxu0  ;;  %v5743_v58 = vld [vmem:[#allocation24 + $0x70] sm:$0xff] }
0x3a8f   :  { %v5368_v12 = vadd.f32 %v8578_v41, %v5367_v16 }
0x3a90   :  { %v8584_v18 = vmul.f32 -1.442695, %v5373_v42  ;;  %v5734_v42 = vld [vmem:[#allocation24 + $0x28] sm:$0xff] }
0x3a91   :  { %v8583_v54 = vmul.f32 -1.442695, %v5368_v12  ;;  %v5746_v12 = vld [vmem:[#allocation24 + $0x88] sm:$0xff] }
0x3a92   :  { %10563 = vpow2.f32 %v8584_v18  ;;  %v9732_v18 = vpack.c.bf16 %v5746_v12, %v5734_v42  ;;  %v5737_v42 = vld [vmem:[#allocation24 + $0x40] sm:$0xff] }
0x3a93   :  { %10565 = vpow2.f32 %v8583_v54  ;;  %v8600_v54 = vld [vmem:[#allocation23] ss:$0 sm:$0xff] }
0x3a9c   :  { %v10564_v44 = vpop.eup %10563 }
0x3a9d   :  { %v10566_v7 = vpop.eup %10565  ;;  %v5399_v38 = vadd.f32 1.0, %v10564_v44 }
0x3a9e   :  { %v5398_v13 = vadd.f32 1.0, %v10566_v7 }
0x3aa0   :  { %10567 = vrcp.f32 %v5398_v13 }
0x3aa1   :  { %10569 = vrcp.f32 %v5399_v38 }
0x3aaa   :  { %v10568_v55 = vpop.eup %10567 }
0x3aab   :  { %v10570_v52 = vpop.eup %10569  ;;  %9143 = vmatprep.mubr.msk.f32.mxu0 %vm2473_vm6, %v10568_v55 }
0x3aac   :  { %9144 = vmatmul.mubr.msk.f32.vlgmr.msra.gmra.mrb[74].mxu0 %vm2473_vm6, %v10570_v52 }
0x3aad   :  { %9715 = vmatpush3.bf16.msra.mxu0 %v9712_v36 }
0x3aae   :  { %9717 = vmatprep.subr.bf16.mxu0 %v9716_v9 }
0x3ad1   :  { %v9134_v48 = vpop.f32.mrb[72].mxu0 }
0x3ad2   :  { %v5383_v31 = vadd.f32 %v9134_v48, %v8578_v41  ;;  %v5377_v15 = vpop.f32.mrb[73].mxu0 }
0x3ad3   :  { %v5378_v30 = vadd.f32 %v8578_v41, %v5377_v15  ;;  %v5731_v41 = vld [vmem:[#allocation24 + $0x10] sm:$0xff] }
0x3ad4   :  { %v8586_v56 = vmul.f32 -1.442695, %v5383_v31 }
0x3ad5   :  { %v8585_v10 = vmul.f32 -1.442695, %v5378_v30 }
0x3ad6   :  { %10571 = vpow2.f32 %v8586_v56 }
0x3ad7   :  { %10573 = vpow2.f32 %v8585_v10 }
0x3ae0   :  { %v10572_v60 = vpop.eup %10571 }
0x3ae1   :  { %v10574_v47 = vpop.eup %10573  ;;  %v5401_v50 = vadd.f32 1.0, %v10572_v60 }
0x3ae2   :  { %v5400_v35 = vadd.f32 1.0, %v10574_v47 }
0x3ae4   :  { %10575 = vrcp.f32 %v5400_v35 }
0x3ae5   :  { %10577 = vrcp.f32 %v5401_v50 }
0x3aee   :  { %v10576_v21 = vpop.eup %10575 }
0x3aef   :  { %v10578_v27 = vpop.eup %10577  ;;  %9146 = vmatprep.mubr.msk.f32.mxu0 %vm2473_vm6, %v10576_v21  ;;  %v5735_v21 = vld [vmem:[#allocation24 + $0x30] sm:$0xff] }
0x3af0   :  { %9147 = vmatmul.mubr.msk.f32.gmra.mrb[76].mxu0 %vm2473_vm6, %v10578_v27  ;;  %v5747_v27 = vld [vmem:[#allocation24 + $0x90] sm:$0xff] }
0x3af1   :  { %9153 = vmatprep.mubr.msk.f32.mxu0 %vm455_vm0, %v11740_v23  ;;  %v5742_v23 = vld [vmem:[#allocation24 + $0x68] sm:$0xff] }
0x3af4   :  { %9154 = vmatmul.mubr.msk.f32.vlgmr.msra.gmra.mrb[78].mxu0 %vm455_vm0, %v11738_v22  ;;  %v5730_v22 = vld [vmem:[#allocation24 + $0x8] sm:$0xff] }
0x3af5   :  { %9156 = vmatprep.mubr.msk.f32.mxu0 %vm455_vm0, %v11746_v25  ;;  %9719 = vmatpush3.bf16.msra.mxu0 %v9716_v9  ;;  %v5729_v25 = vld [vmem:[#allocation24] sm:$0xff]  ;;  %v9724_v63 = vpack.c.bf16 %v5742_v23, %v5730_v22  ;;  %v5752_v22 = vld [vmem:[#allocation24 + $0xb8] sm:$0xff]  ;;  %v5738_v23 = vld [vmem:[#allocation24 + $0x48] sm:$0xff] }
0x3af6   :  { %9721 = vmatprep.subr.bf16.mxu0 %v9720_v8 }
0x3af7   :  { %9725 = vmatprep.subr.bf16.mxu1 %v9724_v63 }
0x3af8   :  { %9157 = vmatmul.mubr.msk.f32.gmra.mrb[80].mxu0 %vm455_vm0, %v11742_v24  ;;  %v5741_v24 = vld [vmem:[#allocation24 + $0x60] sm:$0xff] }
0x3af9   :  { %9723 = vmatpush3.bf16.msra.mxu0 %v9720_v8  ;;  %9167 = vmatprep.mubr.msk.f32.mxu0 %vm2473_vm6, %v12650_v43  ;;  %v9726_v36 = vpack.c.bf16 %v5741_v24, %v5729_v25  ;;  %v9728_v43 = vpack.c.bf16 %v5744_v1, %v5732_v0  ;;  %v5740_v8 = vld [vmem:[#allocation24 + $0x58] sm:$0xff]  ;;  %v5750_v25 = vld [vmem:[#allocation24 + $0xa8] sm:$0xff]  ;;  %v9738_v24 = vpack.c.bf16 %v5747_v27, %v5735_v21 }
0x3afa   :  { %v9734_v0 = vpack.c.bf16 %v5745_v61, %v5733_v49 }
0x3afb   :  { %9727 = vmatpush1.bf16.msra.mxu1 %v9726_v36  ;;  %9729 = vmatprep.subr.bf16.mxu0 %v9728_v43  ;;  %v9744_v36 = vpack.c.bf16 %v5752_v22, %v5740_v8  ;;  %v9740_v43 = vpack.c.bf16 %v5750_v25, %v5738_v23 }
0x3afc   :  { %9168 = vmatmul.mubr.msk.f32.vlgmr.msra.gmra.mrb[78].mxu0 %vm2473_vm6, %v12654_v57  ;;  %v9730_v57 = vpack.c.bf16 %v5743_v58, %v5731_v41  ;;  %9733 = vmatprep.subr.bf16.mxu1 %v9732_v18 }
0x3afd   :  { %9170 = vmatprep.mubr.msk.f32.mxu0 %vm2473_vm6, %v12658_v46  ;;  %v5736_v46 = vld [vmem:[#allocation24 + $0x38] sm:$0xff] }
0x3afe   :  { %9731 = vmatpush1.bf16.msra.mxu0 %v9730_v57  ;;  %v5739_v57 = vld [vmem:[#allocation24 + $0x50] sm:$0xff] }
0x3b00   :  { %9171 = vmatmul.mubr.msk.f32.gmra.mrb[80].mxu0 %vm2473_vm6, %v12662_v32  ;;  %v5748_v32 = vld [vmem:[#allocation24 + $0x98] sm:$0xff] }
0x3b01   :  { %5918 = vmatprep.mubr.f32.mxu0 %v11350_v4  ;;  %v9736_v16 = vpack.c.bf16 %v5748_v32, %v5736_v46  ;;  %v5751_v32 = vld [vmem:[#allocation24 + $0xb0] sm:$0xff] }
0x3b02   :  { %v9746_v12 = vpack.c.bf16 %v5751_v32, %v5739_v57 }
0x3b03   :  { %9737 = vmatprep.subr.bf16.mxu0 %v9736_v16  ;;  %v5749_v16 = vld [vmem:[#allocation24 + $0xa0] sm:$0xff] }
0x3b04   :  { %v9742_v18 = vpack.c.bf16 %v5749_v16, %v5737_v42 }
0x3bcf   :  { %v9169_v44 = vpop.f32.mrb[78].mxu0 }
0x3bd0   :  { %v5702_v7 = vadd.f32 %v9169_v44, %v8600_v54  ;;  %v5675_v38 = vpop.f32.mrb[79].mxu0 }
0x3bd1   :  { %v5701_v13 = vadd.f32 %v8600_v54, %v5675_v38 }
0x3bd2   :  { %v8602_v14 = vmul.f32 -1.442695, %v5702_v7 }
0x3bd3   :  { %v8601_v2 = vmul.f32 -1.442695, %v5701_v13  ;;  %v9172_v55 = vpop.f32.mrb[80].mxu0 }
0x3bd4   :  { %10579 = vpow2.f32 %v8602_v14  ;;  %v5685_v9 = vpop.f32.mrb[81].mxu0  ;;  %v5704_v52 = vadd.f32 %v9172_v55, %v8600_v54 }
0x3bd5   :  { %10581 = vpow2.f32 %v8601_v2  ;;  %v5703_v48 = vadd.f32 %v8600_v54, %v5685_v9 }
0x3bd6   :  { %v8604_v15 = vmul.f32 -1.442695, %v5704_v52 }
0x3bd7   :  { %v8603_v31 = vmul.f32 -1.442695, %v5703_v48 }
0x3bd9   :  { %10583 = vpow2.f32 %v8603_v31 }
0x3bda   :  { %10585 = vpow2.f32 %v8604_v15 }
0x3bde   :  { %v10580_v30 = vpop.eup %10579 }
0x3bdf   :  { %v10582_v56 = vpop.eup %10581  ;;  %v5718_v60 = vadd.f32 1.0, %v10580_v30 }
0x3be0   :  { %v5717_v10 = vadd.f32 1.0, %v10582_v56 }
0x3be2   :  { %10587 = vrcp.f32 %v5717_v10 }
0x3be3   :  { %v10584_v47 = vpop.eup %10583  ;;  %10589 = vrcp.f32 %v5718_v60 }
0x3be4   :  { %v5719_v50 = vadd.f32 1.0, %v10584_v47  ;;  %v10586_v35 = vpop.eup %10585 }
0x3be5   :  { %v5720_v63 = vadd.f32 1.0, %v10586_v35 }
0x3be6   :  { %10591 = vrcp.f32 %v5719_v50 }
0x3be7   :  { %10593 = vrcp.f32 %v5720_v63 }
0x3bec   :  { %v10588_v1 = vpop.eup %10587 }
0x3bed   :  { %8605 = vmatmul.mubr.msk.f32.vlgmr.msra.gmra.mrb[84].mxu1 %vm455_vm0, %v10588_v1  ;;  %8609 = vmatmul.mubr.msk.f32.vlgmr.msra.gmra.mrb[82].mxu0 %vm455_vm0, %v10588_v1  ;;  %v10590_v41 = vpop.eup %10589 }
0x3bee   :  { %5835 = vmatprep.mubr.f32.mxu1 %v11350_v4  ;;  %5924 = vmatprep.mubr.f32.mxu0 %v11350_v4 }
0x3bef   :  { %9739 = vmatpush1.bf16.msra.mxu0 %v9738_v24  ;;  %9735 = vmatpush1.bf16.msra.mxu1 %v9734_v0 }
0x3bf0   :  { %9745 = vmatprep.subr.bf16.mxu0 %v9744_v36  ;;  %9741 = vmatprep.subr.bf16.mxu1 %v9740_v43  ;;  %v10592_v58 = vpop.eup %10591 }
0x3bf1   :  { %8606 = vmatmul.mubr.msk.f32.gmra.mrb[86].mxu1 %vm455_vm0, %v10590_v41  ;;  %8610 = vmatmul.mubr.msk.f32.gmra.mrb[84].mxu0 %vm455_vm0, %v10590_v41  ;;  %v10594_v46 = vpop.eup %10593 }
0x3bf2   :  { %5841 = vmatprep.mubr.f32.mxu1 %v11350_v4  ;;  %5930 = vmatprep.mubr.f32.mxu0 %v11350_v4 }
0x3bf5   :  { %8607 = vmatmul.mubr.msk.f32.gmra.mrb[88].mxu1 %vm455_vm0, %v10592_v58  ;;  %8611 = vmatmul.mubr.msk.f32.gmra.mrb[86].mxu0 %vm455_vm0, %v10592_v58 }
0x3bf6   :  { %5847 = vmatprep.mubr.f32.mxu1 %v11350_v4  ;;  %5936 = vmatprep.mubr.f32.mxu0 %v11350_v4 }
0x3bf9   :  { %8608 = vmatmul.mubr.msk.f32.gmra.mrb[90].mxu1 %vm455_vm0, %v10594_v46  ;;  %8612 = vmatmul.mubr.msk.f32.gmra.mrb[88].mxu0 %vm455_vm0, %v10594_v46 }
0x3bfa   :  { %6007 = vmatprep.mubr.f32.mxu1 %v11350_v4  ;;  %6096 = vmatprep.mubr.f32.mxu0 %v11350_v4 }
0x3bfd   :  { %8613 = vmatmul.mubr.msk.f32.vlgmr.msra.gmra.mrb[92].mxu1 %vm455_vm0, %v10588_v1  ;;  %8617 = vmatmul.mubr.msk.f32.vlgmr.msra.gmra.mrb[90].mxu0 %vm455_vm0, %v10588_v1 }
0x3bfe   :  { %6013 = vmatprep.mubr.f32.mxu1 %v11350_v4  ;;  %6102 = vmatprep.mubr.f32.mxu0 %v11350_v4 }
0x3bff   :  { %9747 = vmatpush1.bf16.msra.mxu0 %v9746_v12  ;;  %9743 = vmatpush1.bf16.msra.mxu1 %v9742_v18 }
0x3c01   :  { %8614 = vmatmul.mubr.msk.f32.gmra.mrb[94].mxu1 %vm455_vm0, %v10590_v41  ;;  %8618 = vmatmul.mubr.msk.f32.gmra.mrb[92].mxu0 %vm455_vm0, %v10590_v41 }
0x3c02   :  { %6019 = vmatprep.mubr.f32.mxu1 %v11350_v4  ;;  %6108 = vmatprep.mubr.f32.mxu0 %v11350_v4 }
0x3c05   :  { %8615 = vmatmul.mubr.msk.f32.gmra.mrb[96].mxu1 %vm455_vm0, %v10592_v58  ;;  %8619 = vmatmul.mubr.msk.f32.gmra.mrb[94].mxu0 %vm455_vm0, %v10592_v58 }
0x3c06   :  { %6025 = vmatprep.mubr.f32.mxu1 %v11350_v4  ;;  %6114 = vmatprep.mubr.f32.mxu0 %v11350_v4 }
0x3c09   :  { %8616 = vmatmul.mubr.msk.f32.gmra.mrb[98].mxu1 %vm455_vm0, %v10594_v46  ;;  %8620 = vmatmul.mubr.msk.f32.gmra.mrb[96].mxu0 %vm455_vm0, %v10594_v46 }
0x3c0a   :  { %6185 = vmatprep.mubr.f32.mxu1 %v11350_v4  ;;  %6274 = vmatprep.mubr.f32.mxu0 %v11350_v4 }
0x3c0d   :  { %8621 = vmatmul.mubr.msk.f32.vlgmr.msra.gmra.mrb[100].mxu1 %vm455_vm0, %v10588_v1  ;;  %8625 = vmatmul.mubr.msk.f32.vlgmr.msra.gmra.mrb[98].mxu0 %vm455_vm0, %v10588_v1 }
0x3c0e   :  { %6191 = vmatprep.mubr.f32.mxu1 %v11350_v4  ;;  %6280 = vmatprep.mubr.f32.mxu0 %v11350_v4 }
0x3c11   :  { %8622 = vmatmul.mubr.msk.f32.gmra.mrb[102].mxu1 %vm455_vm0, %v10590_v41  ;;  %8626 = vmatmul.mubr.msk.f32.gmra.mrb[100].mxu0 %vm455_vm0, %v10590_v41 }
0x3c12   :  { %6197 = vmatprep.mubr.f32.mxu1 %v11350_v4  ;;  %6286 = vmatprep.mubr.f32.mxu0 %v11350_v4 }
0x3c15   :  { %8623 = vmatmul.mubr.msk.f32.gmra.mrb[104].mxu1 %vm455_vm0, %v10592_v58  ;;  %8627 = vmatmul.mubr.msk.f32.gmra.mrb[102].mxu0 %vm455_vm0, %v10592_v58 }
0x3c16   :  { %6203 = vmatprep.mubr.f32.mxu1 %v11350_v4  ;;  %6292 = vmatprep.mubr.f32.mxu0 %v11350_v4 }
0x3c19   :  { %8624 = vmatmul.mubr.msk.f32.gmra.mrb[106].mxu1 %vm455_vm0, %v10594_v46  ;;  %8628 = vmatmul.mubr.msk.f32.gmra.mrb[104].mxu0 %vm455_vm0, %v10594_v46 }
0x3c1a   :  { %6364 = vmatprep.mubr.f32.mxu1 %v11350_v4  ;;  %6453 = vmatprep.mubr.f32.mxu0 %v11350_v4 }
0x3cc0   :  { %v5831_v54 = vpop.f32.mrb[84].mxu1  ;;  %v5920_v44 = vpop.f32.mrb[82].mxu0 }
0x3cc1   :  { %v5833_v7 = vpop.f32.mrb[85].mxu1  ;;  %v5922_v38 = vpop.f32.mrb[83].mxu0 }
0x3cc4   :  { %v5837_v13 = vpop.f32.mrb[86].mxu1  ;;  %v5926_v14 = vpop.f32.mrb[84].mxu0 }
0x3cc5   :  { %v9750_v2 = vpack.c.bf16 %v5837_v13, %v5831_v54  ;;  %v9758_v55 = vpack.c.bf16 %v5926_v14, %v5920_v44  ;;  %v5839_v9 = vpop.f32.mrb[87].mxu1  ;;  %v5928_v52 = vpop.f32.mrb[85].mxu0 }
0x3cc6   :  { %v9748_v48 = vpack.c.bf16 %v5839_v9, %v5833_v7  ;;  %v9756_v31 = vpack.c.bf16 %v5928_v52, %v5922_v38 }
0x3cc8   :  { %v5843_v15 = vpop.f32.mrb[88].mxu1  ;;  %v5932_v30 = vpop.f32.mrb[86].mxu0  ;;  %9749 = vmatprep.subr.bf16.mxu1 %v9748_v48  ;;  %9757 = vmatprep.subr.bf16.mxu0 %v9756_v31 }
0x3cc9   :  { %v5845_v56 = vpop.f32.mrb[89].mxu1  ;;  %v5934_v10 = vpop.f32.mrb[87].mxu0  ;;  %9751 = vmatpush1.bf16.msra.mxu1 %v9750_v2  ;;  %9759 = vmatpush1.bf16.msra.mxu0 %v9758_v55 }
0x3ccc   :  { %v5849_v60 = vpop.f32.mrb[90].mxu1  ;;  %v5938_v47 = vpop.f32.mrb[88].mxu0 }
0x3ccd   :  { %v9754_v50 = vpack.c.bf16 %v5849_v60, %v5843_v15  ;;  %v9762_v35 = vpack.c.bf16 %v5938_v47, %v5932_v30  ;;  %v5851_v21 = vpop.f32.mrb[91].mxu1  ;;  %v5940_v27 = vpop.f32.mrb[89].mxu0 }
0x3cce   :  { %v9752_v49 = vpack.c.bf16 %v5851_v21, %v5845_v56  ;;  %v9760_v61 = vpack.c.bf16 %v5940_v27, %v5934_v10 }
0x3cd0   :  { %v6009_v8 = vpop.f32.mrb[92].mxu1  ;;  %v6098_v22 = vpop.f32.mrb[90].mxu0  ;;  %9753 = vmatprep.subr.bf16.mxu1 %v9752_v49  ;;  %9761 = vmatprep.subr.bf16.mxu0 %v9760_v61  ;;  %v6964_v49 = vld [vmem:[#allocation27 + $0x28] sm:$0xff]  ;;  %v6962_v61 = vld [vmem:[#allocation27 + $0x18] sm:$0xff] }
0x3cd1   :  { %v6011_v23 = vpop.f32.mrb[93].mxu1  ;;  %v6100_v25 = vpop.f32.mrb[91].mxu0  ;;  %9755 = vmatpush1.bf16.msra.mxu1 %v9754_v50  ;;  %9763 = vmatpush1.bf16.msra.mxu0 %v9762_v35  ;;  %v6960_v50 = vld [vmem:[#allocation27 + $0x8] sm:$0xff] }
0x3cd4   :  { %v6015_v63 = vpop.f32.mrb[94].mxu1  ;;  %v6104_v24 = vpop.f32.mrb[92].mxu0  ;;  %8629 = vmatmul.mubr.msk.f32.vlgmr.msra.gmra.mrb[108].mxu1 %vm2473_vm6, %v12240_v34  ;;  %8633 = vmatmul.mubr.msk.f32.vlgmr.msra.gmra.mrb[106].mxu0 %vm2473_vm6, %v12240_v34 }
0x3cd5   :  { %v9766_v0 = vpack.c.bf16 %v6015_v63, %v6009_v8  ;;  %v9774_v1 = vpack.c.bf16 %v6104_v24, %v6098_v22  ;;  %v6017_v36 = vpop.f32.mrb[95].mxu1  ;;  %v6106_v43 = vpop.f32.mrb[93].mxu0  ;;  %6370 = vmatprep.mubr.f32.mxu1 %v11350_v4  ;;  %6459 = vmatprep.mubr.f32.mxu0 %v11350_v4  ;;  %v6966_v8 = vld [vmem:[#allocation27 + $0x38] sm:$0xff]  ;;  %v6963_v63 = vld [vmem:[#allocation27 + $0x20] sm:$0xff]  ;;  %v9796_v24 = vpack.c.bf16 %v6964_v49, %v6960_v50  ;;  %v6996_v50 = vld [vmem:[#allocation27 + $0x128] sm:$0xff] }
0x3cd6   :  { %v9764_v41 = vpack.c.bf16 %v6017_v36, %v6011_v23  ;;  %v9772_v58 = vpack.c.bf16 %v6106_v43, %v6100_v25  ;;  %v6959_v25 = vld [vmem:[#allocation27] sm:$0xff]  ;;  %v6965_v36 = vld [vmem:[#allocation27 + $0x30] sm:$0xff]  ;;  %v6972_v43 = vld [vmem:[#allocation27 + $0x68] sm:$0xff] }
0x3cd7   :  { %v6991_v49 = vld [vmem:[#allocation27 + $0x100] sm:$0xff] }
0x3cd8   :  { %v6021_v57 = vpop.f32.mrb[96].mxu1  ;;  %v6110_v46 = vpop.f32.mrb[94].mxu0  ;;  %8630 = vmatmul.mubr.msk.f32.gmra.mrb[110].mxu1 %vm2473_vm6, %v12257_v53  ;;  %8634 = vmatmul.mubr.msk.f32.gmra.mrb[108].mxu0 %vm2473_vm6, %v12257_v53 }
0x3cd9   :  { %9765 = vmatprep.subr.bf16.mxu1 %v9764_v41  ;;  %9773 = vmatprep.subr.bf16.mxu0 %v9772_v58  ;;  %v6023_v34 = vpop.f32.mrb[97].mxu1  ;;  %v6112_v32 = vpop.f32.mrb[95].mxu0  ;;  %v6970_v41 = vld [vmem:[#allocation27 + $0x58] sm:$0xff] }
0x3cda   :  { %9767 = vmatpush1.bf16.msra.mxu1 %v9766_v0  ;;  %9775 = vmatpush1.bf16.msra.mxu0 %v9774_v1  ;;  %v9860_v0 = vpack.c.bf16 %v6966_v8, %v6962_v61  ;;  %v6961_v1 = vld [vmem:[#allocation27 + $0x10] sm:$0xff]  ;;  %v6974_v58 = vld [vmem:[#allocation27 + $0x78] sm:$0xff]  ;;  %v6995_v61 = vld [vmem:[#allocation27 + $0x120] sm:$0xff] }
0x3cdb   :  { %6376 = vmatprep.mubr.f32.mxu1 %v11350_v4  ;;  %6465 = vmatprep.mubr.f32.mxu0 %v11350_v4 }
0x3cdc   :  { %v6027_v42 = vpop.f32.mrb[98].mxu1  ;;  %v6116_v16 = vpop.f32.mrb[96].mxu0  ;;  %8631 = vmatmul.mubr.msk.f32.gmra.mrb[112].mxu1 %vm2473_vm6, %v12275_v37  ;;  %8635 = vmatmul.mubr.msk.f32.gmra.mrb[110].mxu0 %vm2473_vm6, %v12275_v37 }
0x3cdd   :  { %v9770_v12 = vpack.c.bf16 %v6027_v42, %v6021_v57  ;;  %v9778_v53 = vpack.c.bf16 %v6116_v16, %v6110_v46  ;;  %v6029_v18 = vpop.f32.mrb[99].mxu1  ;;  %v6118_v54 = vpop.f32.mrb[97].mxu0  ;;  %6382 = vmatprep.mubr.f32.mxu1 %v11350_v4  ;;  %6471 = vmatprep.mubr.f32.mxu0 %v11350_v4  ;;  %v9798_v57 = vpack.c.bf16 %v6963_v63, %v6959_v25  ;;  %v6997_v25 = vld [vmem:[#allocation27 + $0x130] sm:$0xff]  ;;  %v7004_v63 = vld [vmem:[#allocation27 + $0x168] sm:$0xff] }
0x3cde   :  { %v9768_v44 = vpack.c.bf16 %v6029_v18, %v6023_v34  ;;  %v9776_v7 = vpack.c.bf16 %v6118_v54, %v6112_v32  ;;  %v9862_v46 = vpack.c.bf16 %v6965_v36, %v6961_v1  ;;  %v6967_v34 = vld [vmem:[#allocation27 + $0x40] sm:$0xff]  ;;  %v9864_v16 = vpack.c.bf16 %v6974_v58, %v6970_v41  ;;  %v6980_v18 = vld [vmem:[#allocation27 + $0xa8] sm:$0xff]  ;;  %v6978_v54 = vld [vmem:[#allocation27 + $0x98] sm:$0xff] }
0x3cdf   :  { %v6971_v32 = vld [vmem:[#allocation27 + $0x60] sm:$0xff]  ;;  %v9814_v1 = vpack.c.bf16 %v6995_v61, %v6991_v49  ;;  %v7032_v61 = vld [vmem:[#allocation27 + $0x248] sm:$0xff] }
0x3ce0   :  { %v6187_v38 = vpop.f32.mrb[100].mxu1  ;;  %v6276_v13 = vpop.f32.mrb[98].mxu0  ;;  %8632 = vmatmul.mubr.msk.f32.gmra.mrb[114].mxu1 %vm2473_vm6, %v12281_v39  ;;  %8636 = vmatmul.mubr.msk.f32.gmra.mrb[112].mxu0 %vm2473_vm6, %v12281_v39 }
0x3ce1   :  { %9769 = vmatprep.subr.bf16.mxu1 %v9768_v44  ;;  %9777 = vmatprep.subr.bf16.mxu0 %v9776_v7  ;;  %v6189_v37 = vpop.f32.mrb[101].mxu1  ;;  %v6278_v14 = vpop.f32.mrb[99].mxu0  ;;  %v6982_v44 = vld [vmem:[#allocation27 + $0xb8] sm:$0xff]  ;;  %v9802_v7 = vpack.c.bf16 %v6971_v32, %v6967_v34  ;;  %v7008_v34 = vld [vmem:[#allocation27 + $0x188] sm:$0xff] }
0x3ce2   :  { %9771 = vmatpush1.bf16.msra.mxu1 %v9770_v12  ;;  %9779 = vmatpush1.bf16.msra.mxu0 %v9778_v53  ;;  %v6969_v12 = vld [vmem:[#allocation27 + $0x50] sm:$0xff]  ;;  %v7012_v32 = vld [vmem:[#allocation27 + $0x1a8] sm:$0xff] }
0x3ce3   :  { %6579 = vmatprep.mubr.f32.mxu1 %v11350_v4  ;;  %6668 = vmatprep.mubr.f32.mxu0 %v11350_v4  ;;  %v6973_v53 = vld [vmem:[#allocation27 + $0x70] sm:$0xff] }
0x3ce4   :  { %v6193_v2 = vpop.f32.mrb[102].mxu1  ;;  %v6282_v55 = vpop.f32.mrb[100].mxu0 }
0x3ce5   :  { %v9782_v9 = vpack.c.bf16 %v6193_v2, %v6187_v38  ;;  %v9790_v52 = vpack.c.bf16 %v6282_v55, %v6276_v13  ;;  %8637 = vmatmul.mubr.msk.f32.vlgmr.msra.gmra.mrb[108].mxu1 %vm2473_vm6, %v12288_v11  ;;  %8641 = vmatmul.mubr.msk.f32.vlgmr.msra.gmra.mrb[106].mxu0 %vm2473_vm6, %v12288_v11  ;;  %v6195_v39 = vpop.f32.mrb[103].mxu1  ;;  %v6284_v48 = vpop.f32.mrb[101].mxu0  ;;  %v9866_v38 = vpack.c.bf16 %v6973_v53, %v6969_v12  ;;  %v6975_v13 = vld [vmem:[#allocation27 + $0x80] sm:$0xff]  ;;  %v6977_v55 = vld [vmem:[#allocation27 + $0x90] sm:$0xff] }
0x3ce6   :  { %v9780_v31 = vpack.c.bf16 %v6195_v39, %v6189_v37  ;;  %v9788_v15 = vpack.c.bf16 %v6284_v48, %v6278_v14  ;;  %6585 = vmatprep.mubr.f32.mxu1 %v11350_v4  ;;  %6674 = vmatprep.mubr.f32.mxu0 %v11350_v4  ;;  %v6979_v37 = vld [vmem:[#allocation27 + $0xa0] sm:$0xff]  ;;  %v9868_v2 = vpack.c.bf16 %v6982_v44, %v6978_v54  ;;  %v6986_v39 = vld [vmem:[#allocation27 + $0xd8] sm:$0xff]  ;;  %v7009_v44 = vld [vmem:[#allocation27 + $0x190] sm:$0xff] }
0x3ce7   :  { %v6990_v48 = vld [vmem:[#allocation27 + $0xf8] sm:$0xff]  ;;  %v7007_v53 = vld [vmem:[#allocation27 + $0x180] sm:$0xff] }
0x3ce8   :  { %v6199_v30 = vpop.f32.mrb[104].mxu1  ;;  %v6288_v56 = vpop.f32.mrb[102].mxu0  ;;  %9781 = vmatprep.subr.bf16.mxu1 %v9780_v31  ;;  %9789 = vmatprep.subr.bf16.mxu0 %v9788_v15  ;;  %v9806_v31 = vpack.c.bf16 %v6979_v37, %v6975_v13  ;;  %v7020_v13 = vld [vmem:[#allocation27 + $0x1e8] sm:$0xff]  ;;  %v7018_v37 = vld [vmem:[#allocation27 + $0x1d8] sm:$0xff] }
0x3ce9   :  { %8638 = vmatmul.mubr.msk.f32.gmra.mrb[110].mxu1 %vm2473_vm6, %v12301_v45  ;;  %8642 = vmatmul.mubr.msk.f32.gmra.mrb[108].mxu0 %vm2473_vm6, %v12301_v45  ;;  %v6201_v10 = vpop.f32.mrb[105].mxu1  ;;  %v6290_v11 = vpop.f32.mrb[103].mxu0 }
0x3cea   :  { %9783 = vmatpush1.bf16.msra.mxu1 %v9782_v9  ;;  %9791 = vmatpush1.bf16.msra.mxu0 %v9790_v52  ;;  %v6981_v9 = vld [vmem:[#allocation27 + $0xb0] sm:$0xff]  ;;  %v6988_v52 = vld [vmem:[#allocation27 + $0xe8] sm:$0xff] }
0x3ceb   :  { %6591 = vmatprep.mubr.f32.mxu1 %v11350_v4  ;;  %6680 = vmatprep.mubr.f32.mxu0 %v11350_v4  ;;  %v9870_v15 = vpack.c.bf16 %v6981_v9, %v6977_v55  ;;  %v7015_v9 = vld [vmem:[#allocation27 + $0x1c0] sm:$0xff] }
0x3cec   :  { %v6205_v60 = vpop.f32.mrb[106].mxu1  ;;  %v6294_v47 = vpop.f32.mrb[104].mxu0 }
0x3ced   :  { %v9786_v35 = vpack.c.bf16 %v6205_v60, %v6199_v30  ;;  %v9794_v21 = vpack.c.bf16 %v6294_v47, %v6288_v56  ;;  %8639 = vmatmul.mubr.msk.f32.gmra.mrb[112].mxu1 %vm2473_vm6, %v12349_v51  ;;  %8643 = vmatmul.mubr.msk.f32.gmra.mrb[110].mxu0 %vm2473_vm6, %v12349_v51  ;;  %v6207_v45 = vpop.f32.mrb[107].mxu1  ;;  %v6296_v27 = vpop.f32.mrb[105].mxu0  ;;  %v6968_v51 = vld [vmem:[#allocation27 + $0x48] sm:$0xff]  ;;  %v6983_v30 = vld [vmem:[#allocation27 + $0xc0] sm:$0xff]  ;;  %v6985_v60 = vld [vmem:[#allocation27 + $0xd0] sm:$0xff] }
0x3cee   :  { %v9784_v22 = vpack.c.bf16 %v6207_v45, %v6201_v10  ;;  %v9792_v23 = vpack.c.bf16 %v6296_v27, %v6290_v11  ;;  %6597 = vmatprep.mubr.f32.mxu1 %v11350_v4  ;;  %6686 = vmatprep.mubr.f32.mxu0 %v11350_v4  ;;  %v9800_v42 = vpack.c.bf16 %v6972_v43, %v6968_v51  ;;  %v6987_v56 = vld [vmem:[#allocation27 + $0xe0] sm:$0xff]  ;;  %v6989_v47 = vld [vmem:[#allocation27 + $0xf0] sm:$0xff] }
0x3cef   :  { %v9872_v11 = vpack.c.bf16 %v6990_v48, %v6986_v39  ;;  %v9810_v45 = vpack.c.bf16 %v6987_v56, %v6983_v30  ;;  %v9874_v27 = vpack.c.bf16 %v6989_v47, %v6985_v60  ;;  %v6999_v51 = vld [vmem:[#allocation27 + $0x140] sm:$0xff]  ;;  %v7017_v48 = vld [vmem:[#allocation27 + $0x1d0] sm:$0xff]  ;;  %v7024_v56 = vld [vmem:[#allocation27 + $0x208] sm:$0xff] }
0x3cf0   :  { %9785 = vmatprep.subr.bf16.mxu1 %v9784_v22  ;;  %9793 = vmatprep.subr.bf16.mxu0 %v9792_v23  ;;  %v6993_v23 = vld [vmem:[#allocation27 + $0x110] sm:$0xff]  ;;  %v7003_v43 = vld [vmem:[#allocation27 + $0x160] sm:$0xff]  ;;  %v7030_v47 = vld [vmem:[#allocation27 + $0x238] sm:$0xff] }
0x3cf1   :  { %8640 = vmatmul.mubr.msk.f32.gmra.mrb[114].mxu1 %vm2473_vm6, %v12355_v62  ;;  %8644 = vmatmul.mubr.msk.f32.gmra.mrb[112].mxu0 %vm2473_vm6, %v12355_v62  ;;  %v6976_v62 = vld [vmem:[#allocation27 + $0x88] sm:$0xff]  ;;  %v9878_v36 = vpack.c.bf16 %v6997_v25, %v6993_v23  ;;  %v7019_v39 = vld [vmem:[#allocation27 + $0x1e0] sm:$0xff]  ;;  %v7038_v25 = vld [vmem:[#allocation27 + $0x278] sm:$0xff] }
0x3cf2   :  { %9787 = vmatpush1.bf16.msra.mxu1 %v9786_v35  ;;  %9795 = vmatpush1.bf16.msra.mxu0 %v9794_v21  ;;  %v9804_v14 = vpack.c.bf16 %v6980_v18, %v6976_v62  ;;  %v6994_v35 = vld [vmem:[#allocation27 + $0x118] sm:$0xff]  ;;  %v7011_v62 = vld [vmem:[#allocation27 + $0x1a0] sm:$0xff]  ;;  %v9820_v18 = vpack.c.bf16 %v7012_v32, %v7008_v34 }
0x3cf3   :  { %6773 = vmatprep.mubr.f32.mxu1 %v11350_v4  ;;  %6862 = vmatprep.mubr.f32.mxu0 %v11350_v4  ;;  %v6998_v21 = vld [vmem:[#allocation27 + $0x138] sm:$0xff]  ;;  %v7039_v34 = vld [vmem:[#allocation27 + $0x280] sm:$0xff] }
0x3cf4   :  { %9797 = vmatprep.subr.bf16.mxu1 %v9796_v24  ;;  %9861 = vmatprep.subr.bf16.mxu0 %v9860_v0  ;;  %v9876_v22 = vpack.c.bf16 %v6998_v21, %v6994_v35  ;;  %v7002_v24 = vld [vmem:[#allocation27 + $0x158] sm:$0xff]  ;;  %v7043_v32 = vld [vmem:[#allocation27 + $0x2a0] sm:$0xff] }
0x3cf5   :  { %8645 = vmatmul.mubr.msk.f32.vlgmr.msra.gmra.mrb[108].mxu1 %vm2473_vm6, %v12364_v19  ;;  %8649 = vmatmul.mubr.msk.f32.vlgmr.msra.gmra.mrb[106].mxu0 %vm2473_vm6, %v12364_v19  ;;  %v6984_v19 = vld [vmem:[#allocation27 + $0xc8] sm:$0xff]  ;;  %v7006_v0 = vld [vmem:[#allocation27 + $0x178] sm:$0xff] }
0x3cf6   :  { %6779 = vmatprep.mubr.f32.mxu1 %v11350_v4  ;;  %6868 = vmatprep.mubr.f32.mxu0 %v11350_v4  ;;  %v9808_v10 = vpack.c.bf16 %v6988_v52, %v6984_v19  ;;  %v9880_v58 = vpack.c.bf16 %v7006_v0, %v7002_v24 }
0x3cf7   :  { %9799 = vmatpush1.bf16.msra.mxu1 %v9798_v57  ;;  %9863 = vmatpush1.bf16.msra.mxu0 %v9862_v46  ;;  %v7001_v57 = vld [vmem:[#allocation27 + $0x150] sm:$0xff] }
0x3cf8   :  { %9801 = vmatprep.subr.bf16.mxu1 %v9800_v42  ;;  %9865 = vmatprep.subr.bf16.mxu0 %v9864_v16  ;;  %v7005_v46 = vld [vmem:[#allocation27 + $0x170] sm:$0xff]  ;;  %v7010_v42 = vld [vmem:[#allocation27 + $0x198] sm:$0xff] }
0x3cf9   :  { %8646 = vmatmul.mubr.msk.f32.gmra.mrb[110].mxu1 %vm2473_vm6, %v12372_v33  ;;  %8650 = vmatmul.mubr.msk.f32.gmra.mrb[108].mxu0 %vm2473_vm6, %v12372_v33  ;;  %v6992_v33 = vld [vmem:[#allocation27 + $0x108] sm:$0xff]  ;;  %v7014_v16 = vld [vmem:[#allocation27 + $0x1b8] sm:$0xff]  ;;  %v9882_v12 = vpack.c.bf16 %v7005_v46, %v7001_v57 }
0x3cfa   :  { %6785 = vmatprep.mubr.f32.mxu1 %v11350_v4  ;;  %6874 = vmatprep.mubr.f32.mxu0 %v11350_v4  ;;  %v9812_v8 = vpack.c.bf16 %v6996_v50, %v6992_v33  ;;  %v9884_v54 = vpack.c.bf16 %v7014_v16, %v7010_v42  ;;  %v7023_v33 = vld [vmem:[#allocation27 + $0x200] sm:$0xff]  ;;  %v7046_v46 = vld [vmem:[#allocation27 + $0x2b8] sm:$0xff]  ;;  %v9838_v16 = vpack.c.bf16 %v7043_v32, %v7039_v34  ;;  %v7080_v34 = vld [vmem:[#allocation27 + $0x3c8] sm:$0xff] }
0x3cfb   :  { %9803 = vmatpush1.bf16.msra.mxu1 %v9802_v7  ;;  %9867 = vmatpush1.bf16.msra.mxu0 %v9866_v38  ;;  %v7013_v7 = vld [vmem:[#allocation27 + $0x1b0] sm:$0xff]  ;;  %v7016_v38 = vld [vmem:[#allocation27 + $0x1c8] sm:$0xff]  ;;  %v7027_v50 = vld [vmem:[#allocation27 + $0x220] sm:$0xff] }
0x3cfc   :  { %9805 = vmatprep.subr.bf16.mxu1 %v9804_v14  ;;  %9869 = vmatprep.subr.bf16.mxu0 %v9868_v2  ;;  %v7022_v14 = vld [vmem:[#allocation27 + $0x1f8] sm:$0xff]  ;;  %v9822_v2 = vpack.c.bf16 %v7011_v62, %v7007_v53  ;;  %v9886_v55 = vpack.c.bf16 %v7013_v7, %v7009_v44  ;;  %v9824_v19 = vpack.c.bf16 %v7020_v13, %v7016_v38  ;;  %v7048_v62 = vld [vmem:[#allocation27 + $0x2c8] sm:$0xff]  ;;  %v7047_v38 = vld [vmem:[#allocation27 + $0x2c0] sm:$0xff] }
0x3cfd   :  { %8647 = vmatmul.mubr.msk.f32.gmra.mrb[112].mxu1 %vm2473_vm6, %v12437_v3  ;;  %8651 = vmatmul.mubr.msk.f32.gmra.mrb[110].mxu0 %vm2473_vm6, %v12437_v3  ;;  %v7000_v3 = vld [vmem:[#allocation27 + $0x148] sm:$0xff]  ;;  %v9888_v52 = vpack.c.bf16 %v7022_v14, %v7018_v37  ;;  %v9830_v21 = vpack.c.bf16 %v7027_v50, %v7023_v33  ;;  %v7054_v7 = vld [vmem:[#allocation27 + $0x2f8] sm:$0xff]  ;;  %v7051_v13 = vld [vmem:[#allocation27 + $0x2e0] sm:$0xff] }
0x3cfe   :  { %6791 = vmatprep.mubr.f32.mxu1 %v11350_v4  ;;  %6880 = vmatprep.mubr.f32.mxu0 %v11350_v4  ;;  %v9816_v41 = vpack.c.bf16 %v7004_v63, %v7000_v3  ;;  %v7031_v3 = vld [vmem:[#allocation27 + $0x240] sm:$0xff]  ;;  %v9842_v14 = vpack.c.bf16 %v7051_v13, %v7047_v38  ;;  %v7064_v33 = vld [vmem:[#allocation27 + $0x348] sm:$0xff] }
0x3cff   :  { %9807 = vmatpush1.bf16.msra.mxu1 %v9806_v31  ;;  %9871 = vmatpush1.bf16.msra.mxu0 %v9870_v15  ;;  %v7021_v31 = vld [vmem:[#allocation27 + $0x1f0] sm:$0xff]  ;;  %v9826_v15 = vpack.c.bf16 %v7019_v39, %v7015_v9  ;;  %v7035_v63 = vld [vmem:[#allocation27 + $0x260] sm:$0xff]  ;;  %v7058_v39 = vld [vmem:[#allocation27 + $0x318] sm:$0xff] }
0x3d00   :  { %9809 = vmatprep.subr.bf16.mxu1 %v9808_v10  ;;  %9873 = vmatprep.subr.bf16.mxu0 %v9872_v11  ;;  %v9890_v30 = vpack.c.bf16 %v7021_v31, %v7017_v48  ;;  %v7028_v10 = vld [vmem:[#allocation27 + $0x228] sm:$0xff]  ;;  %v7026_v11 = vld [vmem:[#allocation27 + $0x218] sm:$0xff]  ;;  %v9834_v0 = vpack.c.bf16 %v7035_v63, %v7031_v3 }
0x3d01   :  { %8648 = vmatmul.mubr.msk.f32.gmra.mrb[114].mxu1 %vm2473_vm6, %v12455_v40  ;;  %8652 = vmatmul.mubr.msk.f32.gmra.mrb[112].mxu0 %vm2473_vm6, %v12455_v40  ;;  %v9818_v40 = vpack.c.bf16 %v7003_v43, %v6999_v51  ;;  %v9828_v60 = vpack.c.bf16 %v7028_v10, %v7024_v56  ;;  %v9892_v35 = vpack.c.bf16 %v7030_v47, %v7026_v11  ;;  %v7040_v43 = vld [vmem:[#allocation27 + $0x288] sm:$0xff]  ;;  %v7062_v31 = vld [vmem:[#allocation27 + $0x338] sm:$0xff]  ;;  %v7057_v11 = vld [vmem:[#allocation27 + $0x310] sm:$0xff] }
0x3d02   :  { %v9908_v56 = vpack.c.bf16 %v7062_v31, %v7058_v39  ;;  %v7068_v50 = vld [vmem:[#allocation27 + $0x368] sm:$0xff] }
0x3d03   :  { %9811 = vmatpush1.bf16.msra.mxu1 %v9810_v45  ;;  %9875 = vmatpush1.bf16.msra.mxu0 %v9874_v27  ;;  %v7025_v45 = vld [vmem:[#allocation27 + $0x210] sm:$0xff]  ;;  %v7072_v3 = vld [vmem:[#allocation27 + $0x388] sm:$0xff] }
0x3d04   :  { %9813 = vmatprep.subr.bf16.mxu1 %v9812_v8  ;;  %9877 = vmatprep.subr.bf16.mxu0 %v9876_v22  ;;  %v7029_v27 = vld [vmem:[#allocation27 + $0x230] sm:$0xff]  ;;  %v7036_v8 = vld [vmem:[#allocation27 + $0x268] sm:$0xff]  ;;  %v7034_v22 = vld [vmem:[#allocation27 + $0x258] sm:$0xff] }
0x3d05   :  { %v9894_v49 = vpack.c.bf16 %v7029_v27, %v7025_v45  ;;  %v9832_v23 = vpack.c.bf16 %v7036_v8, %v7032_v61  ;;  %v9896_v24 = vpack.c.bf16 %v7038_v25, %v7034_v22  ;;  %v7070_v45 = vld [vmem:[#allocation27 + $0x378] sm:$0xff]  ;;  %v7063_v27 = vld [vmem:[#allocation27 + $0x340] sm:$0xff]  ;;  %v7065_v22 = vld [vmem:[#allocation27 + $0x350] sm:$0xff] }
0x3d06   :  { %v7076_v63 = vld [vmem:[#allocation27 + $0x3a8] sm:$0xff] }
0x3d07   :  { %9815 = vmatpush1.bf16.msra.mxu1 %v9814_v1  ;;  %9879 = vmatpush1.bf16.msra.mxu0 %v9878_v36  ;;  %v7033_v1 = vld [vmem:[#allocation27 + $0x250] sm:$0xff]  ;;  %v7084_v32 = vld [vmem:[#allocation27 + $0x3e8] sm:$0xff] }
0x3d08   :  { %9817 = vmatprep.subr.bf16.mxu1 %v9816_v41  ;;  %9881 = vmatprep.subr.bf16.mxu0 %v9880_v58  ;;  %v7037_v36 = vld [vmem:[#allocation27 + $0x270] sm:$0xff]  ;;  %v7044_v41 = vld [vmem:[#allocation27 + $0x2a8] sm:$0xff]  ;;  %v7042_v58 = vld [vmem:[#allocation27 + $0x298] sm:$0xff] }
0x3d09   :  { %v9898_v51 = vpack.c.bf16 %v7037_v36, %v7033_v1  ;;  %v9836_v57 = vpack.c.bf16 %v7044_v41, %v7040_v43  ;;  %v9900_v42 = vpack.c.bf16 %v7046_v46, %v7042_v58  ;;  %v7078_v1 = vld [vmem:[#allocation27 + $0x3b8] sm:$0xff]  ;;  %v7071_v36 = vld [vmem:[#allocation27 + $0x380] sm:$0xff]  ;;  %v7073_v58 = vld [vmem:[#allocation27 + $0x390] sm:$0xff] }
0x3d0a   :  { %v7344_v38 = vld [vmem:[#allocation30 + $0x8] sm:$0xff] }
0x3d0b   :  { %9819 = vmatpush1.bf16.msra.mxu1 %v9818_v40  ;;  %9883 = vmatpush1.bf16.msra.mxu0 %v9882_v12  ;;  %v7041_v40 = vld [vmem:[#allocation27 + $0x290] sm:$0xff] }
0x3d0c   :  { %9821 = vmatprep.subr.bf16.mxu1 %v9820_v18  ;;  %9885 = vmatprep.subr.bf16.mxu0 %v9884_v54  ;;  %v7045_v12 = vld [vmem:[#allocation27 + $0x2b0] sm:$0xff]  ;;  %v7052_v18 = vld [vmem:[#allocation27 + $0x2e8] sm:$0xff]  ;;  %v7050_v54 = vld [vmem:[#allocation27 + $0x2d8] sm:$0xff] }
0x3d0d   :  { %v9902_v53 = vpack.c.bf16 %v7045_v12, %v7041_v40  ;;  %v9840_v44 = vpack.c.bf16 %v7052_v18, %v7048_v62  ;;  %v9904_v37 = vpack.c.bf16 %v7054_v7, %v7050_v54  ;;  %v7086_v40 = vld [vmem:[#allocation27 + $0x3f8] sm:$0xff]  ;;  %v7079_v12 = vld [vmem:[#allocation27 + $0x3c0] sm:$0xff]  ;;  %v7081_v54 = vld [vmem:[#allocation27 + $0x3d0] sm:$0xff] }
0x3d0e   :  { %v7348_v13 = vld [vmem:[#allocation30 + $0x28] sm:$0xff] }
0x3d0f   :  { %9823 = vmatpush1.bf16.msra.mxu1 %v9822_v2  ;;  %9887 = vmatpush1.bf16.msra.mxu0 %v9886_v55  ;;  %v7049_v2 = vld [vmem:[#allocation27 + $0x2d0] sm:$0xff] }
0x3d10   :  { %9825 = vmatprep.subr.bf16.mxu1 %v9824_v19  ;;  %9889 = vmatprep.subr.bf16.mxu0 %v9888_v52  ;;  %v7053_v55 = vld [vmem:[#allocation27 + $0x2f0] sm:$0xff]  ;;  %v7056_v19 = vld [vmem:[#allocation27 + $0x308] sm:$0xff] }
0x3d11   :  { %v9906_v9 = vpack.c.bf16 %v7053_v55, %v7049_v2  ;;  %v7060_v52 = vld [vmem:[#allocation27 + $0x328] sm:$0xff]  ;;  %v7350_v2 = vld [vmem:[#allocation30 + $0x38] sm:$0xff] }
0x3d12   :  { %v9844_v48 = vpack.c.bf16 %v7060_v52, %v7056_v19 }
0x3d13   :  { %9827 = vmatpush1.bf16.msra.mxu1 %v9826_v15  ;;  %9891 = vmatpush1.bf16.msra.mxu0 %v9890_v30  ;;  %v7055_v15 = vld [vmem:[#allocation27 + $0x300] sm:$0xff] }
0x3d14   :  { %9829 = vmatprep.subr.bf16.mxu1 %v9828_v60  ;;  %9893 = vmatprep.subr.bf16.mxu0 %v9892_v35  ;;  %v7059_v30 = vld [vmem:[#allocation27 + $0x320] sm:$0xff]  ;;  %v7061_v60 = vld [vmem:[#allocation27 + $0x330] sm:$0xff]  ;;  %v7066_v35 = vld [vmem:[#allocation27 + $0x358] sm:$0xff] }
0x3d15   :  { %v9846_v10 = vpack.c.bf16 %v7059_v30, %v7055_v15  ;;  %v9910_v47 = vpack.c.bf16 %v7061_v60, %v7057_v11  ;;  %v9912_v61 = vpack.c.bf16 %v7070_v45, %v7066_v35 }
0x3d17   :  { %9831 = vmatpush1.bf16.msra.mxu1 %v9830_v21  ;;  %9895 = vmatpush1.bf16.msra.mxu0 %v9894_v49  ;;  %v9848_v21 = vpack.c.bf16 %v7068_v50, %v7064_v33  ;;  %v7067_v49 = vld [vmem:[#allocation27 + $0x360] sm:$0xff] }
0x3d18   :  { %9833 = vmatprep.subr.bf16.mxu1 %v9832_v23  ;;  %9897 = vmatprep.subr.bf16.mxu0 %v9896_v24  ;;  %v9850_v8 = vpack.c.bf16 %v7067_v49, %v7063_v27  ;;  %v7069_v23 = vld [vmem:[#allocation27 + $0x370] sm:$0xff]  ;;  %v7074_v24 = vld [vmem:[#allocation27 + $0x398] sm:$0xff] }
0x3d19   :  { %v9914_v25 = vpack.c.bf16 %v7069_v23, %v7065_v22  ;;  %v9916_v43 = vpack.c.bf16 %v7078_v1, %v7074_v24 }
0x3d1b   :  { %9835 = vmatpush1.bf16.msra.mxu1 %v9834_v0  ;;  %9899 = vmatpush1.bf16.msra.mxu0 %v9898_v51  ;;  %v9852_v0 = vpack.c.bf16 %v7076_v63, %v7072_v3  ;;  %v7075_v51 = vld [vmem:[#allocation27 + $0x3a0] sm:$0xff] }
0x3d1c   :  { %9837 = vmatprep.subr.bf16.mxu1 %v9836_v57  ;;  %9901 = vmatprep.subr.bf16.mxu0 %v9900_v42  ;;  %v9854_v41 = vpack.c.bf16 %v7075_v51, %v7071_v36  ;;  %v7077_v57 = vld [vmem:[#allocation27 + $0x3b0] sm:$0xff]  ;;  %v7082_v42 = vld [vmem:[#allocation27 + $0x3d8] sm:$0xff] }
0x3d1d   :  { %v9918_v46 = vpack.c.bf16 %v7077_v57, %v7073_v58  ;;  %v9920_v62 = vpack.c.bf16 %v7086_v40, %v7082_v42 }
0x3d1f   :  { %9839 = vmatpush1.bf16.msra.mxu1 %v9838_v16  ;;  %9903 = vmatpush1.bf16.msra.mxu0 %v9902_v53  ;;  %v9856_v16 = vpack.c.bf16 %v7084_v32, %v7080_v34  ;;  %v7083_v53 = vld [vmem:[#allocation27 + $0x3e0] sm:$0xff] }
0x3d20   :  { %9841 = vmatprep.subr.bf16.mxu1 %v9840_v44  ;;  %9905 = vmatprep.subr.bf16.mxu0 %v9904_v37  ;;  %v9858_v18 = vpack.c.bf16 %v7083_v53, %v7079_v12  ;;  %v7085_v44 = vld [vmem:[#allocation27 + $0x3f0] sm:$0xff]  ;;  %v7346_v37 = vld [vmem:[#allocation30 + $0x18] sm:$0xff] }
0x3d21   :  { %v9922_v7 = vpack.c.bf16 %v7085_v44, %v7081_v54  ;;  %v9988_v55 = vpack.c.bf16 %v7350_v2, %v7346_v37  ;;  %v7345_v2 = vld [vmem:[#allocation30 + $0x10] sm:$0xff] }
0x3d23   :  { %9843 = vmatpush1.bf16.msra.mxu1 %v9842_v14  ;;  %9907 = vmatpush1.bf16.msra.mxu0 %v9906_v9  ;;  %v9924_v14 = vpack.c.bf16 %v7348_v13, %v7344_v38  ;;  %v6299_v9 = vld [vmem:[#allocation26] sm:$0xf]  ;;  %v7343_v38 = vld [vmem:[#allocation30] sm:$0xff] }
0x3d24   :  { %9845 = vmatprep.subr.bf16.mxu1 %v9844_v48  ;;  %9909 = vmatprep.subr.bf16.mxu0 %v9908_v56  ;;  %v6486_v19 = vrot.slane %v6299_v9, %v12196_v59  ;;  %v6494_v52 = vrot.slane %v6299_v9, %v12552_v29  ;;  %v12833_v54 = vrot.slane %v6299_v9, %v12560_v28  ;;  %v7347_v13 = vld [vmem:[#allocation30 + $0x20] sm:$0xff] }
0x3d27   :  { %9847 = vmatpush1.bf16.msra.mxu1 %v9846_v10  ;;  %9911 = vmatpush1.bf16.msra.mxu0 %v9910_v47 }
0x3d28   :  { %9849 = vmatprep.subr.bf16.mxu1 %v9848_v21  ;;  %9913 = vmatprep.subr.bf16.mxu0 %v9912_v61 }
0x3d2b   :  { %9851 = vmatpush1.bf16.msra.mxu1 %v9850_v8  ;;  %9915 = vmatpush1.bf16.msra.mxu0 %v9914_v25 }
0x3d2c   :  { %9853 = vmatprep.subr.bf16.mxu1 %v9852_v0  ;;  %9917 = vmatprep.subr.bf16.mxu0 %v9916_v43 }
0x3d2f   :  { %9855 = vmatpush1.bf16.msra.mxu1 %v9854_v41  ;;  %9919 = vmatpush1.bf16.msra.mxu0 %v9918_v46 }
0x3d30   :  { %9857 = vmatprep.subr.bf16.mxu1 %v9856_v16  ;;  %9921 = vmatprep.subr.bf16.mxu0 %v9920_v62  ;;  %v12830_v62 = vrot.slane %v6299_v9, %v12191_v26  ;;  %v7354_v9 = vld [vmem:[#allocation30 + $0x58] sm:$0xff] }
0x3d33   :  { %9859 = vmatpush1.bf16.msra.mxu1 %v9858_v18  ;;  %9923 = vmatpush1.bf16.msra.mxu0 %v9922_v7 }
0x3d34   :  { %9925 = vmatprep.subr.bf16.mxu1 %v9924_v14  ;;  %9989 = vmatprep.subr.bf16.mxu0 %v9988_v55  ;;  %v7349_v55 = vld [vmem:[#allocation30 + $0x30] sm:$0xff] }
0x3dc8   :  { %v6775_v39 = vpop.f32.mrb[108].mxu1  ;;  %v12815_v48 = vpop.f32.mrb[106].mxu0 }
0x3dc9   :  { %v6777_v31 = vpop.f32.mrb[109].mxu1  ;;  %v6866_v15 = vpop.f32.mrb[107].mxu0  ;;  %v10143_v14 = vadd.f32 %v6775_v39, %v12830_v62  ;;  %v7351_v39 = vld [vmem:[#allocation30 + $0x40] sm:$0xff] }
0x3dca   :  { %v10144_v30 = vadd.f32 %v6777_v31, %v6486_v19  ;;  %v10152_v56 = vadd.f32 %v6866_v15, %v6494_v52  ;;  %v10151_v31 = vadd.f32 %v12815_v48, %v12833_v54  ;;  %v7353_v48 = vld [vmem:[#allocation30 + $0x50] sm:$0xff] }
0x3dcc   :  { %v8653_v10 = vmul.f32 -1.442695, %v10144_v30  ;;  %v8657_v11 = vmul.f32 -1.442695, %v10152_v56  ;;  %v12817_v60 = vpop.f32.mrb[110].mxu1  ;;  %v12819_v47 = vpop.f32.mrb[108].mxu0 }
0x3dcd   :  { %v6783_v33 = vpop.f32.mrb[111].mxu1  ;;  %v6872_v50 = vpop.f32.mrb[109].mxu0  ;;  %v7356_v30 = vld [vmem:[#allocation30 + $0x68] sm:$0xff]  ;;  %v7358_v56 = vld [vmem:[#allocation30 + $0x78] sm:$0xff] }
0x3dce   :  { %10595 = vpow2.f32 %v8653_v10  ;;  %v10146_v35 = vadd.f32 %v6783_v33, %v6486_v19  ;;  %v10154_v21 = vadd.f32 %v6872_v50, %v6494_v52 }
0x3dcf   :  { %10597 = vpow2.f32 %v8657_v11 }
0x3dd0   :  { %v8654_v45 = vmul.f32 -1.442695, %v10146_v35  ;;  %v8658_v27 = vmul.f32 -1.442695, %v10154_v21  ;;  %v12821_v49 = vpop.f32.mrb[112].mxu1  ;;  %v12823_v61 = vpop.f32.mrb[110].mxu0  ;;  %v9926_v35 = vpack.c.bf16 %v7347_v13, %v7343_v38  ;;  %v9990_v21 = vpack.c.bf16 %v7349_v55, %v7345_v2 }
0x3dd1   :  { %v6789_v8 = vpop.f32.mrb[113].mxu1  ;;  %v6878_v22 = vpop.f32.mrb[111].mxu0  ;;  %v7370_v38 = vld [vmem:[#allocation30 + $0xd8] sm:$0xff] }
0x3dd2   :  { %10599 = vpow2.f32 %v8654_v45  ;;  %v10148_v23 = vadd.f32 %v6789_v8, %v6486_v19  ;;  %v10156_v25 = vadd.f32 %v6878_v22, %v6494_v52  ;;  %v7355_v45 = vld [vmem:[#allocation30 + $0x60] sm:$0xff]  ;;  %v7374_v13 = vld [vmem:[#allocation30 + $0xf8] sm:$0xff] }
0x3dd3   :  { %10601 = vpow2.f32 %v8658_v27  ;;  %v10145_v27 = vadd.f32 %v12817_v60, %v12830_v62 }
0x3dd4   :  { %v8655_v3 = vmul.f32 -1.442695, %v10148_v23  ;;  %v8659_v63 = vmul.f32 -1.442695, %v10156_v25  ;;  %v12825_v24 = vpop.f32.mrb[114].mxu1  ;;  %v12827_v0 = vpop.f32.mrb[112].mxu0  ;;  %v9992_v23 = vpack.c.bf16 %v7358_v56, %v7354_v9 }
0x3dd5   :  { %v6795_v1 = vpop.f32.mrb[115].mxu1  ;;  %v6884_v36 = vpop.f32.mrb[113].mxu0  ;;  %v7357_v25 = vld [vmem:[#allocation30 + $0x70] sm:$0xff] }
0x3dd6   :  { %10603 = vpow2.f32 %v8655_v3  ;;  %v10150_v51 = vadd.f32 %v6795_v1, %v6486_v19  ;;  %v10158_v43 = vadd.f32 %v6884_v36, %v6494_v52  ;;  %v7352_v19 = vld [vmem:[#allocation30 + $0x48] sm:$0xff]  ;;  %v10153_v1 = vadd.f32 %v12819_v47, %v12833_v54  ;;  %v7369_v56 = vld [vmem:[#allocation30 + $0xd0] sm:$0xff] }
0x3dd7   :  { %10605 = vpow2.f32 %v8659_v63  ;;  %v9928_v22 = vpack.c.bf16 %v7356_v30, %v7352_v19  ;;  %v7360_v3 = vld [vmem:[#allocation30 + $0x88] sm:$0xff]  ;;  %v10147_v47 = vadd.f32 %v12821_v49, %v12830_v62  ;;  %v10149_v19 = vadd.f32 %v12825_v24, %v12830_v62  ;;  %v7371_v30 = vld [vmem:[#allocation30 + $0xe0] sm:$0xff]  ;;  %v7378_v62 = vld [vmem:[#allocation30 + $0x118] sm:$0xff] }
0x3dd8   :  { %v10596_v41 = vpop.eup %10595  ;;  %v8656_v58 = vmul.f32 -1.442695, %v10150_v51  ;;  %v8660_v34 = vmul.f32 -1.442695, %v10158_v43  ;;  %v7364_v36 = vld [vmem:[#allocation30 + $0xa8] sm:$0xff]  ;;  %v7362_v51 = vld [vmem:[#allocation30 + $0x98] sm:$0xff] }
0x3dd9   :  { %v10598_v57 = vpop.eup %10597  ;;  %v6915_v46 = vadd.f32 1.0, %v10596_v41  ;;  %v7366_v43 = vld [vmem:[#allocation30 + $0xb8] sm:$0xff]  ;;  %v7380_v24 = vld [vmem:[#allocation30 + $0x128] sm:$0xff] }
0x3dda   :  { %v6943_v32 = vadd.f32 1.0, %v10598_v57  ;;  %10607 = vpow2.f32 %v8656_v58  ;;  %v9930_v57 = vpack.c.bf16 %v7355_v45, %v7351_v39 }
0x3ddb   :  { %10609 = vrcp.f32 %v6915_v46  ;;  %v9994_v46 = vpack.c.bf16 %v7357_v25, %v7353_v48  ;;  %v7377_v48 = vld [vmem:[#allocation30 + $0x110] sm:$0xff] }
0x3ddc   :  { %v10600_v42 = vpop.eup %10599  ;;  %10611 = vrcp.f32 %v6943_v32  ;;  %v7363_v32 = vld [vmem:[#allocation30 + $0xa0] sm:$0xff]  ;;  %v7381_v25 = vld [vmem:[#allocation30 + $0x130] sm:$0xff] }
0x3ddd   :  { %v10602_v16 = vpop.eup %10601  ;;  %v6916_v40 = vadd.f32 1.0, %v10600_v42  ;;  %10613 = vpow2.f32 %v8660_v34  ;;  %v7359_v34 = vld [vmem:[#allocation30 + $0x80] sm:$0xff]  ;;  %v9932_v42 = vpack.c.bf16 %v7364_v36, %v7360_v3  ;;  %v7384_v3 = vld [vmem:[#allocation30 + $0x148] sm:$0xff]  ;;  %v10006_v36 = vpack.c.bf16 %v7381_v25, %v7377_v48  ;;  %v7422_v25 = vld [vmem:[#allocation30 + $0x278] sm:$0xff] }
0x3dde   :  { %v6944_v12 = vadd.f32 1.0, %v10602_v16  ;;  %v9996_v16 = vpack.c.bf16 %v7366_v43, %v7362_v51  ;;  %v9934_v2 = vpack.c.bf16 %v7363_v32, %v7359_v34  ;;  %v7383_v51 = vld [vmem:[#allocation30 + $0x140] sm:$0xff]  ;;  %v7396_v34 = vld [vmem:[#allocation30 + $0x1a8] sm:$0xff]  ;;  %v7394_v32 = vld [vmem:[#allocation30 + $0x198] sm:$0xff] }
0x3ddf   :  { %10615 = vrcp.f32 %v6916_v40  ;;  %v7361_v40 = vld [vmem:[#allocation30 + $0x90] sm:$0xff]  ;;  %v7387_v43 = vld [vmem:[#allocation30 + $0x160] sm:$0xff] }
0x3de0   :  { %v10604_v53 = vpop.eup %10603  ;;  %10617 = vrcp.f32 %v6944_v12  ;;  %v7365_v12 = vld [vmem:[#allocation30 + $0xb0] sm:$0xff] }
0x3de1   :  { %v10606_v18 = vpop.eup %10605  ;;  %v6917_v44 = vadd.f32 1.0, %v10604_v53  ;;  %v7368_v53 = vld [vmem:[#allocation30 + $0xc8] sm:$0xff]  ;;  %v9998_v55 = vpack.c.bf16 %v7365_v12, %v7361_v40  ;;  %v7391_v40 = vld [vmem:[#allocation30 + $0x180] sm:$0xff] }
0x3de2   :  { %v6945_v7 = vadd.f32 1.0, %v10606_v18  ;;  %v7395_v12 = vld [vmem:[#allocation30 + $0x1a0] sm:$0xff] }
0x3de3   :  { %10619 = vrcp.f32 %v6917_v44  ;;  %v10155_v44 = vadd.f32 %v12823_v61, %v12833_v54 }
0x3de4   :  { %v10608_v37 = vpop.eup %10607  ;;  %10621 = vrcp.f32 %v6945_v7  ;;  %v7372_v7 = vld [vmem:[#allocation30 + $0xe8] sm:$0xff] }
0x3de5   :  { %v10610_v52 = vpop.eup %10609  ;;  %v6918_v15 = vadd.f32 1.0, %v10608_v37  ;;  %v9936_v61 = vpack.c.bf16 %v7372_v7, %v7368_v53  ;;  %v7397_v7 = vld [vmem:[#allocation30 + $0x1b0] sm:$0xff] }
0x3de6   :  { %v10612_v10 = vpop.eup %10611  ;;  %v6927_v11 = vmul.f32 %v10610_v52, %v10143_v14  ;;  %v10000_v52 = vpack.c.bf16 %v7374_v13, %v7370_v38  ;;  %v7400_v38 = vld [vmem:[#allocation30 + $0x1c8] sm:$0xff] }
0x3de7   :  { %v10614_v33 = vpop.eup %10613  ;;  %10623 = vrcp.f32 %v6918_v15  ;;  %v6955_v50 = vmul.f32 %v10612_v10, %v10151_v31  ;;  %v7367_v15 = vld [vmem:[#allocation30 + $0xc0] sm:$0xff]  ;;  %v7373_v10 = vld [vmem:[#allocation30 + $0xf0] sm:$0xff]  ;;  %v7404_v13 = vld [vmem:[#allocation30 + $0x1e8] sm:$0xff] }
0x3de8   :  { %v6946_v8 = vadd.f32 1.0, %v10614_v33  ;;  %v10157_v33 = vadd.f32 %v12827_v0, %v12833_v54  ;;  %v9938_v39 = vpack.c.bf16 %v7371_v30, %v7367_v15  ;;  %v10002_v45 = vpack.c.bf16 %v7373_v10, %v7369_v56  ;;  %v7388_v0 = vld [vmem:[#allocation30 + $0x168] sm:$0xff]  ;;  %v7386_v54 = vld [vmem:[#allocation30 + $0x158] sm:$0xff]  ;;  %v7405_v15 = vld [vmem:[#allocation30 + $0x1f0] sm:$0xff] }
0x3de9   :  { %v10616_v63 = vpop.eup %10615  ;;  %7173 = vmatprep.mubr.f32.mxu1 %v6955_v50  ;;  %7262 = vmatprep.mubr.f32.mxu0 %v6955_v50  ;;  %v7382_v50 = vld [vmem:[#allocation30 + $0x138] sm:$0xff]  ;;  %v7408_v56 = vld [vmem:[#allocation30 + $0x208] sm:$0xff] }
0x3dea   :  { %v10618_v41 = vpop.eup %10617  ;;  %10625 = vrcp.f32 %v6946_v8  ;;  %7174 = vmatmul.mubr.f32.vlgmr.msra.gmra.mrb[116].mxu1 %v6927_v11  ;;  %7263 = vmatmul.mubr.f32.vlgmr.msra.gmra.mrb[114].mxu0 %v6927_v11  ;;  %v6928_v60 = vmul.f32 %v10616_v63, %v10145_v27  ;;  %v7376_v11 = vld [vmem:[#allocation30 + $0x108] sm:$0xff]  ;;  %v7375_v27 = vld [vmem:[#allocation30 + $0x100] sm:$0xff]  ;;  %v7390_v63 = vld [vmem:[#allocation30 + $0x178] sm:$0xff] }
0x3deb   :  { %v6956_v58 = vmul.f32 %v10618_v41, %v10153_v1  ;;  %9927 = vmatpush1.bf16.msra.mxu1 %v9926_v35  ;;  %9991 = vmatpush1.bf16.msra.mxu0 %v9990_v21  ;;  %v7379_v8 = vld [vmem:[#allocation30 + $0x120] sm:$0xff]  ;;  %v9944_v41 = vpack.c.bf16 %v7388_v0, %v7384_v3  ;;  %v7412_v10 = vld [vmem:[#allocation30 + $0x228] sm:$0xff] }
0x3dec   :  { %9929 = vmatprep.subr.bf16.mxu1 %v9928_v22  ;;  %9993 = vmatprep.subr.bf16.mxu0 %v9992_v23  ;;  %v9940_v22 = vpack.c.bf16 %v7380_v24, %v7376_v11  ;;  %v10004_v23 = vpack.c.bf16 %v7382_v50, %v7378_v62  ;;  %v9942_v1 = vpack.c.bf16 %v7379_v8, %v7375_v27  ;;  %v7410_v11 = vld [vmem:[#allocation30 + $0x218] sm:$0xff]  ;;  %v7407_v62 = vld [vmem:[#allocation30 + $0x200] sm:$0xff]  ;;  %v7416_v8 = vld [vmem:[#allocation30 + $0x248] sm:$0xff] }
0x3ded   :  { %v10620_v18 = vpop.eup %10619  ;;  %7179 = vmatprep.mubr.f32.mxu1 %v6956_v58  ;;  %7268 = vmatprep.mubr.f32.mxu0 %v6956_v58  ;;  %v7385_v58 = vld [vmem:[#allocation30 + $0x150] sm:$0xff]  ;;  %v7414_v24 = vld [vmem:[#allocation30 + $0x238] sm:$0xff]  ;;  %v7411_v50 = vld [vmem:[#allocation30 + $0x220] sm:$0xff] }
0x3dee   :  { %v10622_v37 = vpop.eup %10621  ;;  %7180 = vmatmul.mubr.f32.gmra.mrb[118].mxu1 %v6928_v60  ;;  %7269 = vmatmul.mubr.f32.gmra.mrb[116].mxu0 %v6928_v60  ;;  %v6929_v49 = vmul.f32 %v10620_v18, %v10147_v47  ;;  %v10008_v60 = vpack.c.bf16 %v7390_v63, %v7386_v54  ;;  %v7398_v47 = vld [vmem:[#allocation30 + $0x1b8] sm:$0xff]  ;;  %v7415_v3 = vld [vmem:[#allocation30 + $0x240] sm:$0xff] }
0x3def   :  { %v6957_v14 = vmul.f32 %v10622_v37, %v10155_v44  ;;  %9931 = vmatpush1.bf16.msra.mxu1 %v9930_v57  ;;  %9995 = vmatpush1.bf16.msra.mxu0 %v9994_v46  ;;  %v7389_v57 = vld [vmem:[#allocation30 + $0x170] sm:$0xff]  ;;  %v7392_v46 = vld [vmem:[#allocation30 + $0x188] sm:$0xff]  ;;  %v10012_v18 = vpack.c.bf16 %v7398_v47, %v7394_v32  ;;  %v7402_v37 = vld [vmem:[#allocation30 + $0x1d8] sm:$0xff] }
0x3df0   :  { %9933 = vmatprep.subr.bf16.mxu1 %v9932_v42  ;;  %9997 = vmatprep.subr.bf16.mxu0 %v9996_v16  ;;  %v9946_v42 = vpack.c.bf16 %v7387_v43, %v7383_v51  ;;  %v10010_v16 = vpack.c.bf16 %v7389_v57, %v7385_v58  ;;  %v9948_v53 = vpack.c.bf16 %v7396_v34, %v7392_v46  ;;  %v7393_v44 = vld [vmem:[#allocation30 + $0x190] sm:$0xff]  ;;  %v7419_v0 = vld [vmem:[#allocation30 + $0x260] sm:$0xff]  ;;  %v7424_v43 = vld [vmem:[#allocation30 + $0x288] sm:$0xff] }
0x3df1   :  { %v10624_v31 = vpop.eup %10623  ;;  %7185 = vmatprep.mubr.f32.mxu1 %v6957_v14  ;;  %7274 = vmatprep.mubr.f32.mxu0 %v6957_v14  ;;  %v9950_v14 = vpack.c.bf16 %v7395_v12, %v7391_v40  ;;  %v9962_v63 = vpack.c.bf16 %v7419_v0, %v7415_v3  ;;  %v7430_v57 = vld [vmem:[#allocation30 + $0x2b8] sm:$0xff]  ;;  %v7423_v46 = vld [vmem:[#allocation30 + $0x280] sm:$0xff]  ;;  %v7432_v12 = vld [vmem:[#allocation30 + $0x2c8] sm:$0xff] }
0x3df2   :  { %7186 = vmatmul.mubr.f32.gmra.mrb[120].mxu1 %v6929_v49  ;;  %7275 = vmatmul.mubr.f32.gmra.mrb[118].mxu0 %v6929_v49  ;;  %v6930_v9 = vmul.f32 %v10624_v31, %v10149_v19  ;;  %v7406_v49 = vld [vmem:[#allocation30 + $0x1f8] sm:$0xff]  ;;  %v9952_v19 = vpack.c.bf16 %v7404_v13, %v7400_v38  ;;  %v7401_v31 = vld [vmem:[#allocation30 + $0x1d0] sm:$0xff]  ;;  %v7427_v34 = vld [vmem:[#allocation30 + $0x2a0] sm:$0xff] }
0x3df3   :  { %9935 = vmatpush1.bf16.msra.mxu1 %v9934_v2  ;;  %9999 = vmatpush1.bf16.msra.mxu0 %v9998_v55  ;;  %v10014_v2 = vpack.c.bf16 %v7397_v7, %v7393_v44  ;;  %v7399_v55 = vld [vmem:[#allocation30 + $0x1c0] sm:$0xff]  ;;  %v9966_v47 = vpack.c.bf16 %v7427_v34, %v7423_v46  ;;  %v7438_v7 = vld [vmem:[#allocation30 + $0x2f8] sm:$0xff]  ;;  %v7456_v3 = vld [vmem:[#allocation30 + $0x388] sm:$0xff] }
0x3df4   :  { %v10626_v35 = vpop.eup %10625  ;;  %9937 = vmatprep.subr.bf16.mxu1 %v9936_v61  ;;  %10001 = vmatprep.subr.bf16.mxu0 %v10000_v52  ;;  %v10016_v61 = vpack.c.bf16 %v7406_v49, %v7402_v37  ;;  %v7403_v52 = vld [vmem:[#allocation30 + $0x1e0] sm:$0xff]  ;;  %v7460_v0 = vld [vmem:[#allocation30 + $0x3a8] sm:$0xff] }
0x3df5   :  { %v6958_v21 = vmul.f32 %v10626_v35, %v10157_v33  ;;  %v9954_v30 = vpack.c.bf16 %v7403_v52, %v7399_v55  ;;  %v9956_v33 = vpack.c.bf16 %v7412_v10, %v7408_v56  ;;  %v10020_v35 = vpack.c.bf16 %v7414_v24, %v7410_v11  ;;  %v7431_v38 = vld [vmem:[#allocation30 + $0x2c0] sm:$0xff]  ;;  %v7442_v52 = vld [vmem:[#allocation30 + $0x318] sm:$0xff]  ;;  %v7441_v11 = vld [vmem:[#allocation30 + $0x310] sm:$0xff] }
0x3df6   :  { %v7435_v13 = vld [vmem:[#allocation30 + $0x2e0] sm:$0xff]  ;;  %v7464_v46 = vld [vmem:[#allocation30 + $0x3c8] sm:$0xff] }
0x3df7   :  { %7191 = vmatprep.mubr.f32.mxu1 %v6958_v21  ;;  %7280 = vmatprep.mubr.f32.mxu0 %v6958_v21  ;;  %v9958_v21 = vpack.c.bf16 %v7411_v50, %v7407_v62  ;;  %v9970_v49 = vpack.c.bf16 %v7435_v13, %v7431_v38  ;;  %v7448_v62 = vld [vmem:[#allocation30 + $0x348] sm:$0xff]  ;;  %v7087_v38 = vld [vmem:[#allocation29] sm:$0xf] }
0x3df8   :  { %7192 = vmatmul.mubr.f32.gmra.mrb[122].mxu1 %v6930_v9  ;;  %7281 = vmatmul.mubr.f32.gmra.mrb[120].mxu0 %v6930_v9  ;;  %v10018_v9 = vpack.c.bf16 %v7405_v15, %v7401_v31  ;;  %v7446_v15 = vld [vmem:[#allocation30 + $0x338] sm:$0xff]  ;;  %v7452_v50 = vld [vmem:[#allocation30 + $0x368] sm:$0xff]  ;;  %v7096_v13 = vrot.slane %v7087_v38, %v12196_v59 }
0x3df9   :  { %9939 = vmatpush1.bf16.msra.mxu1 %v9938_v39  ;;  %10003 = vmatpush1.bf16.msra.mxu0 %v10002_v45  ;;  %v7409_v39 = vld [vmem:[#allocation30 + $0x210] sm:$0xff]  ;;  %v10036_v56 = vpack.c.bf16 %v7446_v15, %v7442_v52  ;;  %v7468_v34 = vld [vmem:[#allocation30 + $0x3e8] sm:$0xff] }
0x3dfa   :  { %9941 = vmatprep.subr.bf16.mxu1 %v9940_v22  ;;  %10005 = vmatprep.subr.bf16.mxu0 %v10004_v23  ;;  %v7413_v45 = vld [vmem:[#allocation30 + $0x230] sm:$0xff]  ;;  %v7420_v22 = vld [vmem:[#allocation30 + $0x268] sm:$0xff]  ;;  %v7418_v23 = vld [vmem:[#allocation30 + $0x258] sm:$0xff] }
0x3dfb   :  { %v10022_v27 = vpack.c.bf16 %v7413_v45, %v7409_v39  ;;  %v9960_v48 = vpack.c.bf16 %v7420_v22, %v7416_v8  ;;  %v10024_v54 = vpack.c.bf16 %v7422_v25, %v7418_v23  ;;  %v7454_v39 = vld [vmem:[#allocation30 + $0x378] sm:$0xff]  ;;  %v7447_v45 = vld [vmem:[#allocation30 + $0x340] sm:$0xff]  ;;  %v7449_v23 = vld [vmem:[#allocation30 + $0x350] sm:$0xff] }
0x3dfd   :  { %9943 = vmatpush1.bf16.msra.mxu1 %v9942_v1  ;;  %10007 = vmatpush1.bf16.msra.mxu0 %v10006_v36  ;;  %v7417_v1 = vld [vmem:[#allocation30 + $0x250] sm:$0xff] }
0x3dfe   :  { %9945 = vmatprep.subr.bf16.mxu1 %v9944_v41  ;;  %10009 = vmatprep.subr.bf16.mxu0 %v10008_v60  ;;  %v7421_v36 = vld [vmem:[#allocation30 + $0x270] sm:$0xff]  ;;  %v7428_v41 = vld [vmem:[#allocation30 + $0x2a8] sm:$0xff]  ;;  %v7426_v60 = vld [vmem:[#allocation30 + $0x298] sm:$0xff] }
0x3dff   :  { %v10026_v51 = vpack.c.bf16 %v7421_v36, %v7417_v1  ;;  %v9964_v58 = vpack.c.bf16 %v7428_v41, %v7424_v43  ;;  %v10028_v32 = vpack.c.bf16 %v7430_v57, %v7426_v60  ;;  %v7462_v1 = vld [vmem:[#allocation30 + $0x3b8] sm:$0xff]  ;;  %v7455_v36 = vld [vmem:[#allocation30 + $0x380] sm:$0xff]  ;;  %v7457_v60 = vld [vmem:[#allocation30 + $0x390] sm:$0xff] }
0x3e01   :  { %9947 = vmatpush1.bf16.msra.mxu1 %v9946_v42  ;;  %10011 = vmatpush1.bf16.msra.mxu0 %v10010_v16  ;;  %v7425_v42 = vld [vmem:[#allocation30 + $0x290] sm:$0xff] }
0x3e02   :  { %9949 = vmatprep.subr.bf16.mxu1 %v9948_v53  ;;  %10013 = vmatprep.subr.bf16.mxu0 %v10012_v18  ;;  %v7429_v16 = vld [vmem:[#allocation30 + $0x2b0] sm:$0xff]  ;;  %v7436_v53 = vld [vmem:[#allocation30 + $0x2e8] sm:$0xff]  ;;  %v7434_v18 = vld [vmem:[#allocation30 + $0x2d8] sm:$0xff] }
0x3e03   :  { %v10030_v40 = vpack.c.bf16 %v7429_v16, %v7425_v42  ;;  %v9968_v44 = vpack.c.bf16 %v7436_v53, %v7432_v12  ;;  %v10032_v37 = vpack.c.bf16 %v7438_v7, %v7434_v18  ;;  %v7470_v42 = vld [vmem:[#allocation30 + $0x3f8] sm:$0xff]  ;;  %v7463_v16 = vld [vmem:[#allocation30 + $0x3c0] sm:$0xff]  ;;  %v7465_v18 = vld [vmem:[#allocation30 + $0x3d0] sm:$0xff] }
0x3e05   :  { %9951 = vmatpush1.bf16.msra.mxu1 %v9950_v14  ;;  %10015 = vmatpush1.bf16.msra.mxu0 %v10014_v2  ;;  %v7433_v14 = vld [vmem:[#allocation30 + $0x2d0] sm:$0xff] }
0x3e06   :  { %9953 = vmatprep.subr.bf16.mxu1 %v9952_v19  ;;  %10017 = vmatprep.subr.bf16.mxu0 %v10016_v61  ;;  %v7437_v2 = vld [vmem:[#allocation30 + $0x2f0] sm:$0xff]  ;;  %v7440_v19 = vld [vmem:[#allocation30 + $0x308] sm:$0xff] }
0x3e07   :  { %v10034_v55 = vpack.c.bf16 %v7437_v2, %v7433_v14  ;;  %v7444_v61 = vld [vmem:[#allocation30 + $0x328] sm:$0xff] }
0x3e08   :  { %v9972_v31 = vpack.c.bf16 %v7444_v61, %v7440_v19 }
0x3e09   :  { %9955 = vmatpush1.bf16.msra.mxu1 %v9954_v30  ;;  %10019 = vmatpush1.bf16.msra.mxu0 %v10018_v9  ;;  %v7439_v30 = vld [vmem:[#allocation30 + $0x300] sm:$0xff] }
0x3e0a   :  { %9957 = vmatprep.subr.bf16.mxu1 %v9956_v33  ;;  %10021 = vmatprep.subr.bf16.mxu0 %v10020_v35  ;;  %v7443_v9 = vld [vmem:[#allocation30 + $0x320] sm:$0xff]  ;;  %v7445_v33 = vld [vmem:[#allocation30 + $0x330] sm:$0xff]  ;;  %v7450_v35 = vld [vmem:[#allocation30 + $0x358] sm:$0xff] }
0x3e0b   :  { %v9974_v10 = vpack.c.bf16 %v7443_v9, %v7439_v30  ;;  %v10038_v24 = vpack.c.bf16 %v7445_v33, %v7441_v11  ;;  %v10040_v8 = vpack.c.bf16 %v7454_v39, %v7450_v35 }
0x3e0d   :  { %9959 = vmatpush1.bf16.msra.mxu1 %v9958_v21  ;;  %10023 = vmatpush1.bf16.msra.mxu0 %v10022_v27  ;;  %v9976_v21 = vpack.c.bf16 %v7452_v50, %v7448_v62  ;;  %v7451_v27 = vld [vmem:[#allocation30 + $0x360] sm:$0xff] }
0x3e0e   :  { %9961 = vmatprep.subr.bf16.mxu1 %v9960_v48  ;;  %10025 = vmatprep.subr.bf16.mxu0 %v10024_v54  ;;  %v9978_v22 = vpack.c.bf16 %v7451_v27, %v7447_v45  ;;  %v7453_v48 = vld [vmem:[#allocation30 + $0x370] sm:$0xff]  ;;  %v7458_v54 = vld [vmem:[#allocation30 + $0x398] sm:$0xff] }
0x3e0f   :  { %v10042_v25 = vpack.c.bf16 %v7453_v48, %v7449_v23  ;;  %v10044_v43 = vpack.c.bf16 %v7462_v1, %v7458_v54 }
0x3e11   :  { %9963 = vmatpush1.bf16.msra.mxu1 %v9962_v63  ;;  %10027 = vmatpush1.bf16.msra.mxu0 %v10026_v51  ;;  %v9980_v63 = vpack.c.bf16 %v7460_v0, %v7456_v3  ;;  %v7459_v51 = vld [vmem:[#allocation30 + $0x3a0] sm:$0xff] }
0x3e12   :  { %9965 = vmatprep.subr.bf16.mxu1 %v9964_v58  ;;  %10029 = vmatprep.subr.bf16.mxu0 %v10028_v32  ;;  %v9982_v41 = vpack.c.bf16 %v7459_v51, %v7455_v36  ;;  %v7461_v58 = vld [vmem:[#allocation30 + $0x3b0] sm:$0xff]  ;;  %v7466_v32 = vld [vmem:[#allocation30 + $0x3d8] sm:$0xff] }
0x3e13   :  { %v10046_v57 = vpack.c.bf16 %v7461_v58, %v7457_v60  ;;  %v10048_v12 = vpack.c.bf16 %v7470_v42, %v7466_v32 }
0x3e15   :  { %9967 = vmatpush1.bf16.msra.mxu1 %v9966_v47  ;;  %10031 = vmatpush1.bf16.msra.mxu0 %v10030_v40  ;;  %v9984_v47 = vpack.c.bf16 %v7468_v34, %v7464_v46  ;;  %v7467_v40 = vld [vmem:[#allocation30 + $0x3e0] sm:$0xff]  ;;  %v7092_v34 = vrot.slane %v7087_v38, %v12191_v26 }
0x3e16   :  { %9969 = vmatprep.subr.bf16.mxu1 %v9968_v44  ;;  %10033 = vmatprep.subr.bf16.mxu0 %v10032_v37  ;;  %v9986_v53 = vpack.c.bf16 %v7467_v40, %v7463_v16  ;;  %v7469_v44 = vld [vmem:[#allocation30 + $0x3f0] sm:$0xff]  ;;  %v7104_v37 = vrot.slane %v7087_v38, %v12552_v29 }
0x3e17   :  { %v10050_v7 = vpack.c.bf16 %v7469_v44, %v7465_v18 }
0x3e19   :  { %9971 = vmatpush1.bf16.msra.mxu1 %v9970_v49  ;;  %10035 = vmatpush1.bf16.msra.mxu0 %v10034_v55 }
0x3e1a   :  { %9973 = vmatprep.subr.bf16.mxu1 %v9972_v31  ;;  %10037 = vmatprep.subr.bf16.mxu0 %v10036_v56 }
0x3e1d   :  { %9975 = vmatpush1.bf16.msra.mxu1 %v9974_v10  ;;  %10039 = vmatpush1.bf16.msra.mxu0 %v10038_v24 }
0x3e1e   :  { %9977 = vmatprep.subr.bf16.mxu1 %v9976_v21  ;;  %10041 = vmatprep.subr.bf16.mxu0 %v10040_v8 }
0x3e21   :  { %9979 = vmatpush1.bf16.msra.mxu1 %v9978_v22  ;;  %10043 = vmatpush1.bf16.msra.mxu0 %v10042_v25 }
0x3e22   :  { %9981 = vmatprep.subr.bf16.mxu1 %v9980_v63  ;;  %10045 = vmatprep.subr.bf16.mxu0 %v10044_v43 }
0x3e25   :  { %9983 = vmatpush1.bf16.msra.mxu1 %v9982_v41  ;;  %10047 = vmatpush1.bf16.msra.mxu0 %v10046_v57 }
0x3e26   :  { %9985 = vmatprep.subr.bf16.mxu1 %v9984_v47  ;;  %10049 = vmatprep.subr.bf16.mxu0 %v10048_v12  ;;  %v7100_v47 = vrot.slane %v7087_v38, %v12560_v28 }
0x3e29   :  { %9987 = vmatpush1.bf16.msra.mxu1 %v9986_v53  ;;  %10051 = vmatpush1.bf16.msra.mxu0 %v10050_v7 }
0x3ebd   :  { %v7175_v49 = vpop.f32.mrb[116].mxu1  ;;  %v7264_v14 = vpop.f32.mrb[114].mxu0 }
0x3ebe   :  { %v7177_v2 = vpop.f32.mrb[117].mxu1  ;;  %v7266_v55 = vpop.f32.mrb[115].mxu0  ;;  %v7176_v40 = vadd.f32 %v7175_v49, %v7092_v34  ;;  %v7265_v53 = vadd.f32 %v7264_v14, %v7100_v47 }
0x3ebf   :  { %v7178_v19 = vadd.f32 %v7177_v2, %v7096_v13  ;;  %v7267_v61 = vadd.f32 %v7266_v55, %v7104_v37 }
0x3ec1   :  { %v8661_v52 = vmul.f32 -1.442695, %v7178_v19  ;;  %v8665_v31 = vmul.f32 -1.442695, %v7267_v61  ;;  %v7181_v15 = vpop.f32.mrb[118].mxu1  ;;  %v7270_v30 = vpop.f32.mrb[116].mxu0 }
0x3ec2   :  { %v7183_v9 = vpop.f32.mrb[119].mxu1  ;;  %v7272_v56 = vpop.f32.mrb[117].mxu0  ;;  %v7182_v2 = vadd.f32 %v7181_v15, %v7092_v34  ;;  %v7271_v61 = vadd.f32 %v7270_v30, %v7100_v47 }
0x3ec3   :  { %10627 = vpow2.f32 %v8661_v52  ;;  %v7184_v10 = vadd.f32 %v7183_v9, %v7096_v13  ;;  %v7273_v11 = vadd.f32 %v7272_v56, %v7104_v37 }
0x3ec4   :  { %10629 = vpow2.f32 %v8665_v31 }
0x3ec5   :  { %v8662_v33 = vmul.f32 -1.442695, %v7184_v10  ;;  %v8666_v24 = vmul.f32 -1.442695, %v7273_v11  ;;  %v12852_v62 = vpop.f32.mrb[120].mxu1  ;;  %v12854_v50 = vpop.f32.mrb[118].mxu0 }
0x3ec6   :  { %v7189_v35 = vpop.f32.mrb[121].mxu1  ;;  %v7278_v21 = vpop.f32.mrb[119].mxu0  ;;  %v7188_v14 = vadd.f32 %v12852_v62, %v7092_v34  ;;  %v7277_v56 = vadd.f32 %v12854_v50, %v7100_v47 }
0x3ec7   :  { %10631 = vpow2.f32 %v8662_v33  ;;  %v7190_v39 = vadd.f32 %v7189_v35, %v7096_v13  ;;  %v7279_v45 = vadd.f32 %v7278_v21, %v7104_v37  ;;  %v7743_v21 = vld [vmem:[%s13006_s0 + $0x80] sm:$0xff] }
0x3ec8   :  { %10633 = vpow2.f32 %v8666_v24 }
0x3ec9   :  { %v8663_v27 = vmul.f32 -1.442695, %v7190_v39  ;;  %v8667_v8 = vmul.f32 -1.442695, %v7279_v45  ;;  %v7744_v39 = vld [vmem:[%s13006_s0 + $0x88] sm:$0xff] }
0x3eca   :  { %v10052_v45 = vpack.c.bf16 %v7744_v39, %v7743_v21 }
0x3ecb   :  { %10635 = vpow2.f32 %v8663_v27  ;;  %v12856_v22 = vpop.f32.mrb[122].mxu1  ;;  %v12858_v23 = vpop.f32.mrb[120].mxu0  ;;  %v7727_v27 = vld [vmem:[%s13006_s0] sm:$0xff] }
0x3ecc   :  { %10637 = vpow2.f32 %v8667_v8  ;;  %v7195_v48 = vpop.f32.mrb[123].mxu1  ;;  %v7284_v25 = vpop.f32.mrb[121].mxu0  ;;  %v7194_v11 = vadd.f32 %v12856_v22, %v7092_v34  ;;  %v7283_v24 = vadd.f32 %v12858_v23, %v7100_v47  ;;  %v7728_v8 = vld [vmem:[%s13006_s0 + $0x8] sm:$0xff]  ;;  %10053 = vmatprep.subr.bf16.mxu1 %v10052_v45  ;;  %v7745_v23 = vld [vmem:[%s13006_s0 + $0x90] sm:$0xff]  ;;  %v7734_v34 = vld [vmem:[%s13006_s0 + $0x38] sm:$0xff] }
0x3ecd   :  { %v10628_v3 = vpop.eup %10627  ;;  %v7196_v0 = vadd.f32 %v7195_v48, %v7096_v13  ;;  %v7285_v54 = vadd.f32 %v7284_v25, %v7104_v37  ;;  %v10054_v22 = vpack.c.bf16 %v7728_v8, %v7727_v27  ;;  %v7746_v48 = vld [vmem:[%s13006_s0 + $0x98] sm:$0xff]  ;;  %v7751_v47 = vld [vmem:[%s13006_s0 + $0xc0] sm:$0xff] }
0x3ece   :  { %v10630_v63 = vpop.eup %10629  ;;  %v7299_v1 = vadd.f32 1.0, %v10628_v3  ;;  %v10056_v25 = vpack.c.bf16 %v7746_v48, %v7745_v23  ;;  %v7729_v3 = vld [vmem:[%s13006_s0 + $0x10] sm:$0xff] }
0x3ecf   :  { %v7327_v36 = vadd.f32 1.0, %v10630_v63  ;;  %v8664_v51 = vmul.f32 -1.442695, %v7196_v0  ;;  %v8668_v43 = vmul.f32 -1.442695, %v7285_v54  ;;  %v7730_v0 = vld [vmem:[%s13006_s0 + $0x18] sm:$0xff] }
0x3ed0   :  { %10639 = vrcp.f32 %v7299_v1  ;;  %v10058_v54 = vpack.c.bf16 %v7730_v0, %v7729_v3  ;;  %v7747_v63 = vld [vmem:[%s13006_s0 + $0xa0] sm:$0xff]  ;;  %v7748_v1 = vld [vmem:[%s13006_s0 + $0xa8] sm:$0xff] }
0x3ed1   :  { %v10632_v41 = vpop.eup %10631  ;;  %10641 = vrcp.f32 %v7327_v36  ;;  %v10060_v36 = vpack.c.bf16 %v7748_v1, %v7747_v63 }
0x3ed2   :  { %v10634_v60 = vpop.eup %10633  ;;  %v7300_v58 = vadd.f32 1.0, %v10632_v41  ;;  %10643 = vpow2.f32 %v8664_v51  ;;  %v7731_v51 = vld [vmem:[%s13006_s0 + $0x20] sm:$0xff] }
0x3ed3   :  { %v7328_v57 = vadd.f32 1.0, %v10634_v60  ;;  %10645 = vpow2.f32 %v8668_v43  ;;  %v7732_v43 = vld [vmem:[%s13006_s0 + $0x28] sm:$0xff]  ;;  %v7749_v60 = vld [vmem:[%s13006_s0 + $0xb0] sm:$0xff] }
0x3ed4   :  { %10647 = vrcp.f32 %v7300_v58  ;;  %v10062_v41 = vpack.c.bf16 %v7732_v43, %v7731_v51  ;;  %v7750_v58 = vld [vmem:[%s13006_s0 + $0xb8] sm:$0xff] }
0x3ed5   :  { %v10636_v46 = vpop.eup %10635  ;;  %10649 = vrcp.f32 %v7328_v57  ;;  %v10064_v57 = vpack.c.bf16 %v7750_v58, %v7749_v60 }
0x3ed6   :  { %v10638_v32 = vpop.eup %10637  ;;  %v7301_v42 = vadd.f32 1.0, %v10636_v46  ;;  %v7733_v46 = vld [vmem:[%s13006_s0 + $0x30] sm:$0xff] }
0x3ed7   :  { %v7329_v16 = vadd.f32 1.0, %v10638_v32  ;;  %v10066_v32 = vpack.c.bf16 %v7734_v34, %v7733_v46 }
0x3ed8   :  { %10651 = vrcp.f32 %v7301_v42  ;;  %v7752_v42 = vld [vmem:[%s13006_s0 + $0xc8] sm:$0xff] }
0x3ed9   :  { %10653 = vrcp.f32 %v7329_v16  ;;  %v10068_v16 = vpack.c.bf16 %v7752_v42, %v7751_v47 }
0x3eda   :  { %v10640_v12 = vpop.eup %10639 }
0x3edb   :  { %v10642_v18 = vpop.eup %10641  ;;  %v7311_v44 = vmul.f32 %v10640_v12, %v7176_v40  ;;  %v7735_v40 = vld [vmem:[%s13006_s0 + $0x40] sm:$0xff]  ;;  %v7736_v12 = vld [vmem:[%s13006_s0 + $0x48] sm:$0xff] }
0x3edc   :  { %v10644_v7 = vpop.eup %10643  ;;  %v7339_v13 = vmul.f32 %v10642_v18, %v7265_v53  ;;  %v10070_v53 = vpack.c.bf16 %v7736_v12, %v7735_v40  ;;  %v7753_v18 = vld [vmem:[%s13006_s0 + $0xd0] sm:$0xff] }
0x3edd   :  { %v10646_v37 = vpop.eup %10645  ;;  %v7302_v55 = vadd.f32 1.0, %v10644_v7 }
0x3ede   :  { %v10648_v19 = vpop.eup %10647  ;;  %v7330_v52 = vadd.f32 1.0, %v10646_v37  ;;  %7557 = vmatprep.mubr.f32.mxu1 %v7339_v13  ;;  %7646 = vmatprep.mubr.f32.mxu0 %v7339_v13  ;;  %v7737_v13 = vld [vmem:[%s13006_s0 + $0x50] sm:$0xff]  ;;  %v7738_v37 = vld [vmem:[%s13006_s0 + $0x58] sm:$0xff] }
0x3edf   :  { %v10650_v38 = vpop.eup %10649  ;;  %10655 = vrcp.f32 %v7302_v55  ;;  %7558 = vmatmul.mubr.f32.vlgmr.msra.gmra.mrb[124].mxu1 %v7311_v44  ;;  %7647 = vmatmul.mubr.f32.vlgmr.msra.gmra.mrb[122].mxu0 %v7311_v44  ;;  %v7312_v49 = vmul.f32 %v10648_v19, %v7182_v2  ;;  %v7754_v44 = vld [vmem:[%s13006_s0 + $0xd8] sm:$0xff]  ;;  %v10074_v2 = vpack.c.bf16 %v7738_v37, %v7737_v13  ;;  %v7755_v55 = vld [vmem:[%s13006_s0 + $0xe0] sm:$0xff]  ;;  %v7756_v19 = vld [vmem:[%s13006_s0 + $0xe8] sm:$0xff] }
0x3ee0   :  { %10657 = vrcp.f32 %v7330_v52  ;;  %v7340_v31 = vmul.f32 %v10650_v38, %v7271_v61  ;;  %10055 = vmatpush3.bf16.msra.mxu1 %v10054_v22  ;;  %v10072_v7 = vpack.c.bf16 %v7754_v44, %v7753_v18  ;;  %v10076_v61 = vpack.c.bf16 %v7756_v19, %v7755_v55  ;;  %v7739_v52 = vld [vmem:[%s13006_s0 + $0x60] sm:$0xff]  ;;  %v7740_v38 = vld [vmem:[%s13006_s0 + $0x68] sm:$0xff] }
0x3ee1   :  { %10057 = vmatprep.subr.bf16.mxu1 %v10056_v25 }
0x3ee2   :  { %v10652_v9 = vpop.eup %10651  ;;  %7563 = vmatprep.mubr.f32.mxu1 %v7340_v31  ;;  %7652 = vmatprep.mubr.f32.mxu0 %v7340_v31  ;;  %v7757_v31 = vld [vmem:[%s13006_s0 + $0xf0] sm:$0xff] }
0x3ee3   :  { %v10654_v15 = vpop.eup %10653  ;;  %7564 = vmatmul.mubr.f32.gmra.mrb[126].mxu1 %v7312_v49  ;;  %7653 = vmatmul.mubr.f32.gmra.mrb[124].mxu0 %v7312_v49  ;;  %v7313_v30 = vmul.f32 %v10652_v9, %v7188_v14  ;;  %v10078_v49 = vpack.c.bf16 %v7740_v38, %v7739_v52  ;;  %v7758_v14 = vld [vmem:[%s13006_s0 + $0xf8] sm:$0xff] }
0x3ee4   :  { %v7341_v10 = vmul.f32 %v10654_v15, %v7277_v56  ;;  %10059 = vmatpush3.bf16.msra.mxu1 %v10058_v54  ;;  %v10080_v9 = vpack.c.bf16 %v7758_v14, %v7757_v31  ;;  %v7741_v56 = vld [vmem:[%s13006_s0 + $0x70] sm:$0xff]  ;;  %v7742_v15 = vld [vmem:[%s13006_s0 + $0x78] sm:$0xff] }
0x3ee5   :  { %10061 = vmatprep.subr.bf16.mxu1 %v10060_v36 }
0x3ee6   :  { %7569 = vmatprep.mubr.f32.mxu1 %v7341_v10  ;;  %7658 = vmatprep.mubr.f32.mxu0 %v7341_v10  ;;  %v7844_v10 = vld [vmem:[#allocation33] sm:$0xff] }
0x3ee7   :  { %7570 = vmatmul.mubr.f32.gmra.mrb[128].mxu1 %v7313_v30  ;;  %7659 = vmatmul.mubr.f32.gmra.mrb[126].mxu0 %v7313_v30  ;;  %v10082_v30 = vpack.c.bf16 %v7742_v15, %v7741_v56 }
0x3ee8   :  { %10063 = vmatpush3.bf16.msra.mxu1 %v10062_v41 }
0x3ee9   :  { %v10656_v33 = vpop.eup %10655  ;;  %10065 = vmatprep.subr.bf16.mxu1 %v10064_v57 }
0x3eea   :  { %v10658_v62 = vpop.eup %10657  ;;  %v7314_v50 = vmul.f32 %v10656_v33, %v7194_v11  ;;  %v7845_v11 = vld [vmem:[#allocation33 + $0x8] sm:$0xff] }
0x3eeb   :  { %v7342_v35 = vmul.f32 %v10658_v62, %v7283_v24  ;;  %v10084_v33 = vpack.c.bf16 %v7845_v11, %v7844_v10  ;;  %v7471_v24 = vld [vmem:[#allocation32] sm:$0xf] }
0x3eec   :  { %10067 = vmatpush3.bf16.msra.mxu1 %v10066_v32  ;;  %v7480_v62 = vrot.slane %v7471_v24, %v12196_v59  ;;  %v7484_v38 = vrot.slane %v7471_v24, %v12560_v28 }
0x3eed   :  { %7575 = vmatprep.mubr.f32.mxu1 %v7342_v35  ;;  %7664 = vmatprep.mubr.f32.mxu0 %v7342_v35 }
0x3eee   :  { %7576 = vmatmul.mubr.f32.gmra.mrb[130].mxu1 %v7314_v50  ;;  %7665 = vmatmul.mubr.f32.gmra.mrb[128].mxu0 %v7314_v50  ;;  %v7488_v50 = vrot.slane %v7471_v24, %v12552_v29 }
0x3eef   :  { %10069 = vmatprep.subr.bf16.mxu1 %v10068_v16  ;;  %10085 = vmatprep.subr.bf16.mxu0 %v10084_v33 }
0x3ef0   :  { %10071 = vmatpush3.bf16.msra.mxu1 %v10070_v53  ;;  %10087 = vmatpush3.bf16.msra.mxu0 %v10084_v33 }
0x3ef1   :  { %10073 = vmatprep.subr.bf16.mxu1 %v10072_v7 }
0x3ef4   :  { %10075 = vmatpush3.bf16.msra.mxu1 %v10074_v2 }
0x3ef5   :  { %10077 = vmatprep.subr.bf16.mxu1 %v10076_v61  ;;  %v7476_v61 = vrot.slane %v7471_v24, %v12191_v26 }
0x3ef8   :  { %10079 = vmatpush3.bf16.msra.mxu1 %v10078_v49 }
0x3ef9   :  { %10081 = vmatprep.subr.bf16.mxu1 %v10080_v9 }
0x3efc   :  { %10083 = vmatpush3.bf16.msra.mxu1 %v10082_v30 }
0x3fb2   :  { %v7559_v35 = vpop.f32.mrb[124].mxu1  ;;  %v7648_v21 = vpop.f32.mrb[122].mxu0 }
0x3fb3   :  { %v7561_v39 = vpop.f32.mrb[125].mxu1  ;;  %v7650_v45 = vpop.f32.mrb[123].mxu0  ;;  %v7560_v14 = vadd.f32 %v7559_v35, %v7476_v61  ;;  %v7649_v56 = vadd.f32 %v7648_v21, %v7484_v38 }
0x3fb4   :  { %v7562_v27 = vadd.f32 %v7561_v39, %v7480_v62  ;;  %v7651_v8 = vadd.f32 %v7650_v45, %v7488_v50 }
0x3fb6   :  { %v8669_v22 = vmul.f32 -1.442695, %v7562_v27  ;;  %v8673_v23 = vmul.f32 -1.442695, %v7651_v8  ;;  %v7565_v48 = vpop.f32.mrb[126].mxu1  ;;  %v7654_v25 = vpop.f32.mrb[124].mxu0 }
0x3fb7   :  { %v7567_v3 = vpop.f32.mrb[127].mxu1  ;;  %v7656_v0 = vpop.f32.mrb[125].mxu0  ;;  %v7655_v45 = vadd.f32 %v7654_v25, %v7484_v38 }
0x3fb8   :  { %10659 = vpow2.f32 %v8669_v22  ;;  %v7568_v54 = vadd.f32 %v7567_v3, %v7480_v62  ;;  %v7657_v63 = vadd.f32 %v7656_v0, %v7488_v50 }
0x3fb9   :  { %10661 = vpow2.f32 %v8673_v23 }
0x3fba   :  { %v8670_v1 = vmul.f32 -1.442695, %v7568_v54  ;;  %v8674_v59 = vmul.f32 -1.442695, %v7657_v63  ;;  %v7571_v36 = vpop.f32.mrb[128].mxu1  ;;  %v12900_v29 = vpop.f32.mrb[126].mxu0 }
0x3fbb   :  { %v7573_v51 = vpop.f32.mrb[129].mxu1  ;;  %v7662_v43 = vpop.f32.mrb[127].mxu0  ;;  %v7572_v35 = vadd.f32 %v7571_v36, %v7476_v61  ;;  %v7661_v21 = vadd.f32 %v12900_v29, %v7484_v38  ;;  %v7846_v36 = vld [vmem:[#allocation33 + $0x10] sm:$0xff]  ;;  %v7847_v29 = vld [vmem:[#allocation33 + $0x18] sm:$0xff] }
0x3fbc   :  { %10663 = vpow2.f32 %v8670_v1  ;;  %v7574_v41 = vadd.f32 %v7573_v51, %v7480_v62  ;;  %v7663_v60 = vadd.f32 %v7662_v43, %v7488_v50  ;;  %v10088_v51 = vpack.c.bf16 %v7847_v29, %v7846_v36 }
0x3fbd   :  { %10665 = vpow2.f32 %v8674_v59 }
0x3fbe   :  { %v8671_v58 = vmul.f32 -1.442695, %v7574_v41  ;;  %v8675_v57 = vmul.f32 -1.442695, %v7663_v60  ;;  %10089 = vmatprep.subr.bf16.mxu0 %v10088_v51 }
0x3fbf   :  { %10091 = vmatpush3.bf16.msra.mxu0 %v10088_v51  ;;  %v8175_v51 = vld [vmem:[#allocation36] sm:$0xff] }
0x3fc0   :  { %10667 = vpow2.f32 %v8671_v58 }
0x3fc1   :  { %10669 = vpow2.f32 %v8675_v57  ;;  %v7577_v46 = vpop.f32.mrb[130].mxu1  ;;  %v7666_v34 = vpop.f32.mrb[128].mxu0 }
0x3fc2   :  { %v10660_v32 = vpop.eup %10659  ;;  %v7579_v47 = vpop.f32.mrb[131].mxu1  ;;  %v7578_v25 = vadd.f32 %v7577_v46, %v7476_v61  ;;  %v7667_v54 = vadd.f32 %v7666_v34, %v7484_v38 }
0x3fc3   :  { %v7668_v42 = vpop.f32.mrb[129].mxu0  ;;  %v10662_v16 = vpop.eup %10661  ;;  %v7683_v40 = vadd.f32 1.0, %v10660_v32  ;;  %v7580_v12 = vadd.f32 %v7579_v47, %v7480_v62  ;;  %v7566_v62 = vadd.f32 %v7565_v48, %v7476_v61 }
0x3fc4   :  { %v7669_v53 = vadd.f32 %v7668_v42, %v7488_v50  ;;  %v7711_v18 = vadd.f32 1.0, %v10662_v16 }
0x3fc5   :  { %10671 = vrcp.f32 %v7683_v40  ;;  %v8672_v44 = vmul.f32 -1.442695, %v7580_v12  ;;  %v7976_v40 = vld [vmem:[%s13007_s17] sm:$0xff]  ;;  %v7977_v12 = vld [vmem:[%s13007_s17 + $0x8] sm:$0xff] }
0x3fc6   :  { %v8676_v7 = vmul.f32 -1.442695, %v7669_v53  ;;  %v10664_v13 = vpop.eup %10663  ;;  %10673 = vrcp.f32 %v7711_v18  ;;  %v10092_v53 = vpack.c.bf16 %v7977_v12, %v7976_v40  ;;  %v7978_v18 = vld [vmem:[%s13007_s17 + $0x10] sm:$0xff] }
0x3fc7   :  { %v10666_v37 = vpop.eup %10665  ;;  %v7684_v2 = vadd.f32 1.0, %v10664_v13  ;;  %10675 = vpow2.f32 %v8672_v44  ;;  %v7979_v44 = vld [vmem:[%s13007_s17 + $0x18] sm:$0xff]  ;;  %v8677_v13 = vld [vmem:[#allocation35] ss:$0 sm:$0xff] }
0x3fc8   :  { %v7712_v55 = vadd.f32 1.0, %v10666_v37  ;;  %10677 = vpow2.f32 %v8676_v7  ;;  %10093 = vmatprep.subr.bf16.mxu0 %v10092_v53  ;;  %v10096_v7 = vpack.c.bf16 %v7979_v44, %v7978_v18 }
0x3fc9   :  { %10679 = vrcp.f32 %v7684_v2 }
0x3fca   :  { %v10668_v19 = vpop.eup %10667  ;;  %10681 = vrcp.f32 %v7712_v55 }
0x3fcb   :  { %v10670_v52 = vpop.eup %10669  ;;  %v7685_v49 = vadd.f32 1.0, %v10668_v19 }
0x3fcc   :  { %v7713_v31 = vadd.f32 1.0, %v10670_v52 }
0x3fcd   :  { %10683 = vrcp.f32 %v7685_v49 }
0x3fce   :  { %10685 = vrcp.f32 %v7713_v31 }
0x3fcf   :  { %v10672_v9 = vpop.eup %10671 }
0x3fd0   :  { %v10674_v15 = vpop.eup %10673  ;;  %v7695_v30 = vmul.f32 %v10672_v9, %v7560_v14 }
0x3fd1   :  { %v10676_v10 = vpop.eup %10675  ;;  %v7723_v11 = vmul.f32 %v10674_v15, %v7649_v56 }
0x3fd2   :  { %v10678_v33 = vpop.eup %10677  ;;  %v7686_v50 = vadd.f32 1.0, %v10676_v10 }
0x3fd3   :  { %v10680_v39 = vpop.eup %10679  ;;  %v7714_v27 = vadd.f32 1.0, %v10678_v33  ;;  %7823 = vmatprep.mubr.f32.mxu1 %v7723_v11 }
0x3fd4   :  { %v10682_v8 = vpop.eup %10681  ;;  %10687 = vrcp.f32 %v7686_v50  ;;  %7824 = vmatmul.mubr.f32.vlgmr.msra.gmra.mrb[132].mxu1 %v7695_v30  ;;  %v7696_v28 = vmul.f32 %v10680_v39, %v7566_v62 }
0x3fd5   :  { %10689 = vrcp.f32 %v7714_v27  ;;  %v7724_v24 = vmul.f32 %v10682_v8, %v7655_v45 }
0x3fd7   :  { %v10684_v22 = vpop.eup %10683  ;;  %7828 = vmatprep.mubr.f32.mxu1 %v7724_v24  ;;  %v8587_v24 = vld [vmem:[#allocation20] ss:$0 sm:$0xff] }
0x3fd8   :  { %v10686_v23 = vpop.eup %10685  ;;  %7829 = vmatmul.mubr.f32.gmra.mrb[134].mxu1 %v7696_v28  ;;  %v7697_v3 = vmul.f32 %v10684_v22, %v7572_v35  ;;  %v8686_v22 = vld [vmem:[%s13008_s16] ss:$0 sm:$0xff] }
0x3fd9   :  { %v7725_v48 = vmul.f32 %v10686_v23, %v7661_v21 }
0x3fdb   :  { %7833 = vmatprep.mubr.f32.mxu1 %v7725_v48 }
0x3fdc   :  { %7834 = vmatmul.mubr.f32.gmra.mrb[136].mxu1 %v7697_v3 }
0x3fde   :  { %v10688_v0 = vpop.eup %10687 }
0x3fdf   :  { %v10690_v63 = vpop.eup %10689  ;;  %v7698_v1 = vmul.f32 %v10688_v0, %v7578_v25 }
0x3fe0   :  { %v7726_v59 = vmul.f32 %v10690_v63, %v7667_v54  ;;  %v10141_v54 = vadd.f32 %v8686_v22, %v8587_v24 }
0x3fe2   :  { %7838 = vmatprep.mubr.f32.mxu1 %v7726_v59 }
0x3fe3   :  { %7839 = vmatmul.mubr.f32.gmra.mrb[138].mxu1 %v7698_v1 }
0x3fe4   :  { %9209 = vmatprep.mubr.msk.f32.mxu1 %vm455_vm0, %v11697_v5 }
0x40a7   :  { %v8918_v43 = vpop.f32.mrb[132].mxu1 }
0x40a8   :  { %v8919_v41 = vpop.f32.mrb[133].mxu1 }
0x40a9   :  { %v8920_v60 = vadd.f32 %v8919_v41, %v8918_v43  ;;  %v8178_v43 = vld [vmem:[%s13001_s9 + $0x8] sm:$0xff] }
0x40aa   :  { %8186 = vperm.xlu1 %10342, %v8178_v43  }
0x40ab   :  { %v8921_v58 = vpop.f32.mrb[134].mxu1  ;;  %9181 = vmatprep.mubr.msk.f32.mxu0 %vm2473_vm6, %v8920_v60 }
0x40ac   :  { %v8922_v57 = vpop.f32.mrb[135].mxu1 }
0x40ad   :  { %v8923_v46 = vadd.f32 %v8922_v57, %v8921_v58  ;;  %v8176_v57 = vld [vmem:[#allocation36 + $0x8] sm:$0xff] }
0x40af   :  { %v8924_v34 = vpop.f32.mrb[136].mxu1  ;;  %9182 = vmatmul.mubr.msk.f32.vlgmr.msra.gmra.mrb[130].mxu0 %vm2473_vm6, %v8923_v46  ;;  %v8182_v46 = vpop.permute.xlu0 %8181 }
0x40b0   :  { %v8925_v5 = vpop.f32.mrb[137].mxu1  ;;  %10095 = vmatpush3.bf16.msra.mxu0 %v10092_v53 }
0x40b1   :  { %v8926_v32 = vadd.f32 %v8925_v5, %v8924_v34  ;;  %10097 = vmatprep.subr.bf16.mxu0 %v10096_v7 }
0x40b3   :  { %9184 = vmatprep.mubr.msk.f32.mxu0 %vm2473_vm6, %v8926_v32 }
0x40b4   :  { %10099 = vmatpush3.bf16.msra.mxu0 %v10096_v7 }
0x40b6   :  { %v8927_v47 = vpop.f32.mrb[138].mxu1 }
0x40b7   :  { %v8928_v42 = vpop.f32.mrb[139].mxu1 }
0x40b8   :  { %v8929_v16 = vadd.f32 %v8928_v42, %v8927_v47 }
0x40ba   :  { %9185 = vmatmul.mubr.msk.f32.gmra.mrb[132].mxu0 %vm2473_vm6, %v8929_v16 }
0x4129   :  { %v8187_v6 = vpop.permute.xlu1 %8186 }
0x4182   :  { %v9183_v37 = vpop.f32.mrb[130].mxu0 }
0x4183   :  { %v7939_v2 = vadd.f32 %v9183_v37, %v8677_v13  ;;  %v7933_v55 = vpop.f32.mrb[131].mxu0 }
0x4184   :  { %v7934_v19 = vadd.f32 %v8677_v13, %v7933_v55 }
0x4185   :  { %v8683_v61 = vmul.f32 -1.442695, %v7939_v2 }
0x4186   :  { %v8682_v52 = vmul.f32 -1.442695, %v7934_v19 }
0x4187   :  { %10691 = vpow2.f32 %v8683_v61 }
0x4188   :  { %10693 = vpow2.f32 %v8682_v52 }
0x418d   :  { %v9186_v38 = vpop.f32.mrb[132].mxu0 }
0x418e   :  { %v7949_v49 = vadd.f32 %v9186_v38, %v8677_v13  ;;  %v7943_v31 = vpop.f32.mrb[133].mxu0 }
0x418f   :  { %v7944_v14 = vadd.f32 %v8677_v13, %v7943_v31 }
0x4190   :  { %v8685_v9 = vmul.f32 -1.442695, %v7949_v49 }
0x4191   :  { %v10692_v56 = vpop.eup %10691  ;;  %v8684_v15 = vmul.f32 -1.442695, %v7944_v14 }
0x4192   :  { %v10694_v30 = vpop.eup %10693  ;;  %v7965_v10 = vadd.f32 1.0, %v10692_v56  ;;  %10695 = vpow2.f32 %v8685_v9 }
0x4193   :  { %v7964_v11 = vadd.f32 1.0, %v10694_v30  ;;  %10697 = vpow2.f32 %v8684_v15 }
0x4195   :  { %10699 = vrcp.f32 %v7964_v11 }
0x4196   :  { %10701 = vrcp.f32 %v7965_v10 }
0x419c   :  { %v10696_v33 = vpop.eup %10695 }
0x419d   :  { %v10698_v62 = vpop.eup %10697  ;;  %v7967_v50 = vadd.f32 1.0, %v10696_v33 }
0x419e   :  { %v7966_v39 = vadd.f32 1.0, %v10698_v62 }
0x419f   :  { %v10700_v45 = vpop.eup %10699 }
0x41a0   :  { %v10702_v27 = vpop.eup %10701  ;;  %10703 = vrcp.f32 %v7966_v39  ;;  %9195 = vmatprep.mubr.msk.f32.mxu0 %vm2473_vm6, %v10700_v45 }
0x41a1   :  { %10705 = vrcp.f32 %v7967_v50  ;;  %9196 = vmatmul.mubr.msk.f32.vlgmr.msra.gmra.mrb[74].mxu0 %vm2473_vm6, %v10702_v27 }
0x41aa   :  { %v10704_v8 = vpop.eup %10703 }
0x41ab   :  { %v10706_v28 = vpop.eup %10705  ;;  %9198 = vmatprep.mubr.msk.f32.mxu0 %vm2473_vm6, %v10704_v8 }
0x41ac   :  { %9199 = vmatmul.mubr.msk.f32.gmra.mrb[76].mxu0 %vm2473_vm6, %v10706_v28 }
0x41ad   :  { %9216 = vmatprep.mubr.msk.f32.mxu0 %vm455_vm0, %v8175_v51 }
0x4274   :  { %v9197_v35 = vpop.f32.mrb[74].mxu0 }
0x4275   :  { %v10135_v21 = vadd.f32 %v9197_v35, %v8587_v24  ;;  %v8065_v23 = vpop.f32.mrb[75].mxu0 }
0x4276   :  { %v10137_v3 = vadd.f32 %v8587_v24, %v8065_v23 }
0x4277   :  { %v10136_v48 = vadd.f32 %v10135_v21, %v8686_v22 }
0x4278   :  { %v10138_v25 = vadd.f32 %v10137_v3, %v8686_v22 }
0x427a   :  { %v10100_v0 = vpack.c.bf16 %v10136_v48, %v10138_v25 }
0x427c   :  { %10102 = vmatprep.subr.msk.bf16.mxu1 %vm11701_vm2, %v10100_v0 }
0x427d   :  { %10105 = vmatpush3.bf16.xpose.msk.msra.mxu1 %vm11701_vm2, %v10100_v0 }
0x427f   :  { %v9200_v63 = vpop.f32.mrb[76].mxu0 }
0x4280   :  { %v10140_v1 = vadd.f32 %v10141_v54, %v9200_v63  ;;  %v8075_v59 = vpop.f32.mrb[77].mxu0 }
0x4281   :  { %v10142_v36 = vadd.f32 %v10141_v54, %v8075_v59 }
0x4283   :  { %v10106_v29 = vpack.c.bf16 %v10140_v1, %v10142_v36 }
0x4285   :  { %10108 = vmatprep.subr.msk.bf16.mxu1 %vm11701_vm2, %v10106_v29 }
0x4286   :  { %10111 = vmatpush3.bf16.xpose.msk.msra.mxu1 %vm11701_vm2, %v10106_v29 }
0x428d   :  { %9210 = vmatmul.mubr.msk.f32.vlgmr.msra.gmra.mrb[140].mxu1 %vm455_vm0, %v11720_v20 }
0x4360   :  { %v9211_v41 = vpop.f32.mrb[140].mxu1 }
0x4361   :  { %v8166_v60 = vpop.f32.mrb[141].mxu1 }
0x4362   :  { %v10112_v58 = vpack.c.bf16 %v9211_v41, %v8166_v60 }
0x4364   :  { %10113 = vmatprep.subr.bf16.mxu0 %v10112_v58 }
0x4365   :  { %10115 = vmatpush3.bf16.msra.mxu0 %v10112_v58 }
0x4366   :  { %10116 = vmatprep.subr.bf16.mxu0 %v11351_v17  ;;  %v8276_v17 = vld [vmem:[#allocation38] sm:$0x1] }
0x4368   :  { %9217 = vmatmul.mubr.msk.f32.vlgmr.msra.gmra.mrb[134].mxu0 %vm455_vm0, %v8176_v57 }
0x4369   :  { %9223 = vmatprep.mubr.msk.f32.mxu0 %vm11352_vm4, %v11350_v4 }
0x443b   :  { %v9218_v20 = vpop.f32.mrb[134].mxu0 }
0x443c   :  { %v8267_v34 = vadd.f32 %v9218_v20, %v8187_v6  ;;  %v8261_v5 = vpop.f32.mrb[135].mxu0 }
0x443d   :  { %v8262_v32 = vadd.f32 %v8261_v5, %v8182_v46 }
0x443e   :  { %vm8271_vm2 = vcmp.ge.f32.partialorder %v8267_v34, 0.0  ;;  %v8273_v47 = vmul.f32 0.01, %v8267_v34 }
0x443f   :  { %vm8270_vm6 = vcmp.ge.f32.partialorder %v8262_v32, 0.0  ;;  %v8272_v42 = vmul.f32 0.01, %v8262_v32 }
0x4440   :  { %v8275_v16 = vsel %vm8271_vm2, %v8267_v34, %v8273_v47 }
0x4441   :  { %v8274_v40 = vsel %vm8270_vm6, %v8262_v32, %v8272_v42 }
0x4442   :  { %v10117_v12 = vpack.c.bf16 %v8275_v16, %v8274_v40 }
0x4444   :  { %10118 = vmatpush3.bf16.msra.mxu0 %v10117_v12 }
0x4447   :  { %9224 = vmatmul.mubr.msk.f32.vlgmr.msra.gmra.mrb[136].mxu0 %vm455_vm0, %v8276_v17 }
0x4448   :  { %11224 = shalt.err (!%p11221_p6)
}
0x4449   :  { %s11225_s29 = scalar_lea.hbm %s11549_s27, 256 }
0x444a   :  { %p11226_p7 = scmp.ne.s32.totalorder %s11549_s27, %s11225_s29  ;;  %p11229_p8 = scmp.lt.u32.totalorder %s11225_s29, %s11549_s27 }
0x444c   :  { %p11231_p9 = pnand %p11229_p8, %p11226_p7 }
0x444e   :  { %11234 = shalt.err (!%p11231_p9)
}
0x444f   :  { %8391 = dma.vmem_to_hbm [thread:$0]  %s8386_s28, 256, %s11549_s27, [#allocation41], %s11323_s10, %s11323_s10, %s11324_s11   ;;  %v8281_v4 = vpop.permute.xlu0 %8280  ;;  %vm8360_vm0 = vcmask 122880  }
0x4450   :  { %v8286_v53 = vrot.slane %v8281_v4, %v12191_v26  ;;  %s11361_s1 = smov [#allocation39]  }
0x4451   :  { %s8373_s6 = sshll.u32 %s11361_s1, 4  ;;  %s8374_s6 = int_to_ptr.vmem [resolvable:$true] %s8373_s6 }
0x4452   :  { %s11235_s2 = scalar_lea.vmem %s8374_s6, 32  ;;  %p11240_p11 = scmp.lt.s32.totalorder %s8374_s6, %s8374_s6 }
0x4453   :  { %p11236_p10 = scmp.ne.s32.totalorder %s8374_s6, %s11235_s2  ;;  %p11241_p12 = scmp.lt.s32.totalorder %s11235_s2, %s11235_s2 }
0x4455   :  { %p11242_p13 = por %p11241_p12, %p11240_p11 }
0x4457   :  { %p11243_p0 = pnand %p11242_p13, %p11236_p10 }
0x451a   :  { %v8356_v18 = vpop.f32.mrb[136].mxu0 }
0x451b   :  { %v8357_v44 = vadd.f32 %v8356_v18, %v8286_v53  ;;  %v9225_v7 = vpop.f32.mrb[137].mxu0 }
0x451d   :  { %8363 = vrot.lane.b32.xlu1 %v8357_v44, %s11353_s25  ;;  %8361 = vst.msk [vmem:[#allocation39] sm:$0x1] %vm8360_vm0, %v8357_v44 }
0x458f   :  { %v8364_v13 = vpop.permute.xlu1 %8363 }
0x4590   :  { %8367 = vst.msk [vmem:[#allocation39 + $0x1] sm:$0x1] %vm8360_vm0, %v8364_v13 }
0x4591   :  { %11246 = shalt.err (!%p11243_p0)
}
0x4592   :  { %s11247_s27 = scalar_lea.hbm %s11544_s19, 32 }
0x4593   :  { %p11248_p1 = scmp.ne.s32.totalorder %s11544_s19, %s11247_s27  ;;  %p11251_p2 = scmp.lt.u32.totalorder %s11247_s27, %s11544_s19 }
0x4595   :  { %p11253_p3 = pnand %p11251_p2, %p11248_p1 }
0x4597   :  { %11256 = shalt.err (!%p11253_p3)
}
0x4598   :  { %s11362_s10 = smov 1  }
0x4599   :  { %8379 = dma.vmem_to_hbm [thread:$0]  %s8374_s6, 32, %s11544_s19, [#allocation5], %s11354_s13, %s11354_s13, %s11362_s10  }
0x459a   :  { %11281 = dma.done.wait [#allocation5], 32  }
0x459b   :  { %11282 = vsyncadd [#allocation5], 4294967264 }
0x459c   :  { %11283 = dma.done.wait [#allocation41], 256  }
0x459d   :  { %11284 = vsyncadd [#allocation41], 4294967040 }
0x459e   :  { %8398 = vsyncpa [#allocation4], 1 }
0x459f   :  { %8399 = vsyncpa [#allocation7], 1 }
0x45a0   :  { %8400 = vsyncpa [#allocation10], 1 }
0x45a1   :  { %8401 = vsyncpa [#allocation13], 1 }
0x45a2   :  { %8402 = vsyncpa [#allocation16], 1 }
0x45a3   :  { %8403 = vsyncpa [#allocation19], 1 }
0x45a4   :  { %8404 = vsyncpa [#allocation22], 1 }
0x45a5   :  { %8405 = vsyncpa [#allocation25], 1 }
0x45a6   :  { %8406 = vsyncpa [#allocation28], 1 }
0x45a7   :  { %8407 = vsyncpa [#allocation31], 1 }
0x45a8   :  { %8408 = vsyncpa [#allocation34], 1 }
0x45a9   :  { %8409 = vsyncpa [#allocation37], 1 }
0x45aa   :  { %8410 = vsyncpa [#allocation5], 1 }
0x45ab   :  { %8411 = vsyncpa [#allocation41], 1 }

</bundles_post_ra>
